<compile_context>
chip_gen: v6e
topology: v6e:2x2x1
jax: 0.10.0
libtpu: 0.0.40
codegen_flags: <defaults>
</compile_context>

<pallas_src>
import math

import numpy as np

import jax
import jax.numpy as jnp
from jax.experimental import pallas as pl
from jax.experimental.pallas import tpu as pltpu


# ----------------------------------------------------------------------------
# Static shape bookkeeping (input is fixed at 3x32x32 by Linear(432, 10))
# ----------------------------------------------------------------------------
H0 = W0 = 32                       # conv1 input spatial
C0, C1, C2 = 3, 6, 12              # channels: input, conv1, conv2
K1, K2 = 5, 3                      # kernel sizes
HO1 = H0 - K1 + 1                  # 28  conv1 output spatial
HP1 = HO1 // 2                     # 14  pool1 output spatial
HO2 = HP1 - K2 + 1                 # 12  conv2 output spatial
HP2 = HO2 // 2                     # 6   pool2 output spatial
NFEAT = C2 * HP2 * HP2             # 432
NCLS = 10

XLEN = 1152                        # padded per-channel x row length (>= 1028)
WIDE1 = HO1 * W0                   # 896  conv1 wide output (row stride 32)
Q1 = 2 * W0 * (HP1 - 1) + 2 * (HP1 - 1) + 1      # 859  pool1 base positions
P1LEN = 256                        # pooled1 row length (>= 198 needed by conv2)
WIDE2 = HO2 * HP1                  # 168  conv2 wide output (row stride 14)
Q2 = 2 * HP1 * (HP2 - 1) + 2 * (HP2 - 1) + 1     # 151  pool2 base positions
P2LEN = HP2 * HP2                  # 36

NB = 8                             # images per grid step
TAP1, TAP2 = K1 * K1, K2 * K2      # 25, 9
R1 = NB * C0                       # 24  rows per conv1 tap block
R2 = NB * C1                       # 48  rows per conv2 tap block


def _pool_selection_np(q_len, hp, row_stride, pad_cols):
    """One-hot S[q, r] = 1 iff wide position q is the top-left corner of the
    2x2 pool window r (r = pi*hp + pj, row-major). Built once at trace time."""
    r = np.arange(hp * hp)
    q = (r // hp) * (2 * row_stride) + (r % hp) * 2
    s = np.zeros((q_len, pad_cols), np.float32)
    s[q, r] = 1.0
    return s


# ----------------------------------------------------------------------------
# Fused Pallas kernel: NB images (= one grid step) end to end
# ----------------------------------------------------------------------------
def lenet5_fused_kernel(x_ref, w1_ref, b1_ref, w2_ref, b2_ref,
                        s1_ref, g_ref, bl_ref, o_ref,
                        xs1, y1, p1, xs2, y2):
    """Refs (per grid step, NB images):
      x_ref : (NB*C0, XLEN)          bf16  rows = b*C0+cin, row-major 32x32, 0-padded
      w1_ref: (C1*NB, TAP1*NB*C0)    bf16  block-diagonal conv1 weight
      b1_ref: (C1*NB, 1)             f32   conv1 bias repeated per image
      w2_ref: (C2*NB, TAP2*C1*NB)    bf16  block-diagonal conv2 weight
      b2_ref: (C2*NB, 1)             f32
      s1_ref: (Q1, P1LEN)            bf16  one-hot pool-1 selection
      g_ref : (C2, Q2, NCLS)         bf16  pool-2 selection pre-folded into Wl
      bl_ref: (1, NCLS)              f32
      o_ref : (NB, NCLS)             f32   logits for these images
    Scratch:
      xs1: (TAP1*NB*C0, WIDE1) bf16, y1: (C1*NB, WIDE1) f32,
      p1 : (C1*NB, P1LEN)      bf16, xs2: (TAP2*C1*NB, WIDE2) bf16,
      y2 : (C2*NB, WIDE2)      f32
    """
    f32, bf16 = jnp.float32, jnp.bfloat16

    # ---- stack conv1 taps: one (24, 896) copy per tap covers all NB images --
    for ki in range(K1):
        for kj in range(K1):
            t = ki * K1 + kj
            off = ki * W0 + kj
            xs1[t * R1:(t + 1) * R1, :] = x_ref[:, off:off + WIDE1]

    # ---- conv1 (+bias+ReLU): ONE block-diagonal MXU matmul for the batch ----
    y1[...] = jnp.maximum(
        jnp.dot(w1_ref[...], xs1[...], preferred_element_type=f32)
        + b1_ref[...], 0.0)

    # ---- 2x2 max pool -> compact (C1*NB, 196) via one selection matmul ------
    m = jnp.maximum(
        jnp.maximum(y1[:, 0:Q1], y1[:, 1:Q1 + 1]),
        jnp.maximum(y1[:, W0:W0 + Q1], y1[:, W0 + 1:W0 + 1 + Q1]))
    p1[...] = jnp.dot(m.astype(bf16), s1_ref[...],
                      preferred_element_type=f32).astype(bf16)

    # ---- stack conv2 taps: one (48, 168) copy per tap -----------------------
    for ki in range(K2):
        for kj in range(K2):
            t = ki * K2 + kj
            off = ki * HP1 + kj
            xs2[t * R2:(t + 1) * R2, :] = p1[:, off:off + WIDE2]

    # ---- conv2 (+bias+ReLU): one block-diagonal matmul ----------------------
    y2[...] = jnp.maximum(
        jnp.dot(w2_ref[...], xs2[...], preferred_element_type=f32)
        + b2_ref[...], 0.0)

    # ---- pool2 + (C,H,W) flatten + Linear(432,10), folded -------------------
    # g_ref already contains S2 @ Wl per channel, so the shifted maxima feed
    # 12 (NB, Q2)@(Q2, 10) dots directly (rows are channel-major: c*NB + b).
    m2 = jnp.maximum(
        jnp.maximum(y2[:, 0:Q2], y2[:, 1:Q2 + 1]),
        jnp.maximum(y2[:, HP1:HP1 + Q2], y2[:, HP1 + 1:HP1 + 1 + Q2]))
    acc = jnp.zeros((NB, NCLS), f32)
    for c in range(C2):
        acc = acc + jnp.dot(m2[c * NB:(c + 1) * NB, :].astype(bf16), g_ref[c],
                            preferred_element_type=f32)
    o_ref[...] = acc + bl_ref[...]


# ----------------------------------------------------------------------------
# Forward wrapper (glue is layout plumbing only; done once per trace)
# ----------------------------------------------------------------------------
def lenet5_forward(params, x):
    """x: (B, 3, 32, 32) f32 NCHW -> logits (B, 10) f32."""
    assert x.shape[1:] == (C0, H0, W0), x.shape
    B = x.shape[0]
    f32, bf16 = jnp.float32, jnp.bfloat16

    nsteps = (B + NB - 1) // NB
    Bp = nsteps * NB
    if Bp != B:
        x = jnp.pad(x, ((0, Bp - B), (0, 0), (0, 0), (0, 0)))

    # Activations: per-image channels-major, row-major-flattened 32x32, zero-
    # padded so every conv tap is one contiguous lane slice; NB images / block.
    xw = x.reshape(Bp, C0, H0 * W0)
    xw = jnp.pad(xw, ((0, 0), (0, 0), (0, XLEN - H0 * W0))).astype(bf16)
    xw = xw.reshape(nsteps, NB * C0, XLEN)

    eye = jnp.eye(NB, dtype=f32)

    # conv1 block-diagonal weight:
    #   W[c1*NB+b, ((ki*5+kj)*NB + b')*C0 + cin] = w1[c1,cin,ki,kj] * (b==b')
    w1bd = (jnp.transpose(params["w1"], (0, 2, 3, 1))[:, None, :, :, None, :]
            * eye[None, :, None, None, :, None])
    w1bd = w1bd.reshape(C1 * NB, TAP1 * NB * C0).astype(bf16)

    # conv2 block-diagonal weight:
    #   W[c2*NB+b, ((ki*3+kj)*C1 + c1)*NB + b'] = w2[c2,c1,ki,kj] * (b==b')
    w2bd = (jnp.transpose(params["w2"], (0, 2, 3, 1))[:, None, :, :, :, None]
            * eye[None, :, None, None, None, :])
    w2bd = w2bd.reshape(C2 * NB, TAP2 * C1 * NB).astype(bf16)

    b1e = jnp.repeat(params["b1"].astype(f32), NB).reshape(C1 * NB, 1)
    b2e = jnp.repeat(params["b2"].astype(f32), NB).reshape(C2 * NB, 1)
    bl = params["bl"].reshape(1, NCLS).astype(f32)

    # Pool-1 one-hot selection; pool-2 selection folded into the linear weight
    # (PyTorch's (C,H,W) flatten order is absorbed here as well).
    s1 = jnp.asarray(_pool_selection_np(Q1, HP1, W0, P1LEN), dtype=bf16)
    s2 = _pool_selection_np(Q2, HP2, HP1, P2LEN)                     # (151, 36)
    wl3 = params["wl"].reshape(NCLS, C2, P2LEN).astype(f32)
    g = jnp.einsum("qr,ocr->cqo", jnp.asarray(s2), wl3).astype(bf16)  # (12,151,10)

    flops_step = 2 * (w1bd.shape[0] * w1bd.shape[1] * WIDE1
                      + (C1 * NB) * Q1 * P1LEN
                      + w2bd.shape[0] * w2bd.shape[1] * WIDE2
                      + C2 * NB * Q2 * NCLS)
    cost = pl.CostEstimate(
        flops=nsteps * flops_step,
        transcendentals=0,
        bytes_accessed=int(xw.size * 2 + Bp * NCLS * 4 + s1.size * 2
                           + w1bd.size * 2 + w2bd.size * 2 + g.size * 2),
    )

    out = pl.pallas_call(
        lenet5_fused_kernel,
        out_shape=jax.ShapeDtypeStruct((nsteps, NB, NCLS), jnp.float32),
        grid=(nsteps,),
        in_specs=[
            pl.BlockSpec((None, NB * C0, XLEN), lambda i: (i, 0, 0)),   # x
            pl.BlockSpec((C1 * NB, TAP1 * NB * C0), lambda i: (0, 0)),  # w1 bd
            pl.BlockSpec((C1 * NB, 1), lambda i: (0, 0)),               # b1
            pl.BlockSpec((C2 * NB, TAP2 * C1 * NB), lambda i: (0, 0)),  # w2 bd
            pl.BlockSpec((C2 * NB, 1), lambda i: (0, 0)),               # b2
            pl.BlockSpec((Q1, P1LEN), lambda i: (0, 0)),                # pool sel 1
            pl.BlockSpec((C2, Q2, NCLS), lambda i: (0, 0, 0)),          # pool2+linear
            pl.BlockSpec((1, NCLS), lambda i: (0, 0)),                  # bl
        ],
        out_specs=pl.BlockSpec((None, NB, NCLS), lambda i: (i, 0, 0)),
        scratch_shapes=[
            pltpu.VMEM((TAP1 * NB * C0, WIDE1), jnp.bfloat16),  # stacked conv1 taps
            pltpu.VMEM((C1 * NB, WIDE1), jnp.float32),          # conv1 wide (post ReLU)
            pltpu.VMEM((C1 * NB, P1LEN), jnp.bfloat16),         # pooled1
            pltpu.VMEM((TAP2 * C1 * NB, WIDE2), jnp.bfloat16),  # stacked conv2 taps
            pltpu.VMEM((C2 * NB, WIDE2), jnp.float32),          # conv2 wide (post ReLU)
        ],
        compiler_params=pltpu.CompilerParams(
            dimension_semantics=("parallel",),       # megacore split on v7x
        ),
        cost_estimate=cost,
    )(xw, w1bd, b1e, w2bd, b2e, s1, g, bl)
    return out.reshape(Bp, NCLS)[:B]


# ----------------------------------------------------------------------------
# Pure-JAX reference (f32) for a correctness sanity check
# ----------------------------------------------------------------------------
def lenet5_reference(params, x):
    hi = jax.lax.Precision.HIGHEST
    y = jax.lax.conv_general_dilated(
        x, params["w1"], (1, 1), "VALID",
        dimension_numbers=("NCHW", "OIHW", "NCHW"), precision=hi)
    y = jax.nn.relu(y + params["b1"].reshape(1, C1, 1, 1))
    y = jax.lax.reduce_window(y, -jnp.inf, jax.lax.max,
                              (1, 1, 2, 2), (1, 1, 2, 2), "VALID")
    y = jax.lax.conv_general_dilated(
        y, params["w2"], (1, 1), "VALID",
        dimension_numbers=("NCHW", "OIHW", "NCHW"), precision=hi)
    y = jax.nn.relu(y + params["b2"].reshape(1, C2, 1, 1))
    y = jax.lax.reduce_window(y, -jnp.inf, jax.lax.max,
                              (1, 1, 2, 2), (1, 1, 2, 2), "VALID")
    y = y.reshape(x.shape[0], -1)
    return jnp.dot(y, params["wl"].T, precision=hi) + params["bl"]


# ----------------------------------------------------------------------------
# Parameters (deterministic, xavier_uniform like the PyTorch module)
# ----------------------------------------------------------------------------
def _xavier_uniform(key, shape, fan_in, fan_out):
    a = math.sqrt(6.0 / (fan_in + fan_out))
    return jax.random.uniform(key, shape, jnp.float32, minval=-a, maxval=a)


def init_params(key):
    k1, k2, k3 = jax.random.split(key, 3)
    return {
        "w1": _xavier_uniform(k1, (C1, C0, K1, K1),
                              fan_in=C0 * K1 * K1, fan_out=C1 * K1 * K1),
        "b1": jnp.zeros((C1,), jnp.float32),
        "w2": _xavier_uniform(k2, (C2, C1, K2, K2),
                              fan_in=C1 * K2 * K2, fan_out=C2 * K2 * K2),
        "b2": jnp.zeros((C2,), jnp.float32),
        "wl": _xavier_uniform(k3, (NCLS, NFEAT), fan_in=NFEAT, fan_out=NCLS),
        "bl": jnp.zeros((NCLS,), jnp.float32),
    }


if __name__ == "__main__":
    key = jax.random.PRNGKey(0)
    kp, kx = jax.random.split(key)
    params = init_params(kp)
    B = 16                                                   # 2 grid steps of NB=8
    x = jax.random.normal(kx, (B, C0, H0, W0), jnp.float32)  # NCHW, like PyTorch

    fwd = jax.jit(lambda inp: lenet5_forward(params, inp))
    out = fwd(x)
    jax.block_until_ready(out)

    assert out.shape == (B, NCLS), out.shape
    assert out.dtype == jnp.float32, out.dtype

    # bf16-tolerance check against the f32 reference.
    ref = lenet5_reference(params, x)
    err = float(jnp.max(jnp.abs(out - ref)))
    assert err < 0.2, f"max abs error vs reference too large: {err}"

    print("KERNEL_OK")
</pallas_src>

<mosaic_0001>
module attributes {stable_mosaic.version = 11 : i64} {
  func.func @lenet5_fused_kernel(%arg0: i32, %arg1: memref<1x24x1152xbf16, #tpu.memory_space<vmem>>, %arg2: memref<48x600xbf16, #tpu.memory_space<vmem>>, %arg3: memref<48x1xf32, #tpu.memory_space<vmem>>, %arg4: memref<96x432xbf16, #tpu.memory_space<vmem>>, %arg5: memref<96x1xf32, #tpu.memory_space<vmem>>, %arg6: memref<859x256xbf16, #tpu.memory_space<vmem>>, %arg7: memref<12x151x10xbf16, #tpu.memory_space<vmem>>, %arg8: memref<1x10xf32, #tpu.memory_space<vmem>>, %arg9: memref<1x8x10xf32, #tpu.memory_space<vmem>>, %arg10: memref<600x896xbf16, #tpu.memory_space<vmem>>, %arg11: memref<48x896xf32, #tpu.memory_space<vmem>>, %arg12: memref<48x256xbf16, #tpu.memory_space<vmem>>, %arg13: memref<432x168xbf16, #tpu.memory_space<vmem>>, %arg14: memref<96x168xf32, #tpu.memory_space<vmem>>) attributes {dimension_semantics = [#tpu.dimension_semantics<parallel>], iteration_bounds = array<i64: 2>, scalar_prefetch = 0 : i64, scratch_operands = 5 : i64, tpu.core_type = #tpu.core_type<tc>, window_params = [{transform_indices = @transform_0, window_bounds = array<i64: 1, 24, 1152>}, {pipeline_mode = #tpu.pipeline_mode<synchronous>, transform_indices = @transform_1, window_bounds = array<i64: 48, 600>}, {pipeline_mode = #tpu.pipeline_mode<synchronous>, transform_indices = @transform_2, window_bounds = array<i64: 48, 1>}, {pipeline_mode = #tpu.pipeline_mode<synchronous>, transform_indices = @transform_3, window_bounds = array<i64: 96, 432>}, {pipeline_mode = #tpu.pipeline_mode<synchronous>, transform_indices = @transform_4, window_bounds = array<i64: 96, 1>}, {pipeline_mode = #tpu.pipeline_mode<synchronous>, transform_indices = @transform_5, window_bounds = array<i64: 859, 256>}, {pipeline_mode = #tpu.pipeline_mode<synchronous>, transform_indices = @transform_6, window_bounds = array<i64: 12, 151, 10>}, {pipeline_mode = #tpu.pipeline_mode<synchronous>, transform_indices = @transform_7, window_bounds = array<i64: 1, 10>}, {transform_indices = @transform_8, window_bounds = array<i64: 1, 8, 10>}]} {
    %c0 = arith.constant 0 : index
    %c0_0 = arith.constant 0 : index
    %c0_1 = arith.constant 0 : index
    %0 = vector.load %arg1[%c0, %c0_0, %c0_1] : memref<1x24x1152xbf16, #tpu.memory_space<vmem>>, vector<1x24x896xbf16>
    %1 = vector.shape_cast %0 : vector<1x24x896xbf16> to vector<24x896xbf16>
    %c0_2 = arith.constant 0 : index
    %c0_3 = arith.constant 0 : index
    %2 = vector.load %arg10[%c0_2, %c0_3] : memref<600x896xbf16, #tpu.memory_space<vmem>>, vector<24x896xbf16>
    tpu.vector_store %arg10[%c0_2, %c0_3], %1 {strides = array<i32>} : memref<600x896xbf16, #tpu.memory_space<vmem>>, vector<24x896xbf16>,
    %c0_4 = arith.constant 0 : index
    %c0_5 = arith.constant 0 : index
    %c1 = arith.constant 1 : index
    %3 = vector.load %arg1[%c0_4, %c0_5, %c1] : memref<1x24x1152xbf16, #tpu.memory_space<vmem>>, vector<1x24x896xbf16>
    %4 = vector.shape_cast %3 : vector<1x24x896xbf16> to vector<24x896xbf16>
    %c24 = arith.constant 24 : index
    %c0_6 = arith.constant 0 : index
    %5 = vector.load %arg10[%c24, %c0_6] : memref<600x896xbf16, #tpu.memory_space<vmem>>, vector<24x896xbf16>
    tpu.vector_store %arg10[%c24, %c0_6], %4 {strides = array<i32>} : memref<600x896xbf16, #tpu.memory_space<vmem>>, vector<24x896xbf16>,
    %c0_7 = arith.constant 0 : index
    %c0_8 = arith.constant 0 : index
    %c2 = arith.constant 2 : index
    %6 = vector.load %arg1[%c0_7, %c0_8, %c2] : memref<1x24x1152xbf16, #tpu.memory_space<vmem>>, vector<1x24x896xbf16>
    %7 = vector.shape_cast %6 : vector<1x24x896xbf16> to vector<24x896xbf16>
    %c48 = arith.constant 48 : index
    %c0_9 = arith.constant 0 : index
    %8 = vector.load %arg10[%c48, %c0_9] : memref<600x896xbf16, #tpu.memory_space<vmem>>, vector<24x896xbf16>
    tpu.vector_store %arg10[%c48, %c0_9], %7 {strides = array<i32>} : memref<600x896xbf16, #tpu.memory_space<vmem>>, vector<24x896xbf16>,
    %c0_10 = arith.constant 0 : index
    %c0_11 = arith.constant 0 : index
    %c3 = arith.constant 3 : index
    %9 = vector.load %arg1[%c0_10, %c0_11, %c3] : memref<1x24x1152xbf16, #tpu.memory_space<vmem>>, vector<1x24x896xbf16>
    %10 = vector.shape_cast %9 : vector<1x24x896xbf16> to vector<24x896xbf16>
    %c72 = arith.constant 72 : index
    %c0_12 = arith.constant 0 : index
    %11 = vector.load %arg10[%c72, %c0_12] : memref<600x896xbf16, #tpu.memory_space<vmem>>, vector<24x896xbf16>
    tpu.vector_store %arg10[%c72, %c0_12], %10 {strides = array<i32>} : memref<600x896xbf16, #tpu.memory_space<vmem>>, vector<24x896xbf16>,
    %c0_13 = arith.constant 0 : index
    %c0_14 = arith.constant 0 : index
    %c4 = arith.constant 4 : index
    %12 = vector.load %arg1[%c0_13, %c0_14, %c4] : memref<1x24x1152xbf16, #tpu.memory_space<vmem>>, vector<1x24x896xbf16>
    %13 = vector.shape_cast %12 : vector<1x24x896xbf16> to vector<24x896xbf16>
    %c96 = arith.constant 96 : index
    %c0_15 = arith.constant 0 : index
    %14 = vector.load %arg10[%c96, %c0_15] : memref<600x896xbf16, #tpu.memory_space<vmem>>, vector<24x896xbf16>
    tpu.vector_store %arg10[%c96, %c0_15], %13 {strides = array<i32>} : memref<600x896xbf16, #tpu.memory_space<vmem>>, vector<24x896xbf16>,
    %c0_16 = arith.constant 0 : index
    %c0_17 = arith.constant 0 : index
    %c32 = arith.constant 32 : index
    %15 = vector.load %arg1[%c0_16, %c0_17, %c32] : memref<1x24x1152xbf16, #tpu.memory_space<vmem>>, vector<1x24x896xbf16>
    %16 = vector.shape_cast %15 : vector<1x24x896xbf16> to vector<24x896xbf16>
    %c120 = arith.constant 120 : index
    %c0_18 = arith.constant 0 : index
    %17 = vector.load %arg10[%c120, %c0_18] : memref<600x896xbf16, #tpu.memory_space<vmem>>, vector<24x896xbf16>
    tpu.vector_store %arg10[%c120, %c0_18], %16 {strides = array<i32>} : memref<600x896xbf16, #tpu.memory_space<vmem>>, vector<24x896xbf16>,
    %c0_19 = arith.constant 0 : index
    %c0_20 = arith.constant 0 : index
    %c33 = arith.constant 33 : index
    %18 = vector.load %arg1[%c0_19, %c0_20, %c33] : memref<1x24x1152xbf16, #tpu.memory_space<vmem>>, vector<1x24x896xbf16>
    %19 = vector.shape_cast %18 : vector<1x24x896xbf16> to vector<24x896xbf16>
    %c144 = arith.constant 144 : index
    %c0_21 = arith.constant 0 : index
    %20 = vector.load %arg10[%c144, %c0_21] : memref<600x896xbf16, #tpu.memory_space<vmem>>, vector<24x896xbf16>
    tpu.vector_store %arg10[%c144, %c0_21], %19 {strides = array<i32>} : memref<600x896xbf16, #tpu.memory_space<vmem>>, vector<24x896xbf16>,
    %c0_22 = arith.constant 0 : index
    %c0_23 = arith.constant 0 : index
    %c34 = arith.constant 34 : index
    %21 = vector.load %arg1[%c0_22, %c0_23, %c34] : memref<1x24x1152xbf16, #tpu.memory_space<vmem>>, vector<1x24x896xbf16>
    %22 = vector.shape_cast %21 : vector<1x24x896xbf16> to vector<24x896xbf16>
    %c168 = arith.constant 168 : index
    %c0_24 = arith.constant 0 : index
    %23 = vector.load %arg10[%c168, %c0_24] : memref<600x896xbf16, #tpu.memory_space<vmem>>, vector<24x896xbf16>
    tpu.vector_store %arg10[%c168, %c0_24], %22 {strides = array<i32>} : memref<600x896xbf16, #tpu.memory_space<vmem>>, vector<24x896xbf16>,
    %c0_25 = arith.constant 0 : index
    %c0_26 = arith.constant 0 : index
    %c35 = arith.constant 35 : index
    %24 = vector.load %arg1[%c0_25, %c0_26, %c35] : memref<1x24x1152xbf16, #tpu.memory_space<vmem>>, vector<1x24x896xbf16>
    %25 = vector.shape_cast %24 : vector<1x24x896xbf16> to vector<24x896xbf16>
    %c192 = arith.constant 192 : index
    %c0_27 = arith.constant 0 : index
    %26 = vector.load %arg10[%c192, %c0_27] : memref<600x896xbf16, #tpu.memory_space<vmem>>, vector<24x896xbf16>
    tpu.vector_store %arg10[%c192, %c0_27], %25 {strides = array<i32>} : memref<600x896xbf16, #tpu.memory_space<vmem>>, vector<24x896xbf16>,
    %c0_28 = arith.constant 0 : index
    %c0_29 = arith.constant 0 : index
    %c36 = arith.constant 36 : index
    %27 = vector.load %arg1[%c0_28, %c0_29, %c36] : memref<1x24x1152xbf16, #tpu.memory_space<vmem>>, vector<1x24x896xbf16>
    %28 = vector.shape_cast %27 : vector<1x24x896xbf16> to vector<24x896xbf16>
    %c216 = arith.constant 216 : index
    %c0_30 = arith.constant 0 : index
    %29 = vector.load %arg10[%c216, %c0_30] : memref<600x896xbf16, #tpu.memory_space<vmem>>, vector<24x896xbf16>
    tpu.vector_store %arg10[%c216, %c0_30], %28 {strides = array<i32>} : memref<600x896xbf16, #tpu.memory_space<vmem>>, vector<24x896xbf16>,
    %c0_31 = arith.constant 0 : index
    %c0_32 = arith.constant 0 : index
    %c64 = arith.constant 64 : index
    %30 = vector.load %arg1[%c0_31, %c0_32, %c64] : memref<1x24x1152xbf16, #tpu.memory_space<vmem>>, vector<1x24x896xbf16>
    %31 = vector.shape_cast %30 : vector<1x24x896xbf16> to vector<24x896xbf16>
    %c240 = arith.constant 240 : index
    %c0_33 = arith.constant 0 : index
    %32 = vector.load %arg10[%c240, %c0_33] : memref<600x896xbf16, #tpu.memory_space<vmem>>, vector<24x896xbf16>
    tpu.vector_store %arg10[%c240, %c0_33], %31 {strides = array<i32>} : memref<600x896xbf16, #tpu.memory_space<vmem>>, vector<24x896xbf16>,
    %c0_34 = arith.constant 0 : index
    %c0_35 = arith.constant 0 : index
    %c65 = arith.constant 65 : index
    %33 = vector.load %arg1[%c0_34, %c0_35, %c65] : memref<1x24x1152xbf16, #tpu.memory_space<vmem>>, vector<1x24x896xbf16>
    %34 = vector.shape_cast %33 : vector<1x24x896xbf16> to vector<24x896xbf16>
    %c264 = arith.constant 264 : index
    %c0_36 = arith.constant 0 : index
    %35 = vector.load %arg10[%c264, %c0_36] : memref<600x896xbf16, #tpu.memory_space<vmem>>, vector<24x896xbf16>
    tpu.vector_store %arg10[%c264, %c0_36], %34 {strides = array<i32>} : memref<600x896xbf16, #tpu.memory_space<vmem>>, vector<24x896xbf16>,
    %c0_37 = arith.constant 0 : index
    %c0_38 = arith.constant 0 : index
    %c66 = arith.constant 66 : index
    %36 = vector.load %arg1[%c0_37, %c0_38, %c66] : memref<1x24x1152xbf16, #tpu.memory_space<vmem>>, vector<1x24x896xbf16>
    %37 = vector.shape_cast %36 : vector<1x24x896xbf16> to vector<24x896xbf16>
    %c288 = arith.constant 288 : index
    %c0_39 = arith.constant 0 : index
    %38 = vector.load %arg10[%c288, %c0_39] : memref<600x896xbf16, #tpu.memory_space<vmem>>, vector<24x896xbf16>
    tpu.vector_store %arg10[%c288, %c0_39], %37 {strides = array<i32>} : memref<600x896xbf16, #tpu.memory_space<vmem>>, vector<24x896xbf16>,
    %c0_40 = arith.constant 0 : index
    %c0_41 = arith.constant 0 : index
    %c67 = arith.constant 67 : index
    %39 = vector.load %arg1[%c0_40, %c0_41, %c67] : memref<1x24x1152xbf16, #tpu.memory_space<vmem>>, vector<1x24x896xbf16>
    %40 = vector.shape_cast %39 : vector<1x24x896xbf16> to vector<24x896xbf16>
    %c312 = arith.constant 312 : index
    %c0_42 = arith.constant 0 : index
    %41 = vector.load %arg10[%c312, %c0_42] : memref<600x896xbf16, #tpu.memory_space<vmem>>, vector<24x896xbf16>
    tpu.vector_store %arg10[%c312, %c0_42], %40 {strides = array<i32>} : memref<600x896xbf16, #tpu.memory_space<vmem>>, vector<24x896xbf16>,
    %c0_43 = arith.constant 0 : index
    %c0_44 = arith.constant 0 : index
    %c68 = arith.constant 68 : index
    %42 = vector.load %arg1[%c0_43, %c0_44, %c68] : memref<1x24x1152xbf16, #tpu.memory_space<vmem>>, vector<1x24x896xbf16>
    %43 = vector.shape_cast %42 : vector<1x24x896xbf16> to vector<24x896xbf16>
    %c336 = arith.constant 336 : index
    %c0_45 = arith.constant 0 : index
    %44 = vector.load %arg10[%c336, %c0_45] : memref<600x896xbf16, #tpu.memory_space<vmem>>, vector<24x896xbf16>
    tpu.vector_store %arg10[%c336, %c0_45], %43 {strides = array<i32>} : memref<600x896xbf16, #tpu.memory_space<vmem>>, vector<24x896xbf16>,
    %c0_46 = arith.constant 0 : index
    %c0_47 = arith.constant 0 : index
    %c96_48 = arith.constant 96 : index
    %45 = vector.load %arg1[%c0_46, %c0_47, %c96_48] : memref<1x24x1152xbf16, #tpu.memory_space<vmem>>, vector<1x24x896xbf16>
    %46 = vector.shape_cast %45 : vector<1x24x896xbf16> to vector<24x896xbf16>
    %c360 = arith.constant 360 : index
    %c0_49 = arith.constant 0 : index
    %47 = vector.load %arg10[%c360, %c0_49] : memref<600x896xbf16, #tpu.memory_space<vmem>>, vector<24x896xbf16>
    tpu.vector_store %arg10[%c360, %c0_49], %46 {strides = array<i32>} : memref<600x896xbf16, #tpu.memory_space<vmem>>, vector<24x896xbf16>,
    %c0_50 = arith.constant 0 : index
    %c0_51 = arith.constant 0 : index
    %c97 = arith.constant 97 : index
    %48 = vector.load %arg1[%c0_50, %c0_51, %c97] : memref<1x24x1152xbf16, #tpu.memory_space<vmem>>, vector<1x24x896xbf16>
    %49 = vector.shape_cast %48 : vector<1x24x896xbf16> to vector<24x896xbf16>
    %c384 = arith.constant 384 : index
    %c0_52 = arith.constant 0 : index
    %50 = vector.load %arg10[%c384, %c0_52] : memref<600x896xbf16, #tpu.memory_space<vmem>>, vector<24x896xbf16>
    tpu.vector_store %arg10[%c384, %c0_52], %49 {strides = array<i32>} : memref<600x896xbf16, #tpu.memory_space<vmem>>, vector<24x896xbf16>,
    %c0_53 = arith.constant 0 : index
    %c0_54 = arith.constant 0 : index
    %c98 = arith.constant 98 : index
    %51 = vector.load %arg1[%c0_53, %c0_54, %c98] : memref<1x24x1152xbf16, #tpu.memory_space<vmem>>, vector<1x24x896xbf16>
    %52 = vector.shape_cast %51 : vector<1x24x896xbf16> to vector<24x896xbf16>
    %c408 = arith.constant 408 : index
    %c0_55 = arith.constant 0 : index
    %53 = vector.load %arg10[%c408, %c0_55] : memref<600x896xbf16, #tpu.memory_space<vmem>>, vector<24x896xbf16>
    tpu.vector_store %arg10[%c408, %c0_55], %52 {strides = array<i32>} : memref<600x896xbf16, #tpu.memory_space<vmem>>, vector<24x896xbf16>,
    %c0_56 = arith.constant 0 : index
    %c0_57 = arith.constant 0 : index
    %c99 = arith.constant 99 : index
    %54 = vector.load %arg1[%c0_56, %c0_57, %c99] : memref<1x24x1152xbf16, #tpu.memory_space<vmem>>, vector<1x24x896xbf16>
    %55 = vector.shape_cast %54 : vector<1x24x896xbf16> to vector<24x896xbf16>
    %c432 = arith.constant 432 : index
    %c0_58 = arith.constant 0 : index
    %56 = vector.load %arg10[%c432, %c0_58] : memref<600x896xbf16, #tpu.memory_space<vmem>>, vector<24x896xbf16>
    tpu.vector_store %arg10[%c432, %c0_58], %55 {strides = array<i32>} : memref<600x896xbf16, #tpu.memory_space<vmem>>, vector<24x896xbf16>,
    %c0_59 = arith.constant 0 : index
    %c0_60 = arith.constant 0 : index
    %c100 = arith.constant 100 : index
    %57 = vector.load %arg1[%c0_59, %c0_60, %c100] : memref<1x24x1152xbf16, #tpu.memory_space<vmem>>, vector<1x24x896xbf16>
    %58 = vector.shape_cast %57 : vector<1x24x896xbf16> to vector<24x896xbf16>
    %c456 = arith.constant 456 : index
    %c0_61 = arith.constant 0 : index
    %59 = vector.load %arg10[%c456, %c0_61] : memref<600x896xbf16, #tpu.memory_space<vmem>>, vector<24x896xbf16>
    tpu.vector_store %arg10[%c456, %c0_61], %58 {strides = array<i32>} : memref<600x896xbf16, #tpu.memory_space<vmem>>, vector<24x896xbf16>,
    %c0_62 = arith.constant 0 : index
    %c0_63 = arith.constant 0 : index
    %c128 = arith.constant 128 : index
    %60 = vector.load %arg1[%c0_62, %c0_63, %c128] : memref<1x24x1152xbf16, #tpu.memory_space<vmem>>, vector<1x24x896xbf16>
    %61 = vector.shape_cast %60 : vector<1x24x896xbf16> to vector<24x896xbf16>
    %c480 = arith.constant 480 : index
    %c0_64 = arith.constant 0 : index
    %62 = vector.load %arg10[%c480, %c0_64] : memref<600x896xbf16, #tpu.memory_space<vmem>>, vector<24x896xbf16>
    tpu.vector_store %arg10[%c480, %c0_64], %61 {strides = array<i32>} : memref<600x896xbf16, #tpu.memory_space<vmem>>, vector<24x896xbf16>,
    %c0_65 = arith.constant 0 : index
    %c0_66 = arith.constant 0 : index
    %c129 = arith.constant 129 : index
    %63 = vector.load %arg1[%c0_65, %c0_66, %c129] : memref<1x24x1152xbf16, #tpu.memory_space<vmem>>, vector<1x24x896xbf16>
    %64 = vector.shape_cast %63 : vector<1x24x896xbf16> to vector<24x896xbf16>
    %c504 = arith.constant 504 : index
    %c0_67 = arith.constant 0 : index
    %65 = vector.load %arg10[%c504, %c0_67] : memref<600x896xbf16, #tpu.memory_space<vmem>>, vector<24x896xbf16>
    tpu.vector_store %arg10[%c504, %c0_67], %64 {strides = array<i32>} : memref<600x896xbf16, #tpu.memory_space<vmem>>, vector<24x896xbf16>,
    %c0_68 = arith.constant 0 : index
    %c0_69 = arith.constant 0 : index
    %c130 = arith.constant 130 : index
    %66 = vector.load %arg1[%c0_68, %c0_69, %c130] : memref<1x24x1152xbf16, #tpu.memory_space<vmem>>, vector<1x24x896xbf16>
    %67 = vector.shape_cast %66 : vector<1x24x896xbf16> to vector<24x896xbf16>
    %c528 = arith.constant 528 : index
    %c0_70 = arith.constant 0 : index
    %68 = vector.load %arg10[%c528, %c0_70] : memref<600x896xbf16, #tpu.memory_space<vmem>>, vector<24x896xbf16>
    tpu.vector_store %arg10[%c528, %c0_70], %67 {strides = array<i32>} : memref<600x896xbf16, #tpu.memory_space<vmem>>, vector<24x896xbf16>,
    %c0_71 = arith.constant 0 : index
    %c0_72 = arith.constant 0 : index
    %c131 = arith.constant 131 : index
    %69 = vector.load %arg1[%c0_71, %c0_72, %c131] : memref<1x24x1152xbf16, #tpu.memory_space<vmem>>, vector<1x24x896xbf16>
    %70 = vector.shape_cast %69 : vector<1x24x896xbf16> to vector<24x896xbf16>
    %c552 = arith.constant 552 : index
    %c0_73 = arith.constant 0 : index
    %71 = vector.load %arg10[%c552, %c0_73] : memref<600x896xbf16, #tpu.memory_space<vmem>>, vector<24x896xbf16>
    tpu.vector_store %arg10[%c552, %c0_73], %70 {strides = array<i32>} : memref<600x896xbf16, #tpu.memory_space<vmem>>, vector<24x896xbf16>,
    %c0_74 = arith.constant 0 : index
    %c0_75 = arith.constant 0 : index
    %c132 = arith.constant 132 : index
    %72 = vector.load %arg1[%c0_74, %c0_75, %c132] : memref<1x24x1152xbf16, #tpu.memory_space<vmem>>, vector<1x24x896xbf16>
    %73 = vector.shape_cast %72 : vector<1x24x896xbf16> to vector<24x896xbf16>
    %c576 = arith.constant 576 : index
    %c0_76 = arith.constant 0 : index
    %74 = vector.load %arg10[%c576, %c0_76] : memref<600x896xbf16, #tpu.memory_space<vmem>>, vector<24x896xbf16>
    tpu.vector_store %arg10[%c576, %c0_76], %73 {strides = array<i32>} : memref<600x896xbf16, #tpu.memory_space<vmem>>, vector<24x896xbf16>,
    %c0_77 = arith.constant 0 : index
    %c0_78 = arith.constant 0 : index
    %75 = vector.load %arg2[%c0_77, %c0_78] : memref<48x600xbf16, #tpu.memory_space<vmem>>, vector<48x600xbf16>
    %c0_79 = arith.constant 0 : index
    %c0_80 = arith.constant 0 : index
    %76 = vector.load %arg10[%c0_79, %c0_80] : memref<600x896xbf16, #tpu.memory_space<vmem>>, vector<600x896xbf16>
    %cst = arith.constant dense<0.000000e+00> : vector<48x896xf32>
    %77 = tpu.matmul %75, %76, %cst {dimension_numbers = #tpu.dot_dimension_numbers<[1], [0], [0], [1], [0, 0, 1, 1], [], []>} : vector<48x600xbf16>, vector<600x896xbf16>, vector<48x896xf32> -> vector<48x896xf32>
    %c0_81 = arith.constant 0 : index
    %c0_82 = arith.constant 0 : index
    %78 = vector.load %arg3[%c0_81, %c0_82] : memref<48x1xf32, #tpu.memory_space<vmem>>, vector<48x1xf32>
    %79 = vector.broadcast %78 : vector<48x1xf32> to vector<48x896xf32>
    %80 = arith.addf %77, %79 : vector<48x896xf32>
    %cst_83 = arith.constant 0.000000e+00 : f32
    %81 = vector.broadcast %cst_83 : f32 to vector<48x896xf32>
    %82 = arith.maximumf %80, %81 : vector<48x896xf32>
    %c0_84 = arith.constant 0 : index
    %c0_85 = arith.constant 0 : index
    %83 = vector.load %arg11[%c0_84, %c0_85] : memref<48x896xf32, #tpu.memory_space<vmem>>, vector<48x896xf32>
    tpu.vector_store %arg11[%c0_84, %c0_85], %82 {strides = array<i32>} : memref<48x896xf32, #tpu.memory_space<vmem>>, vector<48x896xf32>,
    %c0_86 = arith.constant 0 : index
    %c0_87 = arith.constant 0 : index
    %84 = vector.load %arg11[%c0_86, %c0_87] : memref<48x896xf32, #tpu.memory_space<vmem>>, vector<48x859xf32>
    %c0_88 = arith.constant 0 : index
    %c1_89 = arith.constant 1 : index
    %85 = vector.load %arg11[%c0_88, %c1_89] : memref<48x896xf32, #tpu.memory_space<vmem>>, vector<48x859xf32>
    %86 = arith.maximumf %84, %85 : vector<48x859xf32>
    %c0_90 = arith.constant 0 : index
    %c32_91 = arith.constant 32 : index
    %87 = vector.load %arg11[%c0_90, %c32_91] : memref<48x896xf32, #tpu.memory_space<vmem>>, vector<48x859xf32>
    %c0_92 = arith.constant 0 : index
    %c33_93 = arith.constant 33 : index
    %88 = vector.load %arg11[%c0_92, %c33_93] : memref<48x896xf32, #tpu.memory_space<vmem>>, vector<48x859xf32>
    %89 = arith.maximumf %87, %88 : vector<48x859xf32>
    %90 = arith.maximumf %86, %89 : vector<48x859xf32>
    %91 = arith.truncf %90 : vector<48x859xf32> to vector<48x859xbf16>
    %c0_94 = arith.constant 0 : index
    %c0_95 = arith.constant 0 : index
    %92 = vector.load %arg6[%c0_94, %c0_95] : memref<859x256xbf16, #tpu.memory_space<vmem>>, vector<859x256xbf16>
    %cst_96 = arith.constant dense<0.000000e+00> : vector<48x256xf32>
    %93 = tpu.matmul %91, %92, %cst_96 {dimension_numbers = #tpu.dot_dimension_numbers<[1], [0], [0], [1], [0, 0, 1, 1], [], []>} : vector<48x859xbf16>, vector<859x256xbf16>, vector<48x256xf32> -> vector<48x256xf32>
    %94 = arith.truncf %93 : vector<48x256xf32> to vector<48x256xbf16>
    %c0_97 = arith.constant 0 : index
    %c0_98 = arith.constant 0 : index
    %95 = vector.load %arg12[%c0_97, %c0_98] : memref<48x256xbf16, #tpu.memory_space<vmem>>, vector<48x256xbf16>
    tpu.vector_store %arg12[%c0_97, %c0_98], %94 {strides = array<i32>} : memref<48x256xbf16, #tpu.memory_space<vmem>>, vector<48x256xbf16>,
    %c0_99 = arith.constant 0 : index
    %c0_100 = arith.constant 0 : index
    %96 = vector.load %arg12[%c0_99, %c0_100] : memref<48x256xbf16, #tpu.memory_space<vmem>>, vector<48x168xbf16>
    %c0_101 = arith.constant 0 : index
    %c0_102 = arith.constant 0 : index
    %97 = vector.load %arg13[%c0_101, %c0_102] : memref<432x168xbf16, #tpu.memory_space<vmem>>, vector<48x168xbf16>
    tpu.vector_store %arg13[%c0_101, %c0_102], %96 {strides = array<i32>} : memref<432x168xbf16, #tpu.memory_space<vmem>>, vector<48x168xbf16>,
    %c0_103 = arith.constant 0 : index
    %c1_104 = arith.constant 1 : index
    %98 = vector.load %arg12[%c0_103, %c1_104] : memref<48x256xbf16, #tpu.memory_space<vmem>>, vector<48x168xbf16>
    %c48_105 = arith.constant 48 : index
    %c0_106 = arith.constant 0 : index
    %99 = vector.load %arg13[%c48_105, %c0_106] : memref<432x168xbf16, #tpu.memory_space<vmem>>, vector<48x168xbf16>
    tpu.vector_store %arg13[%c48_105, %c0_106], %98 {strides = array<i32>} : memref<432x168xbf16, #tpu.memory_space<vmem>>, vector<48x168xbf16>,
    %c0_107 = arith.constant 0 : index
    %c2_108 = arith.constant 2 : index
    %100 = vector.load %arg12[%c0_107, %c2_108] : memref<48x256xbf16, #tpu.memory_space<vmem>>, vector<48x168xbf16>
    %c96_109 = arith.constant 96 : index
    %c0_110 = arith.constant 0 : index
    %101 = vector.load %arg13[%c96_109, %c0_110] : memref<432x168xbf16, #tpu.memory_space<vmem>>, vector<48x168xbf16>
    tpu.vector_store %arg13[%c96_109, %c0_110], %100 {strides = array<i32>} : memref<432x168xbf16, #tpu.memory_space<vmem>>, vector<48x168xbf16>,
    %c0_111 = arith.constant 0 : index
    %c14 = arith.constant 14 : index
    %102 = vector.load %arg12[%c0_111, %c14] : memref<48x256xbf16, #tpu.memory_space<vmem>>, vector<48x168xbf16>
    %c144_112 = arith.constant 144 : index
    %c0_113 = arith.constant 0 : index
    %103 = vector.load %arg13[%c144_112, %c0_113] : memref<432x168xbf16, #tpu.memory_space<vmem>>, vector<48x168xbf16>
    tpu.vector_store %arg13[%c144_112, %c0_113], %102 {strides = array<i32>} : memref<432x168xbf16, #tpu.memory_space<vmem>>, vector<48x168xbf16>,
    %c0_114 = arith.constant 0 : index
    %c15 = arith.constant 15 : index
    %104 = vector.load %arg12[%c0_114, %c15] : memref<48x256xbf16, #tpu.memory_space<vmem>>, vector<48x168xbf16>
    %c192_115 = arith.constant 192 : index
    %c0_116 = arith.constant 0 : index
    %105 = vector.load %arg13[%c192_115, %c0_116] : memref<432x168xbf16, #tpu.memory_space<vmem>>, vector<48x168xbf16>
    tpu.vector_store %arg13[%c192_115, %c0_116], %104 {strides = array<i32>} : memref<432x168xbf16, #tpu.memory_space<vmem>>, vector<48x168xbf16>,
    %c0_117 = arith.constant 0 : index
    %c16 = arith.constant 16 : index
    %106 = vector.load %arg12[%c0_117, %c16] : memref<48x256xbf16, #tpu.memory_space<vmem>>, vector<48x168xbf16>
    %c240_118 = arith.constant 240 : index
    %c0_119 = arith.constant 0 : index
    %107 = vector.load %arg13[%c240_118, %c0_119] : memref<432x168xbf16, #tpu.memory_space<vmem>>, vector<48x168xbf16>
    tpu.vector_store %arg13[%c240_118, %c0_119], %106 {strides = array<i32>} : memref<432x168xbf16, #tpu.memory_space<vmem>>, vector<48x168xbf16>,
    %c0_120 = arith.constant 0 : index
    %c28 = arith.constant 28 : index
    %108 = vector.load %arg12[%c0_120, %c28] : memref<48x256xbf16, #tpu.memory_space<vmem>>, vector<48x168xbf16>
    %c288_121 = arith.constant 288 : index
    %c0_122 = arith.constant 0 : index
    %109 = vector.load %arg13[%c288_121, %c0_122] : memref<432x168xbf16, #tpu.memory_space<vmem>>, vector<48x168xbf16>
    tpu.vector_store %arg13[%c288_121, %c0_122], %108 {strides = array<i32>} : memref<432x168xbf16, #tpu.memory_space<vmem>>, vector<48x168xbf16>,
    %c0_123 = arith.constant 0 : index
    %c29 = arith.constant 29 : index
    %110 = vector.load %arg12[%c0_123, %c29] : memref<48x256xbf16, #tpu.memory_space<vmem>>, vector<48x168xbf16>
    %c336_124 = arith.constant 336 : index
    %c0_125 = arith.constant 0 : index
    %111 = vector.load %arg13[%c336_124, %c0_125] : memref<432x168xbf16, #tpu.memory_space<vmem>>, vector<48x168xbf16>
    tpu.vector_store %arg13[%c336_124, %c0_125], %110 {strides = array<i32>} : memref<432x168xbf16, #tpu.memory_space<vmem>>, vector<48x168xbf16>,
    %c0_126 = arith.constant 0 : index
    %c30 = arith.constant 30 : index
    %112 = vector.load %arg12[%c0_126, %c30] : memref<48x256xbf16, #tpu.memory_space<vmem>>, vector<48x168xbf16>
    %c384_127 = arith.constant 384 : index
    %c0_128 = arith.constant 0 : index
    %113 = vector.load %arg13[%c384_127, %c0_128] : memref<432x168xbf16, #tpu.memory_space<vmem>>, vector<48x168xbf16>
    tpu.vector_store %arg13[%c384_127, %c0_128], %112 {strides = array<i32>} : memref<432x168xbf16, #tpu.memory_space<vmem>>, vector<48x168xbf16>,
    %c0_129 = arith.constant 0 : index
    %c0_130 = arith.constant 0 : index
    %114 = vector.load %arg4[%c0_129, %c0_130] : memref<96x432xbf16, #tpu.memory_space<vmem>>, vector<96x432xbf16>
    %c0_131 = arith.constant 0 : index
    %c0_132 = arith.constant 0 : index
    %115 = vector.load %arg13[%c0_131, %c0_132] : memref<432x168xbf16, #tpu.memory_space<vmem>>, vector<432x168xbf16>
    %cst_133 = arith.constant dense<0.000000e+00> : vector<96x168xf32>
    %116 = tpu.matmul %114, %115, %cst_133 {dimension_numbers = #tpu.dot_dimension_numbers<[1], [0], [0], [1], [0, 0, 1, 1], [], []>} : vector<96x432xbf16>, vector<432x168xbf16>, vector<96x168xf32> -> vector<96x168xf32>
    %c0_134 = arith.constant 0 : index
    %c0_135 = arith.constant 0 : index
    %117 = vector.load %arg5[%c0_134, %c0_135] : memref<96x1xf32, #tpu.memory_space<vmem>>, vector<96x1xf32>
    %118 = vector.broadcast %117 : vector<96x1xf32> to vector<96x168xf32>
    %119 = arith.addf %116, %118 : vector<96x168xf32>
    %cst_136 = arith.constant 0.000000e+00 : f32
    %120 = vector.broadcast %cst_136 : f32 to vector<96x168xf32>
    %121 = arith.maximumf %119, %120 : vector<96x168xf32>
    %c0_137 = arith.constant 0 : index
    %c0_138 = arith.constant 0 : index
    %122 = vector.load %arg14[%c0_137, %c0_138] : memref<96x168xf32, #tpu.memory_space<vmem>>, vector<96x168xf32>
    tpu.vector_store %arg14[%c0_137, %c0_138], %121 {strides = array<i32>} : memref<96x168xf32, #tpu.memory_space<vmem>>, vector<96x168xf32>,
    %c0_139 = arith.constant 0 : index
    %c0_140 = arith.constant 0 : index
    %123 = vector.load %arg14[%c0_139, %c0_140] : memref<96x168xf32, #tpu.memory_space<vmem>>, vector<96x151xf32>
    %c0_141 = arith.constant 0 : index
    %c1_142 = arith.constant 1 : index
    %124 = vector.load %arg14[%c0_141, %c1_142] : memref<96x168xf32, #tpu.memory_space<vmem>>, vector<96x151xf32>
    %125 = arith.maximumf %123, %124 : vector<96x151xf32>
    %c0_143 = arith.constant 0 : index
    %c14_144 = arith.constant 14 : index
    %126 = vector.load %arg14[%c0_143, %c14_144] : memref<96x168xf32, #tpu.memory_space<vmem>>, vector<96x151xf32>
    %c0_145 = arith.constant 0 : index
    %c15_146 = arith.constant 15 : index
    %127 = vector.load %arg14[%c0_145, %c15_146] : memref<96x168xf32, #tpu.memory_space<vmem>>, vector<96x151xf32>
    %128 = arith.maximumf %126, %127 : vector<96x151xf32>
    %129 = arith.maximumf %125, %128 : vector<96x151xf32>
    %cst_147 = arith.constant 0.000000e+00 : f32
    %130 = vector.broadcast %cst_147 : f32 to vector<8x10xf32>
    %131 = vector.extract_strided_slice %129 {offsets = [0, 0], sizes = [8, 151], strides = [1, 1]} : vector<96x151xf32> to vector<8x151xf32>
    %132 = arith.truncf %131 : vector<8x151xf32> to vector<8x151xbf16>
    %c0_148 = arith.constant 0 : index
    %c0_149 = arith.constant 0 : index
    %c0_150 = arith.constant 0 : index
    %133 = vector.load %arg7[%c0_148, %c0_149, %c0_150] : memref<12x151x10xbf16, #tpu.memory_space<vmem>>, vector<1x151x10xbf16>
    %134 = vector.shape_cast %133 : vector<1x151x10xbf16> to vector<151x10xbf16>
    %cst_151 = arith.constant dense<0.000000e+00> : vector<8x10xf32>
    %135 = tpu.matmul %132, %134, %cst_151 {dimension_numbers = #tpu.dot_dimension_numbers<[1], [0], [0], [1], [0, 0, 1, 1], [], []>} : vector<8x151xbf16>, vector<151x10xbf16>, vector<8x10xf32> -> vector<8x10xf32>
    %136 = arith.addf %130, %135 : vector<8x10xf32>
    %137 = vector.extract_strided_slice %129 {offsets = [8, 0], sizes = [8, 151], strides = [1, 1]} : vector<96x151xf32> to vector<8x151xf32>
    %138 = arith.truncf %137 : vector<8x151xf32> to vector<8x151xbf16>
    %c1_152 = arith.constant 1 : index
    %c0_153 = arith.constant 0 : index
    %c0_154 = arith.constant 0 : index
    %139 = vector.load %arg7[%c1_152, %c0_153, %c0_154] : memref<12x151x10xbf16, #tpu.memory_space<vmem>>, vector<1x151x10xbf16>
    %140 = vector.shape_cast %139 : vector<1x151x10xbf16> to vector<151x10xbf16>
    %cst_155 = arith.constant dense<0.000000e+00> : vector<8x10xf32>
    %141 = tpu.matmul %138, %140, %cst_155 {dimension_numbers = #tpu.dot_dimension_numbers<[1], [0], [0], [1], [0, 0, 1, 1], [], []>} : vector<8x151xbf16>, vector<151x10xbf16>, vector<8x10xf32> -> vector<8x10xf32>
    %142 = arith.addf %136, %141 : vector<8x10xf32>
    %143 = vector.extract_strided_slice %129 {offsets = [16, 0], sizes = [8, 151], strides = [1, 1]} : vector<96x151xf32> to vector<8x151xf32>
    %144 = arith.truncf %143 : vector<8x151xf32> to vector<8x151xbf16>
    %c2_156 = arith.constant 2 : index
    %c0_157 = arith.constant 0 : index
    %c0_158 = arith.constant 0 : index
    %145 = vector.load %arg7[%c2_156, %c0_157, %c0_158] : memref<12x151x10xbf16, #tpu.memory_space<vmem>>, vector<1x151x10xbf16>
    %146 = vector.shape_cast %145 : vector<1x151x10xbf16> to vector<151x10xbf16>
    %cst_159 = arith.constant dense<0.000000e+00> : vector<8x10xf32>
    %147 = tpu.matmul %144, %146, %cst_159 {dimension_numbers = #tpu.dot_dimension_numbers<[1], [0], [0], [1], [0, 0, 1, 1], [], []>} : vector<8x151xbf16>, vector<151x10xbf16>, vector<8x10xf32> -> vector<8x10xf32>
    %148 = arith.addf %142, %147 : vector<8x10xf32>
    %149 = vector.extract_strided_slice %129 {offsets = [24, 0], sizes = [8, 151], strides = [1, 1]} : vector<96x151xf32> to vector<8x151xf32>
    %150 = arith.truncf %149 : vector<8x151xf32> to vector<8x151xbf16>
    %c3_160 = arith.constant 3 : index
    %c0_161 = arith.constant 0 : index
    %c0_162 = arith.constant 0 : index
    %151 = vector.load %arg7[%c3_160, %c0_161, %c0_162] : memref<12x151x10xbf16, #tpu.memory_space<vmem>>, vector<1x151x10xbf16>
    %152 = vector.shape_cast %151 : vector<1x151x10xbf16> to vector<151x10xbf16>
    %cst_163 = arith.constant dense<0.000000e+00> : vector<8x10xf32>
    %153 = tpu.matmul %150, %152, %cst_163 {dimension_numbers = #tpu.dot_dimension_numbers<[1], [0], [0], [1], [0, 0, 1, 1], [], []>} : vector<8x151xbf16>, vector<151x10xbf16>, vector<8x10xf32> -> vector<8x10xf32>
    %154 = arith.addf %148, %153 : vector<8x10xf32>
    %155 = vector.extract_strided_slice %129 {offsets = [32, 0], sizes = [8, 151], strides = [1, 1]} : vector<96x151xf32> to vector<8x151xf32>
    %156 = arith.truncf %155 : vector<8x151xf32> to vector<8x151xbf16>
    %c4_164 = arith.constant 4 : index
    %c0_165 = arith.constant 0 : index
    %c0_166 = arith.constant 0 : index
    %157 = vector.load %arg7[%c4_164, %c0_165, %c0_166] : memref<12x151x10xbf16, #tpu.memory_space<vmem>>, vector<1x151x10xbf16>
    %158 = vector.shape_cast %157 : vector<1x151x10xbf16> to vector<151x10xbf16>
    %cst_167 = arith.constant dense<0.000000e+00> : vector<8x10xf32>
    %159 = tpu.matmul %156, %158, %cst_167 {dimension_numbers = #tpu.dot_dimension_numbers<[1], [0], [0], [1], [0, 0, 1, 1], [], []>} : vector<8x151xbf16>, vector<151x10xbf16>, vector<8x10xf32> -> vector<8x10xf32>
    %160 = arith.addf %154, %159 : vector<8x10xf32>
    %161 = vector.extract_strided_slice %129 {offsets = [40, 0], sizes = [8, 151], strides = [1, 1]} : vector<96x151xf32> to vector<8x151xf32>
    %162 = arith.truncf %161 : vector<8x151xf32> to vector<8x151xbf16>
    %c5 = arith.constant 5 : index
    %c0_168 = arith.constant 0 : index
    %c0_169 = arith.constant 0 : index
    %163 = vector.load %arg7[%c5, %c0_168, %c0_169] : memref<12x151x10xbf16, #tpu.memory_space<vmem>>, vector<1x151x10xbf16>
    %164 = vector.shape_cast %163 : vector<1x151x10xbf16> to vector<151x10xbf16>
    %cst_170 = arith.constant dense<0.000000e+00> : vector<8x10xf32>
    %165 = tpu.matmul %162, %164, %cst_170 {dimension_numbers = #tpu.dot_dimension_numbers<[1], [0], [0], [1], [0, 0, 1, 1], [], []>} : vector<8x151xbf16>, vector<151x10xbf16>, vector<8x10xf32> -> vector<8x10xf32>
    %166 = arith.addf %160, %165 : vector<8x10xf32>
    %167 = vector.extract_strided_slice %129 {offsets = [48, 0], sizes = [8, 151], strides = [1, 1]} : vector<96x151xf32> to vector<8x151xf32>
    %168 = arith.truncf %167 : vector<8x151xf32> to vector<8x151xbf16>
    %c6 = arith.constant 6 : index
    %c0_171 = arith.constant 0 : index
    %c0_172 = arith.constant 0 : index
    %169 = vector.load %arg7[%c6, %c0_171, %c0_172] : memref<12x151x10xbf16, #tpu.memory_space<vmem>>, vector<1x151x10xbf16>
    %170 = vector.shape_cast %169 : vector<1x151x10xbf16> to vector<151x10xbf16>
    %cst_173 = arith.constant dense<0.000000e+00> : vector<8x10xf32>
    %171 = tpu.matmul %168, %170, %cst_173 {dimension_numbers = #tpu.dot_dimension_numbers<[1], [0], [0], [1], [0, 0, 1, 1], [], []>} : vector<8x151xbf16>, vector<151x10xbf16>, vector<8x10xf32> -> vector<8x10xf32>
    %172 = arith.addf %166, %171 : vector<8x10xf32>
    %173 = vector.extract_strided_slice %129 {offsets = [56, 0], sizes = [8, 151], strides = [1, 1]} : vector<96x151xf32> to vector<8x151xf32>
    %174 = arith.truncf %173 : vector<8x151xf32> to vector<8x151xbf16>
    %c7 = arith.constant 7 : index
    %c0_174 = arith.constant 0 : index
    %c0_175 = arith.constant 0 : index
    %175 = vector.load %arg7[%c7, %c0_174, %c0_175] : memref<12x151x10xbf16, #tpu.memory_space<vmem>>, vector<1x151x10xbf16>
    %176 = vector.shape_cast %175 : vector<1x151x10xbf16> to vector<151x10xbf16>
    %cst_176 = arith.constant dense<0.000000e+00> : vector<8x10xf32>
    %177 = tpu.matmul %174, %176, %cst_176 {dimension_numbers = #tpu.dot_dimension_numbers<[1], [0], [0], [1], [0, 0, 1, 1], [], []>} : vector<8x151xbf16>, vector<151x10xbf16>, vector<8x10xf32> -> vector<8x10xf32>
    %178 = arith.addf %172, %177 : vector<8x10xf32>
    %179 = vector.extract_strided_slice %129 {offsets = [64, 0], sizes = [8, 151], strides = [1, 1]} : vector<96x151xf32> to vector<8x151xf32>
    %180 = arith.truncf %179 : vector<8x151xf32> to vector<8x151xbf16>
    %c8 = arith.constant 8 : index
    %c0_177 = arith.constant 0 : index
    %c0_178 = arith.constant 0 : index
    %181 = vector.load %arg7[%c8, %c0_177, %c0_178] : memref<12x151x10xbf16, #tpu.memory_space<vmem>>, vector<1x151x10xbf16>
    %182 = vector.shape_cast %181 : vector<1x151x10xbf16> to vector<151x10xbf16>
    %cst_179 = arith.constant dense<0.000000e+00> : vector<8x10xf32>
    %183 = tpu.matmul %180, %182, %cst_179 {dimension_numbers = #tpu.dot_dimension_numbers<[1], [0], [0], [1], [0, 0, 1, 1], [], []>} : vector<8x151xbf16>, vector<151x10xbf16>, vector<8x10xf32> -> vector<8x10xf32>
    %184 = arith.addf %178, %183 : vector<8x10xf32>
    %185 = vector.extract_strided_slice %129 {offsets = [72, 0], sizes = [8, 151], strides = [1, 1]} : vector<96x151xf32> to vector<8x151xf32>
    %186 = arith.truncf %185 : vector<8x151xf32> to vector<8x151xbf16>
    %c9 = arith.constant 9 : index
    %c0_180 = arith.constant 0 : index
    %c0_181 = arith.constant 0 : index
    %187 = vector.load %arg7[%c9, %c0_180, %c0_181] : memref<12x151x10xbf16, #tpu.memory_space<vmem>>, vector<1x151x10xbf16>
    %188 = vector.shape_cast %187 : vector<1x151x10xbf16> to vector<151x10xbf16>
    %cst_182 = arith.constant dense<0.000000e+00> : vector<8x10xf32>
    %189 = tpu.matmul %186, %188, %cst_182 {dimension_numbers = #tpu.dot_dimension_numbers<[1], [0], [0], [1], [0, 0, 1, 1], [], []>} : vector<8x151xbf16>, vector<151x10xbf16>, vector<8x10xf32> -> vector<8x10xf32>
    %190 = arith.addf %184, %189 : vector<8x10xf32>
    %191 = vector.extract_strided_slice %129 {offsets = [80, 0], sizes = [8, 151], strides = [1, 1]} : vector<96x151xf32> to vector<8x151xf32>
    %192 = arith.truncf %191 : vector<8x151xf32> to vector<8x151xbf16>
    %c10 = arith.constant 10 : index
    %c0_183 = arith.constant 0 : index
    %c0_184 = arith.constant 0 : index
    %193 = vector.load %arg7[%c10, %c0_183, %c0_184] : memref<12x151x10xbf16, #tpu.memory_space<vmem>>, vector<1x151x10xbf16>
    %194 = vector.shape_cast %193 : vector<1x151x10xbf16> to vector<151x10xbf16>
    %cst_185 = arith.constant dense<0.000000e+00> : vector<8x10xf32>
    %195 = tpu.matmul %192, %194, %cst_185 {dimension_numbers = #tpu.dot_dimension_numbers<[1], [0], [0], [1], [0, 0, 1, 1], [], []>} : vector<8x151xbf16>, vector<151x10xbf16>, vector<8x10xf32> -> vector<8x10xf32>
    %196 = arith.addf %190, %195 : vector<8x10xf32>
    %197 = vector.extract_strided_slice %129 {offsets = [88, 0], sizes = [8, 151], strides = [1, 1]} : vector<96x151xf32> to vector<8x151xf32>
    %198 = arith.truncf %197 : vector<8x151xf32> to vector<8x151xbf16>
    %c11 = arith.constant 11 : index
    %c0_186 = arith.constant 0 : index
    %c0_187 = arith.constant 0 : index
    %199 = vector.load %arg7[%c11, %c0_186, %c0_187] : memref<12x151x10xbf16, #tpu.memory_space<vmem>>, vector<1x151x10xbf16>
    %200 = vector.shape_cast %199 : vector<1x151x10xbf16> to vector<151x10xbf16>
    %cst_188 = arith.constant dense<0.000000e+00> : vector<8x10xf32>
    %201 = tpu.matmul %198, %200, %cst_188 {dimension_numbers = #tpu.dot_dimension_numbers<[1], [0], [0], [1], [0, 0, 1, 1], [], []>} : vector<8x151xbf16>, vector<151x10xbf16>, vector<8x10xf32> -> vector<8x10xf32>
    %202 = arith.addf %196, %201 : vector<8x10xf32>
    %c0_189 = arith.constant 0 : index
    %c0_190 = arith.constant 0 : index
    %203 = vector.load %arg8[%c0_189, %c0_190] : memref<1x10xf32, #tpu.memory_space<vmem>>, vector<1x10xf32>
    %204 = vector.broadcast %203 : vector<1x10xf32> to vector<8x10xf32>
    %205 = arith.addf %202, %204 : vector<8x10xf32>
    %c0_191 = arith.constant 0 : index
    %c0_192 = arith.constant 0 : index
    %c0_193 = arith.constant 0 : index
    %206 = vector.load %arg9[%c0_191, %c0_192, %c0_193] : memref<1x8x10xf32, #tpu.memory_space<vmem>>, vector<1x8x10xf32>
    %207 = vector.shape_cast %206 : vector<1x8x10xf32> to vector<8x10xf32>
    %208 = vector.shape_cast %205 : vector<8x10xf32> to vector<1x8x10xf32>
    tpu.vector_store %arg9[%c0_191, %c0_192, %c0_193], %208 {strides = array<i32>} : memref<1x8x10xf32, #tpu.memory_space<vmem>>, vector<1x8x10xf32>,
    return
  }
  func.func @transform_0(%arg0: i32) -> (i32, i32, i32) {
    %c0_i32 = arith.constant 0 : i32
    %c0_i32_0 = arith.constant 0 : i32
    %c0_i32_1 = arith.constant 0 : i32
    return %arg0, %c0_i32, %c0_i32_0 : i32, i32, i32
  }
  func.func @transform_1(%arg0: i32) -> (i32, i32) {
    %c0_i32 = arith.constant 0 : i32
    %c0_i32_0 = arith.constant 0 : i32
    %c0_i32_1 = arith.constant 0 : i32
    return %c0_i32, %c0_i32_0 : i32, i32
  }
  func.func @transform_2(%arg0: i32) -> (i32, i32) {
    %c0_i32 = arith.constant 0 : i32
    %c0_i32_0 = arith.constant 0 : i32
    %c0_i32_1 = arith.constant 0 : i32
    return %c0_i32, %c0_i32_0 : i32, i32
  }
  func.func @transform_3(%arg0: i32) -> (i32, i32) {
    %c0_i32 = arith.constant 0 : i32
    %c0_i32_0 = arith.constant 0 : i32
    %c0_i32_1 = arith.constant 0 : i32
    return %c0_i32, %c0_i32_0 : i32, i32
  }
  func.func @transform_4(%arg0: i32) -> (i32, i32) {
    %c0_i32 = arith.constant 0 : i32
    %c0_i32_0 = arith.constant 0 : i32
    %c0_i32_1 = arith.constant 0 : i32
    return %c0_i32, %c0_i32_0 : i32, i32
  }
  func.func @transform_5(%arg0: i32) -> (i32, i32) {
    %c0_i32 = arith.constant 0 : i32
    %c0_i32_0 = arith.constant 0 : i32
    %c0_i32_1 = arith.constant 0 : i32
    return %c0_i32, %c0_i32_0 : i32, i32
  }
  func.func @transform_6(%arg0: i32) -> (i32, i32, i32) {
    %c0_i32 = arith.constant 0 : i32
    %c0_i32_0 = arith.constant 0 : i32
    %c0_i32_1 = arith.constant 0 : i32
    %c0_i32_2 = arith.constant 0 : i32
    return %c0_i32, %c0_i32_0, %c0_i32_1 : i32, i32, i32
  }
  func.func @transform_7(%arg0: i32) -> (i32, i32) {
    %c0_i32 = arith.constant 0 : i32
    %c0_i32_0 = arith.constant 0 : i32
    %c0_i32_1 = arith.constant 0 : i32
    return %c0_i32, %c0_i32_0 : i32, i32
  }
  func.func @transform_8(%arg0: i32) -> (i32, i32, i32) {
    %c0_i32 = arith.constant 0 : i32
    %c0_i32_0 = arith.constant 0 : i32
    %c0_i32_1 = arith.constant 0 : i32
    return %arg0, %c0_i32, %c0_i32_0 : i32, i32, i32
  }
}

</mosaic_0001>

<bundles_post_ra>
// kernel: _lambda_.1
= control target key start
LH: loop header
LB: loop body
LE: loop exit
PB: predicated region body
PF: predicated region fallthrough
CT: control target
= control target key end

     0   :  { %s17229_s0 = inlined_call_operand.vmem [shape: bf16[2,24,1152], index: 0, kind: input, shape index: {}]   ;;  %s17230_s1 = inlined_call_operand.vmem [shape: bf16[48,600], index: 1, kind: input, shape index: {}]   ;;  %s17231_s2 = inlined_call_operand.vmem [shape: f32[48,1], index: 2, kind: input, shape index: {}]   ;;  %s17232_s3 = inlined_call_operand.vmem [shape: bf16[96,432], index: 3, kind: input, shape index: {}]   ;;  %s17233_s4 = inlined_call_operand.vmem [shape: f32[96,1], index: 4, kind: input, shape index: {}]   ;;  %s17234_s5 = inlined_call_operand.vmem [shape: bf16[859,256], index: 5, kind: input, shape index: {}]   ;;  %s17235_s6 = inlined_call_operand.vmem [shape: bf16[12,151,10], index: 6, kind: input, shape index: {}]   ;;  %s17236_s7 = inlined_call_operand.vmem [shape: f32[1,10], index: 7, kind: input, shape index: {}]   ;;  %s17237_s8 = inlined_call_operand.hbm [shape: f32[2,8,10], index: 8, kind: output, shape index: {}]  }
   0x1   :  { %17604 = sst [smem:[#allocation51_spill]] %s17229_s0 }
   0x2   :  { %17605 = sst [smem:[#allocation52_spill]] %s17237_s8 }
   0x3   :  { %13 = vsyncpa [#allocation8], 0 }
   0x4   :  { %15 = vsyncpa [#allocation8 + $0x1], 0  ;;  %s12022_s27 = smov 0   ;;  %s12024_s28 = smov 0  }
   0x5   :  { %s12026_s29 = smov 0   ;;  %s12028_s30 = smov 0  }
   0x6 LB: > { %17606 = sst [smem:[#allocation10_spill]] %s11933_s27  ;;  %s12043_s9 = sadd.s32 4294967295, %s11945_s30   ;;  %s11945_s30 = sphi %s12028_s30, %s18049_s30   ;;  %s11941_s29 = sphi %s12026_s29, %s18051_s29   ;;  %s11937_s28 = sphi %s12024_s28, %s18053_s28   ;;  %s11933_s27 = sphi %s12022_s27, %s18052_s27  }
   0x7   : > { %17607 = sst [smem:[#allocation11_spill]] %s11941_s29  ;;  %s10015_s10 = sadd.s32 4294967294, %s11945_s30  }
   0x8   : > { %17608 = sst [smem:[#allocation12_spill]] %s11945_s30  ;;  %s12047_s11 = sadd.s32 1, %s11945_s30  }
   0x9   : > { %17609 = sst [smem:[#allocation13_spill]] %s12047_s11  ;;  %s201_s12 = sadd.s32 1, %s11941_s29 }
   0xa   : > { %s198_s13 = ssub.s32 %s11945_s30, %s12047_s11  ;;  %p211_p0 = scmp.ne.s32.totalorder %s11941_s29, %s11937_s28 }
   0xb   : > { %p199_p1 = scmp.eq.s32.totalorder %s198_s13, 0  ;;  %p212_p2 = scmp.eq.s32.totalorder %s12043_s9, 1 }
   0xc   : > { %p217_p3 = scmp.ne.s32.totalorder %s11937_s28, %s11933_s27  ;;  %p218_p4 = scmp.eq.s32.totalorder %s10015_s10, 1 }
   0xd   : > { %s12058_s14 = scalar_select %p199_p1, %s11941_s29, %s201_s12  }
   0xe   : > { %p12060_p5 = por %p212_p2, %p211_p0  ;;  %p12064_p6 = por %p218_p4, %p217_p3 }
   0xf   : > { %17610 = sst [smem:[#allocation14_spill]] %s12058_s14  ;;  %p10018_p7 = scmp.ge.s32.totalorder %s11945_s30, 1 }
  0x10   : > { %s17612_s16 = scalar_select %p12064_p6, 1, 0 }
  0x11   : > { %p265_p8 = scmp.lt.s32.totalorder %s11945_s30, 3 }
  0x12   : > { %17613 = sst [smem:[#allocation15_spill]] %s17612_s16 }
  0x13   : > { %p266_p9 = pnand %p10018_p7, %p265_p8 }
  0x15   : > { %269 = sbr.rel (%p266_p9) target bundleno = 2621 (0xa3d), region = 52 }
  0x1a   : > { %p299_p10 = scmp.lt.s32.totalorder %s12043_s9, 1  ;;  %s17614_s0 = sld [smem:[#allocation51_spill]]  ;;  %vm389_vm0 = vcmask 1043456   ;;  %vm815_vm1 = vcmask 785408   ;;  %vm709_vm2 = vcmask 1014784   ;;  %vm1875_vm3 = vcmask 261120  }
  0x1b   : > { %s17394_s22 = smov 96   ;;  %s17381_s23 = smov 124   ;;  %vm603_vm4 = vcmask 1022976   ;;  %vm1769_vm5 = vcmask 490496   ;;  %vm497_vm6 = vcmask 1031168   ;;  %vm17444_vm7 = vcmask 498688  }
  0x1c   : > { %s300_s17 = scalar_select %p299_p10, %s12043_s9, 1  ;;  %vm391_vm8 = vcmask 1039360   ;;  %vm1557_vm9 = vcmask 506880   ;;  %vm17292_vm10 = vcmask 515072   ;;  %vm1345_vm11 = vcmask 523264  }
  0x1d   : > { %s17335_s24 = smov 32   ;;  %s17342_s25 = smov 125   ;;  %vm17449_vm12 = vcmask 752640   ;;  %vm17298_vm13 = vcmask 760832   ;;  %vm17329_vm14 = vcmask 228352   ;;  %vm1027_vm15 = vcmask 769024  }
  0x1e   : > { %s10971_s18 = smul.u32 108, %s300_s17  ;;  %s17324_s26 = smov 60  }
  0x1f   : > { %s17337_s10 = smov 126   ;;  %s17333_s12 = smov 61  }
  0x20   : > { %s12075_s21 = scalar_lea.vmem %s17614_s0, %s10971_s18  ;;  %s17371_s13 = smov 127  }
  0x21   : > { %v12078_v0 = vld [vmem:[%s12075_s21] sm:$0xff]  ;;  %v12081_v1 = vld [vmem:[%s12075_s21 + $0x48] sm:$0xff]  ;;  %v12092_v3 = vld [vmem:[%s12075_s21 + $0x50] sm:$0xff]  ;;  %s17244_s17 = smov 62   ;;  %s17238_s18 = smov 63  }
  0x22   : > { %778 = vrot.lane.b32.xlu1 %v12078_v0, %s17394_s22  ;;  %688 = vrot.lane.b32.xlu0 %v12081_v1, %s17381_s23  ;;  %v12088_v2 = vld [vmem:[%s12075_s21 + $0x8] sm:$0xff]  ;;  %325 = vst [vmem:[#allocation2 + $0x38] sm:$0xff] %v12081_v1  ;;  %v12189_v6 = vld [vmem:[%s12075_s21] sm:$0xff]  ;;  %s17246_s19 = smov 64   ;;  %s17240_s20 = smov 92  }
  0x23   : > { %v12099_v4 = vld [vmem:[%s12075_s21 + $0x2c] sm:$0xff]  ;;  %v12102_v5 = vld [vmem:[%s12075_s21 + $0x24] sm:$0xff]  ;;  %s17661_s0 = smov 31   ;;  %s17664_s14 = smov 126  }
  0x24   : > { %v12196_v7 = vld [vmem:[%s12075_s21 + $0x4c] sm:$0xff]  ;;  %v12204_v8 = vld [vmem:[%s12075_s21 + $0x24] sm:$0xff]  ;;  %s17669_s29 = smov 127   ;;  %s17670_s11 = smov 96  }
  0x25   : > { %2364 = vst [vmem:[#allocation2 + $0x6c8] sm:$0xff] %v12196_v7  ;;  %v12219_v9 = vld [vmem:[%s12075_s21 + $0x28] sm:$0xff]  ;;  %v12307_v59 = vld [vmem:[%s12075_s21] sm:$0xff]  ;;  %s17675_s30 = smov 32   ;;  %s17680_s27 = smov 60  }
  0x26   : > { %780 = vrot.lane.b32.xlu1 %v12088_v2, %s17394_s22  ;;  %690 = vrot.lane.b32.xlu0 %v12092_v3, %s17381_s23  ;;  %2360 = vst [vmem:[#allocation2 + $0x6ac] sm:$0xff] %v12219_v9  ;;  %v12263_v34 = vld [vmem:[%s12075_s21 + $0xc] sm:$0xff]  ;;  %v12266_v35 = vld [vmem:[%s12075_s21 + $0x4] sm:$0xff]  ;;  %s17691_s8 = smov 61  }
  0x27   : > { %v12302_v58 = vld [vmem:[%s12075_s21 + $0x8] sm:$0xff] }
  0x2a   : > { %674 = vrot.lane.b32.xlu1 %v12088_v2, %s17381_s23  ;;  %672 = vrot.lane.b32.xlu0 %v12078_v0, %s17381_s23 }
  0x2e   : > { %682 = vrot.lane.b32.xlu1 %v12099_v4, %s17381_s23  ;;  %680 = vrot.lane.b32.xlu0 %v12102_v5, %s17381_s23 }
  0x32   : > { %1848 = vrot.lane.b32.xlu1 %v12099_v4, %s17335_s24  ;;  %1846 = vrot.lane.b32.xlu0 %v12102_v5, %s17335_s24 }
  0x36   : > { %1856 = vrot.lane.b32.xlu1 %v12092_v3, %s17335_s24  ;;  %1854 = vrot.lane.b32.xlu0 %v12081_v1, %s17335_s24 }
  0x3a   : > { %576 = vrot.lane.b32.xlu1 %v12099_v4, %s17342_s25  ;;  %574 = vrot.lane.b32.xlu0 %v12102_v5, %s17342_s25 }
  0x3e   : > { %584 = vrot.lane.b32.xlu1 %v12092_v3, %s17342_s25  ;;  %582 = vrot.lane.b32.xlu0 %v12081_v1, %s17342_s25 }
  0x42   : > { %1750 = vrot.lane.b32.xlu1 %v12092_v3, %s17324_s26  ;;  %1748 = vrot.lane.b32.xlu0 %v12081_v1, %s17324_s26 }
  0x46   : > { %1840 = vrot.lane.b32.xlu1 %v12088_v2, %s17335_s24  ;;  %1838 = vrot.lane.b32.xlu0 %v12078_v0, %s17335_s24 }
  0x4a   : > { %478 = vrot.lane.b32.xlu1 %v12092_v3, %s17337_s10  ;;  %476 = vrot.lane.b32.xlu0 %v12081_v1, %s17337_s10 }
  0x4e   : > { %568 = vrot.lane.b32.xlu1 %v12088_v2, %s17342_s25  ;;  %566 = vrot.lane.b32.xlu0 %v12078_v0, %s17342_s25 }
  0x52   : > { %1734 = vrot.lane.b32.xlu1 %v12088_v2, %s17324_s26  ;;  %1732 = vrot.lane.b32.xlu0 %v12078_v0, %s17324_s26 }
  0x56   : > { %1742 = vrot.lane.b32.xlu1 %v12099_v4, %s17324_s26  ;;  %1740 = vrot.lane.b32.xlu0 %v12102_v5, %s17324_s26 }
  0x5a   : > { %462 = vrot.lane.b32.xlu1 %v12088_v2, %s17337_s10  ;;  %460 = vrot.lane.b32.xlu0 %v12078_v0, %s17337_s10 }
  0x5e   : > { %470 = vrot.lane.b32.xlu1 %v12099_v4, %s17337_s10  ;;  %468 = vrot.lane.b32.xlu0 %v12102_v5, %s17337_s10 }
  0x62   : > { %1636 = vrot.lane.b32.xlu1 %v12099_v4, %s17333_s12  ;;  %1634 = vrot.lane.b32.xlu0 %v12102_v5, %s17333_s12 }
  0x66   : > { %1644 = vrot.lane.b32.xlu1 %v12092_v3, %s17333_s12  ;;  %1642 = vrot.lane.b32.xlu0 %v12081_v1, %s17333_s12 }
  0x6a   : > { %363 = vrot.lane.b32.xlu1 %v12099_v4, %s17371_s13  ;;  %361 = vrot.lane.b32.xlu0 %v12102_v5, %s17371_s13 }
  0x6e   : > { %371 = vrot.lane.b32.xlu1 %v12092_v3, %s17371_s13  ;;  %369 = vrot.lane.b32.xlu0 %v12081_v1, %s17371_s13 }
  0x72   : > { %1538 = vrot.lane.b32.xlu1 %v12092_v3, %s17244_s17  ;;  %1536 = vrot.lane.b32.xlu0 %v12081_v1, %s17244_s17 }
  0x76   : > { %1628 = vrot.lane.b32.xlu1 %v12088_v2, %s17333_s12  ;;  %1626 = vrot.lane.b32.xlu0 %v12078_v0, %s17333_s12 }
  0x7a   : > { %355 = vrot.lane.b32.xlu1 %v12088_v2, %s17371_s13  ;;  %353 = vrot.lane.b32.xlu0 %v12078_v0, %s17371_s13 }
  0x7e   : > { %1522 = vrot.lane.b32.xlu1 %v12088_v2, %s17244_s17  ;;  %1520 = vrot.lane.b32.xlu0 %v12078_v0, %s17244_s17 }
  0x82   : > { %1530 = vrot.lane.b32.xlu1 %v12099_v4, %s17244_s17  ;;  %1528 = vrot.lane.b32.xlu0 %v12102_v5, %s17244_s17  ;;  %s17249_s17 = smov 29  }
  0x86   : > { %1424 = vrot.lane.b32.xlu1 %v12099_v4, %s17238_s18  ;;  %1422 = vrot.lane.b32.xlu0 %v12102_v5, %s17238_s18 }
  0x8a   : > { %1432 = vrot.lane.b32.xlu1 %v12092_v3, %s17238_s18  ;;  %1430 = vrot.lane.b32.xlu0 %v12081_v1, %s17238_s18 }
  0x8e   : > { %1310 = vrot.lane.b32.xlu1 %v12088_v2, %s17246_s19  ;;  %1308 = vrot.lane.b32.xlu0 %v12078_v0, %s17246_s19 }
  0x92   : > { %1318 = vrot.lane.b32.xlu1 %v12099_v4, %s17246_s19  ;;  %1316 = vrot.lane.b32.xlu0 %v12102_v5, %s17246_s19 }
  0x94   : > { %v779_v10 = vpop.permute.xlu1 %778  ;;  %v689_v11 = vpop.permute.xlu0 %688 }
  0x95   : > { %v802_v12 = vrot.slane %v779_v10, 4  ;;  %v704_v13 = vrot.slane %v689_v11, 4 }
  0x96   : > { %1326 = vrot.lane.b32.xlu1 %v12092_v3, %s17246_s19  ;;  %1324 = vrot.lane.b32.xlu0 %v12081_v1, %s17246_s19  ;;  %s17260_s19 = smov 95  }
  0x98   : > { %v12230_v14 = vpop.permute.xlu1 %780  ;;  %v12232_v15 = vpop.permute.xlu0 %690 }
  0x99   : > { %v17304_v16 = vrot.slane %v12230_v14, 4  ;;  %v17297_v17 = vrot.slane %v12232_v15, 4 }
  0x9a   : > { %1416 = vrot.lane.b32.xlu1 %v12088_v2, %s17238_s18  ;;  %1414 = vrot.lane.b32.xlu0 %v12078_v0, %s17238_s18  ;;  %s17242_s18 = smov 93   ;;  %v12318_v0 = vld [vmem:[%s12075_s21 + $0x4] sm:$0xff] }
  0x9b   : > { %v814_v18 = vsel %vm389_vm0, %v802_v12, %v17304_v16  ;;  %v723_v19 = vsel %vm389_vm0, %v704_v13, %v17297_v17 }
  0x9c   : > { %v816_v20 = vsel %vm815_vm1, %v779_v10, %v814_v18  ;;  %v724_v21 = vsel %vm709_vm2, %v689_v11, %v723_v19  ;;  %v12248_v22 = vpop.permute.xlu1 %674  ;;  %v673_v23 = vpop.permute.xlu0 %672  ;;  %v12333_v19 = vld [vmem:[%s12075_s21 + $0x2c] sm:$0xff] }
  0x9d   : > { %v17294_v24 = vrot.slane %v12248_v22, 4  ;;  %v696_v25 = vrot.slane %v673_v23, 4  ;;  %v10086_v26 = vcombine.high %v724_v21, %v816_v20  ;;  %v10085_v27 = vcombine.low %v724_v21, %v816_v20  ;;  %v12338_v20 = vld [vmem:[%s12075_s21 + $0x24] sm:$0xff] }
  0x9e   : > { %1212 = vrot.lane.b32.xlu1 %v12099_v4, %s17240_s20  ;;  %1210 = vrot.lane.b32.xlu0 %v12102_v5, %s17240_s20 }
  0x9f   : > { %v708_v28 = vsel %vm389_vm0, %v696_v25, %v17294_v24  ;;  %4599 = vmatprep.subr.bf16.mxu0 %v10086_v26 }
  0xa0   : > { %v710_v29 = vsel %vm709_vm2, %v673_v23, %v708_v28  ;;  %v12259_v30 = vpop.permute.xlu1 %682  ;;  %v681_v31 = vpop.permute.xlu0 %680  ;;  %4600 = vmatpush1.bf16.msra.mxu0 %v10085_v27 }
  0xa1   : > { %v17296_v32 = vrot.slane %v12259_v30, 4  ;;  %v700_v33 = vrot.slane %v681_v31, 4 }
  0xa2   : > { %1220 = vrot.lane.b32.xlu1 %v12092_v3, %s17240_s20  ;;  %1218 = vrot.lane.b32.xlu0 %v12081_v1, %s17240_s20 }
  0xa3   : > { %v716_v36 = vsel %vm389_vm0, %v700_v33, %v17296_v32 }
  0xa4   : > { %v717_v37 = vsel %vm709_vm2, %v681_v31, %v716_v36  ;;  %v12276_v38 = vpop.permute.xlu1 %1848  ;;  %v1847_v39 = vpop.permute.xlu0 %1846 }
  0xa5   : > { %v17276_v40 = vrot.slane %v12276_v38, 4  ;;  %v1866_v41 = vrot.slane %v1847_v39, 4  ;;  %v10079_v42 = vcombine.high %v710_v29, %v717_v37  ;;  %v10078_v43 = vcombine.low %v710_v29, %v717_v37 }
  0xa6   : > { %2394 = vrot.lane.b32.xlu1 %v12263_v34, %s17371_s13  ;;  %2392 = vrot.lane.b32.xlu0 %v12266_v35, %s17371_s13 }
  0xa7   : > { %v1882_v44 = vsel %vm389_vm0, %v1866_v41, %v17276_v40  ;;  %4601 = vmatprep.subr.bf16.mxu0 %v10079_v42 }
  0xa8   : > { %v1883_v45 = vsel %vm1875_vm3, %v1847_v39, %v1882_v44  ;;  %v12287_v46 = vpop.permute.xlu1 %1856  ;;  %v1855_v47 = vpop.permute.xlu0 %1854  ;;  %4602 = vmatpush1.bf16.msra.mxu0 %v10078_v43  ;;  %v12361_v43 = vld [vmem:[%s12075_s21 + $0x50] sm:$0xff]  ;;  %v12365_v44 = vld [vmem:[#allocation2 + $0x38] sm:$0xff] }
  0xa9   : > { %v17278_v48 = vrot.slane %v12287_v46, 4  ;;  %v1870_v49 = vrot.slane %v1855_v47, 4 }
  0xaa   : > { %1114 = vrot.lane.b32.xlu1 %v12092_v3, %s17242_s18  ;;  %1112 = vrot.lane.b32.xlu0 %v12081_v1, %s17242_s18 }
  0xab   : > { %v1889_v50 = vsel %vm389_vm0, %v1870_v49, %v17278_v48 }
  0xac   : > { %v1890_v51 = vsel %vm1875_vm3, %v1855_v47, %v1889_v50  ;;  %v12298_v52 = vpop.permute.xlu1 %576  ;;  %v575_v53 = vpop.permute.xlu0 %574 }
  0xad   : > { %v17287_v54 = vrot.slane %v12298_v52, 4  ;;  %v594_v55 = vrot.slane %v575_v53, 4  ;;  %v10198_v56 = vcombine.high %v1883_v45, %v1890_v51  ;;  %v10197_v57 = vcombine.low %v1883_v45, %v1890_v51 }
  0xae   : > { %1204 = vrot.lane.b32.xlu1 %v12302_v58, %s17240_s20  ;;  %1202 = vrot.lane.b32.xlu0 %v12307_v59, %s17240_s20  ;;  %s17258_s20 = smov 28  }
  0xaf   : > { %v610_v60 = vsel %vm389_vm0, %v594_v55, %v17287_v54  ;;  %4662 = vmatprep.subr.bf16.mxu1 %v10198_v56 }
  0xb0   : > { %v611_v61 = vsel %vm603_vm4, %v575_v53, %v610_v60  ;;  %v12315_v62 = vpop.permute.xlu1 %584  ;;  %v583_v63 = vpop.permute.xlu0 %582  ;;  %4663 = vmatpush1.bf16.msra.mxu1 %v10197_v57 }
  0xb1   : > { %v17290_v1 = vrot.slane %v12315_v62, 4  ;;  %v598_v2 = vrot.slane %v583_v63, 4 }
  0xb2   : > { %1098 = vrot.lane.b32.xlu1 %v12302_v58, %s17242_s18  ;;  %1096 = vrot.lane.b32.xlu0 %v12307_v59, %s17242_s18 }
  0xb3   : > { %v617_v3 = vsel %vm389_vm0, %v598_v2, %v17290_v1 }
  0xb4   : > { %v618_v4 = vsel %vm603_vm4, %v583_v63, %v617_v3  ;;  %v12329_v5 = vpop.permute.xlu1 %1750  ;;  %v1749_v10 = vpop.permute.xlu0 %1748 }
  0xb5   : > { %v17256_v11 = vrot.slane %v12329_v5, 4  ;;  %v1764_v12 = vrot.slane %v1749_v10, 4  ;;  %v10072_v13 = vcombine.high %v611_v61, %v618_v4  ;;  %v10071_v18 = vcombine.low %v611_v61, %v618_v4 }
  0xb6   : > { %1106 = vrot.lane.b32.xlu1 %v12333_v19, %s17242_s18  ;;  %1104 = vrot.lane.b32.xlu0 %v12338_v20, %s17242_s18  ;;  %s17263_s18 = smov 94  }
  0xb7   : > { %v1783_v21 = vsel %vm389_vm0, %v1764_v12, %v17256_v11  ;;  %4603 = vmatprep.subr.bf16.mxu0 %v10072_v13 }
  0xb8   : > { %v1784_v23 = vsel %vm1769_vm5, %v1749_v10, %v1783_v21  ;;  %v12346_v25 = vpop.permute.xlu1 %1840  ;;  %v1839_v26 = vpop.permute.xlu0 %1838  ;;  %4604 = vmatpush1.bf16.msra.mxu0 %v10071_v18 }
  0xb9   : > { %v17269_v27 = vrot.slane %v12346_v25, 4  ;;  %v1862_v28 = vrot.slane %v1839_v26, 4 }
  0xba   : > { %2272 = vrot.lane.b32.xlu1 %v12333_v19, %s17258_s20  ;;  %2270 = vrot.lane.b32.xlu0 %v12338_v20, %s17258_s20 }
  0xbb   : > { %v1874_v29 = vsel %vm389_vm0, %v1862_v28, %v17269_v27 }
  0xbc   : > { %v1876_v31 = vsel %vm1875_vm3, %v1839_v26, %v1874_v29  ;;  %v12357_v33 = vpop.permute.xlu1 %478  ;;  %v477_v36 = vpop.permute.xlu0 %476 }
  0xbd   : > { %v17282_v37 = vrot.slane %v12357_v33, 4  ;;  %v492_v39 = vrot.slane %v477_v36, 4  ;;  %v10191_v41 = vcombine.high %v1784_v23, %v1876_v31  ;;  %v10190_v42 = vcombine.low %v1784_v23, %v1876_v31 }
  0xbe   : > { %2280 = vrot.lane.b32.xlu1 %v12361_v43, %s17258_s20  ;;  %2278 = vrot.lane.b32.xlu0 %v12365_v44, %s17258_s20 }
  0xbf   : > { %v511_v45 = vsel %vm389_vm0, %v492_v39, %v17282_v37  ;;  %4664 = vmatprep.subr.bf16.mxu1 %v10191_v41 }
  0xc0   : > { %v512_v47 = vsel %vm497_vm6, %v477_v36, %v511_v45  ;;  %v12373_v49 = vpop.permute.xlu1 %568  ;;  %v567_v50 = vpop.permute.xlu0 %566  ;;  %4665 = vmatpush1.bf16.msra.mxu1 %v10190_v42 }
  0xc1   : > { %v17283_v51 = vrot.slane %v12373_v49, 4  ;;  %v590_v53 = vrot.slane %v567_v50, 4 }
  0xc2   : > { %1000 = vrot.lane.b32.xlu1 %v12333_v19, %s17263_s18  ;;  %998 = vrot.lane.b32.xlu0 %v12338_v20, %s17263_s18 }
  0xc3   : > { %v602_v55 = vsel %vm389_vm0, %v590_v53, %v17283_v51 }
  0xc4   : > { %v604_v56 = vsel %vm603_vm4, %v567_v50, %v602_v55  ;;  %v12384_v57 = vpop.permute.xlu1 %1734  ;;  %v1733_v60 = vpop.permute.xlu0 %1732 }
  0xc5   : > { %v17255_v61 = vrot.slane %v12384_v57, 4  ;;  %v1756_v63 = vrot.slane %v1733_v60, 4  ;;  %v10065_v2 = vcombine.high %v512_v47, %v604_v56  ;;  %v10064_v3 = vcombine.low %v512_v47, %v604_v56 }
  0xc6   : > { %1008 = vrot.lane.b32.xlu1 %v12361_v43, %s17263_s18  ;;  %1006 = vrot.lane.b32.xlu0 %v12365_v44, %s17263_s18 }
  0xc7   : > { %v1768_v4 = vsel %vm389_vm0, %v1756_v63, %v17255_v61  ;;  %4605 = vmatprep.subr.bf16.mxu0 %v10065_v2 }
  0xc8   : > { %v1770_v10 = vsel %vm1769_vm5, %v1733_v60, %v1768_v4  ;;  %v12395_v12 = vpop.permute.xlu1 %1742  ;;  %v1741_v13 = vpop.permute.xlu0 %1740  ;;  %4606 = vmatpush1.bf16.msra.mxu0 %v10064_v3 }
  0xc9   : > { %v17252_v18 = vrot.slane %v12395_v12, 4  ;;  %v1760_v21 = vrot.slane %v1741_v13, 4 }
  0xca   : > { %2174 = vrot.lane.b32.xlu1 %v12361_v43, %s17249_s17  ;;  %2172 = vrot.lane.b32.xlu0 %v12365_v44, %s17249_s17 }
  0xcb   : > { %v1776_v23 = vsel %vm389_vm0, %v1760_v21, %v17252_v18 }
  0xcc   : > { %v1777_v26 = vsel %vm1769_vm5, %v1741_v13, %v1776_v23  ;;  %v12406_v28 = vpop.permute.xlu1 %462  ;;  %v461_v29 = vpop.permute.xlu0 %460 }
  0xcd   : > { %v17279_v31 = vrot.slane %v12406_v28, 4  ;;  %v484_v36 = vrot.slane %v461_v29, 4  ;;  %v10184_v39 = vcombine.high %v1770_v10, %v1777_v26  ;;  %v10183_v41 = vcombine.low %v1770_v10, %v1777_v26 }
  0xce   : > { %2264 = vrot.lane.b32.xlu1 %v12302_v58, %s17258_s20  ;;  %2262 = vrot.lane.b32.xlu0 %v12307_v59, %s17258_s20  ;;  %s17627_s20 = smov 62  }
  0xcf   : > { %v496_v42 = vsel %vm389_vm0, %v484_v36, %v17279_v31  ;;  %4666 = vmatprep.subr.bf16.mxu1 %v10184_v39  ;;  %v12655_v31 = vld [vmem:[#allocation2 + $0x6c8] sm:$0xff] }
  0xd0   : > { %v498_v45 = vsel %vm497_vm6, %v461_v29, %v496_v42  ;;  %v12417_v47 = vpop.permute.xlu1 %470  ;;  %v469_v50 = vpop.permute.xlu0 %468  ;;  %4667 = vmatpush1.bf16.msra.mxu1 %v10183_v41 }
  0xd1   : > { %v17280_v53 = vrot.slane %v12417_v47, 4  ;;  %v488_v55 = vrot.slane %v469_v50, 4 }
  0xd2   : > { %902 = vrot.lane.b32.xlu1 %v12361_v43, %s17260_s19  ;;  %900 = vrot.lane.b32.xlu0 %v12365_v44, %s17260_s19 }
  0xd3   : > { %v504_v56 = vsel %vm389_vm0, %v488_v55, %v17280_v53 }
  0xd4   : > { %v505_v60 = vsel %vm497_vm6, %v469_v50, %v504_v56  ;;  %v12428_v63 = vpop.permute.xlu1 %1636  ;;  %v1635_v2 = vpop.permute.xlu0 %1634 }
  0xd5   : > { %v17254_v3 = vrot.slane %v12428_v63, 4  ;;  %v1654_v4 = vrot.slane %v1635_v2, 4  ;;  %v10058_v10 = vcombine.high %v498_v45, %v505_v60  ;;  %v10057_v13 = vcombine.low %v498_v45, %v505_v60 }
  0xd6   : > { %992 = vrot.lane.b32.xlu1 %v12302_v58, %s17263_s18  ;;  %990 = vrot.lane.b32.xlu0 %v12307_v59, %s17263_s18  ;;  %s17340_s18 = smov 31  }
  0xd7   : > { %v1670_v21 = vsel %vm389_vm0, %v1654_v4, %v17254_v3  ;;  %4607 = vmatprep.subr.bf16.mxu0 %v10058_v10 }
  0xd8   : > { %v1671_v23 = vsel %vm17444_vm7, %v1635_v2, %v1670_v21  ;;  %v12439_v26 = vpop.permute.xlu1 %1644  ;;  %v1643_v29 = vpop.permute.xlu0 %1642  ;;  %4608 = vmatpush1.bf16.msra.mxu0 %v10057_v13 }
  0xd9   : > { %v17248_v36 = vrot.slane %v12439_v26, 4  ;;  %v1658_v39 = vrot.slane %v1643_v29, 4 }
  0xda   : > { %2158 = vrot.lane.b32.xlu1 %v12302_v58, %s17249_s17  ;;  %2156 = vrot.lane.b32.xlu0 %v12307_v59, %s17249_s17 }
  0xdb   : > { %v1677_v41 = vsel %vm389_vm0, %v1658_v39, %v17248_v36 }
  0xdc   : > { %v1678_v42 = vsel %vm17444_vm7, %v1643_v29, %v1677_v41  ;;  %v12450_v45 = vpop.permute.xlu1 %363  ;;  %v362_v50 = vpop.permute.xlu0 %361 }
  0xdd   : > { %v17273_v55 = vrot.slane %v12450_v45, 4  ;;  %v381_v56 = vrot.slane %v362_v50, 4  ;;  %v10177_v60 = vcombine.high %v1671_v23, %v1678_v42  ;;  %v10176_v2 = vcombine.low %v1671_v23, %v1678_v42 }
  0xde   : > { %2166 = vrot.lane.b32.xlu1 %v12333_v19, %s17249_s17  ;;  %2164 = vrot.lane.b32.xlu0 %v12338_v20, %s17249_s17  ;;  %s17348_s17 = smov 30  }
  0xdf   : > { %v398_v4 = vsel %vm389_vm0, %v381_v56, %v17273_v55  ;;  %4668 = vmatprep.subr.bf16.mxu1 %v10177_v60 }
  0xe0   : > { %v399_v10 = vsel %vm391_vm8, %v362_v50, %v398_v4  ;;  %v12461_v13 = vpop.permute.xlu1 %371  ;;  %v370_v21 = vpop.permute.xlu0 %369  ;;  %4669 = vmatpush1.bf16.msra.mxu1 %v10176_v2 }
  0xe1   : > { %v17275_v29 = vrot.slane %v12461_v13, 4  ;;  %v385_v23 = vrot.slane %v370_v21, 4 }
  0xe2   : > { %886 = vrot.lane.b32.xlu1 %v12302_v58, %s17260_s19  ;;  %884 = vrot.lane.b32.xlu0 %v12307_v59, %s17260_s19 }
  0xe3   : > { %v405_v39 = vsel %vm389_vm0, %v385_v23, %v17275_v29 }
  0xe4   : > { %v406_v41 = vsel %vm391_vm8, %v370_v21, %v405_v39  ;;  %v12472_v42 = vpop.permute.xlu1 %1538  ;;  %v1537_v50 = vpop.permute.xlu0 %1536 }
  0xe5   : > { %v17251_v56 = vrot.slane %v12472_v42, 4  ;;  %v1552_v60 = vrot.slane %v1537_v50, 4  ;;  %v10051_v2 = vcombine.high %v399_v10, %v406_v41  ;;  %v10050_v4 = vcombine.low %v399_v10, %v406_v41 }
  0xe6   : > { %894 = vrot.lane.b32.xlu1 %v12333_v19, %s17260_s19  ;;  %892 = vrot.lane.b32.xlu0 %v12338_v20, %s17260_s19  ;;  %s17625_s19 = smov 64  }
  0xe7   : > { %v1571_v59 = vsel %vm389_vm0, %v1552_v60, %v17251_v56  ;;  %4609 = vmatprep.subr.bf16.mxu0 %v10051_v2 }
  0xe8   : > { %v1572_v21 = vsel %vm1557_vm9, %v1537_v50, %v1571_v59  ;;  %v12483_v23 = vpop.permute.xlu1 %1628  ;;  %v1627_v39 = vpop.permute.xlu0 %1626  ;;  %4610 = vmatpush1.bf16.msra.mxu0 %v10050_v4 }
  0xe9   : > { %v17253_v36 = vrot.slane %v12483_v23, 4  ;;  %v1650_v10 = vrot.slane %v1627_v39, 4 }
  0xea   : > { %2060 = vrot.lane.b32.xlu1 %v12333_v19, %s17348_s17  ;;  %2058 = vrot.lane.b32.xlu0 %v12338_v20, %s17348_s17 }
  0xeb   : > { %v1662_v41 = vsel %vm389_vm0, %v1650_v10, %v17253_v36 }
  0xec   : > { %v1664_v50 = vsel %vm17444_vm7, %v1627_v39, %v1662_v41  ;;  %v12494_v60 = vpop.permute.xlu1 %355  ;;  %v354_v2 = vpop.permute.xlu0 %353 }
  0xed   : > { %v17262_v4 = vrot.slane %v12494_v60, 4  ;;  %v377_v59 = vrot.slane %v354_v2, 4  ;;  %v10170_v56 = vcombine.high %v1572_v21, %v1664_v50  ;;  %v10169_v18 = vcombine.low %v1572_v21, %v1664_v50 }
  0xee   : > { %2068 = vrot.lane.b32.xlu1 %v12361_v43, %s17348_s17  ;;  %2066 = vrot.lane.b32.xlu0 %v12365_v44, %s17348_s17  ;;  %v10037_v21 = vcombine.high %v12189_v6, %v12204_v8 }
  0xef   : > { %v390_v10 = vsel %vm389_vm0, %v377_v59, %v17262_v4  ;;  %4670 = vmatprep.subr.bf16.mxu1 %v10170_v56  ;;  %v11376_v4 = vld [vmem:[%s17230_s1 + $0x4] ss:$20 sps:$4 sm:$0xff]  }
  0xf0   : > { %v392_v39 = vsel %vm391_vm8, %v354_v2, %v390_v10  ;;  %v12505_v41 = vpop.permute.xlu1 %1522  ;;  %v1521_v36 = vpop.permute.xlu0 %1520  ;;  %4671 = vmatpush1.bf16.msra.mxu1 %v10169_v18  ;;  %v10036_v10 = vcombine.low %v12189_v6, %v12204_v8  ;;  %4631 = vmatprep.mubr.bf16.mxu0 %v11376_v4 }
  0xf1   : > { %v17257_v50 = vrot.slane %v12505_v41, 4  ;;  %v1544_v3 = vrot.slane %v1521_v36, 4  ;;  %v10044_v61 = vcombine.high %v12365_v44, %v392_v39  ;;  %v10043_v11 = vcombine.low %v12365_v44, %v392_v39 }
  0xf2   : > { %788 = vrot.lane.b32.xlu1 %v12333_v19, %s17394_s22  ;;  %786 = vrot.lane.b32.xlu0 %v12338_v20, %s17394_s22 }
  0xf3   : > { %v1556_v18 = vsel %vm389_vm0, %v1544_v3, %v17257_v50  ;;  %4611 = vmatprep.subr.bf16.mxu0 %v10044_v61 }
  0xf4   : > { %v1558_v56 = vsel %vm1557_vm9, %v1521_v36, %v1556_v18  ;;  %v12520_v2 = vpop.permute.xlu1 %1530  ;;  %v1529_v59 = vpop.permute.xlu0 %1528  ;;  %4612 = vmatpush1.bf16.msra.mxu0 %v10043_v11 }
  0xf5   : > { %v17267_v39 = vrot.slane %v12520_v2, 4  ;;  %v1548_v19 = vrot.slane %v1529_v59, 4  ;;  %4613 = vmatprep.subr.bf16.mxu0 %v10037_v21 }
  0xf6   : > { %796 = vrot.lane.b32.xlu1 %v12361_v43, %s17394_s22  ;;  %794 = vrot.lane.b32.xlu0 %v12365_v44, %s17394_s22 }
  0xf7   : > { %v1564_v20 = vsel %vm389_vm0, %v1548_v19, %v17267_v39 }
  0xf8   : > { %v1565_v61 = vsel %vm1557_vm9, %v1529_v59, %v1564_v20  ;;  %v12533_v11 = vpop.permute.xlu1 %1424  ;;  %v1423_v3 = vpop.permute.xlu0 %1422  ;;  %4614 = vmatpush1.bf16.msra.mxu0 %v10036_v10 }
  0xf9   : > { %v17266_v36 = vrot.slane %v12533_v11, 4  ;;  %v1442_v21 = vrot.slane %v1423_v3, 4  ;;  %v10163_v18 = vcombine.high %v1558_v56, %v1565_v61  ;;  %v10162_v50 = vcombine.low %v1558_v56, %v1565_v61 }
  0xfa   : > { %1962 = vrot.lane.b32.xlu1 %v12361_v43, %s17340_s18  ;;  %1960 = vrot.lane.b32.xlu0 %v12365_v44, %s17340_s18  ;;  %v12558_v44 = vld [vmem:[%s12075_s21 + $0x54] sm:$0xff] }
  0xfb   : > { %v1458_v59 = vsel %vm389_vm0, %v1442_v21, %v17266_v36  ;;  %4672 = vmatprep.subr.bf16.mxu1 %v10163_v18 }
  0xfc   : > { %v1459_v56 = vsel %vm17292_vm10, %v1423_v3, %v1458_v59  ;;  %v12547_v10 = vpop.permute.xlu1 %1432  ;;  %v1431_v19 = vpop.permute.xlu0 %1430  ;;  %4673 = vmatpush1.bf16.msra.mxu1 %v10162_v50 }
  0xfd   : > { %v17265_v20 = vrot.slane %v12547_v10, 4  ;;  %v1446_v61 = vrot.slane %v1431_v19, 4 }
  0xfe   : > { %2052 = vrot.lane.b32.xlu1 %v12302_v58, %s17348_s17  ;;  %2050 = vrot.lane.b32.xlu0 %v12189_v6, %s17348_s17  ;;  %s17634_s17 = smov 63  }
  0xff   : > { %v1465_v43 = vsel %vm389_vm0, %v1446_v61, %v17265_v20  ;;  %v1921_v61 = vld [vmem:[%s12075_s21 + $0x8] sm:$0xff] }
 0x100   : > { %v1466_v4 = vsel %vm17292_vm10, %v1431_v19, %v1465_v43  ;;  %v12561_v3 = vpop.permute.xlu1 %1310  ;;  %v1309_v50 = vpop.permute.xlu0 %1308 }
 0x101   : > { %v17268_v21 = vrot.slane %v12561_v3, 4  ;;  %v1332_v18 = vrot.slane %v1309_v50, 4  ;;  %v10156_v59 = vcombine.high %v1459_v56, %v1466_v4  ;;  %v10155_v58 = vcombine.low %v1459_v56, %v1466_v4 }
 0x102   : > { %2725 = vrot.lane.b32.xlu1 %v12558_v44, %s17381_s23  ;;  %2723 = vrot.lane.b32.xlu0 %v12196_v7, %s17381_s23 }
 0x103   : > { %v1344_v19 = vsel %vm389_vm0, %v1332_v18, %v17268_v21  ;;  %4674 = vmatprep.subr.bf16.mxu1 %v10156_v59  ;;  %v1925_v18 = vld [vmem:[%s12075_s21 + $0x2c] sm:$0xff] }
 0x104   : > { %v1346_v43 = vsel %vm1345_vm11, %v1309_v50, %v1344_v19  ;;  %v12573_v20 = vpop.permute.xlu1 %1318  ;;  %v1317_v36 = vpop.permute.xlu0 %1316  ;;  %4675 = vmatpush1.bf16.msra.mxu1 %v10155_v58 }
 0x105   : > { %v17270_v56 = vrot.slane %v12573_v20, 4  ;;  %v1336_v4 = vrot.slane %v1317_v36, 4 }
 0x106   : > { %1946 = vrot.lane.b32.xlu1 %v1921_v61, %s17340_s18  ;;  %1944 = vrot.lane.b32.xlu0 %v12189_v6, %s17340_s18 }
 0x107   : > { %v1352_v7 = vsel %vm389_vm0, %v1336_v4, %v17270_v56 }
 0x108   : > { %v1353_v59 = vsel %vm1345_vm11, %v1317_v36, %v1352_v7  ;;  %v12584_v50 = vpop.permute.xlu1 %1326  ;;  %v1325_v19 = vpop.permute.xlu0 %1324 }
 0x109   : > { %v17271_v58 = vrot.slane %v12584_v50, 4  ;;  %v1340_v39 = vrot.slane %v1325_v19, 4  ;;  %v10142_v21 = vcombine.high %v1346_v43, %v1353_v59  ;;  %v10141_v27 = vcombine.low %v1346_v43, %v1353_v59  ;;  %v11379_v43 = vld [vmem:[%s17230_s1 + $0xc] ss:$20 sps:$4 sm:$0xff]  }
 0x10a   : > { %1954 = vrot.lane.b32.xlu1 %v1925_v18, %s17340_s18  ;;  %1952 = vrot.lane.b32.xlu0 %v12204_v8, %s17340_s18  ;;  %s17643_s18 = smov 95  }
 0x10b   : > { %v1359_v6 = vsel %vm389_vm0, %v1340_v39, %v17271_v58  ;;  %4615 = vmatprep.subr.bf16.mxu0 %v10142_v21  ;;  %4694 = vmatprep.mubr.bf16.mxu1 %v11379_v43  ;;  %v12625_v43 = vld [vmem:[%s12075_s21 + $0x58] sm:$0xff] }
 0x10c   : > { %v1360_v36 = vsel %vm1345_vm11, %v1325_v19, %v1359_v6  ;;  %v12594_v61 = vpop.permute.xlu1 %1416  ;;  %v1415_v4 = vpop.permute.xlu0 %1414  ;;  %4616 = vmatpush2.bf16.msra.mxu0 %v10141_v27  ;;  %v12608_v27 = vld [vmem:[%s12075_s21 + $0x30] sm:$0xff] }
 0x10d   : > { %v17272_v7 = vrot.slane %v12594_v61, 4  ;;  %v1438_v56 = vrot.slane %v1415_v4, 4 }
 0x10e   : > { %2709 = vrot.lane.b32.xlu1 %v12263_v34, %s17381_s23  ;;  %2707 = vrot.lane.b32.xlu0 %v12266_v35, %s17381_s23 }
 0x10f   : > { %v1450_v8 = vsel %vm389_vm0, %v1438_v56, %v17272_v7 }
 0x110   : > { %v1452_v39 = vsel %vm17292_vm10, %v1415_v4, %v1450_v8  ;;  %v12611_v21 = vpop.permute.xlu1 %1212  ;;  %v1211_v18 = vpop.permute.xlu0 %1210  ;;  %v12622_v4 = vld [vmem:[%s12075_s21 + $0x10] sm:$0xff]  ;;  %vm17316_vm10 = vcmask 236544  }
 0x111   : > { %v17274_v59 = vrot.slane %v12611_v21, 4  ;;  %v1230_v19 = vrot.slane %v1211_v18, 4  ;;  %v10149_v6 = vcombine.high %v1360_v36, %v1452_v39  ;;  %v10148_v58 = vcombine.low %v1360_v36, %v1452_v39 }
 0x112   : > { %2717 = vrot.lane.b32.xlu1 %v12608_v27, %s17381_s23  ;;  %2715 = vrot.lane.b32.xlu0 %v12219_v9, %s17381_s23 }
 0x113   : > { %v1246_v56 = vsel %vm389_vm0, %v1230_v19, %v17274_v59  ;;  %4676 = vmatprep.subr.bf16.mxu1 %v10149_v6 }
 0x114   : > { %v1247_v8 = vsel %vm17449_vm12, %v1211_v18, %v1246_v56  ;;  %v12628_v7 = vpop.permute.xlu1 %1220  ;;  %v1219_v36 = vpop.permute.xlu0 %1218  ;;  %4677 = vmatpush1.bf16.msra.mxu1 %v10148_v58 }
 0x115   : > { %v17277_v39 = vrot.slane %v12628_v7, 4  ;;  %v1234_v55 = vrot.slane %v1219_v36, 4 }
 0x116   : > { %782 = vrot.lane.b32.xlu1 %v12622_v4, %s17394_s22  ;;  %692 = vrot.lane.b32.xlu0 %v12625_v43, %s17381_s23 }
 0x117   : > { %v1253_v19 = vsel %vm389_vm0, %v1234_v55, %v17277_v39 }
 0x118   : > { %v1254_v6 = vsel %vm17449_vm12, %v1219_v36, %v1253_v19  ;;  %v12639_v18 = vpop.permute.xlu1 %2394  ;;  %v2393_v56 = vpop.permute.xlu0 %2392 }
 0x119   : > { %v17281_v58 = vrot.slane %v12639_v18, 4  ;;  %v2416_v59 = vrot.slane %v2393_v56, 4  ;;  %v10135_v29 = vcombine.high %v1247_v8, %v1254_v6  ;;  %v10134_v40 = vcombine.low %v1247_v8, %v1254_v6 }
 0x11a   : > { %2612 = vrot.lane.b32.xlu1 %v12608_v27, %s17342_s25  ;;  %2610 = vrot.lane.b32.xlu0 %v12219_v9, %s17342_s25  ;;  %v10247_v8 = vcombine.high %v12318_v0, %v12219_v9 }
 0x11b   : > { %v2428_v55 = vsel %vm389_vm0, %v2416_v59, %v17281_v58  ;;  %4617 = vmatprep.subr.bf16.mxu0 %v10135_v29  ;;  %v12667_v29 = vld [vmem:[%s12075_s21 + $0x34] sm:$0xff] }
 0x11c   : > { %v2429_v36 = vsel %vm391_vm8, %v2393_v56, %v2428_v55  ;;  %v12650_v19 = vpop.permute.xlu1 %1114  ;;  %v1113_v39 = vpop.permute.xlu0 %1112  ;;  %4618 = vmatpush2.bf16.msra.mxu0 %v10134_v40 }
 0x11d   : > { %v17284_v6 = vrot.slane %v12650_v19, 4  ;;  %v1128_v48 = vrot.slane %v1113_v39, 4  ;;  %v10254_v53 = vcombine.high %v12655_v31, %v2429_v36  ;;  %v10253_v59 = vcombine.low %v12655_v31, %v2429_v36 }
 0x11e   : > { %2620 = vrot.lane.b32.xlu1 %v12558_v44, %s17342_s25  ;;  %2618 = vrot.lane.b32.xlu0 %v12655_v31, %s17342_s25  ;;  %v10246_v36 = vcombine.low %v12318_v0, %v12219_v9 }
 0x11f   : > { %v1147_v40 = vsel %vm389_vm0, %v1128_v48, %v17284_v6  ;;  %4678 = vmatprep.subr.bf16.mxu1 %v10254_v53 }
 0x120   : > { %v1148_v56 = vsel %vm17298_vm13, %v1113_v39, %v1147_v40  ;;  %v12670_v55 = vpop.permute.xlu1 %1204  ;;  %v1203_v58 = vpop.permute.xlu0 %1202  ;;  %4679 = vmatpush2.bf16.msra.mxu1 %v10253_v59 }
 0x121   : > { %v17285_v37 = vrot.slane %v12670_v55, 4  ;;  %v1226_v51 = vrot.slane %v1203_v58, 4  ;;  %4680 = vmatprep.subr.bf16.mxu1 %v10247_v8 }
 0x122   : > { %684 = vrot.lane.b32.xlu1 %v12667_v29, %s17381_s23  ;;  %676 = vrot.lane.b32.xlu0 %v12622_v4, %s17381_s23  ;;  %s17657_s23 = smov 30  }
 0x123   : > { %v1238_v48 = vsel %vm389_vm0, %v1226_v51, %v17285_v37 }
 0x124   : > { %v1240_v53 = vsel %vm17449_vm12, %v1203_v58, %v1238_v48  ;;  %v12683_v39 = vpop.permute.xlu1 %1098  ;;  %v1097_v59 = vpop.permute.xlu0 %1096  ;;  %4681 = vmatpush2.bf16.msra.mxu1 %v10246_v36 }
 0x125   : > { %v17286_v9 = vrot.slane %v12683_v39, 4  ;;  %v1120_v40 = vrot.slane %v1097_v59, 4  ;;  %v10128_v8 = vcombine.high %v1148_v56, %v1240_v53  ;;  %v10127_v6 = vcombine.low %v1148_v56, %v1240_v53 }
 0x126   : > { %2515 = vrot.lane.b32.xlu1 %v12558_v44, %s17337_s10  ;;  %2513 = vrot.lane.b32.xlu0 %v12655_v31, %s17337_s10 }
 0x127   : > { %v1132_v51 = vsel %vm389_vm0, %v1120_v40, %v17286_v9  ;;  %4619 = vmatprep.subr.bf16.mxu0 %v10128_v8 }
 0x128   : > { %v1134_v58 = vsel %vm17298_vm13, %v1097_v59, %v1132_v51  ;;  %v12694_v48 = vpop.permute.xlu1 %1106  ;;  %v1105_v36 = vpop.permute.xlu0 %1104  ;;  %4620 = vmatpush2.bf16.msra.mxu0 %v10127_v6 }
 0x129   : > { %v17289_v37 = vrot.slane %v12694_v48, 4  ;;  %v1124_v56 = vrot.slane %v1105_v36, 4 }
 0x12a   : > { %2604 = vrot.lane.b32.xlu1 %v12263_v34, %s17342_s25  ;;  %2602 = vrot.lane.b32.xlu0 %v12266_v35, %s17342_s25  ;;  %v2474_v35 = vld [vmem:[%s12075_s21 + $0xc] sm:$0xff] }
 0x12b   : > { %v1140_v53 = vsel %vm389_vm0, %v1124_v56, %v17289_v37 }
 0x12c   : > { %v1141_v59 = vsel %vm17298_vm13, %v1105_v36, %v1140_v53  ;;  %v12705_v40 = vpop.permute.xlu1 %2272  ;;  %v2271_v6 = vpop.permute.xlu0 %2270  ;;  %vm921_vm13 = vcmask 777216  }
 0x12d   : > { %17615 = vst [vmem:[#allocation16_spill] sm:$0xff] %v12705_v40  ;;  %v17288_v8 = vrot.slane %v12705_v40, 4  ;;  %v2290_v51 = vrot.slane %v2271_v6, 4  ;;  %v10121_v9 = vcombine.high %v1134_v58, %v1141_v59  ;;  %v10120_v54 = vcombine.low %v1134_v58, %v1141_v59 }
 0x12e   : > { %586 = vrot.lane.b32.xlu1 %v12625_v43, %s17342_s25  ;;  %578 = vrot.lane.b32.xlu0 %v12667_v29, %s17342_s25 }
 0x12f   : > { %v2306_v34 = vsel %vm389_vm0, %v2290_v51, %v17288_v8  ;;  %4621 = vmatprep.subr.bf16.mxu0 %v10121_v9 }
 0x130   : > { %v2307_v36 = vsel %vm17329_vm14, %v2271_v6, %v2306_v34  ;;  %v12717_v56 = vpop.permute.xlu1 %2280  ;;  %v2279_v53 = vpop.permute.xlu0 %2278  ;;  %4622 = vmatpush2.bf16.msra.mxu0 %v10120_v54 }
 0x131   : > { %17616 = vst [vmem:[#allocation17_spill] sm:$0xff] %v12717_v56  ;;  %v17291_v58 = vrot.slane %v12717_v56, 4  ;;  %v2294_v59 = vrot.slane %v2279_v53, 4 }
 0x132   : > { %2499 = vrot.lane.b32.xlu1 %v2474_v35, %s17337_s10  ;;  %2497 = vrot.lane.b32.xlu0 %v12318_v0, %s17337_s10  ;;  %v11849_v35 = vld [vmem:[#allocation2 + $0x6ac] sm:$0xff] }
 0x133   : > { %v2313_v51 = vsel %vm389_vm0, %v2294_v59, %v17291_v58 }
 0x134   : > { %v2314_v9 = vsel %vm17329_vm14, %v2279_v53, %v2313_v51  ;;  %v12727_v8 = vpop.permute.xlu1 %1000  ;;  %v999_v6 = vpop.permute.xlu0 %998 }
 0x135   : > { %v17293_v54 = vrot.slane %v12727_v8, 4  ;;  %v1018_v34 = vrot.slane %v999_v6, 4  ;;  %v10240_v37 = vcombine.high %v2307_v36, %v2314_v9  ;;  %v10239_v1 = vcombine.low %v2307_v36, %v2314_v9 }
 0x136   : > { %2507 = vrot.lane.b32.xlu1 %v12608_v27, %s17337_s10  ;;  %2505 = vrot.lane.b32.xlu0 %v11849_v35, %s17337_s10 }
 0x137   : > { %v1034_v0 = vsel %vm389_vm0, %v1018_v34, %v17293_v54  ;;  %4682 = vmatprep.subr.bf16.mxu1 %v10240_v37 }
 0x138   : > { %v1035_v53 = vsel %vm1027_vm15, %v999_v6, %v1034_v0  ;;  %v12737_v59 = vpop.permute.xlu1 %1008  ;;  %v1007_v51 = vpop.permute.xlu0 %1006  ;;  %4683 = vmatpush2.bf16.msra.mxu1 %v10239_v1 }
 0x139   : > { %v17295_v58 = vrot.slane %v12737_v59, 4  ;;  %v1022_v36 = vrot.slane %v1007_v51, 4 }
 0x13a   : > { %570 = vrot.lane.b32.xlu1 %v12622_v4, %s17342_s25  ;;  %480 = vrot.lane.b32.xlu0 %v12625_v43, %s17337_s10  ;;  %s17660_s25 = smov 125  }
 0x13b   : > { %v1041_v9 = vsel %vm389_vm0, %v1022_v36, %v17295_v58 }
 0x13c   : > { %v1042_v37 = vsel %vm1027_vm15, %v1007_v51, %v1041_v9  ;;  %v12748_v6 = vpop.permute.xlu1 %2174  ;;  %v2173_v34 = vpop.permute.xlu0 %2172 }
 0x13d   : > { %17617 = vst [vmem:[#allocation18_spill] sm:$0xff] %v12748_v6  ;;  %v17299_v1 = vrot.slane %v12748_v6, 4  ;;  %v2188_v0 = vrot.slane %v2173_v34, 4  ;;  %v10114_v54 = vcombine.high %v1035_v53, %v1042_v37  ;;  %v10113_v24 = vcombine.low %v1035_v53, %v1042_v37 }
 0x13e   : > { %2402 = vrot.lane.b32.xlu1 %v12608_v27, %s17371_s13  ;;  %2400 = vrot.lane.b32.xlu0 %v11849_v35, %s17371_s13 }
 0x13f   : > { %v2207_v36 = vsel %vm389_vm0, %v2188_v0, %v17299_v1  ;;  %4623 = vmatprep.subr.bf16.mxu0 %v10114_v54  ;;  %v17305_v54 = vmov 0  }
 0x140   : > { %v2208_v51 = vsel %vm17316_vm10, %v2173_v34, %v2207_v36  ;;  %v12758_v9 = vpop.permute.xlu1 %2264  ;;  %v2263_v58 = vpop.permute.xlu0 %2262  ;;  %4624 = vmatpush2.bf16.msra.mxu0 %v10113_v24  ;;  %11041 = vset.pattern.permute.xlu1 %v17305_v54 }
 0x141   : > { %17618 = vst [vmem:[#allocation19_spill] sm:$0xff] %v12758_v9  ;;  %v17300_v32 = vrot.slane %v12758_v9, 4  ;;  %v2286_v17 = vrot.slane %v2263_v58, 4  ;;  %11040 = vset.pattern.permute.xlu0 %v17305_v54 }
 0x142   : > { %2410 = vrot.lane.b32.xlu1 %v12558_v44, %s17371_s13  ;;  %2408 = vrot.lane.b32.xlu0 %v12655_v31, %s17371_s13 }
 0x143   : > { %v2298_v27 = vsel %vm389_vm0, %v2286_v17, %v17300_v32 }
 0x144   : > { %v2300_v24 = vsel %vm17329_vm14, %v2263_v58, %v2298_v27  ;;  %v12771_v35 = vpop.permute.xlu1 %902  ;;  %v901_v53 = vpop.permute.xlu0 %900  ;;  %vm17420_vm14 = vcmask 252928  }
 0x145   : > { %17619 = vst [vmem:[#allocation20_spill] sm:$0xff] %v12771_v35  ;;  %v17301_v44 = vrot.slane %v12771_v35, 4  ;;  %v916_v37 = vrot.slane %v901_v53, 4  ;;  %v10233_v34 = vcombine.high %v2208_v51, %v2300_v24  ;;  %v10232_v31 = vcombine.low %v2208_v51, %v2300_v24 }
 0x146   : > { %472 = vrot.lane.b32.xlu1 %v12667_v29, %s17337_s10  ;;  %464 = vrot.lane.b32.xlu0 %v12622_v4, %s17337_s10  ;;  %s17651_s10 = smov 29  }
 0x147   : > { %v935_v17 = vsel %vm389_vm0, %v916_v37, %v17301_v44  ;;  %4684 = vmatprep.subr.bf16.mxu1 %v10233_v34 }
 0x148   : > { %v936_v58 = vsel %vm921_vm13, %v901_v53, %v935_v17  ;;  %v12782_v0 = vpop.permute.xlu1 %992  ;;  %v991_v36 = vpop.permute.xlu0 %990  ;;  %4685 = vmatpush2.bf16.msra.mxu1 %v10232_v31  ;;  %v12796_v17 = vld [vmem:[%s12075_s21 + $0x50] sm:$0xff] }
 0x149   : > { %v17302_v51 = vrot.slane %v12782_v0, 4  ;;  %v1014_v27 = vrot.slane %v991_v36, 4 }
 0x14a   : > { %1858 = vrot.lane.b32.xlu1 %v12625_v43, %s17335_s24  ;;  %1850 = vrot.lane.b32.xlu0 %v12667_v29, %s17335_s24 }
 0x14b   : > { %v1026_v24 = vsel %vm389_vm0, %v1014_v27, %v17302_v51 }
 0x14c   : > { %v1028_v37 = vsel %vm1027_vm15, %v991_v36, %v1026_v24  ;;  %v12793_v53 = vpop.permute.xlu1 %2158  ;;  %v2157_v34 = vpop.permute.xlu0 %2156 }
 0x14d   : > { %17620 = vst [vmem:[#allocation21_spill] sm:$0xff] %v12793_v53  ;;  %v17303_v31 = vrot.slane %v12793_v53, 4  ;;  %v2180_v1 = vrot.slane %v2157_v34, 4  ;;  %v10107_v32 = vcombine.high %v936_v58, %v1028_v37  ;;  %v10106_v44 = vcombine.low %v936_v58, %v1028_v37 }
 0x14e   : > { %373 = vrot.lane.b32.xlu1 %v12625_v43, %s17371_s13  ;;  %365 = vrot.lane.b32.xlu0 %v12667_v29, %s17371_s13 }
 0x14f   : > { %v2192_v36 = vsel %vm389_vm0, %v2180_v1, %v17303_v31  ;;  %4625 = vmatprep.subr.bf16.mxu0 %v10107_v32  ;;  %v12821_v31 = vld [vmem:[%s12075_s21 + $0x8] sm:$0xff] }
 0x150   : > { %v2194_v27 = vsel %vm17316_vm10, %v2157_v34, %v2192_v36  ;;  %v12807_v24 = vpop.permute.xlu1 %2166  ;;  %v2165_v51 = vpop.permute.xlu0 %2164  ;;  %4626 = vmatpush2.bf16.msra.mxu0 %v10106_v44  ;;  %v12824_v44 = vld [vmem:[%s12075_s21 + $0x2c] sm:$0xff] }
 0x151   : > { %17621 = vst [vmem:[#allocation22_spill] sm:$0xff] %v12807_v24  ;;  %v17311_v58 = vrot.slane %v12807_v24, 4  ;;  %v2184_v37 = vrot.slane %v2165_v51, 4 }
 0x152   : > { %1842 = vrot.lane.b32.xlu1 %v12622_v4, %s17335_s24  ;;  %1752 = vrot.lane.b32.xlu0 %v12625_v43, %s17324_s26  ;;  %s17638_s24 = smov 94  }
 0x153   : > { %v2200_v1 = vsel %vm389_vm0, %v2184_v37, %v17311_v58 }
 0x154   : > { %v2201_v32 = vsel %vm17316_vm10, %v2165_v51, %v2200_v1  ;;  %v12818_v34 = vpop.permute.xlu1 %886  ;;  %v885_v36 = vpop.permute.xlu0 %884  ;;  %vm2087_vm10 = vcmask 244736  }
 0x155   : > { %17622 = vst [vmem:[#allocation23_spill] sm:$0xff] %v12818_v34  ;;  %v17317_v16 = vrot.slane %v12818_v34, 4  ;;  %v908_v54 = vrot.slane %v885_v36, 4  ;;  %v10226_v53 = vcombine.high %v2194_v27, %v2201_v32  ;;  %v10225_v6 = vcombine.low %v2194_v27, %v2201_v32 }
 0x156   : > { %1736 = vrot.lane.b32.xlu1 %v12622_v4, %s17324_s26  ;;  %357 = vrot.lane.b32.xlu0 %v12622_v4, %s17371_s13 }
 0x157   : > { %v920_v1 = vsel %vm389_vm0, %v908_v54, %v17317_v16  ;;  %4686 = vmatprep.subr.bf16.mxu1 %v10226_v53 }
 0x158   : > { %v922_v58 = vsel %vm921_vm13, %v885_v36, %v920_v1  ;;  %v12839_v27 = vpop.permute.xlu1 %894  ;;  %v893_v32 = vpop.permute.xlu0 %892  ;;  %4687 = vmatpush2.bf16.msra.mxu1 %v10225_v6 }
 0x159   : > { %17623 = vst [vmem:[#allocation24_spill] sm:$0xff] %v12839_v27  ;;  %v17318_v24 = vrot.slane %v12839_v27, 4  ;;  %v912_v9 = vrot.slane %v893_v32, 4  ;;  %v12974_v27 = vld [vmem:[%s12075_s21 + $0xc] sm:$0xff] }
 0x15a   : > { %1638 = vrot.lane.b32.xlu1 %v12667_v29, %s17333_s12  ;;  %1744 = vrot.lane.b32.xlu0 %v12667_v29, %s17324_s26  ;;  %s17629_s26 = smov 92   ;;  %17640 = vst [vmem:[#allocation35_spill] sm:$0xff] %v12974_v27 }
 0x15b   : > { %v928_v54 = vsel %vm389_vm0, %v912_v9, %v17318_v24 }
 0x15c   : > { %v929_v53 = vsel %vm921_vm13, %v893_v32, %v928_v54  ;;  %v12850_v36 = vpop.permute.xlu1 %2060  ;;  %v2059_v1 = vpop.permute.xlu0 %2058 }
 0x15d   : > { %17624 = vst [vmem:[#allocation25_spill] sm:$0xff] %v12850_v36  ;;  %v17321_v6 = vrot.slane %v12850_v36, 4  ;;  %v2078_v16 = vrot.slane %v2059_v1, 4  ;;  %v10100_v51 = vcombine.high %v922_v58, %v929_v53  ;;  %v10099_v37 = vcombine.low %v922_v58, %v929_v53 }
 0x15e   : > { %1312 = vrot.lane.b32.xlu1 %v12622_v4, %s17625_s19  ;;  %1646 = vrot.lane.b32.xlu0 %v12625_v43, %s17333_s12 }
 0x15f   : > { %v2094_v9 = vsel %vm389_vm0, %v2078_v16, %v17321_v6  ;;  %4627 = vmatprep.subr.bf16.mxu0 %v10100_v51 }
 0x160   : > { %v2095_v32 = vsel %vm2087_vm10, %v2059_v1, %v2094_v9  ;;  %v12861_v54 = vpop.permute.xlu1 %2068  ;;  %v2067_v24 = vpop.permute.xlu0 %2066  ;;  %4628 = vmatpush2.bf16.msra.mxu0 %v10099_v37 }
 0x161   : > { %17626 = vst [vmem:[#allocation26_spill] sm:$0xff] %v12861_v54  ;;  %v17326_v40 = vrot.slane %v12861_v54, 4  ;;  %v2082_v58 = vrot.slane %v2067_v24, 4 }
 0x162   : > { %1540 = vrot.lane.b32.xlu1 %v12625_v43, %s17627_s20  ;;  %1320 = vrot.lane.b32.xlu0 %v12667_v29, %s17625_s19 }
 0x163   : > { %v2101_v16 = vsel %vm389_vm0, %v2082_v58, %v17326_v40 }
 0x164   : > { %v2102_v51 = vsel %vm2087_vm10, %v2067_v24, %v2101_v16  ;;  %v12872_v53 = vpop.permute.xlu1 %788  ;;  %v787_v1 = vpop.permute.xlu0 %786 }
 0x165   : > { %17628 = vst [vmem:[#allocation27_spill] sm:$0xff] %v12872_v53  ;;  %v17330_v37 = vrot.slane %v12872_v53, 4  ;;  %v806_v9 = vrot.slane %v787_v1, 4  ;;  %v10219_v6 = vcombine.high %v2095_v32, %v2102_v51  ;;  %v10218_v36 = vcombine.low %v2095_v32, %v2102_v51 }
 0x166   : > { %1214 = vrot.lane.b32.xlu1 %v12667_v29, %s17629_s26  ;;  %1630 = vrot.lane.b32.xlu0 %v12622_v4, %s17333_s12  ;;  %s17632_s12 = smov 93  }
 0x167   : > { %v822_v58 = vsel %vm389_vm0, %v806_v9, %v17330_v37  ;;  %4688 = vmatprep.subr.bf16.mxu1 %v10219_v6 }
 0x168   : > { %v823_v24 = vsel %vm815_vm1, %v787_v1, %v822_v58  ;;  %v12883_v16 = vpop.permute.xlu1 %796  ;;  %v795_v40 = vpop.permute.xlu0 %794  ;;  %4689 = vmatpush2.bf16.msra.mxu1 %v10218_v36 }
 0x169   : > { %17630 = vst [vmem:[#allocation28_spill] sm:$0xff] %v12883_v16  ;;  %v17339_v54 = vrot.slane %v12883_v16, 4  ;;  %v810_v32 = vrot.slane %v795_v40, 4 }
 0x16a   : > { %1524 = vrot.lane.b32.xlu1 %v12622_v4, %s17627_s20  ;;  %1222 = vrot.lane.b32.xlu0 %v12625_v43, %s17629_s26 }
 0x16b   : > { %v829_v51 = vsel %vm389_vm0, %v810_v32, %v17339_v54 }
 0x16c   : > { %v830_v6 = vsel %vm815_vm1, %v795_v40, %v829_v51  ;;  %v12894_v1 = vpop.permute.xlu1 %1962  ;;  %v1961_v9 = vpop.permute.xlu0 %1960  ;;  %v11378_v40 = vld [vmem:[%s17230_s1] ss:$20 sps:$4 sm:$0xff]  }
 0x16d   : > { %17631 = vst [vmem:[#allocation29_spill] sm:$0xff] %v12894_v1  ;;  %v17350_v36 = vrot.slane %v12894_v1, 4  ;;  %v1976_v58 = vrot.slane %v1961_v9, 4  ;;  %v10093_v37 = vcombine.high %v823_v24, %v830_v6  ;;  %v10092_v53 = vcombine.low %v823_v24, %v830_v6  ;;  %v11382_v6 = vld [vmem:[%s17230_s1 + $0x2c] ss:$20 sps:$4 sm:$0xff]  }
 0x16e   : > { %1116 = vrot.lane.b32.xlu1 %v12625_v43, %s17632_s12  ;;  %1532 = vrot.lane.b32.xlu0 %v12667_v29, %s17627_s20 }
 0x16f   : > { %v1995_v32 = vsel %vm389_vm0, %v1976_v58, %v17350_v36  ;;  %4629 = vmatprep.subr.bf16.mxu0 %v10093_v37 }
 0x170   : > { %v1996_v51 = vsel %vm17420_vm14, %v1961_v9, %v1995_v32  ;;  %v12908_v54 = vpop.permute.xlu1 %2052  ;;  %v2051_v24 = vpop.permute.xlu0 %2050  ;;  %4630 = vmatpush2.bf16.msra.mxu0 %v10092_v53 }
 0x171   : > { %17633 = vst [vmem:[#allocation30_spill] sm:$0xff] %v12908_v54  ;;  %v17355_v16 = vrot.slane %v12908_v54, 4  ;;  %v2074_v1 = vrot.slane %v2051_v24, 4 }
 0x172   : > { %1426 = vrot.lane.b32.xlu1 %v12667_v29, %s17634_s17  ;;  %1206 = vrot.lane.b32.xlu0 %v12622_v4, %s17629_s26 }
 0x173   : > { %v2086_v37 = vsel %vm389_vm0, %v2074_v1, %v17355_v16  ;;  %4632 = vmatmul.mubr.bf16.vlgmr.msra.gmra.mxu0 %v11378_v40  ;;  %v11384_v40 = vld [vmem:[%s17230_s1 + $0x28] ss:$20 sps:$4 sm:$0xff]  }
 0x174   : > { %v2088_v53 = vsel %vm2087_vm10, %v2051_v24, %v2086_v37  ;;  %v12922_v9 = vpop.permute.xlu1 %2725  ;;  %v2724_v58 = vpop.permute.xlu0 %2723  ;;  %4641 = vmatprep.mubr.bf16.mxu0 %v11382_v6  ;;  %v11385_v37 = vld [vmem:[%s17230_s1 + $0x54] ss:$20 sps:$4 sm:$0xff]  }
 0x175   : > { %17635 = vst [vmem:[#allocation31_spill] sm:$0xff] %v12922_v9  ;;  %v17358_v32 = vrot.slane %v12922_v9, 4  ;;  %v2739_v36 = vrot.slane %v2724_v58, 4  ;;  %v10212_v56 = vcombine.high %v1996_v51, %v2088_v53  ;;  %v10211_v34 = vcombine.low %v1996_v51, %v2088_v53  ;;  %v2353_v53 = vld [vmem:[%s12075_s21 + $0x54] sm:$0xff] }
 0x176   : > { %1100 = vrot.lane.b32.xlu1 %v12622_v4, %s17632_s12  ;;  %1434 = vrot.lane.b32.xlu0 %v12625_v43, %s17634_s17  ;;  %2365 = vst [vmem:[#allocation2 + $0x6d0] sm:$0xff] %v2353_v53 }
 0x177   : > { %v2757_v1 = vsel %vm389_vm0, %v2739_v36, %v17358_v32  ;;  %4690 = vmatprep.subr.bf16.mxu1 %v10212_v56 }
 0x178   : > { %v2758_v24 = vsel %vm709_vm2, %v2724_v58, %v2757_v1  ;;  %v12936_v6 = vpop.permute.xlu1 %1946  ;;  %v1945_v51 = vpop.permute.xlu0 %1944  ;;  %4691 = vmatpush2.bf16.msra.mxu1 %v10211_v34 }
 0x179   : > { %17636 = vst [vmem:[#allocation32_spill] sm:$0xff] %v12936_v6  ;;  %v17361_v16 = vrot.slane %v12936_v6, 4  ;;  %v1968_v54 = vrot.slane %v1945_v51, 4  ;;  %v10296_v36 = vcombine.high %v2758_v24, %v2758_v24  ;;  %v10295_v56 = vcombine.low %v2758_v24, %v2758_v24 }
 0x17a   : > { %1328 = vrot.lane.b32.xlu1 %v12625_v43, %s17625_s19  ;;  %1108 = vrot.lane.b32.xlu0 %v12667_v29, %s17632_s12 }
 0x17b   : > { %v1980_v34 = vsel %vm389_vm0, %v1968_v54, %v17361_v16  ;;  %10302 = vmatprep.subr.msk.bf16.mxu0 %vm389_vm0, %v10296_v36  ;;  %v4579_v58 = vsel %vm389_vm0, %v10295_v56, 0  ;;  %4642 = vmatmul.mubr.bf16.gmra.mxu0 %v11384_v40  ;;  %v12964_v40 = vld [vmem:[%s12075_s21 + $0x14] sm:$0xff] }
 0x17c   : > { %v1982_v1 = vsel %vm17420_vm14, %v1945_v51, %v1980_v34  ;;  %v12953_v24 = vpop.permute.xlu1 %1954  ;;  %v1953_v53 = vpop.permute.xlu0 %1952  ;;  %4730 = vmatpush1.bf16.msra.mxu0 %v4579_v58  ;;  %4651 = vmatprep.mubr.bf16.mxu0 %v11385_v37  ;;  %v11387_v51 = vld [vmem:[%s17230_s1 + $0x50] ss:$20 sps:$4 sm:$0xff]  }
 0x17d   : > { %17637 = vst [vmem:[#allocation33_spill] sm:$0xff] %v12953_v24  ;;  %v17368_v32 = vrot.slane %v12953_v24, 4  ;;  %v1972_v9 = vrot.slane %v1953_v53, 4  ;;  %v12977_v24 = vld [vmem:[%s12075_s21 + $0x30] sm:$0xff] }
 0x17e   : > { %1002 = vrot.lane.b32.xlu1 %v12667_v29, %s17638_s24  ;;  %1418 = vrot.lane.b32.xlu0 %v12622_v4, %s17634_s17  ;;  %17641 = vst [vmem:[#allocation36_spill] sm:$0xff] %v12977_v24 }
 0x17f   : > { %v1988_v54 = vsel %vm389_vm0, %v1972_v9, %v17368_v32  ;;  %v17642_v9 = vmov 0  }
 0x180   : > { %v1989_v37 = vsel %vm17420_vm14, %v1953_v53, %v1988_v54  ;;  %v12970_v36 = vpop.permute.xlu1 %2709  ;;  %v2708_v56 = vpop.permute.xlu0 %2707  ;;  %vm4567_vm14 = vcmask 719872  }
 0x181   : > { %17639 = vst [vmem:[#allocation34_spill] sm:$0xff] %v12970_v36  ;;  %v17373_v34 = vrot.slane %v12970_v36, 4  ;;  %v2731_v58 = vrot.slane %v2708_v56, 4  ;;  %v10205_v16 = vcombine.high %v1982_v1, %v1989_v37  ;;  %v10204_v6 = vcombine.low %v1982_v1, %v1989_v37  ;;  %v11381_v1 = vld [vmem:[%s17230_s1 + $0x8] ss:$20 sps:$4 sm:$0xff]  }
 0x182   : > { %2396 = vrot.lane.b32.xlu1 %v12964_v40, %s17371_s13  ;;  %1010 = vrot.lane.b32.xlu0 %v12625_v43, %s17638_s24  ;;  %s17648_s13 = smov 28  }
 0x183   : > { %v2743_v53 = vsel %vm389_vm0, %v2731_v58, %v17373_v34  ;;  %4692 = vmatprep.subr.bf16.mxu1 %v10205_v16  ;;  %4652 = vmatmul.mubr.bf16.gmra.mxu0 %v11387_v51  ;;  %v11391_v16 = vld [vmem:[%s17230_s1 + $0x34] ss:$20 sps:$4 sm:$0xff]  }
 0x184   : > { %v2744_v37 = vsel %vm709_vm2, %v2708_v56, %v2743_v53  ;;  %v12994_v32 = vpop.permute.xlu1 %2717  ;;  %v2716_v35 = vpop.permute.xlu0 %2715  ;;  %4693 = vmatpush2.bf16.msra.mxu1 %v10204_v6  ;;  %4757 = vmatprep.mubr.bf16.mxu0 %v17642_v9 }
 0x185   : > { %v17380_v58 = vrot.slane %v12994_v32, 4  ;;  %v2735_v34 = vrot.slane %v2716_v35, 4 }
 0x186   : > { %994 = vrot.lane.b32.xlu1 %v12622_v4, %s17638_s24  ;;  %904 = vrot.lane.b32.xlu0 %v12625_v43, %s17643_s18 }
 0x187   : > { %v2750_v51 = vsel %vm389_vm0, %v2735_v34, %v17380_v58  ;;  %4695 = vmatmul.mubr.bf16.vlgmr.msra.gmra.mxu1 %v11381_v1  ;;  %v17647_v1 = vrot.slane %v12232_v15, 4 }
 0x188   : > { %v2751_v6 = vsel %vm709_vm2, %v2716_v35, %v2750_v51  ;;  %v13009_v56 = vpop.permute.xlu1 %782  ;;  %v13011_v53 = vpop.permute.xlu0 %692  ;;  %4704 = vmatprep.mubr.bf16.mxu1 %v11391_v16  ;;  %v17646_v35 = vrot.slane %v12230_v14, 4 }
 0x189   : > { %17644 = vst [vmem:[#allocation37_spill] sm:$0xff] %v13009_v56  ;;  %17645 = vst [vmem:[#allocation38_spill] sm:$0xff] %v13011_v53  ;;  %v17383_v54 = vrot.slane %v13009_v56, 4  ;;  %v17384_v36 = vrot.slane %v13011_v53, 4  ;;  %v10288_v24 = vcombine.low %v2744_v37, %v2751_v6  ;;  %v10289_v27 = vcombine.high %v2744_v37, %v2751_v6  ;;  %v11395_v37 = vld [vmem:[%s17230_s1 + $0x30] ss:$20 sps:$4 sm:$0xff]  }
 0x18a   : > { %896 = vrot.lane.b32.xlu1 %v12667_v29, %s17643_s18  ;;  %888 = vrot.lane.b32.xlu0 %v12622_v4, %s17643_s18  ;;  %v13085_v53 = vld [vmem:[%s12075_s21 + $0x5c] sm:$0xff] }
 0x18b   : > { %v817_v34 = vsel %vm389_vm0, %v17646_v35, %v17383_v54  ;;  %v725_v16 = vsel %vm389_vm0, %v17647_v1, %v17384_v36  ;;  %4731 = vmatprep.subr.bf16.mxu0 %v10289_v27  ;;  %v11396_v54 = vld [vmem:[%s17230_s1 + $0x5c] ss:$20 sps:$4 sm:$0xff]  }
 0x18c   : > { %v818_v51 = vsel %vm815_vm1, %v12230_v14, %v817_v34  ;;  %v726_v6 = vsel %vm709_vm2, %v12232_v15, %v725_v16  ;;  %v13036_v58 = vpop.permute.xlu1 %2612  ;;  %v2611_v35 = vpop.permute.xlu0 %2610  ;;  %4732 = vmatpush1.bf16.msra.mxu0 %v10288_v24 }
 0x18d   : > { %v17387_v27 = vrot.slane %v13036_v58, 4  ;;  %v2630_v1 = vrot.slane %v2611_v35, 4  ;;  %v10087_v36 = vcombine.low %v726_v6, %v818_v51  ;;  %v10088_v56 = vcombine.high %v726_v6, %v818_v51 }
 0x18e   : > { %2282 = vrot.lane.b32.xlu1 %v12625_v43, %s17648_s13  ;;  %2274 = vrot.lane.b32.xlu0 %v12667_v29, %s17648_s13 }
 0x18f   : > { %v2645_v14 = vsel %vm389_vm0, %v2630_v1, %v17387_v27  ;;  %4788 = vmatprep.subr.bf16.mxu1 %v10088_v56  ;;  %4705 = vmatmul.mubr.bf16.gmra.mxu1 %v11395_v37  ;;  %v11398_v37 = vld [vmem:[%s17230_s1 + $0x58] ss:$20 sps:$4 sm:$0xff]  }
 0x190   : > { %v2646_v15 = vsel %vm603_vm4, %v2611_v35, %v2645_v14  ;;  %v13050_v24 = vpop.permute.xlu1 %2620  ;;  %v2619_v34 = vpop.permute.xlu0 %2618  ;;  %4789 = vmatpush1.bf16.msra.mxu1 %v10087_v36  ;;  %4714 = vmatprep.mubr.bf16.mxu1 %v11396_v54 }
 0x191   : > { %v17388_v16 = vrot.slane %v13050_v24, 4  ;;  %v2634_v51 = vrot.slane %v2619_v34, 4 }
 0x192   : > { %798 = vrot.lane.b32.xlu1 %v12625_v43, %s17394_s22  ;;  %790 = vrot.lane.b32.xlu0 %v12667_v29, %s17394_s22  ;;  %s17654_s22 = smov 124  }
 0x193   : > { %v2652_v56 = vsel %vm389_vm0, %v2634_v51, %v17388_v16 }
 0x194   : > { %v2653_v36 = vsel %vm603_vm4, %v2619_v34, %v2652_v56  ;;  %v13064_v54 = vpop.permute.xlu1 %684  ;;  %v13066_v6 = vpop.permute.xlu0 %676  ;;  %v17652_v34 = vrot.slane %v12259_v30, 4  ;;  %v17653_v56 = vrot.slane %v12248_v22, 4 }
 0x195   : > { %17649 = vst [vmem:[#allocation39_spill] sm:$0xff] %v13064_v54  ;;  %17650 = vst [vmem:[#allocation40_spill] sm:$0xff] %v13066_v6  ;;  %v17393_v35 = vrot.slane %v13064_v54, 4  ;;  %v17396_v1 = vrot.slane %v13066_v6, 4  ;;  %v10281_v14 = vcombine.low %v2646_v15, %v2653_v36  ;;  %v10282_v27 = vcombine.high %v2646_v15, %v2653_v36 }
 0x196   : > { %2266 = vrot.lane.b32.xlu1 %v12622_v4, %s17648_s13  ;;  %2176 = vrot.lane.b32.xlu0 %v12625_v43, %s17651_s10 }
 0x197   : > { %v718_v51 = vsel %vm389_vm0, %v17652_v34, %v17393_v35  ;;  %v711_v16 = vsel %vm389_vm0, %v17653_v56, %v17396_v1  ;;  %4733 = vmatprep.subr.bf16.mxu0 %v10282_v27  ;;  %4715 = vmatmul.mubr.bf16.gmra.mxu1 %v11398_v37  ;;  %v11850_v34 = vld [vmem:[%s17230_s1 + $0x4] ss:$20 sps:$4 sm:$0xff]  }
 0x198   : > { %v719_v15 = vsel %vm709_vm2, %v12259_v30, %v718_v51  ;;  %v712_v43 = vsel %vm709_vm2, %v12248_v22, %v711_v16  ;;  %v13091_v36 = vpop.permute.xlu1 %2515  ;;  %v2514_v54 = vpop.permute.xlu0 %2513  ;;  %4734 = vmatpush1.bf16.msra.mxu0 %v10281_v14  ;;  %4820 = vmatprep.mubr.bf16.mxu1 %v11850_v34 }
 0x199   : > { %v17398_v56 = vrot.slane %v13091_v36, 4  ;;  %v2529_v35 = vrot.slane %v2514_v54, 4  ;;  %v10080_v27 = vcombine.low %v712_v43, %v719_v15  ;;  %v10081_v37 = vcombine.high %v712_v43, %v719_v15 }
 0x19a   : > { %2160 = vrot.lane.b32.xlu1 %v12622_v4, %s17651_s10  ;;  %2727 = vrot.lane.b32.xlu0 %v13085_v53, %s17654_s22 }
 0x19b   : > { %v2547_v22 = vsel %vm389_vm0, %v2529_v35, %v17398_v56  ;;  %4790 = vmatprep.subr.bf16.mxu1 %v10081_v37  ;;  %v13116_v35 = vld [vmem:[%s12075_s21 + $0x38] sm:$0xff] }
 0x19c   : > { %v2548_v30 = vsel %vm497_vm6, %v2514_v54, %v2547_v22  ;;  %v13105_v16 = vpop.permute.xlu1 %2604  ;;  %v2603_v14 = vpop.permute.xlu0 %2602  ;;  %4791 = vmatpush1.bf16.msra.mxu1 %v10080_v27  ;;  %v2036_v56 = vld [vmem:[%s12075_s21 + $0x58] sm:$0xff] }
 0x19d   : > { %v17397_v51 = vrot.slane %v13105_v16, 4  ;;  %v2626_v15 = vrot.slane %v2603_v14, 4 }
 0x19e   : > { %2711 = vrot.lane.b32.xlu1 %v12964_v40, %s17654_s22  ;;  %2168 = vrot.lane.b32.xlu0 %v12667_v29, %s17651_s10 }
 0x19f   : > { %v2638_v4 = vsel %vm389_vm0, %v2626_v15, %v17397_v51 }
 0x1a0   : > { %v2639_v54 = vsel %vm603_vm4, %v2603_v14, %v2638_v4  ;;  %v13119_v43 = vpop.permute.xlu1 %586  ;;  %v13121_v34 = vpop.permute.xlu0 %578  ;;  %v17658_v14 = vrot.slane %v12315_v62, 4  ;;  %v17659_v4 = vrot.slane %v12298_v52, 4 }
 0x1a1   : > { %17655 = vst [vmem:[#allocation41_spill] sm:$0xff] %v13119_v43  ;;  %17656 = vst [vmem:[#allocation42_spill] sm:$0xff] %v13121_v34  ;;  %v17401_v27 = vrot.slane %v13119_v43, 4  ;;  %v17406_v37 = vrot.slane %v13121_v34, 4  ;;  %v10274_v22 = vcombine.low %v2548_v30, %v2639_v54  ;;  %v10275_v1 = vcombine.high %v2548_v30, %v2639_v54 }
 0x1a2   : > { %2062 = vrot.lane.b32.xlu1 %v12667_v29, %s17657_s23  ;;  %2719 = vrot.lane.b32.xlu0 %v13116_v35, %s17654_s22 }
 0x1a3   : > { %v619_v15 = vsel %vm389_vm0, %v17658_v14, %v17401_v27  ;;  %v612_v51 = vsel %vm389_vm0, %v17659_v4, %v17406_v37  ;;  %4735 = vmatprep.subr.bf16.mxu0 %v10275_v1 }
 0x1a4   : > { %v620_v29 = vsel %vm603_vm4, %v12315_v62, %v619_v15  ;;  %v613_v30 = vsel %vm603_vm4, %v12298_v52, %v612_v51  ;;  %v13144_v54 = vpop.permute.xlu1 %2499  ;;  %v2498_v43 = vpop.permute.xlu0 %2497  ;;  %4736 = vmatpush1.bf16.msra.mxu0 %v10274_v22 }
 0x1a5   : > { %v17408_v14 = vrot.slane %v13144_v54, 4  ;;  %v2521_v27 = vrot.slane %v2498_v43, 4  ;;  %v10073_v34 = vcombine.low %v613_v30, %v620_v29  ;;  %v10074_v6 = vcombine.high %v613_v30, %v620_v29 }
 0x1a6   : > { %2614 = vrot.lane.b32.xlu1 %v13116_v35, %s17660_s25  ;;  %2070 = vrot.lane.b32.xlu0 %v2036_v56, %s17657_s23 }
 0x1a7   : > { %v2533_v62 = vsel %vm389_vm0, %v2521_v27, %v17408_v14  ;;  %4792 = vmatprep.subr.bf16.mxu1 %v10074_v6  ;;  %v2028_v27 = vld [vmem:[%s12075_s21 + $0x10] sm:$0xff] }
 0x1a8   : > { %v2534_v52 = vsel %vm497_vm6, %v2498_v43, %v2533_v62  ;;  %v13154_v1 = vpop.permute.xlu1 %2507  ;;  %v2506_v51 = vpop.permute.xlu0 %2505  ;;  %4793 = vmatpush1.bf16.msra.mxu1 %v10073_v34 }
 0x1a9   : > { %v17407_v22 = vrot.slane %v13154_v1, 4  ;;  %v2525_v15 = vrot.slane %v2506_v51, 4 }
 0x1aa   : > { %1964 = vrot.lane.b32.xlu1 %v2036_v56, %s17661_s0  ;;  %2622 = vrot.lane.b32.xlu0 %v13085_v53, %s17660_s25 }
 0x1ab   : > { %v2540_v4 = vsel %vm389_vm0, %v2525_v15, %v17407_v22  ;;  %v17665_v15 = vrot.slane %v12373_v49, 4 }
 0x1ac   : > { %v2541_v6 = vsel %vm497_vm6, %v2506_v51, %v2540_v4  ;;  %v13165_v43 = vpop.permute.xlu1 %570  ;;  %v13167_v29 = vpop.permute.xlu0 %480  ;;  %v17666_v4 = vrot.slane %v12357_v33, 4 }
 0x1ad   : > { %17662 = vst [vmem:[#allocation43_spill] sm:$0xff] %v13165_v43  ;;  %17663 = vst [vmem:[#allocation44_spill] sm:$0xff] %v13167_v29  ;;  %v17411_v34 = vrot.slane %v13165_v43, 4  ;;  %v17414_v30 = vrot.slane %v13167_v29, 4  ;;  %v10267_v62 = vcombine.low %v2534_v52, %v2541_v6  ;;  %v10268_v56 = vcombine.high %v2534_v52, %v2541_v6 }
 0x1ae   : > { %2517 = vrot.lane.b32.xlu1 %v13085_v53, %s17664_s14  ;;  %2054 = vrot.lane.b32.xlu0 %v2028_v27, %s17657_s23 }
 0x1af   : > { %v605_v51 = vsel %vm389_vm0, %v17665_v15, %v17411_v34  ;;  %v513_v37 = vsel %vm389_vm0, %v17666_v4, %v17414_v30  ;;  %4737 = vmatprep.subr.bf16.mxu0 %v10268_v56  ;;  %v13233_v30 = vld [vmem:[%s12075_s21 + $0x18] sm:$0xff] }
 0x1b0   : > { %v606_v52 = vsel %vm603_vm4, %v12373_v49, %v605_v51  ;;  %v514_v6 = vsel %vm497_vm6, %v12357_v33, %v513_v37  ;;  %v13188_v22 = vpop.permute.xlu1 %2402  ;;  %v2401_v14 = vpop.permute.xlu0 %2400  ;;  %4738 = vmatpush1.bf16.msra.mxu0 %v10267_v62  ;;  %v1926_v33 = vld [vmem:[%s12075_s21 + $0x34] sm:$0xff] }
 0x1b1   : > { %v17422_v43 = vrot.slane %v13188_v22, 4  ;;  %v2420_v15 = vrot.slane %v2401_v14, 4  ;;  %v10066_v34 = vcombine.low %v514_v6, %v606_v52  ;;  %v10067_v29 = vcombine.high %v514_v6, %v606_v52 }
 0x1b2   : > { %1948 = vrot.lane.b32.xlu1 %v2028_v27, %s17661_s0  ;;  %2606 = vrot.lane.b32.xlu0 %v12964_v40, %s17660_s25 }
 0x1b3   : > { %v2435_v49 = vsel %vm389_vm0, %v2420_v15, %v17422_v43  ;;  %4794 = vmatprep.subr.bf16.mxu1 %v10067_v29  ;;  %v13209_v29 = vld [vmem:[%s12075_s21 + $0x60] sm:$0xff] }
 0x1b4   : > { %v2436_v37 = vsel %vm391_vm8, %v2401_v14, %v2435_v49  ;;  %v13199_v62 = vpop.permute.xlu1 %2410  ;;  %v2409_v56 = vpop.permute.xlu0 %2408  ;;  %4795 = vmatpush1.bf16.msra.mxu1 %v10066_v34 }
 0x1b5   : > { %v17418_v51 = vrot.slane %v13199_v62, 4  ;;  %v2424_v4 = vrot.slane %v2409_v56, 4 }
 0x1b6   : > { %2501 = vrot.lane.b32.xlu1 %v12964_v40, %s17664_s14  ;;  %1956 = vrot.lane.b32.xlu0 %v1926_v33, %s17661_s0  ;;  %v17667_v33 = vrot.slane %v12417_v47, 4 }
 0x1b7   : > { %v2442_v27 = vsel %vm389_vm0, %v2424_v4, %v17418_v51  ;;  %v17668_v4 = vrot.slane %v12406_v28, 4 }
 0x1b8   : > { %v2443_v14 = vsel %vm391_vm8, %v2409_v56, %v2442_v27  ;;  %v13212_v52 = vpop.permute.xlu1 %472  ;;  %v13214_v34 = vpop.permute.xlu0 %464 }
 0x1b9   : > { %v17419_v6 = vrot.slane %v13212_v52, 4  ;;  %v17421_v15 = vrot.slane %v13214_v34, 4  ;;  %v10260_v49 = vcombine.low %v2436_v37, %v2443_v14  ;;  %v10261_v40 = vcombine.high %v2436_v37, %v2443_v14  ;;  %v11388_v37 = vld [vmem:[%s17230_s1 + $0x10] ss:$20 sps:$4 sm:$0xff]  }
 0x1ba   : > { %694 = vrot.lane.b32.xlu1 %v13209_v29, %s17654_s22  ;;  %2509 = vrot.lane.b32.xlu0 %v13116_v35, %s17664_s14 }
 0x1bb   : > { %v506_v56 = vsel %vm389_vm0, %v17667_v33, %v17419_v6  ;;  %v499_v27 = vsel %vm389_vm0, %v17668_v4, %v17421_v15  ;;  %4739 = vmatprep.subr.bf16.mxu0 %v10261_v40 }
 0x1bc   : > { %v507_v14 = vsel %vm497_vm6, %v12417_v47, %v506_v56  ;;  %v500_v51 = vsel %vm497_vm6, %v12406_v28, %v499_v27  ;;  %v13242_v33 = vpop.permute.xlu1 %1858  ;;  %v13244_v6 = vpop.permute.xlu0 %1850  ;;  %4740 = vmatpush1.bf16.msra.mxu0 %v10260_v49  ;;  %v17671_v28 = vrot.slane %v12287_v46, 4  ;;  %v17672_v49 = vrot.slane %v12276_v38, 4 }
 0x1bd   : > { %v17423_v4 = vrot.slane %v13242_v33, 4  ;;  %v17429_v40 = vrot.slane %v13244_v6, 4  ;;  %v10059_v15 = vcombine.low %v500_v51, %v507_v14  ;;  %v10060_v43 = vcombine.high %v500_v51, %v507_v14 }
 0x1be   : > { %2404 = vrot.lane.b32.xlu1 %v13116_v35, %s17669_s29  ;;  %784 = vrot.lane.b32.xlu0 %v13233_v30, %s17670_s11 }
 0x1bf   : > { %v1891_v47 = vsel %vm389_vm0, %v17671_v28, %v17423_v4  ;;  %v1884_v56 = vsel %vm389_vm0, %v17672_v49, %v17429_v40  ;;  %4796 = vmatprep.subr.bf16.mxu1 %v10060_v43  ;;  %10303 = vmatmul.mubr.msk.bf16.vlgmr.msra.gmra.mxu0 %vm4567_vm14, %v11388_v37 }
 0x1c0   : > { %v1892_v35 = vsel %vm1875_vm3, %v12287_v46, %v1891_v47  ;;  %v1885_v51 = vsel %vm1875_vm3, %v12276_v38, %v1884_v56  ;;  %v13267_v27 = vpop.permute.xlu1 %373  ;;  %v13269_v14 = vpop.permute.xlu0 %365  ;;  %4797 = vmatpush1.bf16.msra.mxu1 %v10059_v15  ;;  %4767 = vmatprep.mubr.bf16.mxu0 %v17642_v9  ;;  %v17673_v38 = vrot.slane %v12461_v13, 4  ;;  %v17674_v15 = vrot.slane %v12450_v45, 4  ;;  %v13289_v47 = vld [vmem:[%s12075_s21 + $0x3c] sm:$0xff]  ;;  %v11399_v56 = vld [vmem:[%s17230_s1 + $0x38] ss:$20 sps:$4 sm:$0xff]  }
 0x1c1   : > { %v17426_v28 = vrot.slane %v13267_v27, 4  ;;  %v17427_v43 = vrot.slane %v13269_v14, 4  ;;  %v10199_v49 = vcombine.low %v1885_v51, %v1892_v35  ;;  %v10200_v4 = vcombine.high %v1885_v51, %v1892_v35 }
 0x1c2   : > { %678 = vrot.lane.b32.xlu1 %v13233_v30, %s17654_s22  ;;  %2412 = vrot.lane.b32.xlu0 %v13085_v53, %s17669_s29 }
 0x1c3   : > { %v407_v46 = vsel %vm389_vm0, %v17673_v38, %v17426_v28  ;;  %v400_v37 = vsel %vm389_vm0, %v17674_v15, %v17427_v43  ;;  %4851 = vmatprep.subr.bf16.mxu0 %v10200_v4 }
 0x1c4   : > { %v408_v53 = vsel %vm391_vm8, %v12461_v13, %v407_v46  ;;  %v401_v35 = vsel %vm391_vm8, %v12450_v45, %v400_v37  ;;  %v13298_v51 = vpop.permute.xlu1 %1842  ;;  %v13300_v38 = vpop.permute.xlu0 %1752  ;;  %4852 = vmatpush1.bf16.msra.mxu0 %v10199_v49  ;;  %v17676_v45 = vrot.slane %v12346_v25, 4  ;;  %v17677_v49 = vrot.slane %v12329_v5, 4 }
 0x1c5   : > { %v17430_v15 = vrot.slane %v13298_v51, 4  ;;  %v17433_v28 = vrot.slane %v13300_v38, 4  ;;  %v10052_v4 = vcombine.low %v401_v35, %v408_v53  ;;  %v10053_v43 = vcombine.high %v401_v35, %v408_v53 }
 0x1c6   : > { %1852 = vrot.lane.b32.xlu1 %v13289_v47, %s17675_s30  ;;  %686 = vrot.lane.b32.xlu0 %v13289_v47, %s17654_s22 }
 0x1c7   : > { %v1877_v13 = vsel %vm389_vm0, %v17676_v45, %v17430_v15  ;;  %v1785_v46 = vsel %vm389_vm0, %v17677_v49, %v17433_v28  ;;  %4798 = vmatprep.subr.bf16.mxu1 %v10053_v43  ;;  %10304 = vmatmul.mubr.msk.bf16.gmra.mxu0 %vm4567_vm14, %v11399_v56  ;;  %v17679_v56 = vrot.slane %v12494_v60, 4 }
 0x1c8   : > { %v1878_v37 = vsel %vm1875_vm3, %v12346_v25, %v1877_v13  ;;  %v1786_v53 = vsel %vm1769_vm5, %v12329_v5, %v1785_v46  ;;  %v13323_v35 = vpop.permute.xlu1 %1736  ;;  %v13325_v40 = vpop.permute.xlu0 %357  ;;  %4799 = vmatpush1.bf16.msra.mxu1 %v10052_v4  ;;  %4777 = vmatprep.mubr.bf16.mxu0 %v17642_v9  ;;  %v17678_v5 = vrot.slane %v12384_v57, 4  ;;  %v11400_v13 = vld [vmem:[%s17230_s1 + $0x60] ss:$20 sps:$4 sm:$0xff]  }
 0x1c9   : > { %v17431_v45 = vrot.slane %v13323_v35, 4  ;;  %v17432_v49 = vrot.slane %v13325_v40, 4  ;;  %v10192_v43 = vcombine.low %v1786_v53, %v1878_v37  ;;  %v10193_v15 = vcombine.high %v1786_v53, %v1878_v37 }
 0x1ca   : > { %580 = vrot.lane.b32.xlu1 %v13289_v47, %s17660_s25  ;;  %1860 = vrot.lane.b32.xlu0 %v13209_v29, %s17675_s30 }
 0x1cb   : > { %v1771_v25 = vsel %vm389_vm0, %v17678_v5, %v17431_v45  ;;  %v393_v4 = vsel %vm389_vm0, %v17679_v56, %v17432_v49  ;;  %4853 = vmatprep.subr.bf16.mxu0 %v10193_v15 }
 0x1cc   : > { %v1772_v46 = vsel %vm1769_vm5, %v12384_v57, %v1771_v25  ;;  %v394_v37 = vsel %vm391_vm8, %v12494_v60, %v393_v4  ;;  %v13351_v53 = vpop.permute.xlu1 %1638  ;;  %v13353_v5 = vpop.permute.xlu0 %1744  ;;  %4854 = vmatpush1.bf16.msra.mxu0 %v10192_v43  ;;  %v17681_v57 = vrot.slane %v12428_v63, 4  ;;  %v17682_v43 = vrot.slane %v12395_v12, 4 }
 0x1cd   : > { %v17435_v45 = vrot.slane %v13351_v53, 4  ;;  %v17443_v56 = vrot.slane %v13353_v5, 4  ;;  %v10045_v15 = vcombine.low %v12796_v17, %v394_v37  ;;  %v10046_v49 = vcombine.high %v12796_v17, %v394_v37 }
 0x1ce   : > { %1754 = vrot.lane.b32.xlu1 %v13209_v29, %s17680_s27  ;;  %588 = vrot.lane.b32.xlu0 %v13209_v29, %s17660_s25 }
 0x1cf   : > { %v1672_v60 = vsel %vm389_vm0, %v17681_v57, %v17435_v45  ;;  %v1778_v25 = vsel %vm389_vm0, %v17682_v43, %v17443_v56  ;;  %4800 = vmatprep.subr.bf16.mxu1 %v10046_v49  ;;  %10305 = vmatmul.mubr.msk.bf16.gmra.mxu0 %vm4567_vm14, %v11400_v13  ;;  %v11851_v57 = vld [vmem:[%s17230_s1 + $0xc] ss:$20 sps:$4 sm:$0xff]  }
 0x1d0   : > { %v1673_v17 = vsel %vm17444_vm7, %v12428_v63, %v1672_v60  ;;  %v1779_v4 = vsel %vm1769_vm5, %v12395_v12, %v1778_v25  ;;  %v13378_v37 = vpop.permute.xlu1 %1312  ;;  %v13380_v28 = vpop.permute.xlu0 %1646  ;;  %4801 = vmatpush1.bf16.msra.mxu1 %v10045_v15  ;;  %4883 = vmatprep.mubr.bf16.mxu0 %v11851_v57  ;;  %v17683_v63 = vcombine.high %v12821_v31, %v12824_v44  ;;  %v17684_v12 = vrot.slane %v12561_v3, 4 }
 0x1d1   : > { %v17436_v49 = vrot.slane %v13378_v37, 4  ;;  %v17437_v13 = vrot.slane %v13380_v28, 4  ;;  %v10185_v43 = vcombine.low %v1772_v46, %v1779_v4  ;;  %v10186_v45 = vcombine.high %v1772_v46, %v1779_v4 }
 0x1d2   : > { %4802 = vmatprep.subr.bf16.mxu1 %v17683_v63  ;;  %482 = vrot.lane.b32.xlu1 %v13209_v29, %s17664_s14  ;;  %v17685_v46 = vrot.slane %v12439_v26, 4 }
 0x1d3   : > { %1844 = vrot.lane.b32.xlu0 %v13233_v30, %s17675_s30  ;;  %v1347_v15 = vsel %vm389_vm0, %v17684_v12, %v17436_v49  ;;  %4855 = vmatprep.subr.bf16.mxu0 %v10186_v45  ;;  %v17686_v12 = vcombine.low %v12821_v31, %v12824_v44  ;;  %v17688_v31 = vrot.slane %v12573_v20, 4  ;;  %s11971_s30 = smov 112  }
 0x1d4   : > { %v1679_v60 = vsel %vm389_vm0, %v17685_v46, %v17437_v13  ;;  %v1348_v25 = vsel %vm1345_vm11, %v12561_v3, %v1347_v15  ;;  %v13408_v57 = vpop.permute.xlu1 %1540  ;;  %v13410_v63 = vpop.permute.xlu0 %1320  ;;  %4856 = vmatpush1.bf16.msra.mxu0 %v10185_v43 }
 0x1d5   : > { %v1680_v4 = vsel %vm17444_vm7, %v12439_v26, %v1679_v60  ;;  %4803 = vmatpush1.bf16.msra.mxu1 %v17686_v12  ;;  %v17438_v49 = vrot.slane %v13408_v57, 4  ;;  %v17440_v46 = vrot.slane %v13410_v63, 4  ;;  %v17687_v26 = vrot.slane %v12472_v42, 4 }
 0x1d6   : > { %v10178_v45 = vcombine.low %v1673_v17, %v1680_v4  ;;  %v10179_v13 = vcombine.high %v1673_v17, %v1680_v4  ;;  %1738 = vrot.lane.b32.xlu1 %v13233_v30, %s17680_s27 }
 0x1d7   : > { %572 = vrot.lane.b32.xlu0 %v13233_v30, %s17660_s25  ;;  %v1573_v3 = vsel %vm389_vm0, %v17687_v26, %v17438_v49  ;;  %v1354_v44 = vsel %vm389_vm0, %v17688_v31, %v17440_v46 }
 0x1d8   : > { %4857 = vmatprep.subr.bf16.mxu0 %v10179_v13  ;;  %v1574_v17 = vsel %vm1557_vm9, %v12472_v42, %v1573_v3  ;;  %v1355_v43 = vsel %vm1345_vm11, %v12573_v20, %v1354_v44  ;;  %v13435_v15 = vpop.permute.xlu1 %1214  ;;  %v13437_v60 = vpop.permute.xlu0 %1630  ;;  %v17689_v42 = vrot.slane %v12611_v21, 4  ;;  %v17690_v13 = vrot.slane %v12483_v23, 4 }
 0x1d9   : > { %4858 = vmatpush1.bf16.msra.mxu0 %v10178_v45  ;;  %v17439_v4 = vrot.slane %v13435_v15, 4  ;;  %v17442_v12 = vrot.slane %v13437_v60, 4  ;;  %v10143_v26 = vcombine.low %v1348_v25, %v1355_v43  ;;  %v10144_v49 = vcombine.high %v1348_v25, %v1355_v43 }
 0x1da   : > { %466 = vrot.lane.b32.xlu1 %v13233_v30, %s17664_s14 }
 0x1db   : > { %1746 = vrot.lane.b32.xlu0 %v13289_v47, %s17680_s27  ;;  %v1248_v20 = vsel %vm389_vm0, %v17689_v42, %v17439_v4  ;;  %v1665_v45 = vsel %vm389_vm0, %v17690_v13, %v17442_v12  ;;  %4804 = vmatprep.subr.bf16.mxu1 %v10144_v49  ;;  %v17693_v49 = vrot.slane %v12628_v7, 4 }
 0x1dc   : > { %v1249_v25 = vsel %vm17449_vm12, %v12611_v21, %v1248_v20  ;;  %v1666_v3 = vsel %vm17444_vm7, %v12483_v23, %v1665_v45  ;;  %v13459_v31 = vpop.permute.xlu1 %1524  ;;  %v13461_v44 = vpop.permute.xlu0 %1222  ;;  %4805 = vmatpush2.bf16.msra.mxu1 %v10143_v26  ;;  %v17692_v23 = vrot.slane %v12505_v41, 4  ;;  %vm17696_vm7 = vcmask 760832  }
 0x1dd   : > { %v17441_v43 = vrot.slane %v13459_v31, 4  ;;  %v17446_v42 = vrot.slane %v13461_v44, 4  ;;  %v10171_v4 = vcombine.low %v1574_v17, %v1666_v3  ;;  %v10172_v46 = vcombine.high %v1574_v17, %v1666_v3  ;;  %v316_v3 = vld [vmem:[%s12075_s21 + $0x60] sm:$0xf] }
 0x1de   : > { %1640 = vrot.lane.b32.xlu1 %v13289_v47, %s17691_s8  ;;  %328 = vst [vmem:[#allocation2 + $0x50] sm:$0xf] %v316_v3 }
 0x1df   : > { %474 = vrot.lane.b32.xlu0 %v13289_v47, %s17664_s14  ;;  %v1559_v21 = vsel %vm389_vm0, %v17692_v23, %v17441_v43  ;;  %v1255_v26 = vsel %vm389_vm0, %v17693_v49, %v17446_v42  ;;  %4859 = vmatprep.subr.bf16.mxu0 %v10172_v46  ;;  %v315_v49 = vld [vmem:[%s12075_s21 + $0x58] sm:$0xff]  ;;  %v17695_v46 = vrot.slane %v12520_v2, 4 }
 0x1e0   : > { %v1560_v17 = vsel %vm1557_vm9, %v12505_v41, %v1559_v21  ;;  %v1256_v20 = vsel %vm17449_vm12, %v12628_v7, %v1255_v26  ;;  %v13483_v13 = vpop.permute.xlu1 %1116  ;;  %v13485_v45 = vpop.permute.xlu0 %1532  ;;  %4860 = vmatpush1.bf16.msra.mxu0 %v10171_v4  ;;  %327 = vst [vmem:[#allocation2 + $0x48] sm:$0xff] %v315_v49  ;;  %v17694_v41 = vrot.slane %v12650_v19, 4 }
 0x1e1   : > { %v17445_v23 = vrot.slane %v13483_v13, 4  ;;  %v17448_v43 = vrot.slane %v13485_v45, 4  ;;  %v10136_v12 = vcombine.low %v1249_v25, %v1256_v20  ;;  %v10137_v56 = vcombine.high %v1249_v25, %v1256_v20 }
 0x1e2   : > { %367 = vrot.lane.b32.xlu1 %v13289_v47, %s17669_s29 }
 0x1e3   : > { %1648 = vrot.lane.b32.xlu0 %v13209_v29, %s17691_s8  ;;  %v1149_v7 = vsel %vm389_vm0, %v17694_v41, %v17445_v23  ;;  %v1566_v4 = vsel %vm389_vm0, %v17695_v46, %v17448_v43  ;;  %4806 = vmatprep.subr.bf16.mxu1 %v10137_v56  ;;  %v17698_v56 = vrot.slane %v12670_v55, 4  ;;  %v13540_v43 = vld [vmem:[%s12075_s21 + $0x10] sm:$0xff] }
 0x1e4   : > { %v1150_v25 = vsel %vm17696_vm7, %v12650_v19, %v1149_v7  ;;  %v1567_v21 = vsel %vm1557_vm9, %v12520_v2, %v1566_v4  ;;  %v13509_v26 = vpop.permute.xlu1 %1426  ;;  %v13511_v20 = vpop.permute.xlu0 %1206  ;;  %4807 = vmatpush2.bf16.msra.mxu1 %v10136_v12  ;;  %v17697_v2 = vrot.slane %v12533_v11, 4  ;;  %vm17699_vm7 = vcmask 515072  }
 0x1e5   : > { %v17447_v3 = vrot.slane %v13509_v26, 4  ;;  %v17450_v49 = vrot.slane %v13511_v20, 4  ;;  %v10164_v41 = vcombine.low %v1560_v17, %v1567_v21  ;;  %v10165_v23 = vcombine.high %v1560_v17, %v1567_v21 }
 0x1e6   : > { %1542 = vrot.lane.b32.xlu1 %v13209_v29, %s17627_s20 }
 0x1e7   : > { %375 = vrot.lane.b32.xlu0 %v13209_v29, %s17669_s29  ;;  %v1460_v19 = vsel %vm389_vm0, %v17697_v2, %v17447_v3  ;;  %v1241_v12 = vsel %vm389_vm0, %v17698_v56, %v17450_v49  ;;  %4861 = vmatprep.subr.bf16.mxu0 %v10165_v23  ;;  %v13543_v23 = vld [vmem:[%s12075_s21 + $0x34] sm:$0xff] }
 0x1e8   : > { %v1461_v17 = vsel %vm17699_vm7, %v12533_v11, %v1460_v19  ;;  %v1242_v7 = vsel %vm17449_vm12, %v12670_v55, %v1241_v12  ;;  %v13533_v46 = vpop.permute.xlu1 %1100  ;;  %v13535_v4 = vpop.permute.xlu0 %1434  ;;  %4862 = vmatpush1.bf16.msra.mxu0 %v10164_v41  ;;  %v17700_v55 = vrot.slane %v12683_v39, 4  ;;  %vm17702_vm7 = vcmask 760832  }
 0x1e9   : > { %v17451_v21 = vrot.slane %v13533_v46, 4  ;;  %v17453_v2 = vrot.slane %v13535_v4, 4  ;;  %v10129_v42 = vcombine.low %v1150_v25, %v1242_v7  ;;  %v10130_v3 = vcombine.high %v1150_v25, %v1242_v7 }
 0x1ea   : > { %359 = vrot.lane.b32.xlu1 %v13233_v30, %s17669_s29  ;;  %v17701_v25 = vrot.slane %v12547_v10, 4  ;;  %vm17703_vm12 = vcmask 515072  }
 0x1eb   : > { %1632 = vrot.lane.b32.xlu0 %v13233_v30, %s17691_s8  ;;  %v1135_v41 = vsel %vm389_vm0, %v17700_v55, %v17451_v21  ;;  %4808 = vmatprep.subr.bf16.mxu1 %v10130_v3  ;;  %s11970_s8 = smov 99  }
 0x1ec   : > { %v1467_v19 = vsel %vm389_vm0, %v17701_v25, %v17453_v2  ;;  %v1136_v12 = vsel %vm17702_vm7, %v12683_v39, %v1135_v41  ;;  %v13567_v49 = vpop.permute.xlu1 %1328  ;;  %v13569_v11 = vpop.permute.xlu0 %1108  ;;  %4809 = vmatpush2.bf16.msra.mxu1 %v10129_v42  ;;  %v17706_v42 = vrot.slane %v12694_v48, 4 }
 0x1ed   : > { %v1468_v7 = vsel %vm17703_vm12, %v12547_v10, %v1467_v19  ;;  %17704 = vst [vmem:[#allocation45_spill] sm:$0xff] %v13569_v11  ;;  %v17452_v55 = vrot.slane %v13567_v49, 4  ;;  %v17457_v21 = vrot.slane %v13569_v11, 4  ;;  %v17705_v10 = vrot.slane %v12584_v50, 4  ;;  %vm17707_vm12 = vmmov %vm17702_vm7 }
 0x1ee   : > { %v10157_v25 = vcombine.low %v1461_v17, %v1468_v7  ;;  %v10158_v3 = vcombine.high %v1461_v17, %v1468_v7  ;;  %1534 = vrot.lane.b32.xlu1 %v13289_v47, %s17627_s20  ;;  %vm17711_vm7 = vcmask 515072  }
 0x1ef   : > { %1526 = vrot.lane.b32.xlu0 %v13233_v30, %s17627_s20  ;;  %v1361_v39 = vsel %vm389_vm0, %v17705_v10, %v17452_v55  ;;  %v1142_v41 = vsel %vm389_vm0, %v17706_v42, %v17457_v21  ;;  %s10861_s20 = sshll.u32 %s12043_s9, 7  ;;  %s11976_s9 = smov [#allocation7]  }
 0x1f0   : > { %4863 = vmatprep.subr.bf16.mxu0 %v10158_v3  ;;  %v1362_v17 = vsel %vm1345_vm11, %v12584_v50, %v1361_v39  ;;  %v1143_v19 = vsel %vm17707_vm12, %v12694_v48, %v1142_v41  ;;  %v13591_v7 = vpop.permute.xlu1 %1002  ;;  %v13593_v56 = vpop.permute.xlu0 %1418  ;;  %v17709_v50 = vrot.slane %v12727_v8, 4  ;;  %vm17735_vm12 = vcmask 228352  }
 0x1f1   : > { %17708 = vst [vmem:[#allocation46_spill] sm:$0xff] %v13591_v7  ;;  %4864 = vmatpush1.bf16.msra.mxu0 %v10157_v25  ;;  %v17456_v10 = vrot.slane %v13591_v7, 4  ;;  %v17459_v55 = vrot.slane %v13593_v56, 4  ;;  %v10122_v2 = vcombine.low %v1136_v12, %v1143_v19  ;;  %v10123_v11 = vcombine.high %v1136_v12, %v1143_v19 }
 0x1f2   : > { %1436 = vrot.lane.b32.xlu1 %v13209_v29, %s17634_s17  ;;  %v17710_v25 = vrot.slane %v12594_v61, 4 }
 0x1f3   : > { %1428 = vrot.lane.b32.xlu0 %v13289_v47, %s17634_s17  ;;  %v1036_v48 = vsel %vm389_vm0, %v17709_v50, %v17456_v10  ;;  %4810 = vmatprep.subr.bf16.mxu1 %v10123_v11 }
 0x1f4   : > { %v1453_v3 = vsel %vm389_vm0, %v17710_v25, %v17459_v55  ;;  %v1037_v12 = vsel %vm1027_vm15, %v12727_v8, %v1036_v48  ;;  %v13615_v42 = vpop.permute.xlu1 %2396  ;;  %v13617_v41 = vpop.permute.xlu0 %1010  ;;  %4811 = vmatpush2.bf16.msra.mxu1 %v10122_v2  ;;  %v17714_v2 = vrot.slane %v12737_v59, 4 }
 0x1f5   : > { %v1454_v39 = vsel %vm17711_vm7, %v12594_v61, %v1453_v3  ;;  %17712 = vst [vmem:[#allocation47_spill] sm:$0xff] %v13617_v41  ;;  %v17458_v19 = vrot.slane %v13615_v42, 4  ;;  %v17464_v50 = vrot.slane %v13617_v41, 4  ;;  %v17713_v61 = vrot.slane %v12639_v18, 4  ;;  %vm17736_vm7 = vmmov %vm17735_vm12 }
 0x1f6   : > { %v10150_v10 = vcombine.low %v1362_v17, %v1454_v39  ;;  %v10151_v21 = vcombine.high %v1362_v17, %v1454_v39  ;;  %1322 = vrot.lane.b32.xlu1 %v13289_v47, %s17625_s19  ;;  %v2355_v39 = vld [vmem:[%s12075_s21 + $0x64] sm:$0xf] }
 0x1f7   : > { %1314 = vrot.lane.b32.xlu0 %v13233_v30, %s17625_s19  ;;  %v2430_v8 = vsel %vm389_vm0, %v17713_v61, %v17458_v19  ;;  %v1043_v11 = vsel %vm389_vm0, %v17714_v2, %v17464_v50  ;;  %v2354_v2 = vld [vmem:[%s12075_s21 + $0x5c] sm:$0xff]  ;;  %2367 = vst [vmem:[#allocation2 + $0x6e0] sm:$0xf] %v2355_v39 }
 0x1f8   : > { %4865 = vmatprep.subr.bf16.mxu0 %v10151_v21  ;;  %v2431_v17 = vsel %vm391_vm8, %v12639_v18, %v2430_v8  ;;  %v1044_v48 = vsel %vm1027_vm15, %v12737_v59, %v1043_v11  ;;  %v13639_v25 = vpop.permute.xlu1 %994  ;;  %v13641_v3 = vpop.permute.xlu0 %904  ;;  %v11852_v18 = vld [vmem:[#allocation2 + $0x6d0] sm:$0xff]  ;;  %2366 = vst [vmem:[#allocation2 + $0x6d8] sm:$0xff] %v2354_v2 }
 0x1f9   : > { %17715 = vst [vmem:[#allocation48_spill] sm:$0xff] %v13639_v25  ;;  %17716 = vst [vmem:[#allocation49_spill] sm:$0xff] %v13641_v3  ;;  %4866 = vmatpush1.bf16.msra.mxu0 %v10150_v10  ;;  %v17462_v61 = vrot.slane %v13639_v25, 4  ;;  %v17463_v19 = vrot.slane %v13641_v3, 4  ;;  %v10115_v55 = vcombine.low %v1037_v12, %v1044_v48  ;;  %v10116_v41 = vcombine.high %v1037_v12, %v1044_v48  ;;  %v17718_v12 = vld [vmem:[#allocation20_spill] sm:$0xff] }
 0x1fa   : > { %1420 = vrot.lane.b32.xlu1 %v13233_v30, %s17634_s17  ;;  %v10255_v59 = vcombine.low %v11852_v18, %v2431_v17  ;;  %v10256_v21 = vcombine.high %v11852_v18, %v2431_v17  ;;  %v17717_v10 = vrot.slane %v12782_v0, 4  ;;  %v17719_v11 = vrot.slane %v17718_v12, 4  ;;  %v13705_v25 = vld [vmem:[%s12075_s21 + $0x14] sm:$0xff]  ;;  %s11974_s17 = smov 114  }
 0x1fb   : > { %1330 = vrot.lane.b32.xlu0 %v13209_v29, %s17625_s19  ;;  %4812 = vmatprep.subr.bf16.mxu1 %v10116_v41 }
 0x1fc   : > { %v1029_v8 = vsel %vm389_vm0, %v17717_v10, %v17462_v61  ;;  %v937_v48 = vsel %vm389_vm0, %v17719_v11, %v17463_v19  ;;  %v13665_v2 = vpop.permute.xlu1 %896  ;;  %v13667_v18 = vpop.permute.xlu0 %888  ;;  %4867 = vmatprep.subr.bf16.mxu0 %v10256_v21  ;;  %4813 = vmatpush2.bf16.msra.mxu1 %v10115_v55  ;;  %v17724_v21 = vld [vmem:[#allocation23_spill] sm:$0xff] }
 0x1fd   : > { %v1030_v39 = vsel %vm1027_vm15, %v12782_v0, %v1029_v8  ;;  %v938_v17 = vsel %vm921_vm13, %v17718_v12, %v937_v48  ;;  %17720 = vst [vmem:[#allocation20_spill] sm:$0xff] %v13665_v2  ;;  %17721 = vst [vmem:[#allocation50_spill] sm:$0xff] %v13667_v18  ;;  %v17465_v10 = vrot.slane %v13665_v2, 4  ;;  %v17468_v61 = vrot.slane %v13667_v18, 4  ;;  %4868 = vmatpush2.bf16.msra.mxu0 %v10255_v59  ;;  %v17722_v0 = vld [vmem:[#allocation24_spill] sm:$0xff]  ;;  %v13686_v48 = vld [vmem:[%s12075_s21 + $0x1c] sm:$0xff] }
 0x1fe   : > { %v10108_v11 = vcombine.low %v938_v17, %v1030_v39  ;;  %v10109_v41 = vcombine.high %v938_v17, %v1030_v39  ;;  %1224 = vrot.lane.b32.xlu1 %v13209_v29, %s17629_s26  ;;  %v17723_v8 = vrot.slane %v17722_v0, 4  ;;  %v17725_v12 = vrot.slane %v17724_v21, 4  ;;  %v17726_v39 = vld [vmem:[#allocation35_spill] sm:$0xff]  ;;  %v17727_v17 = vld [vmem:[#allocation36_spill] sm:$0xff] }
 0x1ff   : > { %1216 = vrot.lane.b32.xlu0 %v13289_v47, %s17629_s26  ;;  %v17728_v19 = vcombine.high %v17726_v39, %v17727_v17 }
 0x200   : > { %v930_v55 = vsel %vm389_vm0, %v17723_v8, %v17465_v10  ;;  %v923_v59 = vsel %vm389_vm0, %v17725_v12, %v17468_v61  ;;  %4814 = vmatprep.subr.bf16.mxu1 %v10109_v41  ;;  %v13695_v10 = vpop.permute.xlu1 %2282  ;;  %v13697_v2 = vpop.permute.xlu0 %2274 }
 0x201   : > { %4869 = vmatprep.subr.bf16.mxu0 %v17728_v19  ;;  %v931_v50 = vsel %vm921_vm13, %v17722_v0, %v930_v55  ;;  %v924_v8 = vsel %vm921_vm13, %v17724_v21, %v923_v59  ;;  %17729 = vst [vmem:[#allocation24_spill] sm:$0xff] %v13695_v10  ;;  %4815 = vmatpush2.bf16.msra.mxu1 %v10108_v11  ;;  %v17477_v12 = vrot.slane %v13695_v10, 4  ;;  %v17478_v61 = vrot.slane %v13697_v2, 4  ;;  %v13708_v0 = vld [vmem:[%s12075_s21 + $0x38] sm:$0xff] }
 0x202   : > { %v10101_v41 = vcombine.low %v924_v8, %v931_v50  ;;  %v10102_v18 = vcombine.high %v924_v8, %v931_v50  ;;  %v17730_v19 = vcombine.low %v17726_v39, %v17727_v17  ;;  %1118 = vrot.lane.b32.xlu1 %v13209_v29, %s17632_s12  ;;  %v17731_v50 = vld [vmem:[#allocation17_spill] sm:$0xff]  ;;  %v17733_v59 = vld [vmem:[#allocation16_spill] sm:$0xff] }
 0x203   : > { %2398 = vrot.lane.b32.xlu0 %v13686_v48, %s17669_s29  ;;  %v17732_v55 = vrot.slane %v17731_v50, 4  ;;  %v17734_v39 = vrot.slane %v17733_v59, 4 }
 0x204   : > { %4870 = vmatpush2.bf16.msra.mxu0 %v17730_v19  ;;  %4816 = vmatprep.subr.bf16.mxu1 %v10102_v18  ;;  %v13732_v3 = vpop.permute.xlu1 %798  ;;  %v13734_v10 = vpop.permute.xlu0 %790 }
 0x205   : > { %v2315_v21 = vsel %vm389_vm0, %v17732_v55, %v17477_v12  ;;  %v2308_v17 = vsel %vm389_vm0, %v17734_v39, %v17478_v61  ;;  %17737 = vst [vmem:[#allocation23_spill] sm:$0xff] %v13732_v3  ;;  %17738 = vst [vmem:[#allocation35_spill] sm:$0xff] %v13734_v10  ;;  %4817 = vmatpush2.bf16.msra.mxu1 %v10101_v41  ;;  %v17481_v55 = vrot.slane %v13732_v3, 4  ;;  %v17486_v12 = vrot.slane %v13734_v10, 4  ;;  %v17741_v41 = vld [vmem:[#allocation27_spill] sm:$0xff] }
 0x206   : > { %v2316_v19 = vsel %vm17735_vm12, %v17731_v50, %v2315_v21  ;;  %v2309_v11 = vsel %vm17736_vm7, %v17733_v59, %v2308_v17  ;;  %1102 = vrot.lane.b32.xlu1 %v13233_v30, %s17632_s12  ;;  %v17739_v50 = vld [vmem:[#allocation28_spill] sm:$0xff]  ;;  %v17742_v17 = vrot.slane %v17741_v41, 4  ;;  %vm17749_vm12 = vmmov %vm17736_vm7  ;;  %vm17750_vm7 = vcmask 236544  }
 0x207   : > { %v10241_v39 = vcombine.low %v2309_v11, %v2316_v19  ;;  %v10242_v18 = vcombine.high %v2309_v11, %v2316_v19  ;;  %1208 = vrot.lane.b32.xlu0 %v13233_v30, %s17629_s26  ;;  %v17740_v21 = vrot.slane %v17739_v50, 4  ;;  %s11972_s26 = smov 100  }
 0x208   : > { %v824_v8 = vsel %vm389_vm0, %v17742_v17, %v17486_v12  ;;  %v13756_v61 = vpop.permute.xlu1 %2266  ;;  %v13758_v3 = vpop.permute.xlu0 %2176 }
 0x209   : > { %v831_v59 = vsel %vm389_vm0, %v17740_v21, %v17481_v55  ;;  %4871 = vmatprep.subr.bf16.mxu0 %v10242_v18  ;;  %v825_v19 = vsel %vm815_vm1, %v17741_v41, %v824_v8  ;;  %17743 = vst [vmem:[#allocation36_spill] sm:$0xff] %v13756_v61  ;;  %17744 = vst [vmem:[#allocation17_spill] sm:$0xff] %v13758_v3  ;;  %v17487_v21 = vrot.slane %v13756_v61, 4  ;;  %v17494_v55 = vrot.slane %v13758_v3, 4  ;;  %v17745_v8 = vld [vmem:[#allocation19_spill] sm:$0xff] }
 0x20a   : > { %v832_v11 = vsel %vm815_vm1, %v17739_v50, %v831_v59  ;;  %4872 = vmatpush2.bf16.msra.mxu0 %v10241_v39  ;;  %2276 = vrot.lane.b32.xlu1 %v13289_v47, %s17648_s13  ;;  %v17746_v18 = vrot.slane %v17745_v8, 4  ;;  %v17747_v39 = vld [vmem:[#allocation18_spill] sm:$0xff] }
 0x20b   : > { %v10094_v10 = vcombine.low %v825_v19, %v832_v11  ;;  %v10095_v7 = vcombine.high %v825_v19, %v832_v11  ;;  %1110 = vrot.lane.b32.xlu0 %v13289_v47, %s17632_s12  ;;  %v17748_v59 = vrot.slane %v17747_v39, 4  ;;  %s11973_s12 = smov 113  }
 0x20c   : > { %v2301_v50 = vsel %vm389_vm0, %v17746_v18, %v17487_v21  ;;  %v13780_v19 = vpop.permute.xlu1 %2160  ;;  %v13782_v12 = vpop.permute.xlu0 %2727 }
 0x20d   : > { %v2209_v41 = vsel %vm389_vm0, %v17748_v59, %v17494_v55  ;;  %4818 = vmatprep.subr.bf16.mxu1 %v10095_v7  ;;  %v2302_v17 = vsel %vm17749_vm12, %v17745_v8, %v2301_v50  ;;  %17751 = vst [vmem:[#allocation16_spill] sm:$0xff] %v13780_v19  ;;  %17752 = vst [vmem:[#allocation28_spill] sm:$0xff] %v13782_v12  ;;  %v17492_v18 = vrot.slane %v13780_v19, 4  ;;  %v17493_v21 = vrot.slane %v13782_v12, 4  ;;  %v17753_v7 = vld [vmem:[#allocation21_spill] sm:$0xff] }
 0x20e   : > { %v2210_v11 = vsel %vm17750_vm7, %v17747_v39, %v2209_v41  ;;  %4819 = vmatpush2.bf16.msra.mxu1 %v10094_v10  ;;  %1004 = vrot.lane.b32.xlu1 %v13289_v47, %s17638_s24  ;;  %v17754_v8 = vrot.slane %v17753_v7, 4  ;;  %v17755_v10 = vld [vmem:[#allocation31_spill] sm:$0xff]  ;;  %v11853_v41 = vld [vmem:[%s17230_s1] ss:$20 sps:$4 sm:$0xff]   ;;  %vm17757_vm12 = vmmov %vm17750_vm7 }
 0x20f   : > { %v10234_v61 = vcombine.low %v2210_v11, %v2302_v17  ;;  %v10235_v3 = vcombine.high %v2210_v11, %v2302_v17  ;;  %2284 = vrot.lane.b32.xlu0 %v13209_v29, %s17648_s13  ;;  %v17756_v39 = vrot.slane %v17755_v10, 4  ;;  %v13831_v12 = vld [vmem:[%s12075_s21 + $0x60] sm:$0xff] }
 0x210   : > { %v2195_v50 = vsel %vm389_vm0, %v17754_v8, %v17492_v18  ;;  %v13807_v8 = vpop.permute.xlu1 %2711  ;;  %v13809_v18 = vpop.permute.xlu0 %2168 }
 0x211   : > { %v2759_v59 = vsel %vm389_vm0, %v17756_v39, %v17493_v21  ;;  %4873 = vmatprep.subr.bf16.mxu0 %v10235_v3  ;;  %4821 = vmatmul.mubr.bf16.vlgmr.msra.gmra.mxu1 %v11853_v41  ;;  %v2196_v17 = vsel %vm17757_vm12, %v17753_v7, %v2195_v50  ;;  %17758 = vst [vmem:[#allocation27_spill] sm:$0xff] %v13807_v8  ;;  %17759 = vst [vmem:[#allocation19_spill] sm:$0xff] %v13809_v18  ;;  %v11854_v3 = vld [vmem:[%s17230_s1 + $0x2c] ss:$20 sps:$4 sm:$0xff]   ;;  %v17501_v39 = vrot.slane %v13807_v8, 4  ;;  %vm17776_vm12 = vcmask 252928  }
 0x212   : > { %v2760_v11 = vsel %vm709_vm2, %v17755_v10, %v2759_v59  ;;  %4874 = vmatpush2.bf16.msra.mxu0 %v10234_v61  ;;  %4830 = vmatprep.mubr.bf16.mxu1 %v11854_v3  ;;  %v17502_v41 = vrot.slane %v13809_v18, 4  ;;  %v17760_v61 = vld [vmem:[#allocation34_spill] sm:$0xff] }
 0x213   : > { %v10298_v21 = vcombine.high %v2760_v11, %v2760_v11  ;;  %v10297_v55 = vcombine.low %v2760_v11, %v2760_v11  ;;  %2178 = vrot.lane.b32.xlu1 %v13209_v29, %s17651_s10  ;;  %1012 = vrot.lane.b32.xlu0 %v13209_v29, %s17638_s24  ;;  %v17761_v7 = vrot.slane %v17760_v61, 4  ;;  %v17762_v10 = vld [vmem:[#allocation22_spill] sm:$0xff] }
 0x214   : > { %v17763_v59 = vrot.slane %v17762_v10, 4  ;;  %v13839_v19 = vpop.permute.xlu1 %2062 }
 0x215   : > { %v2745_v50 = vsel %vm389_vm0, %v17761_v7, %v17501_v39  ;;  %10306 = vmatprep.subr.msk.bf16.mxu1 %vm389_vm0, %v10298_v21  ;;  %v4585_v11 = vsel %vm389_vm0, %v10297_v55, 0  ;;  %v13841_v7 = vpop.permute.xlu0 %2719  ;;  %v17506_v39 = vrot.slane %v13839_v19, 4  ;;  %v17765_v55 = vld [vmem:[#allocation25_spill] sm:$0xff] }
 0x216   : > { %v2202_v3 = vsel %vm389_vm0, %v17763_v59, %v17502_v41  ;;  %v2746_v29 = vsel %vm709_vm2, %v17760_v61, %v2745_v50  ;;  %17764 = vst [vmem:[#allocation18_spill] sm:$0xff] %v13841_v7  ;;  %4919 = vmatpush1.bf16.msra.mxu1 %v4585_v11  ;;  %v17505_v59 = vrot.slane %v13841_v7, 4  ;;  %v17766_v21 = vrot.slane %v17765_v55, 4 }
 0x217   : > { %v2203_v8 = vsel %vm17750_vm7, %v17762_v10, %v2202_v3  ;;  %906 = vrot.lane.b32.xlu1 %v13831_v12, %s17643_s18  ;;  %2268 = vrot.lane.b32.xlu0 %v13233_v30, %s17648_s13  ;;  %v17767_v50 = vrot.slane %v12994_v32, 4  ;;  %vm17786_vm7 = vmmov %vm17776_vm12 }
 0x218   : > { %v10227_v41 = vcombine.low %v2196_v17, %v2203_v8  ;;  %v10228_v18 = vcombine.high %v2196_v17, %v2203_v8  ;;  %v2096_v61 = vsel %vm389_vm0, %v17766_v21, %v17506_v39  ;;  %v11855_v17 = vld [vmem:[%s17230_s1 + $0x28] ss:$20 sps:$4 sm:$0xff]   ;;  %v13866_v11 = vpop.permute.xlu1 %2614 }
 0x219   : > { %v2752_v10 = vsel %vm389_vm0, %v17767_v50, %v17505_v59  ;;  %4831 = vmatmul.mubr.bf16.gmra.mxu1 %v11855_v17  ;;  %v2097_v8 = vsel %vm2087_vm10, %v17765_v55, %v2096_v61  ;;  %17768 = vst [vmem:[#allocation21_spill] sm:$0xff] %v13866_v11  ;;  %v13868_v21 = vpop.permute.xlu0 %2070  ;;  %v17509_v50 = vrot.slane %v13866_v11, 4  ;;  %v17770_v55 = vld [vmem:[#allocation26_spill] sm:$0xff] }
 0x21a   : > { %4875 = vmatprep.subr.bf16.mxu0 %v10228_v18  ;;  %v2753_v3 = vsel %vm709_vm2, %v12994_v32, %v2752_v10  ;;  %v11856_v18 = vld [vmem:[%s17230_s1 + $0x54] ss:$20 sps:$4 sm:$0xff]   ;;  %v17510_v17 = vrot.slane %v13868_v21, 4  ;;  %v17769_v32 = vrot.slane %v13036_v58, 4  ;;  %v17771_v61 = vrot.slane %v17770_v55, 4 }
 0x21b   : > { %4876 = vmatpush2.bf16.msra.mxu0 %v10227_v41  ;;  %4840 = vmatprep.mubr.bf16.mxu1 %v11856_v18  ;;  %v10290_v59 = vcombine.low %v2746_v29, %v2753_v3  ;;  %v10291_v39 = vcombine.high %v2746_v29, %v2753_v3  ;;  %v13890_v29 = vld [vmem:[%s12075_s21 + $0x18] sm:$0xff] }
 0x21c   : > { %2162 = vrot.lane.b32.xlu1 %v13233_v30, %s17651_s10  ;;  %996 = vrot.lane.b32.xlu0 %v13233_v30, %s17638_s24  ;;  %v2647_v41 = vsel %vm389_vm0, %v17769_v32, %v17509_v50  ;;  %v2103_v10 = vsel %vm389_vm0, %v17771_v61, %v17510_v17  ;;  %v13896_v18 = vpop.permute.xlu1 %1964 }
 0x21d   : > { %4920 = vmatprep.subr.bf16.mxu1 %v10291_v39  ;;  %v2648_v3 = vsel %vm603_vm4, %v13036_v58, %v2647_v41  ;;  %v2104_v30 = vsel %vm2087_vm10, %v17770_v55, %v2103_v10  ;;  %v13898_v11 = vpop.permute.xlu0 %2622  ;;  %v17511_v32 = vrot.slane %v13896_v18, 4  ;;  %v17773_v58 = vld [vmem:[#allocation29_spill] sm:$0xff] }
 0x21e   : > { %17772 = vst [vmem:[#allocation31_spill] sm:$0xff] %v13898_v11  ;;  %4921 = vmatpush1.bf16.msra.mxu1 %v10290_v59  ;;  %v17512_v50 = vrot.slane %v13898_v11, 4  ;;  %v10220_v61 = vcombine.low %v2097_v8, %v2104_v30  ;;  %v10221_v17 = vcombine.high %v2097_v8, %v2104_v30  ;;  %v17774_v39 = vrot.slane %v17773_v58, 4  ;;  %v13917_v10 = vld [vmem:[%s12075_s21 + $0x3c] sm:$0xff]  ;;  %v11857_v8 = vld [vmem:[%s17230_s1 + $0x50] ss:$20 sps:$4 sm:$0xff]  }
 0x21f   : > { %v17775_v59 = vrot.slane %v13050_v24, 4 }
 0x220   : > { %890 = vrot.lane.b32.xlu1 %v13890_v29, %s17643_s18  ;;  %2170 = vrot.lane.b32.xlu0 %v13289_v47, %s17651_s10  ;;  %v1997_v41 = vsel %vm389_vm0, %v17774_v39, %v17511_v32  ;;  %v13926_v39 = vpop.permute.xlu1 %2517 }
 0x221   : > { %v2654_v55 = vsel %vm389_vm0, %v17775_v59, %v17512_v50  ;;  %4877 = vmatprep.subr.bf16.mxu0 %v10221_v17  ;;  %4841 = vmatmul.mubr.bf16.gmra.mxu1 %v11857_v8  ;;  %v1998_v47 = vsel %vm17776_vm12, %v17773_v58, %v1997_v41  ;;  %17777 = vst [vmem:[#allocation34_spill] sm:$0xff] %v13926_v39  ;;  %v13928_v32 = vpop.permute.xlu0 %2054  ;;  %v17517_v17 = vrot.slane %v13926_v39, 4  ;;  %v17780_v58 = vld [vmem:[#allocation30_spill] sm:$0xff]  ;;  %vm17791_vm12 = vmmov %vm17786_vm7 }
 0x222   : > { %v2655_v30 = vsel %vm603_vm4, %v13050_v24, %v2654_v55  ;;  %17778 = vst [vmem:[#allocation22_spill] sm:$0xff] %v13928_v32  ;;  %4878 = vmatpush2.bf16.msra.mxu0 %v10220_v61  ;;  %4946 = vmatprep.mubr.bf16.mxu1 %v17642_v9  ;;  %v17523_v59 = vrot.slane %v13928_v32, 4  ;;  %v17779_v24 = vrot.slane %v13091_v36, 4  ;;  %v17781_v41 = vrot.slane %v17780_v58, 4 }
 0x223   : > { %v10283_v50 = vcombine.low %v2648_v3, %v2655_v30  ;;  %v10284_v11 = vcombine.high %v2648_v3, %v2655_v30 }
 0x224   : > { %2064 = vrot.lane.b32.xlu1 %v13917_v10, %s17657_s23  ;;  %898 = vrot.lane.b32.xlu0 %v13917_v10, %s17643_s18  ;;  %v2549_v61 = vsel %vm389_vm0, %v17779_v24, %v17517_v17  ;;  %v2089_v55 = vsel %vm389_vm0, %v17781_v41, %v17523_v59  ;;  %v13951_v30 = vpop.permute.xlu1 %1948  ;;  %s11889_s18 = sshll.u32 %s11976_s9, 4  ;;  %s11890_s18 = int_to_ptr.vmem [resolvable:$false] %s11889_s18 }
 0x225   : > { %4922 = vmatprep.subr.bf16.mxu1 %v10284_v11  ;;  %v2550_v3 = vsel %vm497_vm6, %v13091_v36, %v2549_v61  ;;  %v2090_v8 = vsel %vm2087_vm10, %v17780_v58, %v2089_v55  ;;  %v13953_v39 = vpop.permute.xlu0 %2606  ;;  %v17522_v24 = vrot.slane %v13951_v30, 4  ;;  %v17783_v36 = vld [vmem:[#allocation32_spill] sm:$0xff]  ;;  %s11891_s10 = scalar_lea.vmem %s11890_s18, 256 }
 0x226   : > { %17782 = vst [vmem:[#allocation25_spill] sm:$0xff] %v13953_v39  ;;  %4923 = vmatpush1.bf16.msra.mxu1 %v10283_v50  ;;  %v17527_v17 = vrot.slane %v13953_v39, 4  ;;  %v10213_v7 = vcombine.low %v1998_v47, %v2090_v8  ;;  %v10214_v32 = vcombine.high %v1998_v47, %v2090_v8  ;;  %v17784_v11 = vrot.slane %v17783_v36, 4 }
 0x227   : > { %v17785_v50 = vrot.slane %v13105_v16, 4 }
 0x228   : > { %792 = vrot.lane.b32.xlu1 %v13917_v10, %s17670_s11  ;;  %2072 = vrot.lane.b32.xlu0 %v13831_v12, %s17657_s23  ;;  %v1983_v61 = vsel %vm389_vm0, %v17784_v11, %v17522_v24  ;;  %v13975_v55 = vpop.permute.xlu1 %2501 }
 0x229   : > { %v2640_v58 = vsel %vm389_vm0, %v17785_v50, %v17527_v17  ;;  %4879 = vmatprep.subr.bf16.mxu0 %v10214_v32  ;;  %v1984_v47 = vsel %vm17786_vm7, %v17783_v36, %v1983_v61  ;;  %17787 = vst [vmem:[#allocation26_spill] sm:$0xff] %v13975_v55  ;;  %v13977_v8 = vpop.permute.xlu0 %1956  ;;  %v17526_v11 = vrot.slane %v13975_v55, 4  ;;  %v13996_v50 = vld [vmem:[%s12075_s21 + $0x64] sm:$0xff] }
 0x22a   : > { %v2641_v41 = vsel %vm603_vm4, %v13105_v16, %v2640_v58  ;;  %4880 = vmatpush2.bf16.msra.mxu0 %v10213_v7  ;;  %v17530_v24 = vrot.slane %v13977_v8, 4  ;;  %v17788_v16 = vrot.slane %v13144_v54, 4  ;;  %v17789_v7 = vld [vmem:[#allocation33_spill] sm:$0xff] }
 0x22b   : > { %v10276_v59 = vcombine.low %v2550_v3, %v2641_v41  ;;  %v10277_v39 = vcombine.high %v2550_v3, %v2641_v41  ;;  %v17790_v36 = vrot.slane %v17789_v7, 4 }
 0x22c   : > { %1966 = vrot.lane.b32.xlu1 %v13831_v12, %s17661_s0  ;;  %800 = vrot.lane.b32.xlu0 %v13831_v12, %s17670_s11  ;;  %v2535_v32 = vsel %vm389_vm0, %v17788_v16, %v17526_v11  ;;  %v695_v58 = vpop.permute.xlu1 %694 }
 0x22d   : > { %v1990_v61 = vsel %vm389_vm0, %v17790_v36, %v17530_v24  ;;  %4924 = vmatprep.subr.bf16.mxu1 %v10277_v39  ;;  %v2536_v3 = vsel %vm497_vm6, %v13144_v54, %v2535_v32  ;;  %v14002_v41 = vpop.permute.xlu0 %2509  ;;  %v707_v16 = vrot.slane %v695_v58, 4  ;;  %v17793_v39 = vld [vmem:[#allocation38_spill] sm:$0xff] }
 0x22e   : > { %v1991_v12 = vsel %vm17791_vm12, %v17789_v7, %v1990_v61  ;;  %17792 = vst [vmem:[#allocation29_spill] sm:$0xff] %v14002_v41  ;;  %4925 = vmatpush1.bf16.msra.mxu1 %v10276_v59  ;;  %v2527_v11 = vrot.slane %v14002_v41, 4  ;;  %v17794_v54 = vrot.slane %v17793_v39, 4  ;;  %v17795_v59 = vrot.slane %v13154_v1, 4 }
 0x22f   : > { %v10206_v17 = vcombine.low %v1984_v47, %v1991_v12  ;;  %v10207_v55 = vcombine.high %v1984_v47, %v1991_v12  ;;  %v729_v7 = vsel %vm709_vm2, %v695_v58, %v707_v16 }
 0x230   : > { %2729 = vrot.lane.b32.xlu1 %v13996_v50, %s17654_s22  ;;  %2056 = vrot.lane.b32.xlu0 %v13890_v29, %s17657_s23  ;;  %v727_v32 = vsel %vm389_vm0, %v17794_v54, %v707_v16  ;;  %v2542_v36 = vsel %vm389_vm0, %v17795_v59, %v2527_v11  ;;  %753 = vst [vmem:[#allocation2 + $0x1a0] sm:$0xf] %v729_v7  ;;  %v14022_v12 = vpop.permute.xlu1 %2404  ;;  %v14039_v59 = vld [vmem:[%s12075_s21 + $0x40] sm:$0xff] }
 0x231   : > { %4881 = vmatprep.subr.bf16.mxu0 %v10207_v55  ;;  %v728_v47 = vsel %vm709_vm2, %v17793_v39, %v727_v32  ;;  %v2543_v61 = vsel %vm497_vm6, %v13154_v1, %v2542_v36  ;;  %v785_v54 = vpop.permute.xlu0 %784  ;;  %v17533_v58 = vrot.slane %v14022_v12, 4  ;;  %v17796_v55 = vrot.slane %v13188_v22, 4  ;;  %v17797_v39 = vld [vmem:[#allocation37_spill] sm:$0xff] }
 0x232   : > { %4882 = vmatpush2.bf16.msra.mxu0 %v10206_v17  ;;  %v805_v16 = vrot.slane %v785_v54, 4  ;;  %v10269_v24 = vcombine.low %v2536_v3, %v2543_v61  ;;  %v10270_v41 = vcombine.high %v2536_v3, %v2543_v61  ;;  %v17798_v32 = vrot.slane %v17797_v39, 4 }
 0x233   : > { %v2437_v1 = vsel %vm389_vm0, %v17796_v55, %v17533_v58 }
 0x234   : > { %1958 = vrot.lane.b32.xlu1 %v13917_v10, %s17661_s0  ;;  %1950 = vrot.lane.b32.xlu0 %v13890_v29, %s17661_s0  ;;  %v819_v17 = vsel %vm389_vm0, %v17798_v32, %v805_v16  ;;  %v821_v7 = vsel %vm815_vm1, %v785_v54, %v805_v16  ;;  %v11858_v10 = vld [vmem:[%s17230_s1 + $0x8] ss:$20 sps:$4 sm:$0xff]   ;;  %v2438_v29 = vsel %vm391_vm8, %v13188_v22, %v2437_v1  ;;  %v679_v36 = vpop.permute.xlu1 %678  ;;  %v17799_v22 = vld [vmem:[#allocation40_spill] sm:$0xff] }
 0x235   : > { %4926 = vmatprep.subr.bf16.mxu1 %v10270_v41  ;;  %4884 = vmatmul.mubr.bf16.vlgmr.msra.gmra.mxu0 %v11858_v10  ;;  %v820_v3 = vsel %vm815_vm1, %v17797_v39, %v819_v17  ;;  %851 = vst [vmem:[#allocation2 + $0x1bc] sm:$0xf] %v821_v7  ;;  %v14048_v61 = vpop.permute.xlu0 %2412  ;;  %v11859_v41 = vld [vmem:[%s17230_s1 + $0x34] ss:$20 sps:$4 sm:$0xff]   ;;  %v699_v54 = vrot.slane %v679_v36, 4  ;;  %v17800_v1 = vrot.slane %v17799_v22, 4 }
 0x236   : > { %4927 = vmatpush1.bf16.msra.mxu1 %v10269_v24  ;;  %4893 = vmatprep.mubr.bf16.mxu0 %v11859_v41  ;;  %v2426_v16 = vrot.slane %v14048_v61, 4  ;;  %v10089_v55 = vcombine.low %v728_v47, %v820_v3  ;;  %v10090_v32 = vcombine.high %v728_v47, %v820_v3  ;;  %v17801_v17 = vrot.slane %v13199_v62, 4 }
 0x237   : > { %v713_v24 = vsel %vm389_vm0, %v17800_v1, %v699_v54  ;;  %v715_v39 = vsel %vm709_vm2, %v679_v36, %v699_v54 }
 0x238   : > { %2721 = vrot.lane.b32.xlu1 %v14039_v59, %s17654_s22  ;;  %2713 = vrot.lane.b32.xlu0 %v13686_v48, %s17654_s22  ;;  %v2444_v7 = vsel %vm389_vm0, %v17801_v17, %v2426_v16  ;;  %v714_v47 = vsel %vm709_vm2, %v17799_v22, %v713_v24  ;;  %745 = vst [vmem:[#allocation2 + $0x168] sm:$0xf] %v715_v39  ;;  %v1853_v3 = vpop.permute.xlu1 %1852 }
 0x239   : > { %4977 = vmatprep.subr.bf16.mxu0 %v10090_v32  ;;  %v2445_v10 = vsel %vm391_vm8, %v13199_v62, %v2444_v7  ;;  %v687_v41 = vpop.permute.xlu0 %686  ;;  %v1869_v1 = vrot.slane %v1853_v3, 4  ;;  %v17802_v32 = vrot.slane %v13244_v6, 4  ;;  %v17803_v62 = vld [vmem:[#allocation39_spill] sm:$0xff] }
 0x23a   : > { %4978 = vmatpush1.bf16.msra.mxu0 %v10089_v55  ;;  %v703_v58 = vrot.slane %v687_v41, 4  ;;  %v10262_v36 = vcombine.low %v2438_v29, %v2445_v10  ;;  %v10263_v54 = vcombine.high %v2438_v29, %v2445_v10  ;;  %v17804_v39 = vrot.slane %v17803_v62, 4 }
 0x23b   : > { %v1886_v22 = vsel %vm389_vm0, %v17802_v32, %v1869_v1  ;;  %v1888_v24 = vsel %vm1875_vm3, %v1853_v3, %v1869_v1  ;;  %v11860_v3 = vld [vmem:[%s17230_s1 + $0x30] ss:$20 sps:$4 sm:$0xff]  }
 0x23c   : > { %2624 = vrot.lane.b32.xlu1 %v13996_v50, %s17660_s25  ;;  %2616 = vrot.lane.b32.xlu0 %v14039_v59, %s17660_s25  ;;  %v720_v55 = vsel %vm389_vm0, %v17804_v39, %v703_v58  ;;  %v722_v17 = vsel %vm709_vm2, %v687_v41, %v703_v58  ;;  %v1887_v29 = vsel %vm1875_vm3, %v13244_v6, %v1886_v22  ;;  %v581_v10 = vpop.permute.xlu1 %580  ;;  %v11861_v6 = vld [vmem:[%s17230_s1 + $0x5c] ss:$20 sps:$4 sm:$0xff]   ;;  %v2351_v22 = vld [vmem:[%s12075_s21 + $0x40] sm:$0xf] }
 0x23d   : > { %4928 = vmatprep.subr.bf16.mxu1 %v10263_v54  ;;  %1915 = vst [vmem:[#allocation2 + $0x520] sm:$0xf] %v1888_v24  ;;  %v721_v7 = vsel %vm709_vm2, %v17803_v62, %v720_v55  ;;  %749 = vst [vmem:[#allocation2 + $0x184] sm:$0xf] %v722_v17  ;;  %v1861_v32 = vpop.permute.xlu0 %1860  ;;  %4894 = vmatmul.mubr.bf16.gmra.mxu0 %v11860_v3  ;;  %v597_v58 = vrot.slane %v581_v10, 4  ;;  %v17805_v24 = vld [vmem:[#allocation42_spill] sm:$0xff] }
 0x23e   : > { %4929 = vmatpush1.bf16.msra.mxu1 %v10262_v36  ;;  %v1873_v41 = vrot.slane %v1861_v32, 4  ;;  %v10082_v1 = vcombine.low %v714_v47, %v721_v7  ;;  %v10083_v54 = vcombine.high %v714_v47, %v721_v7  ;;  %4903 = vmatprep.mubr.bf16.mxu0 %v11861_v6  ;;  %v2347_v36 = vld [vmem:[%s12075_s21 + $0x1c] sm:$0xf]  ;;  %v17806_v62 = vrot.slane %v17805_v24, 4  ;;  %v11862_v3 = vld [vmem:[%s17230_s1 + $0x10] ss:$20 sps:$4 sm:$0xff]  }
 0x23f   : > { %v616_v55 = vsel %vm603_vm4, %v581_v10, %v597_v58  ;;  %v17807_v47 = vrot.slane %v13242_v33, 4  ;;  %2359 = vst [vmem:[#allocation2 + $0x6a8] sm:$0xf] %v2347_v36  ;;  %2363 = vst [vmem:[#allocation2 + $0x6c4] sm:$0xf] %v2351_v22  ;;  %v17809_v22 = vld [vmem:[#allocation41_spill] sm:$0xff] }
 0x240   : > { %2608 = vrot.lane.b32.xlu1 %v13686_v48, %s17660_s25  ;;  %2519 = vrot.lane.b32.xlu0 %v13996_v50, %s17664_s14  ;;  %v614_v39 = vsel %vm389_vm0, %v17806_v62, %v597_v58  ;;  %v1895_v7 = vsel %vm1875_vm3, %v1861_v32, %v1873_v41  ;;  %643 = vst [vmem:[#allocation2 + $0x130] sm:$0xf] %v616_v55  ;;  %v1755_v58 = vpop.permute.xlu1 %1754  ;;  %s11975_s25 = smov 98  }
 0x241   : > { %v1893_v17 = vsel %vm389_vm0, %v17807_v47, %v1873_v41  ;;  %10307 = vmatmul.mubr.msk.bf16.vlgmr.msra.gmra.mxu1 %vm4567_vm14, %v11862_v3  ;;  %v615_v6 = vsel %vm603_vm4, %v17805_v24, %v614_v39  ;;  %1919 = vst [vmem:[#allocation2 + $0x53c] sm:$0xf] %v1895_v7  ;;  %v589_v62 = vpop.permute.xlu0 %588  ;;  %4979 = vmatprep.subr.bf16.mxu0 %v10083_v54  ;;  %v1767_v32 = vrot.slane %v1755_v58, 4  ;;  %v17810_v24 = vrot.slane %v17809_v22, 4  ;;  %v11863_v7 = vld [vmem:[%s17230_s1 + $0x58] ss:$20 sps:$4 sm:$0xff]  }
 0x242   : > { %v1894_v10 = vsel %vm1875_vm3, %v13242_v33, %v1893_v17  ;;  %4956 = vmatprep.mubr.bf16.mxu1 %v17642_v9  ;;  %v601_v41 = vrot.slane %v589_v62, 4  ;;  %4980 = vmatpush1.bf16.msra.mxu0 %v10082_v1  ;;  %v17808_v33 = vrot.slane %v13300_v38, 4 }
 0x243   : > { %v10201_v47 = vcombine.low %v1887_v29, %v1894_v10  ;;  %v10202_v3 = vcombine.high %v1887_v29, %v1894_v10  ;;  %v1789_v54 = vsel %vm1769_vm5, %v1755_v58, %v1767_v32  ;;  %v308_v10 = vld [vmem:[%s12075_s21 + $0x18] sm:$0xf]  ;;  %v312_v58 = vld [vmem:[%s12075_s21 + $0x3c] sm:$0xf] }
 0x244   : > { %2511 = vrot.lane.b32.xlu1 %v14039_v59, %s17664_s14  ;;  %2503 = vrot.lane.b32.xlu0 %v13686_v48, %s17664_s14  ;;  %v1787_v36 = vsel %vm389_vm0, %v17808_v33, %v1767_v32  ;;  %v621_v1 = vsel %vm389_vm0, %v17810_v24, %v601_v41  ;;  %v623_v29 = vsel %vm603_vm4, %v589_v62, %v601_v41  ;;  %v483_v55 = vpop.permute.xlu1 %482  ;;  %v17811_v33 = vld [vmem:[#allocation44_spill] sm:$0xff] }
 0x245   : > { %5040 = vmatprep.subr.bf16.mxu1 %v10202_v3  ;;  %v1788_v39 = vsel %vm1769_vm5, %v13300_v38, %v1787_v36  ;;  %1813 = vst [vmem:[#allocation2 + $0x4e8] sm:$0xf] %v1789_v54  ;;  %v622_v48 = vsel %vm603_vm4, %v17809_v22, %v621_v1  ;;  %647 = vst [vmem:[#allocation2 + $0x14c] sm:$0xf] %v623_v29  ;;  %v1845_v17 = vpop.permute.xlu0 %1844  ;;  %4904 = vmatmul.mubr.bf16.gmra.mxu0 %v11863_v7  ;;  %v495_v62 = vrot.slane %v483_v55, 4 }
 0x246   : > { %5041 = vmatpush1.bf16.msra.mxu1 %v10201_v47  ;;  %v1865_v32 = vrot.slane %v1845_v17, 4  ;;  %v10075_v41 = vcombine.low %v615_v6, %v622_v48  ;;  %v10076_v3 = vcombine.high %v615_v6, %v622_v48  ;;  %v11864_v38 = vld [vmem:[%s17230_s1 + $0x4] ss:$20 sps:$4 sm:$0xff]   ;;  %320 = vst [vmem:[#allocation2 + $0x18] sm:$0xf] %v308_v10  ;;  %v3107_v47 = vld [vmem:[%s17231_s2 + $0x8] sm:$0xff] }
 0x247   : > { %5009 = vmatprep.mubr.bf16.mxu0 %v11864_v38  ;;  %324 = vst [vmem:[#allocation2 + $0x34] sm:$0xf] %v312_v58  ;;  %v17812_v36 = vrot.slane %v17811_v33, 4  ;;  %v517_v54 = vsel %vm497_vm6, %v483_v55, %v495_v62  ;;  %v17813_v22 = vrot.slane %v13298_v51, 4  ;;  %v17814_v38 = vrot.slane %v13323_v35, 4 }
 0x248   : > { %2414 = vrot.lane.b32.xlu1 %v13996_v50, %s17669_s29  ;;  %2406 = vrot.lane.b32.xlu0 %v14039_v59, %s17669_s29  ;;  %v1881_v1 = vsel %vm1875_vm3, %v1845_v17, %v1865_v32  ;;  %v11865_v50 = vld [vmem:[%s17230_s1 + $0x38] ss:$20 sps:$4 sm:$0xff]   ;;  %v3106_v59 = vld [vmem:[%s17231_s2] sm:$0xff]  ;;  %541 = vst [vmem:[#allocation2 + $0xf8] sm:$0xf] %v517_v54  ;;  %v1739_v55 = vpop.permute.xlu1 %1738 }
 0x249   : > { %v515_v6 = vsel %vm389_vm0, %v17812_v36, %v495_v62  ;;  %v1879_v24 = vsel %vm389_vm0, %v17813_v22, %v1865_v32  ;;  %10308 = vmatmul.mubr.msk.bf16.gmra.mxu1 %vm4567_vm14, %v11865_v50  ;;  %1911 = vst [vmem:[#allocation2 + $0x504] sm:$0xf] %v1881_v1  ;;  %v573_v17 = vpop.permute.xlu0 %572  ;;  %4981 = vmatprep.subr.bf16.mxu0 %v10076_v3  ;;  %v1759_v7 = vrot.slane %v1739_v55, 4  ;;  %v3108_v32 = vld [vmem:[%s17231_s2 + $0x10] sm:$0xff] }
 0x24a   : > { %v516_v29 = vsel %vm497_vm6, %v17811_v33, %v515_v6  ;;  %v1880_v48 = vsel %vm1875_vm3, %v13298_v51, %v1879_v24  ;;  %4966 = vmatprep.mubr.bf16.mxu1 %v17642_v9  ;;  %v593_v10 = vrot.slane %v573_v17, 4  ;;  %4982 = vmatpush1.bf16.msra.mxu0 %v10075_v41  ;;  %v17815_v3 = vld [vmem:[#allocation43_spill] sm:$0xff]  ;;  %vm17820_vm3 = vcmask 498688  }
 0x24b   : > { %v10194_v58 = vcombine.low %v1788_v39, %v1880_v48  ;;  %v10195_v62 = vcombine.high %v1788_v39, %v1880_v48  ;;  %v1773_v51 = vsel %vm389_vm0, %v17814_v38, %v1759_v7  ;;  %v1775_v33 = vsel %vm1769_vm5, %v1739_v55, %v1759_v7  ;;  %v3109_v39 = vld [vmem:[%s17231_s2 + $0x18] sm:$0xff]  ;;  %v3110_v55 = vld [vmem:[%s17231_s2 + $0x20] sm:$0xff]  ;;  %vm17825_vm7 = vmmov %vm17820_vm3 }
 0x24c   : > { %3119 = vperm.xlu1 %11041, %v3107_v47   ;;  %3114 = vperm.xlu0 %11040, %v3106_v59   ;;  %v17816_v36 = vrot.slane %v17815_v3, 4  ;;  %v609_v41 = vsel %vm603_vm4, %v573_v17, %v593_v10  ;;  %v1774_v47 = vsel %vm1769_vm5, %v13323_v35, %v1773_v51  ;;  %1805 = vst [vmem:[#allocation2 + $0x4b0] sm:$0xf] %v1775_v33  ;;  %v467_v22 = vpop.permute.xlu1 %466  ;;  %v17817_v35 = vrot.slane %v13214_v34, 4  ;;  %vm17826_vm12 = vmmov %vm17820_vm3 }
 0x24d   : > { %5042 = vmatprep.subr.bf16.mxu1 %v10195_v62  ;;  %639 = vst [vmem:[#allocation2 + $0x114] sm:$0xf] %v609_v41  ;;  %v1747_v24 = vpop.permute.xlu0 %1746  ;;  %v487_v1 = vrot.slane %v467_v22, 4 }
 0x24e   : > { %v607_v6 = vsel %vm389_vm0, %v17816_v36, %v593_v10  ;;  %5043 = vmatpush1.bf16.msra.mxu1 %v10194_v58  ;;  %v1763_v50 = vrot.slane %v1747_v24, 4  ;;  %v17818_v10 = vrot.slane %v13353_v5, 4  ;;  %v11867_v36 = vld [vmem:[%s17230_s1 + $0xc] ss:$20 sps:$4 sm:$0xff]  }
 0x24f   : > { %v608_v54 = vsel %vm603_vm4, %v17815_v3, %v607_v6  ;;  %v501_v17 = vsel %vm389_vm0, %v17817_v35, %v487_v1  ;;  %v503_v7 = vsel %vm497_vm6, %v467_v22, %v487_v1 }
 0x250   : > { %v10068_v59 = vcombine.low %v516_v29, %v608_v54  ;;  %v10069_v48 = vcombine.high %v516_v29, %v608_v54  ;;  %3124 = vperm.xlu1 %11041, %v3108_v32   ;;  %3129 = vperm.xlu0 %11040, %v3109_v39   ;;  %v1780_v58 = vsel %vm389_vm0, %v17818_v10, %v1763_v50  ;;  %v11866_v29 = vld [vmem:[%s17230_s1 + $0x60] ss:$20 sps:$4 sm:$0xff]   ;;  %v3111_v32 = vld [vmem:[%s17231_s2 + $0x28] sm:$0xff]  ;;  %v1641_v33 = vpop.permute.xlu1 %1640 }
 0x251   : > { %v1782_v62 = vsel %vm1769_vm5, %v1747_v24, %v1763_v50  ;;  %10309 = vmatmul.mubr.msk.bf16.gmra.mxu1 %vm4567_vm14, %v11866_v29  ;;  %v502_v38 = vsel %vm497_vm6, %v13214_v34, %v501_v17  ;;  %533 = vst [vmem:[#allocation2 + $0xc0] sm:$0xf] %v503_v7  ;;  %v1781_v51 = vsel %vm1769_vm5, %v13353_v5, %v1780_v58  ;;  %v475_v3 = vpop.permute.xlu0 %474  ;;  %v1657_v6 = vrot.slane %v1641_v33, 4  ;;  %vm17822_vm5 = vmmov %vm17820_vm3 }
 0x252   : > { %1809 = vst [vmem:[#allocation2 + $0x4cc] sm:$0xf] %v1782_v62  ;;  %4983 = vmatprep.subr.bf16.mxu0 %v10069_v48  ;;  %5072 = vmatprep.mubr.bf16.mxu1 %v11867_v36  ;;  %v491_v41 = vrot.slane %v475_v3, 4  ;;  %v10187_v39 = vcombine.low %v1774_v47, %v1781_v51  ;;  %v10188_v54 = vcombine.high %v1774_v47, %v1781_v51  ;;  %v17819_v34 = vrot.slane %v13351_v53, 4 }
 0x253   : > { %4984 = vmatpush1.bf16.msra.mxu0 %v10068_v59  ;;  %v1676_v22 = vsel %vm17820_vm3, %v1641_v33, %v1657_v6  ;;  %v17821_v24 = vrot.slane %v13212_v52, 4  ;;  %v17823_v58 = vrot.slane %v13269_v14, 4 }
 0x254   : > { %3134 = vperm.xlu1 %11041, %v3110_v55   ;;  %3139 = vperm.xlu0 %11040, %v3111_v32   ;;  %v1674_v5 = vsel %vm389_vm0, %v17819_v34, %v1657_v6  ;;  %v510_v50 = vsel %vm497_vm6, %v475_v3, %v491_v41  ;;  %1703 = vst [vmem:[#allocation2 + $0x478] sm:$0xf] %v1676_v22  ;;  %v368_v48 = vpop.permute.xlu1 %367 }
 0x255   : > { %v508_v1 = vsel %vm389_vm0, %v17821_v24, %v491_v41  ;;  %5044 = vmatprep.subr.bf16.mxu1 %v10188_v54  ;;  %v1675_v59 = vsel %vm17822_vm5, %v13351_v53, %v1674_v5  ;;  %537 = vst [vmem:[#allocation2 + $0xdc] sm:$0xf] %v510_v50  ;;  %v1649_v55 = vpop.permute.xlu0 %1648  ;;  %v384_v35 = vrot.slane %v368_v48, 4  ;;  %v17824_v53 = vrot.slane %v13380_v28, 4  ;;  %vm17831_vm5 = vmmov %vm17820_vm3 }
 0x256   : > { %v509_v47 = vsel %vm497_vm6, %v13212_v52, %v508_v1  ;;  %5045 = vmatpush1.bf16.msra.mxu1 %v10187_v39  ;;  %v1661_v17 = vrot.slane %v1649_v55, 4  ;;  %v17827_v54 = vrot.slane %v13408_v57, 4 }
 0x257   : > { %v10061_v7 = vcombine.low %v502_v38, %v509_v47  ;;  %v10062_v10 = vcombine.high %v502_v38, %v509_v47  ;;  %v402_v62 = vsel %vm389_vm0, %v17823_v58, %v384_v35  ;;  %v404_v29 = vsel %vm391_vm8, %v368_v48, %v384_v35 }
 0x258   : > { %v1681_v32 = vsel %vm389_vm0, %v17824_v53, %v1661_v17  ;;  %v1683_v52 = vsel %vm17825_vm7, %v1649_v55, %v1661_v17  ;;  %v403_v51 = vsel %vm391_vm8, %v13269_v14, %v402_v62  ;;  %431 = vst [vmem:[#allocation2 + $0x88] sm:$0xf] %v404_v29  ;;  %v1543_v33 = vpop.permute.xlu1 %1542  ;;  %v17828_v14 = vrot.slane %v13267_v27, 4 }
 0x259   : > { %4985 = vmatprep.subr.bf16.mxu0 %v10062_v10  ;;  %v1682_v38 = vsel %vm17826_vm12, %v13380_v28, %v1681_v32  ;;  %1707 = vst [vmem:[#allocation2 + $0x494] sm:$0xf] %v1683_v52  ;;  %v376_v3 = vpop.permute.xlu0 %375  ;;  %v1555_v36 = vrot.slane %v1543_v33, 4  ;;  %v17829_v17 = vrot.slane %v13325_v40, 4  ;;  %vm17836_vm7 = vcmask 515072  }
 0x25a   : > { %4986 = vmatpush1.bf16.msra.mxu0 %v10061_v7  ;;  %v388_v6 = vrot.slane %v376_v3, 4  ;;  %v10180_v41 = vcombine.low %v1675_v59, %v1682_v38  ;;  %v10181_v39 = vcombine.high %v1675_v59, %v1682_v38  ;;  %v11868_v38 = vld [vmem:[#allocation2 + $0x48] sm:$0xff]  ;;  %vm17839_vm12 = vmmov %vm17836_vm7 }
 0x25b   : > { %v1575_v34 = vsel %vm389_vm0, %v17827_v54, %v1555_v36  ;;  %v1577_v5 = vsel %vm1557_vm9, %v1543_v33, %v1555_v36  ;;  %v17833_v54 = vrot.slane %v13459_v31, 4 }
 0x25c   : > { %v409_v22 = vsel %vm389_vm0, %v17828_v14, %v388_v6  ;;  %v411_v28 = vsel %vm391_vm8, %v376_v3, %v388_v6  ;;  %5046 = vmatprep.subr.bf16.mxu1 %v10181_v39  ;;  %v1576_v24 = vsel %vm1557_vm9, %v13408_v57, %v1575_v34  ;;  %1601 = vst [vmem:[#allocation2 + $0x440] sm:$0xf] %v1577_v5  ;;  %v360_v50 = vpop.permute.xlu1 %359  ;;  %v17830_v57 = vrot.slane %v13437_v60, 4 }
 0x25d   : > { %v410_v1 = vsel %vm391_vm8, %v13267_v27, %v409_v22  ;;  %435 = vst [vmem:[#allocation2 + $0xa4] sm:$0xf] %v411_v28  ;;  %v1633_v59 = vpop.permute.xlu0 %1632  ;;  %5047 = vmatpush1.bf16.msra.mxu1 %v10180_v41  ;;  %v380_v47 = vrot.slane %v360_v50, 4  ;;  %v17832_v41 = vrot.slane %v13485_v45, 4 }
 0x25e   : > { %v1653_v48 = vrot.slane %v1633_v59, 4  ;;  %v10054_v55 = vcombine.low %v403_v51, %v410_v1  ;;  %v10055_v35 = vcombine.high %v403_v51, %v410_v1 }
 0x25f   : > { %v395_v7 = vsel %vm389_vm0, %v17829_v17, %v380_v47  ;;  %v397_v10 = vsel %vm391_vm8, %v360_v50, %v380_v47  ;;  %v17834_v47 = vcombine.high %v13540_v43, %v13543_v23 }
 0x260   : > { %v1667_v58 = vsel %vm389_vm0, %v17830_v57, %v1653_v48  ;;  %v1669_v27 = vsel %vm17820_vm3, %v1633_v59, %v1653_v48  ;;  %4987 = vmatprep.subr.bf16.mxu0 %v10055_v35  ;;  %v396_v62 = vsel %vm391_vm8, %v13325_v40, %v395_v7  ;;  %427 = vst [vmem:[#allocation2 + $0x6c] sm:$0xf] %v397_v10  ;;  %v1535_v53 = vpop.permute.xlu1 %1534  ;;  %vm17840_vm3 = vmmov %vm17836_vm7 }
 0x261   : > { %v1668_v29 = vsel %vm17831_vm5, %v13437_v60, %v1667_v58  ;;  %1699 = vst [vmem:[#allocation2 + $0x45c] sm:$0xf] %v1669_v27  ;;  %v1527_v32 = vpop.permute.xlu0 %1526  ;;  %4988 = vmatpush1.bf16.msra.mxu0 %v10054_v55  ;;  %v1551_v52 = vrot.slane %v1535_v53, 4  ;;  %v10047_v33 = vcombine.low %v11868_v38, %v396_v62  ;;  %v10048_v3 = vcombine.high %v11868_v38, %v396_v62  ;;  %vm17845_vm5 = vmmov %vm17840_vm3 }
 0x262   : > { %v1547_v51 = vrot.slane %v1527_v32, 4  ;;  %v10173_v36 = vcombine.low %v1576_v24, %v1668_v29  ;;  %v10174_v6 = vcombine.high %v1576_v24, %v1668_v29  ;;  %v17837_v55 = vrot.slane %v13509_v26, 4 }
 0x263   : > { %v1568_v39 = vsel %vm389_vm0, %v17832_v41, %v1551_v52  ;;  %v1570_v40 = vsel %vm1557_vm9, %v1535_v53, %v1551_v52  ;;  %4989 = vmatprep.subr.bf16.mxu0 %v10048_v3  ;;  %v17841_v27 = vcombine.low %v13540_v43, %v13543_v23  ;;  %v17842_v52 = vrot.slane %v13410_v63, 4 }
 0x264   : > { %v1561_v60 = vsel %vm389_vm0, %v17833_v54, %v1547_v51  ;;  %v1563_v34 = vsel %vm1557_vm9, %v1527_v32, %v1547_v51  ;;  %v1569_v5 = vsel %vm1557_vm9, %v13485_v45, %v1568_v39  ;;  %1597 = vst [vmem:[#allocation2 + $0x424] sm:$0xf] %v1570_v40  ;;  %v1437_v22 = vpop.permute.xlu1 %1436  ;;  %5048 = vmatprep.subr.bf16.mxu1 %v10174_v6  ;;  %v17835_v45 = vrot.slane %v13535_v4, 4 }
 0x265   : > { %v1562_v14 = vsel %vm1557_vm9, %v13459_v31, %v1561_v60  ;;  %1593 = vst [vmem:[#allocation2 + $0x408] sm:$0xf] %v1563_v34  ;;  %v1429_v28 = vpop.permute.xlu0 %1428  ;;  %4990 = vmatpush1.bf16.msra.mxu0 %v10047_v33  ;;  %v1449_v24 = vrot.slane %v1437_v22, 4  ;;  %5049 = vmatpush1.bf16.msra.mxu1 %v10173_v36  ;;  %vm17838_vm9 = vmmov %vm17836_vm7  ;;  %v17844_v54 = vrot.slane %v13593_v56, 4 }
 0x266   : > { %v1445_v1 = vrot.slane %v1429_v28, 4  ;;  %v10166_v50 = vcombine.low %v1562_v14, %v1569_v5  ;;  %v10167_v59 = vcombine.high %v1562_v14, %v1569_v5  ;;  %4991 = vmatprep.subr.bf16.mxu0 %v17834_v47 }
 0x267   : > { %v1469_v48 = vsel %vm389_vm0, %v17835_v45, %v1449_v24  ;;  %v1471_v31 = vsel %vm17836_vm7, %v1437_v22, %v1449_v24  ;;  %vm17847_vm7 = vmmov %vm17840_vm3  ;;  %v17848_v45 = vrot.slane %v13461_v44, 4 }
 0x268   : > { %v1462_v35 = vsel %vm389_vm0, %v17837_v55, %v1445_v1  ;;  %v1464_v17 = vsel %vm17838_vm9, %v1429_v28, %v1445_v1  ;;  %5050 = vmatprep.subr.bf16.mxu1 %v10167_v59  ;;  %v1470_v7 = vsel %vm17839_vm12, %v13535_v4, %v1469_v48  ;;  %1495 = vst [vmem:[#allocation2 + $0x3ec] sm:$0xf] %v1471_v31  ;;  %v1323_v57 = vpop.permute.xlu1 %1322  ;;  %vm17849_vm9 = vcmask 752640  }
 0x269   : > { %v1463_v10 = vsel %vm17840_vm3, %v13509_v26, %v1462_v35  ;;  %1491 = vst [vmem:[#allocation2 + $0x3d0] sm:$0xf] %v1464_v17  ;;  %v1315_v58 = vpop.permute.xlu0 %1314  ;;  %4992 = vmatpush1.bf16.msra.mxu0 %v17841_v27  ;;  %v1339_v62 = vrot.slane %v1323_v57, 4  ;;  %5051 = vmatpush1.bf16.msra.mxu1 %v10166_v50  ;;  %v17843_v26 = vrot.slane %v13378_v37, 4  ;;  %vm17851_vm12 = vmmov %vm17849_vm9 }
 0x26a   : > { %v1335_v29 = vrot.slane %v1315_v58, 4  ;;  %v10159_v53 = vcombine.low %v1463_v10, %v1470_v7  ;;  %v10160_v32 = vcombine.high %v1463_v10, %v1470_v7  ;;  %vm17853_vm3 = vmmov %vm17849_vm9 }
 0x26b   : > { %v1356_v4 = vsel %vm389_vm0, %v17842_v52, %v1339_v62  ;;  %v1358_v51 = vsel %vm1345_vm11, %v1323_v57, %v1339_v62 }
 0x26c   : > { %v1349_v38 = vsel %vm389_vm0, %v17843_v26, %v1335_v29  ;;  %v1351_v33 = vsel %vm1345_vm11, %v1315_v58, %v1335_v29  ;;  %5052 = vmatprep.subr.bf16.mxu1 %v10160_v32  ;;  %v1357_v43 = vsel %vm1345_vm11, %v13410_v63, %v1356_v4  ;;  %1385 = vst [vmem:[#allocation2 + $0x37c] sm:$0xf] %v1358_v51  ;;  %v1421_v3 = vpop.permute.xlu1 %1420  ;;  %v17846_v63 = vrot.slane %v13567_v49, 4 }
 0x26d   : > { %v1350_v23 = vsel %vm1345_vm11, %v13378_v37, %v1349_v38  ;;  %1381 = vst [vmem:[#allocation2 + $0x360] sm:$0xf] %v1351_v33  ;;  %v1331_v36 = vpop.permute.xlu0 %1330  ;;  %v1441_v6 = vrot.slane %v1421_v3, 4  ;;  %5053 = vmatpush1.bf16.msra.mxu1 %v10159_v53  ;;  %v17854_v29 = vrot.slane %v13483_v13, 4 }
 0x26e   : > { %v1343_v41 = vrot.slane %v1331_v36, 4  ;;  %v10145_v39 = vcombine.low %v1350_v23, %v1357_v43  ;;  %v10146_v40 = vcombine.high %v1350_v23, %v1357_v43  ;;  %v11869_v23 = vld [vmem:[#allocation2 + $0x6d8] sm:$0xff] }
 0x26f   : > { %v1455_v60 = vsel %vm389_vm0, %v17844_v54, %v1441_v6  ;;  %v1457_v34 = vsel %vm17845_vm5, %v1421_v3, %v1441_v6  ;;  %vm17855_vm5 = vcmask 760832   ;;  %v17858_v6 = vrot.slane %v13533_v46, 4 }
 0x270   : > { %v1363_v5 = vsel %vm389_vm0, %v17846_v63, %v1343_v41  ;;  %v1365_v37 = vsel %vm1345_vm11, %v1331_v36, %v1343_v41  ;;  %4993 = vmatprep.subr.bf16.mxu0 %v10146_v40  ;;  %v1456_v14 = vsel %vm17847_vm7, %v13593_v56, %v1455_v60  ;;  %1487 = vst [vmem:[#allocation2 + $0x3b4] sm:$0xf] %v1457_v34  ;;  %v1225_v28 = vpop.permute.xlu1 %1224  ;;  %v17850_v56 = vrot.slane %v13435_v15, 4  ;;  %vm17857_vm7 = vmmov %vm17855_vm5 }
 0x271   : > { %v1364_v22 = vsel %vm1345_vm11, %v13567_v49, %v1363_v5  ;;  %1389 = vst [vmem:[#allocation2 + $0x398] sm:$0xf] %v1365_v37  ;;  %v1217_v24 = vpop.permute.xlu0 %1216  ;;  %4994 = vmatpush2.bf16.msra.mxu0 %v10145_v39  ;;  %v1237_v1 = vrot.slane %v1225_v28, 4  ;;  %vm17852_vm11 = vmmov %vm17849_vm9 }
 0x272   : > { %v1233_v50 = vrot.slane %v1217_v24, 4  ;;  %v10152_v59 = vcombine.low %v1364_v22, %v1456_v14  ;;  %v10153_v47 = vcombine.high %v1364_v22, %v1456_v14 }
 0x273   : > { %v1257_v48 = vsel %vm389_vm0, %v17848_v45, %v1237_v1  ;;  %v1259_v31 = vsel %vm17849_vm9, %v1225_v28, %v1237_v1  ;;  %vm17859_vm9 = vmmov %vm17855_vm5  ;;  %v17863_v28 = vcombine.high %v13705_v25, %v13708_v0 }
 0x274   : > { %v1250_v55 = vsel %vm389_vm0, %v17850_v56, %v1233_v50  ;;  %v1252_v49 = vsel %vm17851_vm12, %v1217_v24, %v1233_v50  ;;  %5054 = vmatprep.subr.bf16.mxu1 %v10153_v47  ;;  %v1258_v35 = vsel %vm17852_vm11, %v13461_v44, %v1257_v48  ;;  %1283 = vst [vmem:[#allocation2 + $0x344] sm:$0xf] %v1259_v31  ;;  %v1119_v7 = vpop.permute.xlu1 %1118  ;;  %v17856_v44 = vrot.slane %v13615_v42, 4  ;;  %vm17861_vm12 = vmmov %vm17853_vm3  ;;  %v17866_v50 = vld [vmem:[#allocation45_spill] sm:$0xff] }
 0x275   : > { %v1251_v17 = vsel %vm17853_vm3, %v13435_v15, %v1250_v55  ;;  %1279 = vst [vmem:[#allocation2 + $0x328] sm:$0xf] %v1252_v49  ;;  %v2399_v10 = vpop.permute.xlu0 %2398  ;;  %5055 = vmatpush1.bf16.msra.mxu1 %v10152_v59  ;;  %v1131_v57 = vrot.slane %v1119_v7, 4  ;;  %vm17862_vm11 = vmmov %vm17855_vm5  ;;  %v17864_v24 = vrot.slane %v13697_v2, 4  ;;  %v17870_v55 = vcombine.low %v13705_v25, %v13708_v0 }
 0x276   : > { %v2419_v58 = vrot.slane %v2399_v10, 4  ;;  %v10138_v27 = vcombine.low %v1251_v17, %v1258_v35  ;;  %v10139_v62 = vcombine.high %v1251_v17, %v1258_v35 }
 0x277   : > { %v1151_v53 = vsel %vm389_vm0, %v17854_v29, %v1131_v57  ;;  %v1153_v32 = vsel %vm17855_vm5, %v1119_v7, %v1131_v57  ;;  %vm17865_vm5 = vcmask 228352  }
 0x278   : > { %v2432_v52 = vsel %vm389_vm0, %v17856_v44, %v2419_v58  ;;  %v2434_v15 = vsel %vm391_vm8, %v2399_v10, %v2419_v58  ;;  %4995 = vmatprep.subr.bf16.mxu0 %v10139_v62  ;;  %v1152_v4 = vsel %vm17857_vm7, %v13483_v13, %v1151_v53  ;;  %1177 = vst [vmem:[#allocation2 + $0x2f0] sm:$0xf] %v1153_v32  ;;  %v1103_v26 = vpop.permute.xlu1 %1102  ;;  %v17860_v13 = vrot.slane %v13511_v20, 4  ;;  %v17871_v10 = vld [vmem:[#allocation46_spill] sm:$0xff] }
 0x279   : > { %v2433_v51 = vsel %vm391_vm8, %v13615_v42, %v2432_v52  ;;  %2464 = vst [vmem:[#allocation2 + $0x6fc] sm:$0xf] %v2434_v15  ;;  %v1209_v38 = vpop.permute.xlu0 %1208  ;;  %4996 = vmatpush2.bf16.msra.mxu0 %v10138_v27  ;;  %v1123_v33 = vrot.slane %v1103_v26, 4  ;;  %v17872_v57 = vrot.slane %v17871_v10, 4  ;;  %v17873_v27 = vld [vmem:[#allocation24_spill] sm:$0xff] }
 0x27a   : > { %v1229_v43 = vrot.slane %v1209_v38, 4  ;;  %v10257_v3 = vcombine.low %v11869_v23, %v2433_v51  ;;  %v10258_v36 = vcombine.high %v11869_v23, %v2433_v51  ;;  %v17874_v62 = vrot.slane %v17873_v27, 4  ;;  %v17880_v23 = vld [vmem:[#allocation47_spill] sm:$0xff] }
 0x27b   : > { %v1137_v41 = vsel %vm389_vm0, %v17858_v6, %v1123_v33  ;;  %v1139_v39 = vsel %vm17859_vm9, %v1103_v26, %v1123_v33  ;;  %vm17868_vm9 = vmmov %vm17865_vm5  ;;  %v17877_v26 = vld [vmem:[#allocation17_spill] sm:$0xff] }
 0x27c   : > { %v1243_v40 = vsel %vm389_vm0, %v17860_v13, %v1229_v43  ;;  %v1245_v42 = vsel %vm17861_vm12, %v1209_v38, %v1229_v43  ;;  %5056 = vmatprep.subr.bf16.mxu1 %v10258_v36  ;;  %v1138_v54 = vsel %vm17862_vm11, %v13533_v46, %v1137_v41  ;;  %1169 = vst [vmem:[#allocation2 + $0x2b8] sm:$0xf] %v1139_v39  ;;  %v2277_v34 = vpop.permute.xlu1 %2276  ;;  %vm17869_vm12 = vmmov %vm17857_vm7  ;;  %v17878_v38 = vrot.slane %v17877_v26, 4 }
 0x27d   : > { %v1244_v60 = vsel %vm17853_vm3, %v13511_v20, %v1243_v40  ;;  %1275 = vst [vmem:[#allocation2 + $0x30c] sm:$0xf] %v1245_v42  ;;  %v1111_v63 = vpop.permute.xlu0 %1110  ;;  %5057 = vmatpush2.bf16.msra.mxu1 %v10257_v3  ;;  %v2293_v5 = vrot.slane %v2277_v34, 4  ;;  %v17867_v20 = vrot.slane %v17866_v50, 4  ;;  %vm17875_vm11 = vmmov %vm17865_vm5  ;;  %v17881_v3 = vrot.slane %v17880_v23, 4 }
 0x27e   : > { %v1127_v37 = vrot.slane %v1111_v63, 4  ;;  %v10131_v14 = vcombine.low %v1152_v4, %v1244_v60  ;;  %v10132_v22 = vcombine.high %v1152_v4, %v1244_v60  ;;  %5058 = vmatprep.subr.bf16.mxu1 %v17863_v28  ;;  %vm17876_vm3 = vmmov %vm17865_vm5 }
 0x27f   : > { %v2310_v46 = vsel %vm389_vm0, %v17864_v24, %v2293_v5  ;;  %v2312_v1 = vsel %vm17865_vm5, %v2277_v34, %v2293_v5  ;;  %vm17879_vm5 = vcmask 236544  }
 0x280   : > { %v1144_v59 = vsel %vm389_vm0, %v17867_v20, %v1127_v37  ;;  %v1146_v47 = vsel %vm17857_vm7, %v1111_v63, %v1127_v37  ;;  %4997 = vmatprep.subr.bf16.mxu0 %v10132_v22  ;;  %v2311_v45 = vsel %vm17868_vm9, %v13697_v2, %v2310_v46  ;;  %2339 = vst [vmem:[#allocation2 + $0x670] sm:$0xf] %v2312_v1  ;;  %v1005_v31 = vpop.permute.xlu1 %1004  ;;  %vm17882_vm7 = vmmov %vm17879_vm5  ;;  %v17883_v63 = vld [vmem:[#allocation49_spill] sm:$0xff]  ;;  %v17885_v22 = vld [vmem:[#allocation36_spill] sm:$0xff] }
 0x281   : > { %v1145_v48 = vsel %vm17869_vm12, %v17866_v50, %v1144_v59  ;;  %1173 = vst [vmem:[#allocation2 + $0x2d4] sm:$0xf] %v1146_v47  ;;  %v2285_v56 = vpop.permute.xlu0 %2284  ;;  %4998 = vmatpush2.bf16.msra.mxu0 %v10131_v14  ;;  %5059 = vmatpush2.bf16.msra.mxu1 %v17870_v55  ;;  %v1021_v49 = vrot.slane %v1005_v31, 4  ;;  %v17884_v5 = vrot.slane %v17883_v63, 4  ;;  %v17886_v28 = vrot.slane %v17885_v22, 4  ;;  %vm17887_vm9 = vmmov %vm17876_vm3 }
 0x282   : > { %v2297_v35 = vrot.slane %v2285_v56, 4  ;;  %v10124_v17 = vcombine.low %v1138_v54, %v1145_v48  ;;  %v10125_v7 = vcombine.high %v1138_v54, %v1145_v48  ;;  %vm17888_vm12 = vmmov %vm17876_vm3 }
 0x283   : > { %v1038_v2 = vsel %vm389_vm0, %v17872_v57, %v1021_v49  ;;  %v1040_v58 = vsel %vm1027_vm15, %v1005_v31, %v1021_v49 }
 0x284   : > { %v2317_v29 = vsel %vm389_vm0, %v17874_v62, %v2297_v35  ;;  %v2319_v53 = vsel %vm17875_vm11, %v2285_v56, %v2297_v35  ;;  %4999 = vmatprep.subr.bf16.mxu0 %v10125_v7  ;;  %v1039_v25 = vsel %vm1027_vm15, %v17871_v10, %v1038_v2  ;;  %1067 = vst [vmem:[#allocation2 + $0x280] sm:$0xf] %v1040_v58  ;;  %v17889_v56 = vld [vmem:[#allocation16_spill] sm:$0xff]  ;;  %vm17891_vm11 = vmmov %vm17879_vm5 }
 0x285   : > { %v2318_v0 = vsel %vm17876_vm3, %v17873_v27, %v2317_v29  ;;  %2343 = vst [vmem:[#allocation2 + $0x68c] sm:$0xf] %v2319_v53  ;;  %v2179_v32 = vpop.permute.xlu1 %2178  ;;  %v1013_v44 = vpop.permute.xlu0 %1012  ;;  %5000 = vmatpush2.bf16.msra.mxu0 %v10124_v17  ;;  %v17890_v55 = vrot.slane %v17889_v56, 4  ;;  %v17892_v17 = vld [vmem:[#allocation48_spill] sm:$0xff]  ;;  %vm17894_vm3 = vmmov %vm17879_vm5 }
 0x286   : > { %v2191_v52 = vrot.slane %v2179_v32, 4  ;;  %v1025_v15 = vrot.slane %v1013_v44, 4  ;;  %v10243_v4 = vcombine.low %v2311_v45, %v2318_v0  ;;  %v10244_v51 = vcombine.high %v2311_v45, %v2318_v0 }
 0x287   : > { %v17893_v7 = vrot.slane %v17892_v17, 4 }
 0x288   : > { %v2211_v33 = vsel %vm389_vm0, %v17878_v38, %v2191_v52  ;;  %v2213_v43 = vsel %vm17879_vm5, %v2179_v32, %v2191_v52  ;;  %v1045_v36 = vsel %vm389_vm0, %v17881_v3, %v1025_v15  ;;  %v1047_v6 = vsel %vm1027_vm15, %v1013_v44, %v1025_v15  ;;  %5060 = vmatprep.subr.bf16.mxu1 %v10244_v51  ;;  %v17895_v32 = vld [vmem:[#allocation50_spill] sm:$0xff]  ;;  %vm17899_vm5 = vmmov %vm17894_vm3 }
 0x289   : > { %v2212_v41 = vsel %vm17882_vm7, %v17877_v26, %v2211_v33  ;;  %2237 = vst [vmem:[#allocation2 + $0x638] sm:$0xf] %v2213_v43  ;;  %v1046_v39 = vsel %vm1027_vm15, %v17880_v23, %v1045_v36  ;;  %1071 = vst [vmem:[#allocation2 + $0x29c] sm:$0xf] %v1047_v6  ;;  %v907_v13 = vpop.permute.xlu1 %906  ;;  %v2269_v40 = vpop.permute.xlu0 %2268  ;;  %5061 = vmatpush2.bf16.msra.mxu1 %v10243_v4  ;;  %v17896_v44 = vrot.slane %v17895_v32, 4  ;;  %v17897_v4 = vld [vmem:[#allocation19_spill] sm:$0xff] }
 0x28a   : > { %v919_v42 = vrot.slane %v907_v13, 4  ;;  %v2289_v54 = vrot.slane %v2269_v40, 4  ;;  %v10117_v60 = vcombine.low %v1039_v25, %v1046_v39  ;;  %v10118_v34 = vcombine.high %v1039_v25, %v1046_v39 }
 0x28b   : > { %v17898_v51 = vrot.slane %v17897_v4, 4 }
 0x28c   : > { %v939_v37 = vsel %vm389_vm0, %v17884_v5, %v919_v42  ;;  %v941_v14 = vsel %vm921_vm13, %v907_v13, %v919_v42  ;;  %v2303_v24 = vsel %vm389_vm0, %v17886_v28, %v2289_v54  ;;  %v2305_v46 = vsel %vm17887_vm9, %v2269_v40, %v2289_v54  ;;  %5001 = vmatprep.subr.bf16.mxu0 %v10118_v34  ;;  %v14426_v13 = vpop.f32.mrf.mxu0 }
 0x28d   : > { %v940_v1 = vsel %vm921_vm13, %v17883_v63, %v939_v37  ;;  %965 = vst [vmem:[#allocation2 + $0x248] sm:$0xf] %v941_v14  ;;  %v2304_v50 = vsel %vm17888_vm12, %v17885_v22, %v2303_v24  ;;  %2335 = vst [vmem:[#allocation2 + $0x654] sm:$0xf] %v2305_v46  ;;  %5002 = vmatpush2.bf16.msra.mxu0 %v10117_v60  ;;  %v17901_v40 = vrot.slane %v13839_v19, 4  ;;  %v17902_v60 = vld [vmem:[#allocation20_spill] sm:$0xff] }
 0x28e   : > { %v2163_v20 = vpop.permute.xlu1 %2162  ;;  %v997_v59 = vpop.permute.xlu0 %996  ;;  %v10236_v48 = vcombine.low %v2212_v41, %v2304_v50  ;;  %v10237_v31 = vcombine.high %v2212_v41, %v2304_v50  ;;  %v17903_v34 = vrot.slane %v17902_v60, 4 }
 0x28f   : > { %v2183_v47 = vrot.slane %v2163_v20, 4  ;;  %v1017_v45 = vrot.slane %v997_v59, 4 }
 0x290   : > { %5062 = vmatprep.subr.bf16.mxu1 %v10237_v31 }
 0x291   : > { %v2197_v49 = vsel %vm389_vm0, %v17890_v55, %v2183_v47  ;;  %v2199_v35 = vsel %vm17891_vm11, %v2163_v20, %v2183_v47  ;;  %v1031_v10 = vsel %vm389_vm0, %v17893_v7, %v1017_v45  ;;  %v1033_v57 = vsel %vm1027_vm15, %v997_v59, %v1017_v45  ;;  %5063 = vmatpush2.bf16.msra.mxu1 %v10236_v48  ;;  %v14440_v20 = vpop.f32.mrf.mxu0  ;;  %v17904_v59 = vld [vmem:[#allocation35_spill] sm:$0xff] }
 0x292   : > { %v2198_v2 = vsel %vm17894_vm3, %v17889_v56, %v2197_v49  ;;  %2229 = vst [vmem:[#allocation2 + $0x600] sm:$0xf] %v2199_v35  ;;  %v1032_v58 = vsel %vm1027_vm15, %v17892_v17, %v1031_v10  ;;  %1063 = vst [vmem:[#allocation2 + $0x264] sm:$0xf] %v1033_v57  ;;  %v891_v27 = vpop.permute.xlu1 %890  ;;  %v2171_v62 = vpop.permute.xlu0 %2170  ;;  %v17905_v47 = vrot.slane %v17904_v59, 4  ;;  %v17906_v48 = vrot.slane %v13868_v21, 4 }
 0x293   : > { %v911_v29 = vrot.slane %v891_v27, 4  ;;  %v2187_v53 = vrot.slane %v2171_v62, 4  ;;  %v10110_v25 = vcombine.low %v940_v1, %v1032_v58  ;;  %v10111_v0 = vcombine.high %v940_v1, %v1032_v58  ;;  %vm17900_vm15 = vmmov %vm17894_vm3  ;;  %v14454_v58 = vpop.f32.mrf.mxu0 }
 0x294   : > { %vm6624_vm3 = vcmask 744448  }
 0x295   : > { %v925_v52 = vsel %vm389_vm0, %v17896_v44, %v911_v29  ;;  %v927_v15 = vsel %vm921_vm13, %v891_v27, %v911_v29  ;;  %v2204_v26 = vsel %vm389_vm0, %v17898_v51, %v2187_v53  ;;  %v2206_v38 = vsel %vm17899_vm5, %v2171_v62, %v2187_v53  ;;  %5003 = vmatprep.subr.bf16.mxu0 %v10111_v0  ;;  %v17909_v53 = vld [vmem:[#allocation23_spill] sm:$0xff] }
 0x296   : > { %v926_v33 = vsel %vm921_vm13, %v17895_v32, %v925_v52  ;;  %957 = vst [vmem:[#allocation2 + $0x210] sm:$0xf] %v927_v15  ;;  %v2205_v43 = vsel %vm17900_vm15, %v17897_v4, %v2204_v26  ;;  %2233 = vst [vmem:[#allocation2 + $0x61c] sm:$0xf] %v2206_v38  ;;  %v2065_v23 = vpop.permute.xlu1 %2064  ;;  %v899_v3 = vpop.permute.xlu0 %898  ;;  %5004 = vmatpush2.bf16.msra.mxu0 %v10110_v25  ;;  %v17907_v27 = vrot.slane %v13896_v18, 4  ;;  %v17910_v25 = vrot.slane %v17909_v53, 4 }
 0x297   : > { %v2081_v36 = vrot.slane %v2065_v23, 4  ;;  %v915_v6 = vrot.slane %v899_v3, 4  ;;  %v10229_v41 = vcombine.low %v2198_v2, %v2205_v43  ;;  %v10230_v39 = vcombine.high %v2198_v2, %v2205_v43  ;;  %v14470_v43 = vpop.f32.mrf.mxu1 }
 0x298   : > { %vm7876_vm15 = vcmask 392192  }
 0x299   : > { %v2098_v42 = vsel %vm389_vm0, %v17901_v40, %v2081_v36  ;;  %v2100_v54 = vsel %vm2087_vm10, %v2065_v23, %v2081_v36  ;;  %v932_v63 = vsel %vm389_vm0, %v17903_v34, %v915_v6  ;;  %v934_v5 = vsel %vm921_vm13, %v899_v3, %v915_v6  ;;  %5064 = vmatprep.subr.bf16.mxu1 %v10230_v39  ;;  %v17912_v23 = vld [vmem:[#allocation28_spill] sm:$0xff]  ;;  %v17914_v6 = vld [vmem:[#allocation22_spill] sm:$0xff] }
 0x29a   : > { %v2099_v37 = vsel %vm2087_vm10, %v13839_v19, %v2098_v42  ;;  %2127 = vst [vmem:[#allocation2 + $0x5c8] sm:$0xf] %v2100_v54  ;;  %v933_v14 = vsel %vm921_vm13, %v17902_v60, %v932_v63  ;;  %961 = vst [vmem:[#allocation2 + $0x22c] sm:$0xf] %v934_v5  ;;  %v793_v22 = vpop.permute.xlu1 %792  ;;  %v2073_v28 = vpop.permute.xlu0 %2072  ;;  %5065 = vmatpush2.bf16.msra.mxu1 %v10229_v41  ;;  %vm17908_vm13 = vcmask 252928   ;;  %v17913_v3 = vrot.slane %v17912_v23, 4 }
 0x29b   : > { %v809_v24 = vrot.slane %v793_v22, 4  ;;  %v2085_v46 = vrot.slane %v2073_v28, 4  ;;  %v10103_v1 = vcombine.low %v926_v33, %v933_v14  ;;  %v10104_v50 = vcombine.high %v926_v33, %v933_v14  ;;  %vm17911_vm7 = vmmov %vm17908_vm13  ;;  %v14468_v33 = vpop.f32.mrf.mxu0 }
 0x29c   : > { %v17915_v41 = vrot.slane %v17914_v6, 4  ;;  %vm17917_vm9 = vmmov %vm17911_vm7 }
 0x29d   : > { %v826_v45 = vsel %vm389_vm0, %v17905_v47, %v809_v24  ;;  %v828_v19 = vsel %vm815_vm1, %v793_v22, %v809_v24  ;;  %v2105_v31 = vsel %vm389_vm0, %v17906_v48, %v2085_v46  ;;  %v2107_v56 = vsel %vm2087_vm10, %v2073_v28, %v2085_v46  ;;  %5005 = vmatprep.subr.bf16.mxu0 %v10104_v50  ;;  %v14484_v22 = vpop.f32.mrf.mxu0  ;;  %v14486_v28 = vpop.f32.mrf.mxu1  ;;  %v14499_v48 = vld [vmem:[%s17230_s1] ss:$20 sps:$4 sm:$0xff]   ;;  %vm17920_vm12 = vmmov %vm17911_vm7 }
 0x29e   : > { %v827_v55 = vsel %vm815_vm1, %v17904_v59, %v826_v45  ;;  %855 = vst [vmem:[#allocation2 + $0x1d8] sm:$0xf] %v828_v19  ;;  %v2106_v49 = vsel %vm2087_vm10, %v13868_v21, %v2105_v31  ;;  %2131 = vst [vmem:[#allocation2 + $0x5e4] sm:$0xf] %v2107_v56  ;;  %v1967_v35 = vpop.permute.xlu1 %1966  ;;  %v801_v17 = vpop.permute.xlu0 %800  ;;  %5006 = vmatpush2.bf16.msra.mxu0 %v10103_v1  ;;  %v17916_v1 = vrot.slane %v13977_v8, 4  ;;  %v17918_v47 = vrot.slane %v13951_v30, 4 }
 0x29f   : > { %v1979_v7 = vrot.slane %v1967_v35, 4  ;;  %v813_v10 = vrot.slane %v801_v17, 4  ;;  %v10222_v57 = vcombine.low %v2099_v37, %v2106_v49  ;;  %v10223_v2 = vcombine.high %v2099_v37, %v2106_v49  ;;  %vm17921_vm11 = vmmov %vm17911_vm7 }
 0x2a1   : > { %v1999_v62 = vsel %vm389_vm0, %v17907_v27, %v1979_v7  ;;  %v2001_v29 = vsel %vm17908_vm13, %v1967_v35, %v1979_v7  ;;  %v833_v21 = vsel %vm389_vm0, %v17910_v25, %v813_v10  ;;  %v835_v0 = vsel %vm815_vm1, %v801_v17, %v813_v10  ;;  %5066 = vmatprep.subr.bf16.mxu1 %v10223_v2  ;;  %v14508_v2 = vpop.f32.mrf.mxu0  ;;  %v17922_v27 = vld [vmem:[#allocation18_spill] sm:$0xff]  ;;  %v17924_v25 = vld [vmem:[#allocation27_spill] sm:$0xff] }
 0x2a2   : > { %v2000_v32 = vsel %vm17911_vm7, %v13896_v18, %v1999_v62  ;;  %2025 = vst [vmem:[#allocation2 + $0x590] sm:$0xf] %v2001_v29  ;;  %v834_v44 = vsel %vm815_vm1, %v17909_v53, %v833_v21  ;;  %859 = vst [vmem:[#allocation2 + $0x1f4] sm:$0xf] %v835_v0  ;;  %v2730_v52 = vpop.permute.xlu1 %2729  ;;  %v2057_v15 = vpop.permute.xlu0 %2056  ;;  %5067 = vmatpush2.bf16.msra.mxu1 %v10222_v57  ;;  %v17923_v62 = vrot.slane %v17922_v27, 4  ;;  %v17925_v21 = vrot.slane %v17924_v25, 4 }
 0x2a3   : > { %v2742_v4 = vrot.slane %v2730_v52, 4  ;;  %v2077_v51 = vrot.slane %v2057_v15, 4  ;;  %v10096_v26 = vcombine.low %v827_v55, %v834_v44  ;;  %v10097_v38 = vcombine.high %v827_v55, %v834_v44 }
 0x2a4   : > { %vm7274_vm13 = vcmask 809984  }
 0x2a5   : > { %v2761_v18 = vsel %vm389_vm0, %v17913_v3, %v2742_v4  ;;  %v2763_v36 = vsel %vm709_vm2, %v2730_v52, %v2742_v4  ;;  %v2091_v39 = vsel %vm389_vm0, %v17915_v41, %v2077_v51  ;;  %v2093_v40 = vsel %vm2087_vm10, %v2057_v15, %v2077_v51  ;;  %5007 = vmatprep.subr.bf16.mxu0 %v10097_v38  ;;  %v11405_v51 = vld [vmem:[#allocation2 + $0x360] ss:$28 sps:$4 sm:$0xff]  }
 0x2a6   : > { %v2762_v42 = vsel %vm709_vm2, %v17912_v23, %v2761_v18  ;;  %2787 = vst [vmem:[#allocation2 + $0x830] sm:$0xf] %v2763_v36  ;;  %v2092_v54 = vsel %vm2087_vm10, %v17914_v6, %v2091_v39  ;;  %2123 = vst [vmem:[#allocation2 + $0x5ac] sm:$0xf] %v2093_v40  ;;  %v1959_v60 = vpop.permute.xlu1 %1958  ;;  %v1951_v34 = vpop.permute.xlu0 %1950  ;;  %5008 = vmatpush2.bf16.msra.mxu0 %v10096_v26  ;;  %v17926_v6 = vld [vmem:[#allocation31_spill] sm:$0xff] }
 0x2a7   : > { %v1975_v63 = vrot.slane %v1959_v60, 4  ;;  %v1971_v5 = vrot.slane %v1951_v34, 4  ;;  %v10215_v37 = vcombine.low %v2000_v32, %v2092_v54  ;;  %v10216_v14 = vcombine.high %v2000_v32, %v2092_v54  ;;  %vm17919_vm10 = vmmov %vm17911_vm7  ;;  %v14530_v18 = vpop.f32.mrf.mxu0 }
 0x2a8   : > { %v10300_v24 = vcombine.high %v2762_v42, %v2762_v42  ;;  %v10299_v46 = vcombine.low %v2762_v42, %v2762_v42  ;;  %v17927_v41 = vrot.slane %v17926_v6, 4  ;;  %v17928_v42 = vld [vmem:[#allocation21_spill] sm:$0xff]  ;;  %vm7176_vm7 = vcmask 916480  }
 0x2a9   : > { %v1992_v50 = vsel %vm389_vm0, %v17916_v1, %v1975_v63  ;;  %v1994_v59 = vsel %vm17917_vm9, %v1959_v60, %v1975_v63  ;;  %v1985_v45 = vsel %vm389_vm0, %v17918_v47, %v1971_v5  ;;  %v1987_v19 = vsel %vm17919_vm10, %v1951_v34, %v1971_v5  ;;  %5010 = vmatmul.mubr.bf16.vlgmr.msra.gmra.mxu0 %v14499_v48  ;;  %v14545_v63 = vld [vmem:[%s17230_s1 + $0x28] ss:$20 sps:$4 sm:$0xff]  }
 0x2aa   : > { %v1993_v31 = vsel %vm17920_vm12, %v13977_v8, %v1992_v50  ;;  %2021 = vst [vmem:[#allocation2 + $0x574] sm:$0xf] %v1994_v59  ;;  %v1986_v56 = vsel %vm17921_vm11, %v13951_v30, %v1985_v45  ;;  %2017 = vst [vmem:[#allocation2 + $0x558] sm:$0xf] %v1987_v19  ;;  %v2722_v55 = vpop.permute.xlu1 %2721  ;;  %v2714_v49 = vpop.permute.xlu0 %2713  ;;  %5068 = vmatprep.subr.bf16.mxu1 %v10216_v14  ;;  %10310 = vmatprep.subr.msk.bf16.mxu0 %vm389_vm0, %v10300_v24  ;;  %v4591_v35 = vsel %vm389_vm0, %v10299_v46, 0  ;;  %vm7225_vm9 = vcmask 818176  }
 0x2ab   : > { %v2738_v17 = vrot.slane %v2722_v55, 4  ;;  %v2734_v7 = vrot.slane %v2714_v49, 4  ;;  %5069 = vmatpush2.bf16.msra.mxu1 %v10215_v37  ;;  %5108 = vmatpush1.bf16.msra.mxu0 %v4591_v35  ;;  %v10208_v10 = vcombine.low %v1986_v56, %v1993_v31  ;;  %v10209_v57 = vcombine.high %v1986_v56, %v1993_v31  ;;  %v14510_v8 = vpop.f32.mrf.mxu1  ;;  %v14515_v30 = vld [vmem:[%s17230_s1 + $0x2c] ss:$20 sps:$4 sm:$0xff]   ;;  %v14555_v1 = vld [vmem:[%s17230_s1 + $0x8] ss:$20 sps:$4 sm:$0xff]   ;;  %v14558_v31 = vpop.f32.mrf.mxu0 }
 0x2ac   : > { %5019 = vmatprep.mubr.bf16.mxu0 %v14515_v30  ;;  %v17929_v54 = vrot.slane %v17928_v42, 4  ;;  %v11406_v5 = vld [vmem:[#allocation2 + $0x1a0] ss:$28 sps:$4 sm:$0xff]   ;;  %v11407_v50 = vld [vmem:[#allocation2 + $0x328] ss:$28 sps:$4 sm:$0xff]   ;;  %vm7127_vm10 = vcmask 924672  }
 0x2ad   : > { %v2754_v29 = vsel %vm389_vm0, %v17923_v62, %v2738_v17  ;;  %v2756_v53 = vsel %vm709_vm2, %v2722_v55, %v2738_v17  ;;  %v2747_v0 = vsel %vm389_vm0, %v17925_v21, %v2734_v7  ;;  %v2749_v32 = vsel %vm709_vm2, %v2714_v49, %v2734_v7  ;;  %5070 = vmatprep.subr.bf16.mxu1 %v10209_v57  ;;  %v14532_v36 = vpop.f32.mrf.mxu1  ;;  %v14565_v55 = vld [vmem:[%s17230_s1 + $0x54] ss:$20 sps:$4 sm:$0xff]   ;;  %v17930_v49 = vld [vmem:[#allocation25_spill] sm:$0xff] }
 0x2ae   : > { %v2755_v44 = vsel %vm709_vm2, %v17922_v27, %v2754_v29  ;;  %2783 = vst [vmem:[#allocation2 + $0x814] sm:$0xf] %v2756_v53  ;;  %v2748_v52 = vsel %vm709_vm2, %v17924_v25, %v2747_v0  ;;  %2779 = vst [vmem:[#allocation2 + $0x7f8] sm:$0xf] %v2749_v32  ;;  %v2625_v15 = vpop.permute.xlu1 %2624  ;;  %v2617_v4 = vpop.permute.xlu0 %2616  ;;  %v17931_v35 = vrot.slane %v17930_v49, 4  ;;  %vm11968_vm2 = vmmov 0  }
 0x2af   : > { %v2637_v26 = vrot.slane %v2625_v15, 4  ;;  %v2633_v38 = vrot.slane %v2617_v4, 4  ;;  %5071 = vmatpush2.bf16.msra.mxu1 %v10208_v10  ;;  %v10292_v23 = vcombine.low %v2748_v52, %v2755_v44  ;;  %v10293_v3 = vcombine.high %v2748_v52, %v2755_v44  ;;  %v14560_v56 = vpop.f32.mrf.mxu1  ;;  %v17932_v10 = vld [vmem:[#allocation34_spill] sm:$0xff]  ;;  %v11409_v32 = vld [vmem:[#allocation2 + $0x2f0] ss:$28 sps:$4 sm:$0xff]  }
 0x2b0   : > { %10870 = vmatprep.subr.bf16.mxu1 %v11405_v51  ;;  %v17933_v57 = vrot.slane %v17932_v10, 4  ;;  %v11408_v29 = vld [vmem:[#allocation2 + $0x168] ss:$28 sps:$4 sm:$0xff]   ;;  %vm7078_vm12 = vcmask 932864   ;;  %vm7323_vm11 = vcmask 801792  }
 0x2b1   : > { %v2656_v39 = vsel %vm389_vm0, %v17927_v41, %v2637_v26  ;;  %v2658_v40 = vsel %vm603_vm4, %v2625_v15, %v2637_v26  ;;  %v2649_v60 = vsel %vm389_vm0, %v17929_v54, %v2633_v38  ;;  %v2651_v34 = vsel %vm603_vm4, %v2617_v4, %v2633_v38  ;;  %5020 = vmatmul.mubr.bf16.gmra.mxu0 %v14545_v63  ;;  %v14583_v44 = vld [vmem:[%s17230_s1 + $0x34] ss:$20 sps:$4 sm:$0xff]   ;;  %v14586_v26 = vpop.f32.mrf.mxu0  ;;  %v14588_v38 = vpop.f32.mrf.mxu1  ;;  %v14601_v54 = vld [vmem:[%s17230_s1 + $0x50] ss:$20 sps:$4 sm:$0xff]  }
 0x2b2   : > { %v2657_v37 = vsel %vm603_vm4, %v17926_v6, %v2656_v39  ;;  %2682 = vst [vmem:[#allocation2 + $0x7dc] sm:$0xf] %v2658_v40  ;;  %v2650_v14 = vsel %vm603_vm4, %v17928_v42, %v2649_v60  ;;  %2678 = vst [vmem:[#allocation2 + $0x7c0] sm:$0xf] %v2651_v34  ;;  %v2609_v24 = vpop.permute.xlu1 %2608  ;;  %v2520_v46 = vpop.permute.xlu0 %2519  ;;  %5073 = vmatmul.mubr.bf16.vlgmr.msra.gmra.mxu1 %v14555_v1  ;;  %5109 = vmatprep.subr.bf16.mxu0 %v10293_v3  ;;  %v17935_v41 = vld [vmem:[#allocation26_spill] sm:$0xff] }
 0x2b3   : > { %v2629_v59 = vrot.slane %v2609_v24, 4  ;;  %v2532_v47 = vrot.slane %v2520_v46, 4  ;;  %5110 = vmatpush1.bf16.msra.mxu0 %v10292_v23  ;;  %10871 = vmatpush3.bf16.msra.mxu1 %v11406_v5  ;;  %v10285_v45 = vcombine.low %v2650_v14, %v2657_v37  ;;  %v10286_v19 = vcombine.high %v2650_v14, %v2657_v37  ;;  %v17934_v23 = vld [vmem:[#allocation29_spill] sm:$0xff]  ;;  %v11410_v60 = vld [vmem:[#allocation2 + $0x130] ss:$28 sps:$4 sm:$0xff]  }
 0x2b4   : > { %10872 = vmatprep.subr.bf16.mxu1 %v11407_v50  ;;  %5029 = vmatprep.mubr.bf16.mxu0 %v14565_v55  ;;  %v17936_v39 = vrot.slane %v17935_v41, 4  ;;  %v14611_v14 = vld [vmem:[%s17230_s1 + $0x30] ss:$20 sps:$4 sm:$0xff]  }
 0x2b5   : > { %v2642_v17 = vsel %vm389_vm0, %v17931_v35, %v2629_v59  ;;  %v2644_v7 = vsel %vm603_vm4, %v2609_v24, %v2629_v59  ;;  %v2551_v27 = vsel %vm389_vm0, %v17933_v57, %v2532_v47  ;;  %v2553_v62 = vsel %vm497_vm6, %v2520_v46, %v2532_v47  ;;  %5111 = vmatprep.subr.bf16.mxu0 %v10286_v19  ;;  %v11411_v24 = vld [vmem:[#allocation2 + $0x2b8] ss:$28 sps:$4 sm:$0xff]   ;;  %v14616_v19 = vpop.f32.mrf.mxu1 }
 0x2b6   : > { %v2643_v53 = vsel %vm603_vm4, %v17930_v49, %v2642_v17  ;;  %2674 = vst [vmem:[#allocation2 + $0x7a4] sm:$0xf] %v2644_v7  ;;  %v2552_v25 = vsel %vm497_vm6, %v17932_v10, %v2551_v27  ;;  %2577 = vst [vmem:[#allocation2 + $0x788] sm:$0xf] %v2553_v62  ;;  %v2512_v21 = vpop.permute.xlu1 %2511  ;;  %v2504_v0 = vpop.permute.xlu0 %2503  ;;  %5082 = vmatprep.mubr.bf16.mxu1 %v14583_v44  ;;  %v14621_v49 = vld [vmem:[%s17230_s1 + $0x5c] ss:$20 sps:$4 sm:$0xff]  }
 0x2b7   : > { %v2528_v52 = vrot.slane %v2512_v21, 4  ;;  %v2524_v15 = vrot.slane %v2504_v0, 4  ;;  %5112 = vmatpush1.bf16.msra.mxu0 %v10285_v45  ;;  %10873 = vmatpush3.bf16.msra.mxu1 %v11408_v29  ;;  %v10278_v4 = vcombine.low %v2552_v25, %v2643_v53  ;;  %v10279_v51 = vcombine.high %v2552_v25, %v2643_v53  ;;  %v14614_v45 = vpop.f32.mrf.mxu0  ;;  %v11412_v27 = vld [vmem:[#allocation2 + $0xf8] ss:$28 sps:$4 sm:$0xff]   ;;  %v11413_v53 = vld [vmem:[#allocation2 + $0x280] ss:$28 sps:$4 sm:$0xff]  }
 0x2b8   : > { %10874 = vmatprep.subr.bf16.mxu1 %v11409_v32  ;;  %v17937_v7 = vrot.slane %v14022_v12, 4  ;;  %v11414_v32 = vld [vmem:[#allocation2 + $0xc0] ss:$28 sps:$4 sm:$0xff]   ;;  %vm6634_vm4 = vcmask 1044480  }
 0x2b9   : > { %v2544_v3 = vsel %vm389_vm0, %v2527_v11, %v2528_v52  ;;  %v2546_v6 = vsel %vm497_vm6, %v2512_v21, %v2528_v52  ;;  %v2537_v40 = vsel %vm389_vm0, %v17936_v39, %v2524_v15  ;;  %v2539_v42 = vsel %vm497_vm6, %v2504_v0, %v2524_v15  ;;  %5030 = vmatmul.mubr.bf16.gmra.mxu0 %v14601_v54  ;;  %v14637_v21 = vpop.f32.mrf.mxu0  ;;  %v14639_v0 = vpop.f32.mrf.mxu1  ;;  %v11416_v52 = vld [vmem:[#allocation2 + $0x6e0] ss:$28 sps:$4 sm:$0xff]   ;;  %v11419_v39 = vld [vmem:[#allocation2 + $0x210] ss:$28 sps:$4 sm:$0xff]  }
 0x2ba   : > { %v2545_v34 = vsel %vm497_vm6, %v17934_v23, %v2544_v3  ;;  %2573 = vst [vmem:[#allocation2 + $0x76c] sm:$0xf] %v2546_v6  ;;  %v2538_v11 = vsel %vm497_vm6, %v17935_v41, %v2537_v40  ;;  %2569 = vst [vmem:[#allocation2 + $0x750] sm:$0xf] %v2539_v42  ;;  %v2415_v5 = vpop.permute.xlu1 %2414  ;;  %v2407_v37 = vpop.permute.xlu0 %2406  ;;  %5083 = vmatmul.mubr.bf16.gmra.mxu1 %v14611_v14  ;;  %5113 = vmatprep.subr.bf16.mxu0 %v10279_v51  ;;  %v11418_v51 = vld [vmem:[#allocation2 + $0x520] ss:$28 sps:$4 sm:$0xff]  }
 0x2bb   : > { %v2427_v46 = vrot.slane %v2415_v5, 4  ;;  %v2423_v50 = vrot.slane %v2407_v37, 4  ;;  %5114 = vmatpush1.bf16.msra.mxu0 %v10278_v4  ;;  %10875 = vmatpush3.bf16.msra.mxu1 %v11410_v60  ;;  %v10271_v59 = vcombine.low %v2538_v11, %v2545_v34  ;;  %v10272_v47 = vcombine.high %v2538_v11, %v2545_v34  ;;  %v14647_v15 = vpop.f32.mrf.mxu0  ;;  %v14649_v4 = vpop.f32.mrf.mxu1  ;;  %v11420_v23 = vld [vmem:[#allocation2 + $0x6a8] ss:$28 sps:$4 sm:$0xff]   ;;  %v11421_v60 = vld [vmem:[#allocation2 + $0x50] ss:$28 sps:$4 sm:$0xff]  }
 0x2bc   : > { %10876 = vmatprep.subr.bf16.mxu1 %v11411_v24  ;;  %5092 = vmatprep.mubr.bf16.mxu1 %v14621_v49  ;;  %v11417_v3 = vld [vmem:[#allocation2 + $0x88] ss:$28 sps:$4 sm:$0xff]   ;;  %v11423_v11 = vld [vmem:[#allocation2 + $0x1d8] ss:$28 sps:$4 sm:$0xff]  }
 0x2bd   : > { %v2446_v35 = vsel %vm389_vm0, %v2426_v16, %v2427_v46  ;;  %v2448_v17 = vsel %vm391_vm8, %v2415_v5, %v2427_v46  ;;  %v2439_v10 = vsel %vm389_vm0, %v17937_v7, %v2423_v50  ;;  %v2441_v57 = vsel %vm391_vm8, %v2407_v37, %v2423_v50  ;;  %5115 = vmatprep.subr.bf16.mxu0 %v10272_v47  ;;  %v11880_v6 = vld [vmem:[%s17230_s1 + $0x4] ss:$20 sps:$4 sm:$0xff]   ;;  %v14661_v40 = vpop.f32.mrf.mxu0  ;;  %v14663_v42 = vpop.f32.mrf.mxu1  ;;  %v11424_v5 = vld [vmem:[#allocation2 + $0x670] ss:$28 sps:$4 sm:$0xff]  }
 0x2be   : > { %v2447_v62 = vsel %vm391_vm8, %v14048_v61, %v2446_v35  ;;  %2472 = vst [vmem:[#allocation2 + $0x734] sm:$0xf] %v2448_v17  ;;  %v2440_v29 = vsel %vm391_vm8, %v14022_v12, %v2439_v10  ;;  %2468 = vst [vmem:[#allocation2 + $0x718] sm:$0xf] %v2441_v57  ;;  %5135 = vmatprep.mubr.bf16.mxu0 %v17642_v9  ;;  %v14644_v61 = vld [vmem:[%s17230_s1 + $0x58] ss:$20 sps:$4 sm:$0xff]  }
 0x2bf   : > { %5116 = vmatpush1.bf16.msra.mxu0 %v10271_v59  ;;  %10877 = vmatpush3.bf16.msra.mxu1 %v11412_v27  ;;  %v10264_v16 = vcombine.low %v2440_v29, %v2447_v62  ;;  %v10265_v25 = vcombine.high %v2440_v29, %v2447_v62  ;;  %v11415_v12 = vld [vmem:[#allocation2 + $0x248] ss:$28 sps:$4 sm:$0xff]   ;;  %v11425_v37 = vld [vmem:[#allocation2 + $0x18] ss:$28 sps:$4 sm:$0xff]   ;;  %v14666_v24 = vpop.f32.mrf.mxu0  ;;  %v14668_v46 = vpop.f32.mrf.mxu1  ;;  %v11426_v50 = vld [vmem:[#allocation2 + $0x4b0] ss:$28 sps:$4 sm:$0xff]  }
 0x2c0   : > { %10878 = vmatprep.subr.bf16.mxu1 %v11413_v53  ;;  %v14657_v41 = vld [vmem:[%s17230_s1 + $0x10] ss:$20 sps:$4 sm:$0xff]   ;;  %v14673_v59 = vld [vmem:[%s17230_s1 + $0x38] ss:$20 sps:$4 sm:$0xff]   ;;  %v11967_v10 = vmov 0.0  }
 0x2c1   : > { %5117 = vmatprep.subr.bf16.mxu0 %v10265_v25  ;;  %v11422_v34 = vld [vmem:[#allocation2 + $0x4e8] ss:$28 sps:$4 sm:$0xff]   ;;  %v11427_v47 = vld [vmem:[#allocation2 + $0x638] ss:$28 sps:$4 sm:$0xff]   ;;  %v11429_v35 = vld [vmem:[#allocation2 + $0x830] ss:$0 sps:$4 sm:$0xff]   ;;  %v14677_v17 = vpop.f32.mrf.mxu0  ;;  %v14679_v7 = vpop.f32.mrf.mxu1 }
 0x2c2   : > { %5093 = vmatmul.mubr.bf16.gmra.mxu1 %v14644_v61  ;;  %v11428_v57 = vld [vmem:[#allocation2 + $0x478] ss:$28 sps:$4 sm:$0xff]   ;;  %v4597_v62 = vsel %vm389_vm0, %v11429_v35, 0  ;;  %v11430_v29 = vld [vmem:[#allocation2 + $0x600] ss:$28 sps:$4 sm:$0xff]  }
 0x2c3   : > { %5118 = vmatpush1.bf16.msra.mxu0 %v10264_v16  ;;  %10879 = vmatpush3.bf16.msra.mxu1 %v11414_v32  ;;  %v14687_v53 = vpop.f32.mrf.mxu0  ;;  %v11431_v16 = vld [vmem:[#allocation2 + $0x440] ss:$28 sps:$4 sm:$0xff]   ;;  %v11432_v25 = vld [vmem:[#allocation2 + $0x7f8] ss:$28 sps:$4 sm:$0xff]  }
 0x2c4   : > { %10880 = vmatprep.subr.bf16.mxu1 %v11415_v12  ;;  %10904 = vmatprep.subr.bf16.mxu0 %v11416_v52  ;;  %v11433_v12 = vld [vmem:[#allocation2 + $0x5c8] ss:$28 sps:$4 sm:$0xff]  }
 0x2c5   : > { %5198 = vmatprep.mubr.bf16.mxu1 %v11880_v6  ;;  %v14700_v52 = vpop.f32.mrf.mxu0  ;;  %v11436_v6 = vld [vmem:[#allocation2 + $0x590] ss:$28 sps:$4 sm:$0xff]  }
 0x2c6   : > { %10311 = vmatmul.mubr.msk.bf16.vlgmr.msra.gmra.mxu0 %vm4567_vm14, %v14657_v41 }
 0x2c7   : > { %10881 = vmatpush3.bf16.msra.mxu1 %v11417_v3  ;;  %10905 = vmatpush3.bf16.msra.mxu0 %v11418_v51  ;;  %v11434_v51 = vld [vmem:[#allocation2 + $0x408] ss:$28 sps:$4 sm:$0xff]  }
 0x2c8   : > { %10882 = vmatprep.subr.bf16.mxu1 %v11419_v39  ;;  %10906 = vmatprep.subr.bf16.mxu0 %v11420_v23  ;;  %v11884_v23 = vld [vmem:[%s17230_s1 + $0xc] ss:$20 sps:$4 sm:$0xff]   ;;  %v14709_v39 = vpop.f32.mrf.mxu0 }
 0x2c9   : > { %5145 = vmatprep.mubr.bf16.mxu0 %v17642_v9 }
 0x2cb   : > { %10883 = vmatpush3.bf16.msra.mxu1 %v11421_v60  ;;  %10907 = vmatpush3.bf16.msra.mxu0 %v11422_v34  ;;  %v11437_v60 = vld [vmem:[#allocation2 + $0x3d0] ss:$28 sps:$4 sm:$0xff]   ;;  %v11438_v34 = vld [vmem:[#allocation2 + $0x788] ss:$28 sps:$4 sm:$0xff]  }
 0x2cc   : > { %10884 = vmatprep.subr.bf16.mxu1 %v11423_v11  ;;  %10908 = vmatprep.subr.bf16.mxu0 %v11424_v5  ;;  %v11439_v5 = vld [vmem:[#allocation2 + $0x558] ss:$28 sps:$4 sm:$0xff]  }
 0x2ce   : > { %10312 = vmatmul.mubr.msk.bf16.gmra.mxu0 %vm4567_vm14, %v14673_v59 }
 0x2cf   : > { %10885 = vmatpush3.bf16.msra.mxu1 %v11425_v37  ;;  %10909 = vmatpush3.bf16.msra.mxu0 %v11426_v50  ;;  %v14713_v37 = vpop.f32.mrf.mxu0  ;;  %v11441_v50 = vld [vmem:[#allocation2 + $0x750] ss:$28 sps:$4 sm:$0xff]  }
 0x2d0   : > { %10910 = vmatprep.subr.bf16.mxu0 %v11427_v47  ;;  %10947 = vmatprep.subr.bf16.mxu1 %v11967_v10 }
 0x2d1   : > { %5155 = vmatprep.mubr.bf16.mxu0 %v17642_v9  ;;  %v14683_v27 = vpop.f32.mrf.mxu1  ;;  %v14717_v35 = vpop.f32.mrf.mxu0 }
 0x2d2   : > { %5199 = vmatmul.mubr.bf16.vlgmr.msra.gmra.mxu1 %v14499_v48  ;;  %v14696_v48 = vld [vmem:[%s17230_s1 + $0x60] ss:$20 sps:$4 sm:$0xff]  }
 0x2d3   : > { %10911 = vmatpush3.bf16.msra.mxu0 %v11428_v57  ;;  %10948 = vmatpush3.bf16.msra.mxu1 %v4597_v62  ;;  %v14691_v32 = vpop.f32.mrf.mxu1  ;;  %v14723_v62 = vpop.f32.mrf.mxu0 }
 0x2d4   : > { %10912 = vmatprep.subr.bf16.mxu0 %v11430_v29  ;;  %10949 = vmatprep.subr.bf16.mxu1 %v11967_v10  ;;  %17938 = vst [vmem:[#allocation30_spill] sm:$0xff] %v14723_v62 }
 0x2d5   : > { %5206 = vmatprep.mubr.bf16.mxu1 %v14515_v30  ;;  %v11435_v30 = vld [vmem:[#allocation2 + $0x7c0] ss:$28 sps:$4 sm:$0xff]   ;;  %v14706_v3 = vpop.f32.mrf.mxu1  ;;  %v14730_v29 = vpop.f32.mrf.mxu0 }
 0x2d6   : > { %10313 = vmatmul.mubr.msk.bf16.gmra.mxu0 %vm4567_vm14, %v14696_v48 }
 0x2d7   : > { %10913 = vmatpush3.bf16.msra.mxu0 %v11431_v16  ;;  %10950 = vmatpush3.bf16.msra.mxu1 %v11432_v25  ;;  %v4828_v11 = vpop.f32.mrf.mxu1 }
 0x2d8   : > { %10914 = vmatprep.subr.bf16.mxu0 %v11433_v12  ;;  %10951 = vmatprep.subr.bf16.mxu1 %v11967_v10 }
 0x2d9   : > { %5255 = vmatprep.mubr.bf16.mxu0 %v11884_v23  ;;  %v4832_v47 = vpop.f32.mrf.mxu1 }
 0x2da   : > { %5207 = vmatmul.mubr.bf16.gmra.mxu1 %v14545_v63  ;;  %v11440_v63 = vld [vmem:[#allocation2 + $0x398] ss:$28 sps:$4 sm:$0xff]  }
 0x2db   : > { %10915 = vmatpush3.bf16.msra.mxu0 %v11434_v51  ;;  %10952 = vmatpush3.bf16.msra.mxu1 %v11435_v30  ;;  %v4834_v57 = vpop.f32.mrf.mxu1 }
 0x2dc   : > { %10916 = vmatprep.subr.bf16.mxu0 %v11436_v6  ;;  %10953 = vmatprep.subr.bf16.mxu1 %v11967_v10 }
 0x2dd   : > { %5214 = vmatprep.mubr.bf16.mxu1 %v14565_v55  ;;  %v11442_v55 = vld [vmem:[#allocation2 + $0x718] ss:$28 sps:$4 sm:$0xff]  }
 0x2df   : > { %10917 = vmatpush3.bf16.msra.mxu0 %v11437_v60  ;;  %10954 = vmatpush3.bf16.msra.mxu1 %v11438_v34 }
 0x2e0   : > { %10918 = vmatprep.subr.bf16.mxu0 %v11439_v5  ;;  %10955 = vmatprep.subr.bf16.mxu1 %v11967_v10 }
 0x2e2   : > { %5215 = vmatmul.mubr.bf16.gmra.mxu1 %v14601_v54  ;;  %v14726_v54 = vpop.f32.mrf.mxu1 }
 0x2e3   : > { %10919 = vmatpush3.bf16.msra.mxu0 %v11440_v63  ;;  %10956 = vmatpush3.bf16.msra.mxu1 %v11441_v50 }
 0x2e4   : > { %10957 = vmatprep.subr.bf16.mxu1 %v11967_v10  ;;  %10959 = vmatprep.mubr.msk.bf16.mxu1 %vm11968_vm2, %v11967_v10  ;;  %v14734_v16 = vpop.f32.mrf.mxu1 }
 0x2e6   : > { %5256 = vmatmul.mubr.bf16.vlgmr.msra.gmra.mxu0 %v14555_v1  ;;  %v14737_v1 = vpop.f32.mrf.mxu0  ;;  %v14740_v25 = vpop.f32.mrf.mxu1 }
 0x2e7   : > { %10958 = vmatpush3.bf16.msra.mxu1 %v11442_v55  ;;  %5263 = vmatprep.mubr.bf16.mxu0 %v14583_v44  ;;  %17939 = vst [vmem:[#allocation32_spill] sm:$0xff] %v14737_v1 }
 0x2e8   : > { %v14744_v44 = vpop.f32.mrf.mxu0  ;;  %v14750_v12 = vpop.f32.mrf.mxu1 }
 0x2ea   : > { %10960 = vmatmul.mubr.msk.bf16.vlgmr.msra.gmra.mxu1 %vm4567_vm14, %v14657_v41  ;;  %v14748_v41 = vpop.permute.xlu0 %3114  ;;  %v14759_v23 = vpop.f32.mrf.mxu1 }
 0x2eb   : > { %10963 = vmatprep.mubr.msk.bf16.mxu1 %vm11968_vm2, %v11967_v10 }
 0x2ec   : > { %v14773_v5 = vpop.f32.mrf.mxu1 }
 0x2ee   : > { %5264 = vmatmul.mubr.bf16.gmra.mxu0 %v14611_v14  ;;  %v14752_v14 = vpop.permute.xlu1 %3119  ;;  %v14777_v50 = vpop.permute.xlu0 %3129 }
 0x2ef   : > { %5271 = vmatprep.mubr.bf16.mxu0 %v14621_v49  ;;  %v4636_v49 = vadd.f32 %v14440_v20, %v14748_v41  ;;  %v4638_v60 = vadd.f32 %v14454_v58, %v14752_v14  ;;  %v4634_v20 = vadd.f32 %v14426_v13, %v14748_v41  ;;  %v4827_v58 = vadd.f32 %v14706_v3, %v14752_v14 }
 0x2f0   : > { %v4650_v3 = vadd.f32 %v14558_v31, %v14777_v50 }
 0x2f2   : > { %10964 = vmatmul.mubr.msk.bf16.gmra.mxu1 %vm4567_vm14, %v14673_v59  ;;  %v4640_v59 = vadd.f32 %v14468_v33, %v14752_v14  ;;  %v4825_v33 = vadd.f32 %v14691_v32, %v14748_v41  ;;  %v4697_v32 = vadd.f32 %v14470_v43, %v4634_v20 }
 0x2f3   : > { %10967 = vmatprep.mubr.msk.bf16.mxu1 %vm11968_vm2, %v11967_v10  ;;  %v4823_v10 = vadd.f32 %v14683_v27, %v14748_v41  ;;  %v14775_v27 = vpop.permute.xlu1 %3124  ;;  %vm8523_vm2 = vcmask 1042432  }
 0x2f4   : > { %v4703_v34 = vadd.f32 %v14532_v36, %v4640_v59  ;;  %v4829_v36 = vadd.f32 %v4828_v11, %v14752_v14  ;;  %v4646_v59 = vadd.f32 %v14508_v2, %v14775_v27  ;;  %v14799_v11 = vadd.f32 %v14661_v40, %v4697_v32 }
 0x2f5   : > { %v4885_v51 = vpop.f32.mrf.mxu0  ;;  %v4835_v2 = vadd.f32 %v4834_v57, %v14775_v27 }
 0x2f6   : > { %5272 = vmatmul.mubr.bf16.gmra.mxu0 %v14644_v61  ;;  %v4699_v61 = vadd.f32 %v14486_v28, %v4636_v49  ;;  %v4701_v28 = vadd.f32 %v14510_v8, %v4638_v60  ;;  %v14788_v49 = vadd.f32 %v14687_v53, %v4703_v34  ;;  %v4833_v8 = vadd.f32 %v4832_v47, %v14775_v27 }
 0x2f7   : > { %v4887_v30 = vpop.f32.mrf.mxu0  ;;  %17943 = vst [vmem:[#allocation40_spill] sm:$0xff] %v14799_v11 }
 0x2f8   : > { %v14783_v13 = vadd.f32 %v14666_v24, %v4699_v61  ;;  %v4888_v55 = vadd.f32 %v4887_v30, %v4825_v33  ;;  %17941 = vst [vmem:[#allocation38_spill] sm:$0xff] %v14788_v49  ;;  %v14802_v53 = vadd.f32 %v14677_v17, %v4701_v28  ;;  %v17543_v47 = vmax.f32 %v14788_v49, 0.0 }
 0x2f9   : > { %v4889_v6 = vpop.f32.mrf.mxu0  ;;  %v4713_v33 = vadd.f32 %v14639_v0, %v4650_v3 }
 0x2fa   : > { %10968 = vmatmul.mubr.msk.bf16.gmra.mxu1 %vm4567_vm14, %v14696_v48  ;;  %v4886_v48 = vadd.f32 %v4885_v51, %v4823_v10  ;;  %17940 = vst [vmem:[#allocation33_spill] sm:$0xff] %v14783_v13  ;;  %v4890_v60 = vadd.f32 %v4889_v6, %v4827_v58  ;;  %v17544_v43 = vmax.f32 %v14783_v13, 0.0  ;;  %17944 = vst [vmem:[#allocation39_spill] sm:$0xff] %v14802_v53  ;;  %v17541_v28 = vmax.f32 %v14802_v53, 0.0  ;;  %v14948_v53 = vpop.permute.xlu1 %3134 }
 0x2fb   : > { %v4891_v63 = vpop.f32.mrf.mxu0  ;;  %v4709_v6 = vadd.f32 %v14588_v38, %v4646_v59  ;;  %vm6635_vm14 = vcmask 1045504  }
 0x2fc   : > { %v4892_v20 = vadd.f32 %v4891_v63, %v4829_v36  ;;  %v17540_v63 = vmax.f32 %v14799_v11, 0.0  ;;  %v4648_v11 = vadd.f32 %v14530_v18, %v14777_v50  ;;  %v4839_v18 = vadd.f32 %v14734_v16, %v14777_v50 }
 0x2fd   : > { %v4895_v10 = vpop.f32.mrf.mxu0  ;;  %v14829_v3 = vadd.f32 %v14709_v39, %v4709_v6 }
 0x2fe   : > { %v4711_v1 = vadd.f32 %v14616_v19, %v4648_v11  ;;  %v11469_v19 = vld [vmem:[%s17234_s5 + $0xf4] ss:$8 sps:$4 sm:$0xff]  }
 0x2ff   : > { %v4897_v40 = vpop.f32.mrf.mxu0  ;;  %17948 = vst [vmem:[#allocation43_spill] sm:$0xff] %v14829_v3 }
 0x301   : > { %v4948_v51 = vpop.f32.mrf.mxu1 }
 0x302   : > { %v14795_v24 = vadd.f32 %v4948_v51, %v4886_v48  ;;  %v4896_v48 = vadd.f32 %v4895_v10, %v4833_v8  ;;  %v14832_v51 = vadd.f32 %v14717_v35, %v4713_v33 }
 0x303   : > { %v4950_v30 = vpop.f32.mrf.mxu1 }
 0x304   : > { %17942 = vst [vmem:[#allocation37_spill] sm:$0xff] %v14795_v24  ;;  %v17545_v31 = vmax.f32 %v14795_v24, 0.0  ;;  %v14806_v61 = vadd.f32 %v4950_v30, %v4888_v55  ;;  %v4898_v55 = vadd.f32 %v4897_v40, %v4835_v2  ;;  %17949 = vst [vmem:[#allocation45_spill] sm:$0xff] %v14832_v51  ;;  %v11057_v30 = vpack.i.bf16 %v17541_v28, %v17540_v63  ;;  %v14955_v24 = vpop.permute.xlu0 %3139 }
 0x305   : > { %v4952_v34 = vpop.f32.mrf.mxu1  ;;  %v17536_v6 = vmax.f32 %v14832_v51, 0.0 }
 0x306   : > { %17945 = vst [vmem:[#allocation42_spill] sm:$0xff] %v14806_v61  ;;  %v11042_v17 = vpack.i.bf16 %v17545_v31, %v17544_v43  ;;  %v17537_v57 = vmax.f32 %v14806_v61, 0.0  ;;  %v14816_v58 = vadd.f32 %v4952_v34, %v4890_v60 }
 0x307   : > { %v4954_v32 = vpop.f32.mrf.mxu1 }
 0x308   : > { %17946 = vst [vmem:[#allocation41_spill] sm:$0xff] %v14816_v58  ;;  %v11047_v38 = vpack.i.bf16 %v17543_v47, %v17537_v57  ;;  %v17542_v0 = vmax.f32 %v14816_v58, 0.0  ;;  %v14825_v36 = vadd.f32 %v4954_v32, %v4892_v20  ;;  %11043 = vrot.lane.b32.xlu1 %v11042_v17, %s17669_s29  ;;  %v17539_v20 = vmax.f32 %v14829_v3, 0.0  ;;  %v11443_v17 = vld [vmem:[%s17234_s5 + $0x70] ss:$8 sps:$4 sm:$0xff]  }
 0x309   : > { %v4958_v59 = vpop.f32.mrf.mxu1  ;;  %v11448_v32 = vld [vmem:[%s17234_s5 + $0x64] ss:$8 sps:$4 sm:$0xff]  }
 0x30a   : > { %17947 = vst [vmem:[#allocation44_spill] sm:$0xff] %v14825_v36  ;;  %v17535_v10 = vmax.f32 %v14825_v36, 0.0  ;;  %v14835_v8 = vadd.f32 %v4958_v59, %v4896_v48  ;;  %11048 = vrot.lane.b32.xlu0 %v11047_v38, %s17669_s29  ;;  %v11445_v48 = vld [vmem:[%s17234_s5 + $0x74] ss:$8 sps:$4 sm:$0xff]   ;;  %v11446_v38 = vld [vmem:[%s17234_s5 + $0x60] ss:$8 sps:$4 sm:$0xff]  }
 0x30b   : > { %v4960_v60 = vpop.f32.mrf.mxu1  ;;  %6644 = vmatprep.subr.bf16.mxu0 %v11445_v48  ;;  %v11449_v59 = vld [vmem:[%s17234_s5 + $0x50] ss:$8 sps:$4 sm:$0xff]  }
 0x30c   : > { %17950 = vst [vmem:[#allocation46_spill] sm:$0xff] %v14835_v8  ;;  %v11052_v39 = vpack.i.bf16 %v17535_v10, %v17542_v0  ;;  %v17538_v35 = vmax.f32 %v14835_v8, 0.0  ;;  %v14847_v2 = vadd.f32 %v4960_v60, %v4898_v55  ;;  %6645 = vmatpush1.bf16.msra.mxu0 %v11443_v17  ;;  %v11451_v55 = vld [vmem:[%s17234_s5 + $0x54] ss:$8 sps:$4 sm:$0xff]   ;;  %v11454_v60 = vld [vmem:[%s17234_s5 + $0x44] ss:$8 sps:$4 sm:$0xff]   ;;  %v4644_v8 = vadd.f32 %v14484_v22, %v14775_v27 }
 0x30d   : > { %6646 = vmatprep.subr.bf16.mxu0 %v11448_v32  ;;  %v11460_v17 = vld [vmem:[%s17234_s5 + $0x24] ss:$8 sps:$4 sm:$0xff]   ;;  %v11458_v32 = vld [vmem:[%s17234_s5 + $0x20] ss:$8 sps:$4 sm:$0xff]   ;;  %v4837_v22 = vadd.f32 %v14726_v54, %v14777_v50 }
 0x30e   : > { %17951 = vst [vmem:[#allocation24_spill] sm:$0xff] %v14847_v2  ;;  %v17534_v33 = vmax.f32 %v14847_v2, 0.0  ;;  %11053 = vrot.lane.b32.xlu1 %v11052_v39, %s17669_s29  ;;  %11058 = vrot.lane.b32.xlu0 %v11057_v30, %s17669_s29  ;;  %v11062_v34 = vpack.i.bf16 %v17538_v35, %v17539_v20  ;;  %v11452_v30 = vld [vmem:[%s17234_s5 + $0x40] ss:$8 sps:$4 sm:$0xff]   ;;  %v11457_v39 = vld [vmem:[%s17234_s5 + $0x34] ss:$8 sps:$4 sm:$0xff]   ;;  %v4707_v13 = vadd.f32 %v14560_v56, %v4644_v8 }
 0x30f   : > { %v4656_v56 = vadd.f32 %v14614_v45, %v14948_v53  ;;  %v4660_v8 = vadd.f32 %v14647_v15, %v14955_v24 }
 0x310   : > { %v11067_v40 = vpack.i.bf16 %v17536_v6, %v17534_v33  ;;  %6647 = vmatpush1.bf16.msra.mxu0 %v11446_v38  ;;  %v11463_v38 = vld [vmem:[%s17234_s5 + $0x14] ss:$8 sps:$4 sm:$0xff]   ;;  %v14978_v16 = vadd.f32 %v14700_v52, %v4707_v13 }
 0x311   : > { %6648 = vmatprep.subr.bf16.mxu0 %v11451_v55  ;;  %v4719_v52 = vadd.f32 %v14663_v42, %v4656_v56  ;;  %v4654_v42 = vadd.f32 %v14586_v26, %v14948_v53  ;;  %v11470_v26 = vld [vmem:[%s17234_s5 + $0xe0] ss:$8 sps:$4 sm:$0xff]  }
 0x312   : > { %11063 = vrot.lane.b32.xlu1 %v11062_v34, %s17669_s29  ;;  %11068 = vrot.lane.b32.xlu0 %v11067_v40, %s17669_s29  ;;  %v4899_v34 = vpop.f32.mrf.mxu0  ;;  %v11455_v40 = vld [vmem:[%s17234_s5 + $0x30] ss:$8 sps:$4 sm:$0xff]  }
 0x313   : > { %v4900_v11 = vadd.f32 %v4899_v34, %v4837_v22  ;;  %v4843_v34 = vadd.f32 %v14740_v25, %v14948_v53  ;;  %v4658_v25 = vadd.f32 %v14637_v21, %v14955_v24 }
 0x314   : > { %6649 = vmatpush1.bf16.msra.mxu0 %v11449_v59  ;;  %v4901_v48 = vpop.f32.mrf.mxu0  ;;  %v14905_v59 = vpop.f32.mrf.mxu1 }
 0x315   : > { %6650 = vmatprep.subr.bf16.mxu0 %v11454_v60  ;;  %v11461_v60 = vld [vmem:[%s17234_s5 + $0x10] ss:$8 sps:$4 sm:$0xff]   ;;  %v4902_v45 = vadd.f32 %v4901_v48, %v4839_v18 }
 0x316   : > { %v14903_v55 = vpop.f32.mrf.mxu0 }
 0x318   : > { %6651 = vmatpush1.bf16.msra.mxu0 %v11452_v30  ;;  %v14910_v30 = vpop.f32.mrf.mxu0 }
 0x319   : > { %6652 = vmatprep.subr.bf16.mxu0 %v11457_v39  ;;  %v14912_v39 = vpop.f32.mrf.mxu1 }
 0x31c   : > { %6653 = vmatpush1.bf16.msra.mxu0 %v11455_v40  ;;  %v14914_v40 = vpop.f32.mrf.mxu0 }
 0x31d   : > { %6654 = vmatprep.subr.bf16.mxu0 %v11460_v17  ;;  %v14916_v17 = vpop.f32.mrf.mxu1 }
 0x31e   : > { %v14918_v33 = vpop.f32.mrf.mxu0 }
 0x31f   : > { %v14920_v6 = vpop.f32.mrf.mxu1 }
 0x320   : > { %6655 = vmatpush1.bf16.msra.mxu0 %v11458_v32 }
 0x321   : > { %6656 = vmatprep.subr.bf16.mxu0 %v11463_v38  ;;  %v14922_v57 = vpop.f32.mrf.mxu1 }
 0x323   : > { %v14924_v38 = vpop.f32.mrf.mxu1 }
 0x324   : > { %6657 = vmatpush1.bf16.msra.mxu0 %v11461_v60  ;;  %17952 = vst [vmem:[#allocation17_spill] sm:$0xff] %v14924_v38 }
 0x369   : > { %v5011_v10 = vpop.f32.mrf.mxu0 }
 0x36a   : > { %v5012_v62 = vadd.f32 %v5011_v10, %v14748_v41  ;;  %v11467_v10 = vld [vmem:[%s17234_s5 + $0xf0] ss:$8 sps:$4 sm:$0xff]  }
 0x36b   : > { %v5013_v32 = vpop.f32.mrf.mxu0 }
 0x36d   : > { %v5015_v35 = vpop.f32.mrf.mxu0 }
 0x36e   : > { %v5016_v13 = vadd.f32 %v5015_v35, %v14752_v14 }
 0x36f   : > { %v5017_v20 = vpop.f32.mrf.mxu0 }
 0x371   : > { %v14926_v63 = vpop.f32.mrf.mxu0 }
 0x372   : > { %v5074_v28 = vpop.f32.mrf.mxu1 }
 0x373   : > { %v14928_v60 = vpop.f32.mrf.mxu0  ;;  %v5075_v38 = vadd.f32 %v5074_v28, %v5012_v62 }
 0x374   : > { %v5076_v0 = vpop.f32.mrf.mxu1 }
 0x375   : > { %v14930_v47 = vpop.f32.mrf.mxu0 }
 0x376   : > { %v5078_v43 = vpop.f32.mrf.mxu1 }
 0x377   : > { %v14932_v31 = vpop.f32.mrf.mxu0  ;;  %v5079_v35 = vadd.f32 %v5078_v43, %v5016_v13  ;;  %v4845_v43 = vadd.f32 %v14750_v12, %v14948_v53  ;;  %v4849_v12 = vadd.f32 %v14773_v5, %v14955_v24 }
 0x378   : > { %v5080_v9 = vpop.f32.mrf.mxu1 }
 0x379   : > { %v14934_v2 = vpop.f32.mrf.mxu0 }
 0x37a   : > { %17953 = vst [vmem:[#allocation47_spill] sm:$0xff] %v14934_v2  ;;  %v14936_v36 = vpop.f32.mrf.mxu1  ;;  %v11466_v2 = vld [vmem:[%s17234_s5 + $0x4] ss:$8 sps:$4 sm:$0xff]  }
 0x37b   : > { %v14938_v51 = vpop.f32.mrf.mxu0  ;;  %6658 = vmatprep.subr.bf16.mxu0 %v11466_v2  ;;  %v5014_v2 = vadd.f32 %v5013_v32, %v14748_v41 }
 0x37c   : > { %17954 = vst [vmem:[#allocation49_spill] sm:$0xff] %v14938_v51  ;;  %v14940_v61 = vpop.f32.mrf.mxu1 }
 0x37d   : > { %v14950_v58 = vpop.f32.mrf.mxu0  ;;  %v5077_v62 = vadd.f32 %v5076_v0, %v5014_v2  ;;  %v15011_v0 = vadd.f32 %v14905_v59, %v4900_v11  ;;  %v4847_v59 = vadd.f32 %v14759_v23, %v14955_v24  ;;  %v11475_v23 = vld [vmem:[%s17234_s5 + $0xd4] ss:$8 sps:$4 sm:$0xff]  }
 0x37e   : > { %v14944_v3 = vpop.f32.mrf.mxu1  ;;  %17955 = vst [vmem:[#allocation36_spill] sm:$0xff] %v14950_v58  ;;  %v11464_v58 = vld [vmem:[%s17234_s5] ss:$8 sps:$4 sm:$0xff]  }
 0x37f   : > { %v14973_v51 = vpop.f32.mrf.mxu0  ;;  %6659 = vmatpush1.bf16.msra.mxu0 %v11464_v58  ;;  %v14993_v58 = vadd.f32 %v14679_v7, %v4660_v8  ;;  %v11472_v7 = vld [vmem:[%s17234_s5 + $0xe4] ss:$8 sps:$4 sm:$0xff]  }
 0x380   : > { %v14952_v49 = vpop.f32.mrf.mxu1  ;;  %6660 = vmatprep.subr.bf16.mxu0 %v11469_v19 }
 0x382   : > { %v14975_v54 = vpop.f32.mrf.mxu1 }
 0x383   : > { %17956 = vst [vmem:[#allocation16_spill] sm:$0xff] %v14975_v54  ;;  %v14988_v54 = vadd.f32 %v14713_v37, %v4711_v1  ;;  %6661 = vmatpush2.bf16.msra.mxu0 %v11467_v10  ;;  %v17573_v37 = vmax.f32 %v14978_v16, 0.0  ;;  %v5018_v1 = vadd.f32 %v5017_v20, %v14752_v14  ;;  %v5022_v20 = vadd.f32 %v14926_v63, %v14775_v27 }
 0x384   : > { %v14997_v28 = vpop.f32.mrf.mxu1  ;;  %6662 = vmatprep.subr.bf16.mxu0 %v11472_v7  ;;  %v5026_v10 = vadd.f32 %v14930_v47, %v14777_v50 }
 0x385   : > { %v5081_v21 = vadd.f32 %v5080_v9, %v5018_v1  ;;  %v5024_v9 = vadd.f32 %v14928_v60, %v14775_v27  ;;  %v5085_v63 = vadd.f32 %v14936_v36, %v5022_v20  ;;  %v11473_v36 = vld [vmem:[%s17234_s5 + $0xd0] ss:$8 sps:$4 sm:$0xff]   ;;  %v17572_v47 = vmax.f32 %v14988_v54, 0.0 }
 0x386   : > { %v5137_v15 = vpop.f32.mrf.mxu0  ;;  %v15030_v8 = vpop.f32.mrf.mxu1  ;;  %v15062_v1 = vadd.f32 %v14730_v29, %v4719_v52  ;;  %v5089_v20 = vadd.f32 %v14944_v3, %v5026_v10  ;;  %v4717_v52 = vadd.f32 %v14649_v4, %v4654_v42  ;;  %v4910_v3 = vadd.f32 %v14914_v40, %v4847_v59 }
 0x387   : > { %v14999_v48 = vadd.f32 %v5137_v15, %v5075_v38  ;;  %v15014_v38 = vadd.f32 %v14912_v39, %v4902_v45  ;;  %v4906_v39 = vadd.f32 %v14903_v55, %v4843_v34  ;;  %6663 = vmatpush2.bf16.msra.mxu0 %v11470_v26  ;;  %v17577_v55 = vmax.f32 %v15011_v0, 0.0 }
 0x388   : > { %v5139_v32 = vpop.f32.mrf.mxu0  ;;  %v5087_v13 = vadd.f32 %v14940_v61, %v5024_v9  ;;  %6664 = vmatprep.subr.bf16.mxu0 %v11475_v23  ;;  %v5028_v26 = vadd.f32 %v14932_v31, %v14777_v50  ;;  %v15104_v40 = vadd.f32 %v14744_v44, %v14993_v58  ;;  %v11087_v23 = vpack.i.bf16 %v17572_v47, %v17573_v37  ;;  %v11481_v58 = vld [vmem:[%s17234_s5 + $0xb4] ss:$8 sps:$4 sm:$0xff]  }
 0x389   : > { %v15016_v22 = vadd.f32 %v5139_v32, %v5077_v62  ;;  %v17581_v19 = vmax.f32 %v14999_v48, 0.0  ;;  %v17567_v15 = vmax.f32 %v15014_v38, 0.0  ;;  %v15066_v7 = vadd.f32 %v14916_v17, %v4906_v39  ;;  %v11478_v17 = vld [vmem:[%s17234_s5 + $0xc4] ss:$8 sps:$4 sm:$0xff]  }
 0x38a   : > { %v5141_v18 = vpop.f32.mrf.mxu0  ;;  %v5091_v9 = vadd.f32 %v14952_v49, %v5028_v26  ;;  %v15129_v10 = vadd.f32 %v14922_v57, %v4910_v3  ;;  %v11479_v26 = vld [vmem:[%s17234_s5 + $0xb0] ss:$8 sps:$4 sm:$0xff]   ;;  %v15145_v57 = vpop.permute.xlu1 %11043 }
 0x38b   : > { %v15025_v56 = vadd.f32 %v5141_v18, %v5079_v35  ;;  %v17562_v11 = vmax.f32 %v15016_v22, 0.0  ;;  %v4908_v35 = vadd.f32 %v14910_v30, %v4845_v43  ;;  %v15068_v18 = vpop.f32.mrf.mxu1  ;;  %6665 = vmatpush2.bf16.msra.mxu0 %v11473_v36  ;;  %v11077_v31 = vpack.i.bf16 %v17567_v15, %v17577_v55  ;;  %v17958_v36 = vld [vmem:[#allocation49_spill] sm:$0xff] }
 0x38c   : > { %v5143_v45 = vpop.f32.mrf.mxu0  ;;  %v4912_v43 = vadd.f32 %v14918_v33, %v4849_v12  ;;  %6666 = vmatprep.subr.bf16.mxu0 %v11478_v17  ;;  %v4721_v33 = vadd.f32 %v14668_v46, %v4658_v25  ;;  %v17564_v46 = vmax.f32 %v15066_v7, 0.0  ;;  %v15117_v25 = vpop.permute.xlu0 %11048 }
 0x38d   : > { %v15039_v2 = vadd.f32 %v5143_v45, %v5081_v21  ;;  %v11072_v5 = vpack.i.bf16 %v17562_v11, %v17581_v19  ;;  %v17574_v34 = vmax.f32 %v15025_v56, 0.0  ;;  %v11476_v45 = vld [vmem:[%s17234_s5 + $0xc0] ss:$8 sps:$4 sm:$0xff]   ;;  %v15107_v59 = vadd.f32 %v14920_v6, %v4908_v35  ;;  %v17963_v11 = vld [vmem:[#allocation36_spill] sm:$0xff] }
 0x38e   : > { %v5147_v60 = vpop.f32.mrf.mxu0 }
 0x38f   : > { %v17560_v62 = vmax.f32 %v15039_v2, 0.0  ;;  %v15058_v32 = vadd.f32 %v5147_v60, %v5085_v63  ;;  %11073 = vrot.lane.b32.xlu1 %v11072_v5, %s17669_s29  ;;  %6667 = vmatpush2.bf16.msra.mxu0 %v11476_v45  ;;  %v17957_v5 = vld [vmem:[#allocation17_spill] sm:$0xff]  ;;  %v17568_v45 = vmax.f32 %v15107_v59, 0.0 }
 0x390   : > { %v5149_v61 = vpop.f32.mrf.mxu0  ;;  %v15132_v60 = vadd.f32 %v17957_v5, %v4912_v43  ;;  %6668 = vmatprep.subr.bf16.mxu0 %v11481_v58  ;;  %v17960_v43 = vld [vmem:[#allocation32_spill] sm:$0xff]  ;;  %v17571_v58 = vmax.f32 %v15129_v10, 0.0 }
 0x391   : > { %v11082_v29 = vpack.i.bf16 %v17560_v62, %v17574_v34  ;;  %v15078_v30 = vadd.f32 %v5149_v61, %v5087_v13  ;;  %v17563_v4 = vmax.f32 %v15058_v32, 0.0  ;;  %v5034_v13 = vadd.f32 %v17958_v36, %v14948_v53 }
 0x392   : > { %v5151_v21 = vpop.f32.mrf.mxu0  ;;  %v15090_v39 = vpop.f32.mrf.mxu1 }
 0x393   : > { %v17559_v42 = vmax.f32 %v15078_v30, 0.0  ;;  %v15098_v63 = vadd.f32 %v5151_v21, %v5089_v20  ;;  %11083 = vrot.lane.b32.xlu0 %v11082_v29, %s17669_s29  ;;  %11078 = vrot.lane.b32.xlu1 %v11077_v31, %s17669_s29  ;;  %v17565_v20 = vmax.f32 %v15062_v1, 0.0  ;;  %v17959_v29 = vld [vmem:[#allocation30_spill] sm:$0xff]  ;;  %v15151_v21 = vadd.f32 %v17960_v43, %v4721_v33 }
 0x394   : > { %v5153_v49 = vpop.f32.mrf.mxu0  ;;  %v15110_v12 = vpop.f32.mrf.mxu1  ;;  %v15143_v17 = vadd.f32 %v17959_v29, %v4717_v52  ;;  %v5097_v52 = vadd.f32 %v14997_v28, %v5034_v13  ;;  %6669 = vmatpush2.bf16.msra.mxu0 %v11479_v26  ;;  %v17569_v29 = vmax.f32 %v15104_v40, 0.0  ;;  %v17570_v13 = vmax.f32 %v15132_v60, 0.0  ;;  %v17962_v26 = vld [vmem:[#allocation16_spill] sm:$0xff] }
 0x395   : > { %v11092_v44 = vpack.i.bf16 %v17559_v42, %v17563_v4  ;;  %v15123_v6 = vadd.f32 %v5153_v49, %v5091_v9  ;;  %v17566_v31 = vmax.f32 %v15098_v63, 0.0  ;;  %v17961_v9 = vld [vmem:[#allocation47_spill] sm:$0xff]  ;;  %v11097_v33 = vpack.i.bf16 %v17564_v46, %v17565_v20  ;;  %v15187_v46 = vpop.permute.xlu1 %11053  ;;  %v11059_v20 = vpop.permute.xlu0 %11058 }
 0x396   : > { %v5157_v35 = vpop.f32.mrf.mxu0  ;;  %v15136_v61 = vpop.f32.mrf.mxu1  ;;  %v5032_v49 = vadd.f32 %v17961_v9, %v14948_v53  ;;  %v5036_v4 = vadd.f32 %v17963_v11, %v14955_v24 }
 0x397   : > { %v17561_v3 = vmax.f32 %v15123_v6, 0.0  ;;  %11088 = vrot.lane.b32.xlu0 %v11087_v23, %s17669_s29  ;;  %11093 = vrot.lane.b32.xlu1 %v11092_v44, %s17669_s29  ;;  %v5038_v23 = vadd.f32 %v14973_v51, %v14955_v24  ;;  %v11484_v44 = vld [vmem:[%s17234_s5 + $0xa4] ss:$8 sps:$4 sm:$0xff]   ;;  %v11482_v51 = vld [vmem:[%s17234_s5 + $0xa0] ss:$8 sps:$4 sm:$0xff]  }
 0x398   : > { %v5159_v5 = vpop.f32.mrf.mxu0  ;;  %v15158_v36 = vpop.f32.mrf.mxu1  ;;  %v5095_v43 = vadd.f32 %v17962_v26, %v5032_v49  ;;  %6670 = vmatprep.subr.bf16.mxu0 %v11484_v44  ;;  %v17576_v49 = vmax.f32 %v15143_v17, 0.0 }
 0x399   : > { %v11102_v28 = vpack.i.bf16 %v17561_v3, %v17566_v31  ;;  %v15177_v9 = vadd.f32 %v5159_v5, %v5097_v52  ;;  %v17582_v3 = vunpack.i.l.bf16 %v15117_v25  ;;  %v5101_v31 = vadd.f32 %v15068_v18, %v5038_v23  ;;  %6671 = vmatpush2.bf16.msra.mxu0 %v11482_v51 }
 0x39a   : > { %v5161_v42 = vpop.f32.mrf.mxu0  ;;  %v15179_v62 = vpop.f32.mrf.mxu1  ;;  %v17575_v52 = vmax.f32 %v15151_v21, 0.0  ;;  %v11107_v5 = vpack.i.bf16 %v17569_v29, %v17568_v45  ;;  %v15197_v26 = vadd.f32 %v5157_v35, %v5095_v43  ;;  %v11046_v18 = vunpack.i.h.bf16 %v15145_v57  ;;  %v11487_v45 = vld [vmem:[%s17234_s5 + $0x94] ss:$8 sps:$4 sm:$0xff]  }
 0x39b   : > { %11103 = vrot.lane.b32.xlu0 %v11102_v28, %s17669_s29  ;;  %11098 = vrot.lane.b32.xlu1 %v11097_v33, %s17669_s29  ;;  %v11045_v23 = vunpack.i.l.bf16 %v15145_v57  ;;  %v5099_v28 = vadd.f32 %v15030_v8, %v5036_v4  ;;  %v11112_v35 = vpack.i.bf16 %v17570_v13, %v17571_v58  ;;  %v17578_v33 = vunpack.i.h.bf16 %v15187_v46  ;;  %v11485_v8 = vld [vmem:[%s17234_s5 + $0x90] ss:$8 sps:$4 sm:$0xff]  }
 0x39c   : > { %v5163_v11 = vpop.f32.mrf.mxu0  ;;  %v15200_v15 = vpop.f32.mrf.mxu1  ;;  %v11055_v43 = vunpack.i.l.bf16 %v15187_v46  ;;  %v17579_v51 = vmax.f32 %v15177_v9, 0.0  ;;  %v5592_v4 = vsel %vm391_vm8, %v11046_v18, %v17582_v3  ;;  %6672 = vmatprep.subr.bf16.mxu0 %v11487_v45  ;;  %v11051_v13 = vunpack.i.h.bf16 %v15117_v25  ;;  %v11490_v45 = vld [vmem:[%s17234_s5 + $0x84] ss:$8 sps:$4 sm:$0xff]  }
 0x39d   : > { %v15205_v44 = vadd.f32 %v5163_v11, %v5101_v31  ;;  %v11061_v31 = vunpack.i.h.bf16 %v11059_v20  ;;  %v11060_v11 = vunpack.i.l.bf16 %v11059_v20  ;;  %v15225_v29 = vadd.f32 %v5161_v42, %v5099_v28  ;;  %6673 = vmatpush2.bf16.msra.mxu0 %v11485_v8 }
 0x39e   : > { %v15217_v57 = vpop.f32.mrf.mxu1  ;;  %v17580_v58 = vmax.f32 %v15197_v26, 0.0  ;;  %v11117_v37 = vpack.i.bf16 %v17575_v52, %v17576_v49  ;;  %v5591_v20 = vsel %vm391_vm8, %v11045_v23, %v11046_v18  ;;  %v5598_v8 = vsel %vm391_vm8, %v11055_v43, %v17578_v33  ;;  %v11488_v49 = vld [vmem:[%s17234_s5 + $0x80] ss:$8 sps:$4 sm:$0xff]   ;;  %6674 = vmatprep.subr.bf16.mxu0 %v11490_v45 }
 0x39f   : > { %11108 = vrot.lane.b32.xlu0 %v11107_v5, %s17669_s29  ;;  %11113 = vrot.lane.b32.xlu1 %v11112_v35, %s17669_s29  ;;  %v17583_v42 = vmax.f32 %v15205_v44, 0.0  ;;  %v17964_v5 = vld [vmem:[#allocation37_spill] sm:$0xff]  ;;  %v5597_v35 = vsel %vm391_vm8, %v11051_v13, %v11055_v43 }
 0x3a0   : > { %v10896_v47 = vpop.f32.mrf.mxu1  ;;  %v17965_v28 = vmax.f32 %v17964_v5, 0.0  ;;  %v11122_v18 = vpack.i.bf16 %v17579_v51, %v17580_v58  ;;  %v5596_v5 = vsel %vm391_vm8, %v11061_v31, %v11051_v13  ;;  %v17966_v43 = vld [vmem:[#allocation33_spill] sm:$0xff]  ;;  %v17968_v58 = vld [vmem:[#allocation38_spill] sm:$0xff] }
 0x3a1   : > { %v17967_v55 = vmax.f32 %v17966_v43, 0.0  ;;  %6675 = vmatpush2.bf16.msra.mxu0 %v11488_v49  ;;  %v17969_v19 = vmax.f32 %v17968_v58, 0.0  ;;  %v17970_v13 = vld [vmem:[#allocation41_spill] sm:$0xff]  ;;  %v17974_v49 = vld [vmem:[#allocation40_spill] sm:$0xff] }
 0x3a2   : > { %v15242_v34 = vmax.f32 %v17965_v28, %v5592_v4  ;;  %v10898_v52 = vpop.f32.mrf.mxu1  ;;  %v5590_v4 = vsel %vm391_vm8, %v11060_v11, %v11045_v23  ;;  %v17584_v28 = vmax.f32 %v15225_v29, 0.0  ;;  %v17971_v31 = vmax.f32 %v17970_v13, 0.0  ;;  %v17972_v11 = vld [vmem:[#allocation39_spill] sm:$0xff] }
 0x3a3   : > { %11118 = vrot.lane.b32.xlu0 %v11117_v37, %s17669_s29  ;;  %v15261_v33 = vmax.f32 %v17967_v55, %v5591_v20  ;;  %11123 = vrot.lane.b32.xlu1 %v11122_v18, %s17669_s29  ;;  %v15266_v3 = vmax.f32 %v17969_v19, %v5597_v35  ;;  %v10888_v37 = vadd.f32 %v15110_v12, %v15090_v39  ;;  %v17973_v20 = vmax.f32 %v17972_v11, 0.0 }
 0x3a4   : > { %v10899_v51 = vpop.f32.mrf.mxu1  ;;  %v15270_v23 = vmax.f32 %v17971_v31, %v5598_v8  ;;  %v11127_v55 = vpack.i.bf16 %v17583_v42, %v17584_v28  ;;  %v17975_v58 = vmax.f32 %v17974_v49, 0.0 }
 0x3a5   : > { %v15280_v45 = vmax.f32 %v17973_v20, %v5596_v5  ;;  %v11132_v8 = vpack.i.bf16 %v15242_v34, %v15261_v33  ;;  %v5201_v43 = vadd.f32 %v10888_v37, %v14748_v41  ;;  %v10891_v5 = vadd.f32 %v15158_v36, %v15136_v61 }
 0x3a6   : > { %v15284_v19 = vmax.f32 %v17975_v58, %v5590_v4  ;;  %v10901_v35 = vpop.f32.mrf.mxu1  ;;  %v10920_v18 = vpop.f32.mrf.mxu0  ;;  %v11142_v4 = vpack.i.bf16 %v15270_v23, %v15266_v3  ;;  %v10894_v61 = vadd.f32 %v15200_v15, %v15179_v62 }
 0x3a7   : > { %11128 = vrot.lane.b32.xlu0 %v11127_v55, %s17669_s29  ;;  %11133 = vrot.lane.b32.xlu1 %v11132_v8, %s17670_s11  ;;  %v5204_v41 = vadd.f32 %v10891_v5, %v14752_v14  ;;  %v15310_v15 = vpop.permute.xlu0 %11068 }
 0x3a8   : > { %v10902_v39 = vpop.f32.mrf.mxu1  ;;  %v10921_v12 = vpop.f32.mrf.mxu0  ;;  %v11137_v20 = vpack.i.bf16 %v15280_v45, %v15284_v19 }
 0x3a9   : > { %v10922_v13 = vadd.f32 %v10921_v12, %v10920_v18 }
 0x3aa   : > { %v10923_v31 = vpop.f32.mrf.mxu0  ;;  %v5314_v11 = vpop.f32.mrf.mxu1 }
 0x3ab   : > { %v5258_v49 = vadd.f32 %v10922_v13, %v5201_v43  ;;  %11143 = vrot.lane.b32.xlu0 %v11142_v4, %s17670_s11  ;;  %11138 = vrot.lane.b32.xlu1 %v11137_v20, %s17670_s11  ;;  %v15304_v43 = vpop.permute.xlu1 %11063  ;;  %v5209_v13 = vadd.f32 %v10894_v61, %v14775_v27  ;;  %v10897_v4 = vadd.f32 %v10896_v47, %v15217_v57  ;;  %v17592_v61 = vunpack.i.l.bf16 %v15310_v15 }
 0x3ac   : > { %v10924_v55 = vpop.f32.mrf.mxu0  ;;  %v10961_v58 = vpop.f32.mrf.mxu1  ;;  %v10900_v57 = vadd.f32 %v10899_v51, %v10898_v52 }
 0x3ad   : > { %v10925_v36 = vadd.f32 %v10924_v55, %v10923_v31  ;;  %v15302_v8 = vadd.f32 %v5314_v11, %v5258_v49  ;;  %v17593_v49 = vunpack.i.l.bf16 %v15304_v43  ;;  %v5212_v47 = vadd.f32 %v10897_v4, %v14777_v50 }
 0x3ae   : > { %v10926_v37 = vpop.f32.mrf.mxu0  ;;  %v5317_v18 = vpop.f32.mrf.mxu1  ;;  %v10903_v4 = vadd.f32 %v10902_v39, %v10901_v35  ;;  %v17978_v39 = vld [vmem:[#allocation46_spill] sm:$0xff] }
 0x3af   : > { %v5261_v12 = vadd.f32 %v10925_v36, %v5204_v41  ;;  %v17585_v62 = vmax.f32 %v15302_v8, 0.0 }
 0x3b0   : > { %v10927_v42 = vpop.f32.mrf.mxu0  ;;  %v10962_v28 = vpop.f32.mrf.mxu1 }
 0x3b1   : > { %v15308_v20 = vadd.f32 %v5317_v18, %v5261_v12  ;;  %v10928_v14 = vadd.f32 %v10927_v42, %v10926_v37  ;;  %v11066_v28 = vunpack.i.h.bf16 %v15304_v43 }
 0x3b2   : > { %v10929_v5 = vpop.f32.mrf.mxu0  ;;  %v5322_v58 = vpop.f32.mrf.mxu1 }
 0x3b3   : > { %v17591_v31 = vmax.f32 %v15308_v20, 0.0  ;;  %v5266_v11 = vadd.f32 %v10928_v14, %v5209_v13  ;;  %v5603_v50 = vsel %vm391_vm8, %v17593_v49, %v11066_v28  ;;  %v5217_v13 = vadd.f32 %v10900_v57, %v14948_v53 }
 0x3b4   : > { %v10930_v55 = vpop.f32.mrf.mxu0  ;;  %v10965_v27 = vpop.f32.mrf.mxu1  ;;  %v17979_v57 = vmax.f32 %v17978_v39, 0.0  ;;  %v11520_v39 = vld [vmem:[%s17234_s5 + $0x274] ss:$8 sps:$4 sm:$0xff]  }
 0x3b5   : > { %v11147_v42 = vpack.i.bf16 %v17591_v31, %v17585_v62  ;;  %v10931_v41 = vadd.f32 %v10930_v55, %v10929_v5  ;;  %v15322_v18 = vadd.f32 %v5322_v58, %v5266_v11  ;;  %v5604_v58 = vsel %vm391_vm8, %v11066_v28, %v17592_v61  ;;  %6770 = vmatprep.subr.bf16.mxu0 %v11520_v39  ;;  %v11521_v39 = vld [vmem:[%s17234_s5 + $0x1e0] ss:$8 sps:$4 sm:$0xff]  }
 0x3b6   : > { %v10932_v36 = vpop.f32.mrf.mxu0  ;;  %v5325_v37 = vpop.f32.mrf.mxu1 }
 0x3b7   : > { %11148 = vrot.lane.b32.xlu0 %v11147_v42, %s17669_s29  ;;  %v5269_v12 = vadd.f32 %v10931_v41, %v5212_v47  ;;  %v17588_v27 = vmax.f32 %v15322_v18, 0.0  ;;  %v17976_v41 = vld [vmem:[#allocation43_spill] sm:$0xff] }
 0x3b8   : > { %v10933_v52 = vpop.f32.mrf.mxu0  ;;  %v10966_v51 = vpop.f32.mrf.mxu1  ;;  %v17977_v62 = vmax.f32 %v17976_v41, 0.0  ;;  %v11494_v41 = vld [vmem:[%s17234_s5 + $0x160] ss:$8 sps:$4 sm:$0xff]  }
 0x3b9   : > { %v10934_v14 = vadd.f32 %v10933_v52, %v10932_v36  ;;  %v15329_v5 = vadd.f32 %v5325_v37, %v5269_v12  ;;  %v15342_v36 = vmax.f32 %v17979_v57, %v5604_v58  ;;  %v5220_v37 = vadd.f32 %v10903_v4, %v14955_v24  ;;  %v11491_v24 = vld [vmem:[%s17234_s5 + $0x170] ss:$8 sps:$4 sm:$0xff]   ;;  %v11493_v4 = vld [vmem:[%s17234_s5 + $0x174] ss:$8 sps:$4 sm:$0xff]  }
 0x3ba   : > { %v10935_v11 = vpop.f32.mrf.mxu0  ;;  %v5330_v55 = vpop.f32.mrf.mxu1  ;;  %v15338_v51 = vmax.f32 %v17977_v62, %v5603_v50  ;;  %6707 = vmatprep.subr.bf16.mxu1 %v11493_v4  ;;  %v11497_v57 = vld [vmem:[%s17234_s5 + $0x150] ss:$8 sps:$4 sm:$0xff]   ;;  %v11514_v4 = vld [vmem:[%s17234_s5 + $0x104] ss:$8 sps:$4 sm:$0xff]  }
 0x3bb   : > { %v17589_v47 = vmax.f32 %v15329_v5, 0.0  ;;  %v5274_v42 = vadd.f32 %v10934_v14, %v5217_v13  ;;  %17980 = vst [vmem:[#allocation48_spill] sm:$0xff] %v15342_v36  ;;  %6708 = vmatpush1.bf16.msra.mxu1 %v11491_v24  ;;  %v11509_v24 = vld [vmem:[%s17234_s5 + $0x110] ss:$8 sps:$4 sm:$0xff]  }
 0x3bc   : > { %v10936_v53 = vpop.f32.mrf.mxu0  ;;  %v10969_v35 = vpop.f32.mrf.mxu1  ;;  %v11162_v58 = vpack.i.bf16 %v15342_v36, %v15338_v51 }
 0x3bd   : > { %v11152_v28 = vpack.i.bf16 %v17589_v47, %v17588_v27  ;;  %v10937_v12 = vadd.f32 %v10936_v53, %v10935_v11  ;;  %v15349_v13 = vadd.f32 %v5330_v55, %v5274_v42  ;;  %v11496_v11 = vld [vmem:[%s17234_s5 + $0x164] ss:$8 sps:$4 sm:$0xff]   ;;  %v11499_v35 = vld [vmem:[%s17234_s5 + $0x154] ss:$8 sps:$4 sm:$0xff]   ;;  %v17989_v47 = vmax.f32 %v15011_v0, 0.0 }
 0x3be   : > { %v5333_v52 = vpop.f32.mrf.mxu1  ;;  %6709 = vmatprep.subr.bf16.mxu1 %v11496_v11  ;;  %v11512_v11 = vld [vmem:[%s17234_s5 + $0x100] ss:$8 sps:$4 sm:$0xff]  }
 0x3bf   : > { %11153 = vrot.lane.b32.xlu1 %v11152_v28, %s17669_s29  ;;  %v5277_v62 = vadd.f32 %v10937_v12, %v5220_v37  ;;  %v17586_v55 = vmax.f32 %v15349_v13, 0.0  ;;  %6710 = vmatpush1.bf16.msra.mxu1 %v11494_v41  ;;  %v11502_v37 = vld [vmem:[%s17234_s5 + $0x144] ss:$8 sps:$4 sm:$0xff]   ;;  %v11500_v28 = vld [vmem:[%s17234_s5 + $0x140] ss:$8 sps:$4 sm:$0xff]  }
 0x3c0   : > { %v10970_v50 = vpop.f32.mrf.mxu1  ;;  %6711 = vmatprep.subr.bf16.mxu1 %v11499_v35  ;;  %v11505_v12 = vld [vmem:[%s17234_s5 + $0x134] ss:$8 sps:$4 sm:$0xff]   ;;  %v11523_v35 = vld [vmem:[%s17234_s5 + $0x1e4] ss:$8 sps:$4 sm:$0xff]  }
 0x3c1   : > { %v15352_v14 = vadd.f32 %v5333_v52, %v5277_v62  ;;  %v11503_v52 = vld [vmem:[%s17234_s5 + $0x130] ss:$8 sps:$4 sm:$0xff]   ;;  %v11508_v62 = vld [vmem:[%s17234_s5 + $0x124] ss:$8 sps:$4 sm:$0xff]   ;;  %v11506_v50 = vld [vmem:[%s17234_s5 + $0x120] ss:$8 sps:$4 sm:$0xff]  }
 0x3c2   : > { %v11517_v41 = vld [vmem:[%s17234_s5 + $0x1f4] ss:$8 sps:$4 sm:$0xff]  }
 0x3c3   : > { %v17587_v42 = vmax.f32 %v15352_v14, 0.0  ;;  %11163 = vrot.lane.b32.xlu1 %v11162_v58, %s17670_s11  ;;  %6712 = vmatpush1.bf16.msra.mxu1 %v11497_v57  ;;  %v11511_v58 = vld [vmem:[%s17234_s5 + $0x114] ss:$8 sps:$4 sm:$0xff]  }
 0x3c4   : > { %6713 = vmatprep.subr.bf16.mxu1 %v11502_v37  ;;  %v11529_v57 = vld [vmem:[%s17234_s5 + $0x1d4] ss:$8 sps:$4 sm:$0xff]   ;;  %v11527_v37 = vld [vmem:[%s17234_s5 + $0x1d0] ss:$8 sps:$4 sm:$0xff]  }
 0x3c5   : > { %v11157_v53 = vpack.i.bf16 %v17587_v42, %v17586_v55  ;;  %v11071_v55 = vunpack.i.h.bf16 %v15310_v15 }
 0x3c7   : > { %11158 = vrot.lane.b32.xlu0 %v11157_v53, %s17669_s29  ;;  %6714 = vmatpush1.bf16.msra.mxu1 %v11500_v28  ;;  %v11515_v53 = vld [vmem:[%s17234_s5 + $0x1f0] ss:$8 sps:$4 sm:$0xff]   ;;  %v11535_v28 = vld [vmem:[%s17234_s5 + $0x1c4] ss:$8 sps:$4 sm:$0xff]  }
 0x3c8   : > { %6715 = vmatprep.subr.bf16.mxu1 %v11505_v12  ;;  %v11533_v12 = vld [vmem:[%s17234_s5 + $0x1c0] ss:$8 sps:$4 sm:$0xff]  }
 0x3cb   : > { %6716 = vmatpush1.bf16.msra.mxu1 %v11503_v52  ;;  %v11541_v52 = vld [vmem:[%s17234_s5 + $0x1b4] ss:$8 sps:$4 sm:$0xff]  }
 0x3cc   : > { %6717 = vmatprep.subr.bf16.mxu1 %v11508_v62  ;;  %v11539_v62 = vld [vmem:[%s17234_s5 + $0x1b0] ss:$8 sps:$4 sm:$0xff]  }
 0x3cf   : > { %6718 = vmatpush1.bf16.msra.mxu1 %v11506_v50  ;;  %v11547_v50 = vld [vmem:[%s17234_s5 + $0x1a4] ss:$8 sps:$4 sm:$0xff]  }
 0x3d0   : > { %6719 = vmatprep.subr.bf16.mxu1 %v11511_v58  ;;  %v11545_v58 = vld [vmem:[%s17234_s5 + $0x1a0] ss:$8 sps:$4 sm:$0xff]  }
 0x3d3   : > { %6720 = vmatpush1.bf16.msra.mxu1 %v11509_v24 }
 0x3d4   : > { %6721 = vmatprep.subr.bf16.mxu1 %v11514_v4 }
 0x3d7   : > { %6722 = vmatpush1.bf16.msra.mxu1 %v11512_v11 }
 0x3d8   : > { %6723 = vmatprep.subr.bf16.mxu1 %v11517_v41  ;;  %v11553_v41 = vld [vmem:[%s17234_s5 + $0x194] ss:$8 sps:$4 sm:$0xff]  }
 0x3db   : > { %6724 = vmatpush2.bf16.msra.mxu1 %v11515_v53  ;;  %v11551_v53 = vld [vmem:[%s17234_s5 + $0x190] ss:$8 sps:$4 sm:$0xff]  }
 0x3dc   : > { %6725 = vmatprep.subr.bf16.mxu1 %v11523_v35  ;;  %v17981_v35 = vunpack.i.l.bf16 %v15117_v25 }
 0x3df   : > { %6726 = vmatpush2.bf16.msra.mxu1 %v11521_v39 }
 0x3e0   : > { %6727 = vmatprep.subr.bf16.mxu1 %v11529_v57 }
 0x3e3   : > { %6728 = vmatpush2.bf16.msra.mxu1 %v11527_v37 }
 0x3e4   : > { %6729 = vmatprep.subr.bf16.mxu1 %v11535_v28  ;;  %v17982_v28 = vld [vmem:[#allocation42_spill] sm:$0xff] }
 0x3e7   : > { %6730 = vmatpush2.bf16.msra.mxu1 %v11533_v12  ;;  %v17983_v12 = vmax.f32 %v17982_v28, 0.0  ;;  %v11557_v28 = vld [vmem:[%s17234_s5 + $0x180] ss:$8 sps:$4 sm:$0xff]  }
 0x3e8   : > { %6731 = vmatprep.subr.bf16.mxu1 %v11541_v52 }
 0x3eb   : > { %6732 = vmatpush2.bf16.msra.mxu1 %v11539_v62  ;;  %v17984_v62 = vmax.f32 %v14999_v48, 0.0 }
 0x3ec   : > { %6733 = vmatprep.subr.bf16.mxu1 %v11547_v50 }
 0x3ef   : > { %6734 = vmatpush2.bf16.msra.mxu1 %v11545_v58 }
 0x3f0   : > { %6735 = vmatprep.subr.bf16.mxu1 %v11553_v41  ;;  %v11559_v41 = vld [vmem:[%s17234_s5 + $0x184] ss:$8 sps:$4 sm:$0xff]  }
 0x3f3   : > { %6736 = vmatpush2.bf16.msra.mxu1 %v11551_v53 }
 0x3f4   : > { %6737 = vmatprep.subr.bf16.mxu1 %v11559_v41  ;;  %v17993_v41 = vmax.f32 %v15025_v56, 0.0 }
 0x3f7   : > { %6738 = vmatpush2.bf16.msra.mxu1 %v11557_v28  ;;  %v17996_v28 = vmax.f32 %v14978_v16, 0.0 }
 0x401   : > { %v15451_v24 = vpop.permute.xlu1 %11073 }
 0x402   : > { %v17590_v4 = vunpack.i.h.bf16 %v15451_v24  ;;  %v11075_v11 = vunpack.i.l.bf16 %v15451_v24 }
 0x404   : > { %v5593_v39 = vsel %vm391_vm8, %v17981_v35, %v11075_v11  ;;  %v5594_v57 = vsel %vm391_vm8, %v11075_v11, %v17590_v4 }
 0x405   : > { %v15467_v37 = vpop.permute.xlu0 %11083  ;;  %v15471_v52 = vmax.f32 %v17983_v12, %v5593_v39  ;;  %v15475_v50 = vmax.f32 %v17984_v62, %v5594_v57  ;;  %v11079_v58 = vpop.permute.xlu1 %11078  ;;  %v17986_v39 = vunpack.i.h.bf16 %v15187_v46  ;;  %v17987_v46 = vld [vmem:[#allocation45_spill] sm:$0xff] }
 0x406   : > { %v17596_v25 = vunpack.i.h.bf16 %v15467_v37  ;;  %v11085_v35 = vunpack.i.l.bf16 %v15467_v37  ;;  %v11081_v11 = vunpack.i.h.bf16 %v11079_v58  ;;  %v11080_v42 = vunpack.i.l.bf16 %v11079_v58 }
 0x407   : > { %17985 = vst [vmem:[#allocation50_spill] sm:$0xff] %v15475_v50  ;;  %v11172_v57 = vpack.i.bf16 %v15475_v50, %v15471_v52  ;;  %v17988_v27 = vmax.f32 %v17987_v46, 0.0 }
 0x408   : > { %v5599_v48 = vsel %vm391_vm8, %v17986_v39, %v11085_v35  ;;  %v5609_v53 = vsel %vm391_vm8, %v11071_v55, %v11080_v42  ;;  %v5610_v12 = vsel %vm391_vm8, %v11080_v42, %v11081_v11  ;;  %v5600_v62 = vsel %vm391_vm8, %v11085_v35, %v17596_v25  ;;  %v17991_v42 = vld [vmem:[#allocation44_spill] sm:$0xff] }
 0x409   : > { %v11089_v58 = vpop.permute.xlu0 %11088  ;;  %v15498_v39 = vmax.f32 %v17988_v27, %v5609_v53  ;;  %v15502_v4 = vmax.f32 %v17989_v47, %v5610_v12  ;;  %v15504_v31 = vpop.permute.xlu1 %11093  ;;  %11173 = vrot.lane.b32.xlu1 %v11172_v57, %s17670_s11  ;;  %v17992_v50 = vmax.f32 %v17991_v42, 0.0  ;;  %v15513_v46 = vmax.f32 %v17993_v41, %v5600_v62 }
 0x40a   : > { %v11091_v61 = vunpack.i.h.bf16 %v11089_v58  ;;  %v11090_v49 = vunpack.i.l.bf16 %v11089_v58  ;;  %v17995_v27 = vunpack.i.l.bf16 %v15304_v43  ;;  %v11095_v57 = vunpack.i.l.bf16 %v15504_v31 }
 0x40b   : > { %17990 = vst [vmem:[#allocation19_spill] sm:$0xff] %v15502_v4  ;;  %v15509_v35 = vmax.f32 %v17992_v50, %v5599_v48  ;;  %17994 = vst [vmem:[#allocation20_spill] sm:$0xff] %v15513_v46  ;;  %v11167_v53 = vpack.i.bf16 %v15502_v4, %v15498_v39  ;;  %v17997_v50 = vmax.f32 %v14988_v54, 0.0  ;;  %v18007_v4 = vmax.f32 %v15066_v7, 0.0 }
 0x40c   : > { %v5602_v0 = vsel %vm391_vm8, %v11090_v49, %v17995_v27  ;;  %v5608_v47 = vsel %vm391_vm8, %v11091_v61, %v11071_v55  ;;  %v11571_v27 = vld [vmem:[%s17234_s5 + $0x354] ss:$8 sps:$4 sm:$0x3f]   ;;  %v18010_v7 = vmax.f32 %v15058_v32, 0.0 }
 0x40d   : > { %v15524_v12 = vmax.f32 %v17996_v28, %v5602_v0  ;;  %v15528_v56 = vmax.f32 %v17997_v50, %v5608_v47  ;;  %v15530_v48 = vpop.permute.xlu0 %11103  ;;  %v11099_v49 = vpop.permute.xlu1 %11098  ;;  %11168 = vrot.lane.b32.xlu0 %v11167_v53, %s17670_s11  ;;  %v11182_v41 = vpack.i.bf16 %v15513_v46, %v15509_v35  ;;  %v17998_v0 = vunpack.i.l.bf16 %v15310_v15 }
 0x40e   : > { %v17595_v61 = vunpack.i.h.bf16 %v15530_v48  ;;  %v11105_v55 = vunpack.i.l.bf16 %v15530_v48  ;;  %v11101_v62 = vunpack.i.h.bf16 %v11099_v49  ;;  %v11100_v58 = vunpack.i.l.bf16 %v11099_v49 }
 0x40f   : > { %v11177_v16 = vpack.i.bf16 %v15528_v56, %v15524_v12  ;;  %v5605_v47 = vsel %vm391_vm8, %v17998_v0, %v11095_v57  ;;  %v17999_v53 = vmax.f32 %v15014_v38, 0.0  ;;  %v17598_v15 = vmov 65535  }
 0x410   : > { %v5611_v54 = vsel %vm391_vm8, %v11081_v11, %v11105_v55  ;;  %v5612_v42 = vsel %vm391_vm8, %v11105_v55, %v17595_v61  ;;  %v18001_v11 = vmax.f32 %v15098_v63, 0.0  ;;  %v5615_v55 = vsel %vm391_vm8, %v11100_v58, %v11101_v62 }
 0x411   : > { %v15552_v28 = vmax.f32 %v17999_v53, %v5611_v54  ;;  %v11109_v49 = vpop.permute.xlu0 %11108  ;;  %11178 = vrot.lane.b32.xlu1 %v11177_v16, %s17670_s11  ;;  %v11114_v61 = vpop.permute.xlu1 %11113  ;;  %11183 = vrot.lane.b32.xlu0 %v11182_v41, %s17670_s11  ;;  %v6636_v38 = vsel %vm6634_vm4, 4294967295, %v17598_v15  ;;  %v18003_v16 = vunpack.i.h.bf16 %v15504_v31 }
 0x412   : > { %v15556_v50 = vmax.f32 %v18001_v11, %v5612_v42  ;;  %v11111_v25 = vunpack.i.h.bf16 %v11109_v49  ;;  %v11110_v43 = vunpack.i.l.bf16 %v11109_v49  ;;  %v11116_v54 = vunpack.i.h.bf16 %v11114_v61  ;;  %v18004_v11 = vld [vmem:[#allocation24_spill] sm:$0xff] }
 0x413   : > { %18000 = vst [vmem:[#allocation35_spill] sm:$0xff] %v15552_v28  ;;  %v11115_v0 = vunpack.i.l.bf16 %v11114_v61  ;;  %v15566_v42 = vsel %vm6635_vm14, %v6636_v38, 0  ;;  %v5606_v53 = vsel %vm391_vm8, %v11095_v57, %v18003_v16  ;;  %v18005_v49 = vmax.f32 %v18004_v11, 0.0 }
 0x414   : > { %18002 = vst [vmem:[#allocation23_spill] sm:$0xff] %v15556_v50  ;;  %v11197_v63 = vpack.i.bf16 %v15556_v50, %v15552_v28  ;;  %v5616_v41 = vsel %vm391_vm8, %v11101_v62, %v11110_v43  ;;  %v6642_v15 = vand.u32 %v11571_v27, %v15566_v42  ;;  %v18006_v61 = vmax.f32 %v15062_v1, 0.0 }
 0x415   : > { %v15573_v46 = vmax.f32 %v18005_v49, %v5605_v47  ;;  %v5622_v50 = vsel %vm391_vm8, %v11115_v0, %v11116_v54  ;;  %v5621_v38 = vsel %vm391_vm8, %v11111_v25, %v11115_v0  ;;  %v15585_v28 = vmax.f32 %v18007_v4, %v5616_v41  ;;  %v11119_v57 = vpop.permute.xlu0 %11118 }
 0x416   : > { %v15579_v36 = vmax.f32 %v18006_v61, %v5615_v55  ;;  %11198 = vrot.lane.b32.xlu1 %v11197_v63, %s17670_s11  ;;  %v18008_v47 = vmax.f32 %v15129_v10, 0.0  ;;  %v18009_v27 = vmax.f32 %v15104_v40, 0.0  ;;  %v15596_v55 = vpop.permute.xlu1 %11123  ;;  %v11121_v16 = vunpack.i.h.bf16 %v11119_v57  ;;  %6837 = vmatprep.subr.bf16.mxu1 %v6642_v15 }
 0x417   : > { %v11120_v11 = vunpack.i.l.bf16 %v11119_v57  ;;  %v15600_v4 = vmax.f32 %v18010_v7, %v5606_v53  ;;  %v11126_v0 = vunpack.i.h.bf16 %v15596_v55  ;;  %v11125_v63 = vunpack.i.l.bf16 %v15596_v55 }
 0x418   : > { %v15590_v62 = vmax.f32 %v18008_v47, %v5622_v50  ;;  %v15594_v1 = vmax.f32 %v18009_v27, %v5621_v38  ;;  %v11187_v10 = vpack.i.bf16 %v15585_v28, %v15579_v36  ;;  %v5620_v50 = vsel %vm391_vm8, %v11121_v16, %v11111_v25 }
 0x419   : > { %v5614_v40 = vsel %vm391_vm8, %v11120_v11, %v11100_v58  ;;  %v5617_v15 = vsel %vm391_vm8, %v11110_v43, %v11125_v63  ;;  %v5618_v32 = vsel %vm391_vm8, %v11125_v63, %v11126_v0  ;;  %v18011_v53 = vmax.f32 %v15143_v17, 0.0  ;;  %v15622_v58 = vpop.permute.xlu0 %11128 }
 0x41a   : > { %v11202_v49 = vpack.i.bf16 %v15590_v62, %v15594_v1  ;;  %v18012_v61 = vmax.f32 %v15151_v21, 0.0  ;;  %11188 = vrot.lane.b32.xlu0 %v11187_v10, %s17670_s11  ;;  %v18013_v25 = vmax.f32 %v15107_v59, 0.0  ;;  %v18014_v43 = vmax.f32 %v15197_v26, 0.0  ;;  %v15633_v27 = vpop.permute.xlu1 %11133 }
 0x41b   : > { %v15616_v41 = vmax.f32 %v18011_v53, %v5614_v40  ;;  %v17603_v17 = vunpack.i.h.bf16 %v15622_v58  ;;  %v11130_v21 = vunpack.i.l.bf16 %v15622_v58  ;;  %v11136_v16 = vunpack.i.h.bf16 %v15633_v27 }
 0x41c   : > { %v15620_v38 = vmax.f32 %v18012_v61, %v5620_v50  ;;  %v15627_v57 = vmax.f32 %v18013_v25, %v5617_v15  ;;  %v15631_v47 = vmax.f32 %v18014_v43, %v5618_v32  ;;  %11203 = vrot.lane.b32.xlu1 %v11202_v49, %s17670_s11  ;;  %v11135_v11 = vunpack.i.l.bf16 %v15633_v27 }
 0x41d   : > { %v11192_v59 = vpack.i.bf16 %v15600_v4, %v15573_v46  ;;  %v5623_v7 = vsel %vm391_vm8, %v11116_v54, %v11130_v21  ;;  %v5624_v26 = vsel %vm391_vm8, %v11130_v21, %v17603_v17  ;;  %v15648_v10 = vpop.permute.xlu0 %11143  ;;  %v18015_v32 = vmax.f32 %v15132_v60, 0.0 }
 0x41e   : > { %v11212_v63 = vpack.i.bf16 %v15631_v47, %v15627_v57  ;;  %v11146_v40 = vunpack.i.h.bf16 %v15648_v10  ;;  %v11145_v50 = vunpack.i.l.bf16 %v15648_v10  ;;  %v11139_v49 = vpop.permute.xlu1 %11138  ;;  %v11207_v54 = vpack.i.bf16 %v15620_v38, %v15616_v41 }
 0x41f   : > { %11193 = vrot.lane.b32.xlu0 %v11192_v59, %s17670_s11  ;;  %v5838_v15 = vsel %vm815_vm1, %v11135_v11, %v11136_v16  ;;  %v15661_v53 = vmax.f32 %v18015_v32, %v5623_v7  ;;  %v18016_v61 = vmax.f32 %v15225_v29, 0.0  ;;  %v11141_v43 = vunpack.i.h.bf16 %v11139_v49 }
 0x420   : > { %11213 = vrot.lane.b32.xlu1 %v11212_v63, %s17670_s11  ;;  %v11140_v21 = vunpack.i.l.bf16 %v11139_v49  ;;  %v5844_v59 = vsel %vm815_vm1, %v11145_v50, %v11146_v40  ;;  %v5916_v60 = vmax.f32 %v15261_v33, %v5838_v15  ;;  %v11532_v33 = vld [vmem:[%s17234_s5 + $0x254] ss:$8 sps:$4 sm:$0xff]   ;;  %v18017_v15 = vmax.f32 %v15308_v20, 0.0 }
 0x421   : > { %v15665_v25 = vmax.f32 %v18016_v61, %v5624_v26  ;;  %v5843_v63 = vsel %vm815_vm1, %v11141_v43, %v11145_v50  ;;  %v5923_v7 = vmax.f32 %v15266_v3, %v5844_v59  ;;  %v11518_v50 = vld [vmem:[%s17234_s5 + $0x270] ss:$8 sps:$4 sm:$0xff]   ;;  %v11524_v3 = vld [vmem:[%s17234_s5 + $0x260] ss:$8 sps:$4 sm:$0xff]   ;;  %v18021_v20 = vmax.f32 %v15016_v22, 0.0 }
 0x422   : > { %v5837_v17 = vsel %vm815_vm1, %v11140_v21, %v11135_v11  ;;  %v5922_v29 = vmax.f32 %v15280_v45, %v5843_v63  ;;  %v11526_v11 = vld [vmem:[%s17234_s5 + $0x264] ss:$8 sps:$4 sm:$0xff]   ;;  %v18018_v21 = vunpack.i.h.bf16 %v15451_v24  ;;  %v18019_v63 = vunpack.i.h.bf16 %v15467_v37  ;;  %v11544_v22 = vld [vmem:[%s17234_s5 + $0x234] ss:$8 sps:$4 sm:$0xff]  }
 0x423   : > { %11208 = vrot.lane.b32.xlu0 %v11207_v54, %s17670_s11  ;;  %v5915_v26 = vmax.f32 %v15284_v19, %v5837_v17  ;;  %v5958_v32 = vpack.c.bf16 %v5923_v7, %v5916_v60  ;;  %v11217_v49 = vpack.i.bf16 %v15665_v25, %v15661_v53  ;;  %v11530_v54 = vld [vmem:[%s17234_s5 + $0x250] ss:$8 sps:$4 sm:$0xff]   ;;  %v18020_v7 = vmax.f32 %v15302_v8, 0.0 }
 0x424   : > { %v18022_v24 = vmax.f32 %v15039_v2, 0.0  ;;  %v18033_v55 = vmax.f32 %v15205_v44, 0.0  ;;  %v11563_v44 = vld [vmem:[%s17234_s5 + $0x2f0] ss:$8 sps:$4 sm:$0xff]  }
 0x425   : > { %v5957_v61 = vpack.c.bf16 %v5922_v29, %v5915_v26  ;;  %6676 = vmatprep.mubr.bf16.mxu0 %v5958_v32  ;;  %v11538_v26 = vld [vmem:[%s17234_s5 + $0x244] ss:$8 sps:$4 sm:$0xff]  }
 0x427   : > { %11218 = vrot.lane.b32.xlu0 %v11217_v49, %s17670_s11  ;;  %6677 = vmatmul.mubr.bf16.vlgmr.msra.gmra.mxu0 %v5957_v61 }
 0x428   : > { %6771 = vmatpush1.bf16.msra.mxu0 %v11518_v50  ;;  %v11536_v50 = vld [vmem:[%s17234_s5 + $0x240] ss:$8 sps:$4 sm:$0xff]  }
 0x429   : > { %6772 = vmatprep.subr.bf16.mxu0 %v11526_v11  ;;  %v11149_v45 = vpop.permute.xlu0 %11148 }
 0x42a   : > { %v11151_v19 = vunpack.i.h.bf16 %v11149_v45  ;;  %v11150_v17 = vunpack.i.l.bf16 %v11149_v45 }
 0x42c   : > { %6773 = vmatpush1.bf16.msra.mxu0 %v11524_v3  ;;  %v15697_v43 = vmax.f32 %v18017_v15, %v11151_v19  ;;  %v5595_v59 = vsel %vm391_vm8, %v18018_v21, %v11150_v17  ;;  %v5601_v60 = vsel %vm391_vm8, %v18019_v63, %v11151_v19  ;;  %v15707_v29 = vmax.f32 %v18020_v7, %v11150_v17  ;;  %v11542_v3 = vld [vmem:[%s17234_s5 + $0x230] ss:$8 sps:$4 sm:$0xff]   ;;  %v11550_v63 = vld [vmem:[%s17234_s5 + $0x224] ss:$8 sps:$4 sm:$0xff]  }
 0x42d   : > { %6774 = vmatprep.subr.bf16.mxu0 %v11532_v33  ;;  %v15714_v32 = vmax.f32 %v18021_v20, %v5595_v59  ;;  %v15718_v49 = vmax.f32 %v18022_v24, %v5601_v60  ;;  %v18023_v33 = vunpack.i.h.bf16 %v15530_v48  ;;  %v18024_v19 = vmax.f32 %v15329_v5, 0.0 }
 0x42e   : > { %v18026_v21 = vmax.f32 %v15322_v18, 0.0  ;;  %v18027_v48 = vmax.f32 %v15123_v6, 0.0  ;;  %v18028_v5 = vmax.f32 %v15078_v30, 0.0  ;;  %v11556_v6 = vld [vmem:[%s17234_s5 + $0x214] ss:$8 sps:$4 sm:$0xff]  }
 0x42f   : > { %v11227_v37 = vpack.i.bf16 %v15697_v43, %v15718_v49  ;;  %v11222_v8 = vpack.i.bf16 %v15707_v29, %v15714_v32 }
 0x430   : > { %6775 = vmatpush1.bf16.msra.mxu0 %v11530_v54  ;;  %v18025_v54 = vunpack.i.h.bf16 %v15504_v31 }
 0x431   : > { %6776 = vmatprep.subr.bf16.mxu0 %v11538_v26  ;;  %11228 = vrot.lane.b32.xlu0 %v11227_v37, %s17670_s11  ;;  %v11154_v2 = vpop.permute.xlu1 %11153  ;;  %v11548_v26 = vld [vmem:[%s17234_s5 + $0x220] ss:$8 sps:$4 sm:$0xff]   ;;  %v11554_v37 = vld [vmem:[%s17234_s5 + $0x210] ss:$8 sps:$4 sm:$0xff]  }
 0x432   : > { %11223 = vrot.lane.b32.xlu1 %v11222_v8, %s17670_s11  ;;  %v11156_v61 = vunpack.i.h.bf16 %v11154_v2  ;;  %v11155_v11 = vunpack.i.l.bf16 %v11154_v2  ;;  %v18029_v8 = vmax.f32 %v15352_v14, 0.0  ;;  %v18030_v2 = vunpack.i.h.bf16 %v15622_v58 }
 0x433   : > { %v18032_v14 = vmax.f32 %v15177_v9, 0.0  ;;  %v11565_v9 = vld [vmem:[%s17234_s5 + $0x2f4] ss:$8 sps:$4 sm:$0xff]  }
 0x434   : > { %6777 = vmatpush1.bf16.msra.mxu0 %v11536_v50  ;;  %v5613_v45 = vsel %vm391_vm8, %v18023_v33, %v11156_v61  ;;  %v15740_v17 = vmax.f32 %v18024_v19, %v11156_v61  ;;  %v5607_v15 = vsel %vm391_vm8, %v18025_v54, %v11155_v11  ;;  %v15747_v59 = vmax.f32 %v18026_v21, %v11155_v11  ;;  %v11562_v33 = vld [vmem:[%s17234_s5 + $0x204] ss:$8 sps:$4 sm:$0xff]   ;;  %v11560_v19 = vld [vmem:[%s17234_s5 + $0x200] ss:$8 sps:$4 sm:$0xff]   ;;  %v11574_v21 = vld [vmem:[%s17234_s5 + $0x2d4] ss:$8 sps:$4 sm:$0xff]  }
 0x435   : > { %6778 = vmatprep.subr.bf16.mxu0 %v11544_v22  ;;  %v15754_v60 = vmax.f32 %v18027_v48, %v5613_v45  ;;  %v15758_v7 = vmax.f32 %v18028_v5, %v5607_v15  ;;  %v18031_v11 = vmax.f32 %v15349_v13, 0.0  ;;  %v11568_v54 = vld [vmem:[%s17234_s5 + $0x2e4] ss:$8 sps:$4 sm:$0xff]   ;;  %v11566_v15 = vld [vmem:[%s17234_s5 + $0x2e0] ss:$8 sps:$4 sm:$0xff]  }
 0x436   : > { %v11580_v48 = vld [vmem:[%s17234_s5 + $0x2c4] ss:$8 sps:$4 sm:$0xff]   ;;  %v11578_v5 = vld [vmem:[%s17234_s5 + $0x2c0] ss:$8 sps:$4 sm:$0xff]  }
 0x437   : > { %v11237_v31 = vpack.i.bf16 %v15740_v17, %v15754_v60  ;;  %v11232_v18 = vpack.i.bf16 %v15747_v59, %v15758_v7 }
 0x438   : > { %6779 = vmatpush1.bf16.msra.mxu0 %v11542_v3 }
 0x439   : > { %6780 = vmatprep.subr.bf16.mxu0 %v11550_v63  ;;  %v11159_v20 = vpop.permute.xlu0 %11158  ;;  %11238 = vrot.lane.b32.xlu0 %v11237_v31, %s17670_s11  ;;  %v11572_v63 = vld [vmem:[%s17234_s5 + $0x2d0] ss:$8 sps:$4 sm:$0xff]   ;;  %v11586_v31 = vld [vmem:[%s17234_s5 + $0x2b4] ss:$8 sps:$4 sm:$0xff]  }
 0x43a   : > { %11233 = vrot.lane.b32.xlu1 %v11232_v18, %s17670_s11  ;;  %v11161_v30 = vunpack.i.h.bf16 %v11159_v20  ;;  %v11160_v24 = vunpack.i.l.bf16 %v11159_v20  ;;  %v11584_v18 = vld [vmem:[%s17234_s5 + $0x2b0] ss:$8 sps:$4 sm:$0xff]   ;;  %v11598_v20 = vld [vmem:[%s17234_s5 + $0x294] ss:$8 sps:$4 sm:$0xff]  }
 0x43c   : > { %6781 = vmatpush1.bf16.msra.mxu0 %v11548_v26  ;;  %v15777_v50 = vmax.f32 %v18029_v8, %v11161_v30  ;;  %v5619_v22 = vsel %vm391_vm8, %v11126_v0, %v11160_v24  ;;  %v5625_v61 = vsel %vm391_vm8, %v18030_v2, %v11161_v30  ;;  %v15787_v3 = vmax.f32 %v18031_v11, %v11160_v24  ;;  %v11592_v26 = vld [vmem:[%s17234_s5 + $0x2a4] ss:$8 sps:$4 sm:$0xff]   ;;  %v11596_v30 = vld [vmem:[%s17234_s5 + $0x290] ss:$8 sps:$4 sm:$0xff]   ;;  %v15857_v8 = vpop.permute.xlu1 %11163 }
 0x43d   : > { %6782 = vmatprep.subr.bf16.mxu0 %v11556_v6  ;;  %v15794_v45 = vmax.f32 %v18032_v14, %v5619_v22  ;;  %v15798_v0 = vmax.f32 %v18033_v55, %v5625_v61  ;;  %v11590_v6 = vld [vmem:[%s17234_s5 + $0x2a0] ss:$8 sps:$4 sm:$0xff]   ;;  %v11604_v24 = vld [vmem:[%s17234_s5 + $0x284] ss:$8 sps:$4 sm:$0xff]   ;;  %v11166_v22 = vunpack.i.h.bf16 %v15857_v8  ;;  %v11165_v2 = vunpack.i.l.bf16 %v15857_v8 }
 0x43f   : > { %v11247_v58 = vpack.i.bf16 %v15777_v50, %v15798_v0  ;;  %v11242_v13 = vpack.i.bf16 %v15787_v3, %v15794_v45 }
 0x440   : > { %6783 = vmatpush1.bf16.msra.mxu0 %v11554_v37  ;;  %v11602_v37 = vld [vmem:[%s17234_s5 + $0x280] ss:$8 sps:$4 sm:$0xff]  }
 0x441   : > { %6784 = vmatprep.subr.bf16.mxu0 %v11562_v33  ;;  %11248 = vrot.lane.b32.xlu0 %v11247_v58, %s17670_s11  ;;  %v5850_v33 = vsel %vm815_vm1, %v11165_v2, %v11166_v22 }
 0x442   : > { %11243 = vrot.lane.b32.xlu1 %v11242_v13, %s17670_s11 }
 0x444   : > { %6785 = vmatpush1.bf16.msra.mxu0 %v11560_v19 }
 0x445   : > { %6786 = vmatprep.subr.bf16.mxu0 %v11565_v9 }
 0x448   : > { %6787 = vmatpush2.bf16.msra.mxu0 %v11563_v44 }
 0x449   : > { %6788 = vmatprep.subr.bf16.mxu0 %v11568_v54 }
 0x44c   : > { %6789 = vmatpush2.bf16.msra.mxu0 %v11566_v15 }
 0x44d   : > { %6790 = vmatprep.subr.bf16.mxu0 %v11574_v21  ;;  %v5930_v21 = vmax.f32 %v15338_v51, %v5850_v33 }
 0x450   : > { %6791 = vmatpush2.bf16.msra.mxu0 %v11572_v63 }
 0x451   : > { %6792 = vmatprep.subr.bf16.mxu0 %v11580_v48 }
 0x454   : > { %6793 = vmatpush2.bf16.msra.mxu0 %v11578_v5 }
 0x455   : > { %6794 = vmatprep.subr.bf16.mxu0 %v11586_v31 }
 0x458   : > { %6795 = vmatpush2.bf16.msra.mxu0 %v11584_v18 }
 0x459   : > { %6796 = vmatprep.subr.bf16.mxu0 %v11592_v26  ;;  %v11569_v26 = vld [vmem:[%s17234_s5 + $0x350] ss:$8 sps:$4 sm:$0x3f]  }
 0x45a   : > { %v6639_v33 = vand.u32 %v11569_v26, %v15566_v42  ;;  %v11583_v26 = vld [vmem:[%s17234_s5 + $0x334] ss:$8 sps:$4 sm:$0xff]  }
 0x45c   : > { %6797 = vmatpush2.bf16.msra.mxu0 %v11590_v6 }
 0x45d   : > { %6798 = vmatprep.subr.bf16.mxu0 %v11598_v20 }
 0x460   : > { %6799 = vmatpush2.bf16.msra.mxu0 %v11596_v30 }
 0x461   : > { %6800 = vmatprep.subr.bf16.mxu0 %v11604_v24 }
 0x464   : > { %6801 = vmatpush2.bf16.msra.mxu0 %v11602_v37 }
 0x47b   : > { %v15861_v61 = vpop.permute.xlu1 %11173 }
 0x47c   : > { %v11176_v14 = vunpack.i.h.bf16 %v15861_v61  ;;  %v11175_v55 = vunpack.i.l.bf16 %v15861_v61 }
 0x47e   : > { %v5839_v48 = vsel %vm815_vm1, %v11136_v16, %v11175_v55  ;;  %v5840_v18 = vsel %vm815_vm1, %v11175_v55, %v11176_v14 }
 0x47f   : > { %v11169_v11 = vpop.permute.xlu0 %11168  ;;  %v5917_v37 = vmax.f32 %v15242_v34, %v5839_v48  ;;  %v11577_v34 = vld [vmem:[%s17234_s5 + $0x344] ss:$8 sps:$4 sm:$0xff]  }
 0x480   : > { %v11171_v58 = vunpack.i.h.bf16 %v11169_v11  ;;  %v11170_v13 = vunpack.i.l.bf16 %v11169_v11 }
 0x482   : > { %v5856_v9 = vsel %vm815_vm1, %v11170_v13, %v11171_v58 }
 0x483   : > { %v11179_v19 = vpop.permute.xlu1 %11178  ;;  %v15869_v44 = vpop.permute.xlu0 %11183  ;;  %v5937_v63 = vmax.f32 %v15498_v39, %v5856_v9 }
 0x484   : > { %v11181_v54 = vunpack.i.h.bf16 %v11179_v19  ;;  %v11180_v15 = vunpack.i.l.bf16 %v11179_v19  ;;  %v11186_v5 = vunpack.i.h.bf16 %v15869_v44  ;;  %v11185_v31 = vunpack.i.l.bf16 %v15869_v44 }
 0x485   : > { %v5965_v6 = vpack.c.bf16 %v5937_v63, %v5930_v21  ;;  %v11575_v21 = vld [vmem:[%s17234_s5 + $0x340] ss:$8 sps:$4 sm:$0xff]  }
 0x486   : > { %v5855_v51 = vsel %vm815_vm1, %v11181_v54, %v11170_v13  ;;  %v5849_v39 = vsel %vm815_vm1, %v11180_v15, %v11165_v2  ;;  %v5845_v27 = vsel %vm815_vm1, %v11146_v40, %v11185_v31  ;;  %v5846_v24 = vsel %vm815_vm1, %v11185_v31, %v11186_v5 }
 0x487   : > { %v5929_v20 = vmax.f32 %v15524_v12, %v5849_v39  ;;  %v5936_v30 = vmax.f32 %v15528_v56, %v5855_v51  ;;  %v5924_v11 = vmax.f32 %v15270_v23, %v5845_v27  ;;  %6686 = vmatprep.mubr.bf16.mxu0 %v5965_v6  ;;  %v5918_v2 = vmax.f32 %v15471_v52, %v5840_v18 }
 0x488   : > { %v15889_v16 = vpop.permute.xlu1 %11198  ;;  %v5925_v10 = vmax.f32 %v15509_v35, %v5846_v24 }
 0x489   : > { %v5964_v40 = vpack.c.bf16 %v5936_v30, %v5929_v20  ;;  %v5959_v55 = vpack.c.bf16 %v5924_v11, %v5917_v37  ;;  %v11201_v12 = vunpack.i.h.bf16 %v15889_v16  ;;  %v11200_v56 = vunpack.i.l.bf16 %v15889_v16  ;;  %v18035_v37 = vld [vmem:[#allocation19_spill] sm:$0xff] }
 0x48a   : > { %v5960_v13 = vpack.c.bf16 %v5925_v10, %v5918_v2  ;;  %v11581_v2 = vld [vmem:[%s17234_s5 + $0x330] ss:$8 sps:$4 sm:$0xff]  }
 0x48b   : > { %6687 = vmatmul.mubr.bf16.gmra.mxu0 %v5964_v40  ;;  %v5858_v42 = vsel %vm815_vm1, %v11200_v56, %v11201_v12  ;;  %v5857_v63 = vsel %vm815_vm1, %v11171_v58, %v11200_v56  ;;  %v18034_v58 = vld [vmem:[#allocation35_spill] sm:$0xff] }
 0x48c   : > { %v11189_v19 = vpop.permute.xlu0 %11188  ;;  %6739 = vmatprep.mubr.bf16.mxu1 %v5960_v13  ;;  %v5939_v20 = vmax.f32 %v18034_v58, %v5858_v42  ;;  %v5938_v11 = vmax.f32 %v18035_v37, %v5857_v63  ;;  %v11593_v58 = vld [vmem:[%s17234_s5 + $0x310] ss:$8 sps:$4 sm:$0xff]  }
 0x48d   : > { %v11191_v23 = vunpack.i.h.bf16 %v11189_v19  ;;  %v11190_v9 = vunpack.i.l.bf16 %v11189_v19  ;;  %6740 = vmatmul.mubr.bf16.vlgmr.msra.gmra.mxu1 %v5959_v55  ;;  %v11589_v55 = vld [vmem:[%s17234_s5 + $0x324] ss:$8 sps:$4 sm:$0xff]  }
 0x48e   : > { %v11204_v52 = vpop.permute.xlu1 %11203  ;;  %6838 = vmatpush1.bf16.msra.mxu1 %v6639_v33 }
 0x48f   : > { %v11206_v35 = vunpack.i.h.bf16 %v11204_v52  ;;  %v11205_v54 = vunpack.i.l.bf16 %v11204_v52  ;;  %v5862_v15 = vsel %vm815_vm1, %v11190_v9, %v11191_v23  ;;  %6839 = vmatprep.subr.bf16.mxu1 %v11577_v34 }
 0x490   : > { %v5944_v18 = vmax.f32 %v15579_v36, %v5862_v15 }
 0x491   : > { %v5868_v48 = vsel %vm815_vm1, %v11205_v54, %v11206_v35  ;;  %v15915_v31 = vpop.permute.xlu0 %11193 }
 0x492   : > { %v11196_v51 = vunpack.i.h.bf16 %v15915_v31  ;;  %v11195_v39 = vunpack.i.l.bf16 %v15915_v31  ;;  %v15923_v6 = vpop.permute.xlu1 %11213  ;;  %v5951_v27 = vmax.f32 %v15594_v1, %v5868_v48  ;;  %6840 = vmatpush1.bf16.msra.mxu1 %v11575_v21 }
 0x493   : > { %v11216_v1 = vunpack.i.h.bf16 %v15923_v6  ;;  %v11215_v10 = vunpack.i.l.bf16 %v15923_v6  ;;  %6841 = vmatprep.subr.bf16.mxu1 %v11583_v26 }
 0x494   : > { %v5851_v30 = vsel %vm815_vm1, %v11166_v22, %v11195_v39  ;;  %v5852_v36 = vsel %vm815_vm1, %v11195_v39, %v11196_v51  ;;  %v5972_v24 = vpack.c.bf16 %v5951_v27, %v5944_v18  ;;  %v18036_v22 = vld [vmem:[#allocation48_spill] sm:$0xff] }
 0x495   : > { %v11209_v40 = vpop.permute.xlu0 %11208  ;;  %v5932_v8 = vmax.f32 %v15573_v46, %v5852_v36  ;;  %v5931_v33 = vmax.f32 %v18036_v22, %v5851_v30  ;;  %v11587_v46 = vld [vmem:[%s17234_s5 + $0x320] ss:$8 sps:$4 sm:$0xff]   ;;  %v5864_v15 = vsel %vm815_vm1, %v11215_v10, %v11216_v1 }
 0x496   : > { %v11211_v56 = vunpack.i.h.bf16 %v11209_v40  ;;  %v11210_v13 = vunpack.i.l.bf16 %v11209_v40  ;;  %6696 = vmatprep.mubr.bf16.mxu0 %v5972_v24  ;;  %6842 = vmatpush1.bf16.msra.mxu1 %v11581_v2 }
 0x497   : > { %v5967_v19 = vpack.c.bf16 %v5939_v20, %v5932_v8  ;;  %v5966_v34 = vpack.c.bf16 %v5938_v11, %v5931_v33  ;;  %6843 = vmatprep.subr.bf16.mxu1 %v11589_v55  ;;  %v18038_v55 = vld [vmem:[#allocation20_spill] sm:$0xff] }
 0x498   : > { %v5861_v52 = vsel %vm815_vm1, %v11210_v13, %v11190_v9  ;;  %v5867_v42 = vsel %vm815_vm1, %v11211_v56, %v11205_v54  ;;  %v11595_v9 = vld [vmem:[%s17234_s5 + $0x314] ss:$8 sps:$4 sm:$0xff]   ;;  %v5863_v54 = vsel %vm815_vm1, %v11191_v23, %v11215_v10 }
 0x499   : > { %v15952_v21 = vpop.permute.xlu0 %11218  ;;  %6749 = vmatprep.mubr.bf16.mxu1 %v5967_v19  ;;  %v5943_v63 = vmax.f32 %v15616_v41, %v5861_v52  ;;  %v5950_v48 = vmax.f32 %v15620_v38, %v5867_v42  ;;  %v5946_v38 = vmax.f32 %v15627_v57, %v5864_v15  ;;  %v5945_v20 = vmax.f32 %v15585_v28, %v5863_v54  ;;  %v11599_v57 = vld [vmem:[%s17234_s5 + $0x300] ss:$8 sps:$4 sm:$0xff]  }
 0x49a   : > { %v11221_v18 = vunpack.i.h.bf16 %v15952_v21  ;;  %v11220_v26 = vunpack.i.l.bf16 %v15952_v21  ;;  %6750 = vmatmul.mubr.bf16.gmra.mxu1 %v5966_v34 }
 0x49b   : > { %v5971_v39 = vpack.c.bf16 %v5950_v48, %v5943_v63  ;;  %6844 = vmatpush1.bf16.msra.mxu1 %v11587_v46 }
 0x49c   : > { %v5869_v27 = vsel %vm815_vm1, %v11206_v35, %v11220_v26  ;;  %v5870_v41 = vsel %vm815_vm1, %v11220_v26, %v11221_v18  ;;  %6845 = vmatprep.subr.bf16.mxu1 %v11595_v9  ;;  %v11601_v35 = vld [vmem:[%s17234_s5 + $0x304] ss:$8 sps:$4 sm:$0xff]  }
 0x49d   : > { %6697 = vmatmul.mubr.bf16.gmra.mxu0 %v5971_v39  ;;  %v5953_v23 = vmax.f32 %v15661_v53, %v5870_v41  ;;  %v5952_v30 = vmax.f32 %v15590_v62, %v5869_v27  ;;  %v18037_v53 = vmov 0   ;;  %v18040_v41 = vld [vmem:[#allocation23_spill] sm:$0xff] }
 0x49f   : > { %v5974_v36 = vpack.c.bf16 %v5953_v23, %v5946_v38  ;;  %v5973_v24 = vpack.c.bf16 %v5952_v30, %v5945_v20  ;;  %6846 = vmatpush1.bf16.msra.mxu1 %v11593_v58 }
 0x4a0   : > { %6847 = vmatprep.subr.bf16.mxu1 %v11601_v35 }
 0x4a1   : > { %6759 = vmatprep.mubr.bf16.mxu1 %v5974_v36 }
 0x4a2   : > { %6760 = vmatmul.mubr.bf16.gmra.mxu1 %v5973_v24 }
 0x4a3   : > { %6865 = vmatprep.mubr.bf16.mxu1 %v18037_v53  ;;  %6848 = vmatpush1.bf16.msra.mxu1 %v11599_v57  ;;  %v11229_v28 = vpop.permute.xlu0 %11228 }
 0x4a4   : > { %v11224_v62 = vpop.permute.xlu1 %11223  ;;  %v11231_v37 = vunpack.i.h.bf16 %v11229_v28  ;;  %v11230_v11 = vunpack.i.l.bf16 %v11229_v28 }
 0x4a5   : > { %v11226_v2 = vunpack.i.h.bf16 %v11224_v62  ;;  %v11225_v10 = vunpack.i.l.bf16 %v11224_v62 }
 0x4a6   : > { %v5928_v40 = vmax.f32 %v15697_v43, %v11231_v37  ;;  %v5847_v8 = vsel %vm815_vm1, %v11186_v5, %v11230_v11  ;;  %v5848_v22 = vsel %vm815_vm1, %v11230_v11, %v11231_v37  ;;  %v18039_v43 = vld [vmem:[#allocation50_spill] sm:$0xff] }
 0x4a7   : > { %v5921_v33 = vmax.f32 %v15707_v29, %v11226_v2  ;;  %v5926_v56 = vmax.f32 %v18038_v55, %v5847_v8  ;;  %v5841_v13 = vsel %vm815_vm1, %v11176_v14, %v11225_v10  ;;  %v5842_v19 = vsel %vm815_vm1, %v11225_v10, %v11226_v2 }
 0x4a8   : > { %v5927_v34 = vmax.f32 %v15718_v49, %v5848_v22  ;;  %v5919_v42 = vmax.f32 %v18039_v43, %v5841_v13  ;;  %v5920_v44 = vmax.f32 %v15714_v32, %v5842_v19 }
 0x4a9   : > { %v5963_v52 = vpack.c.bf16 %v5928_v40, %v5921_v33 }
 0x4aa   : > { %v5961_v5 = vpack.c.bf16 %v5926_v56, %v5919_v42  ;;  %v5962_v46 = vpack.c.bf16 %v5927_v34, %v5920_v44 }
 0x4ab   : > { %10425 = vmatmul.mubr.msk.bf16.vlgmr.msra.gmra.mxu1 %vm6624_vm3, %v5963_v52  ;;  %v11239_v29 = vpop.permute.xlu0 %11238 }
 0x4ac   : > { %v11234_v15 = vpop.permute.xlu1 %11233  ;;  %6875 = vmatprep.mubr.bf16.mxu1 %v18037_v53  ;;  %v11241_v61 = vunpack.i.h.bf16 %v11239_v29  ;;  %v11240_v63 = vunpack.i.l.bf16 %v11239_v29  ;;  %6802 = vmatprep.mubr.bf16.mxu0 %v5962_v46 }
 0x4ad   : > { %v11236_v14 = vunpack.i.h.bf16 %v11234_v15  ;;  %v11235_v48 = vunpack.i.l.bf16 %v11234_v15  ;;  %6803 = vmatmul.mubr.bf16.vlgmr.msra.gmra.mxu0 %v5961_v5 }
 0x4ae   : > { %v5942_v49 = vmax.f32 %v15740_v17, %v11241_v61  ;;  %v5859_v32 = vsel %vm815_vm1, %v11201_v12, %v11240_v63  ;;  %v5860_v9 = vsel %vm815_vm1, %v11240_v63, %v11241_v61 }
 0x4af   : > { %v5935_v54 = vmax.f32 %v15747_v59, %v11236_v14  ;;  %v5853_v26 = vsel %vm815_vm1, %v11196_v51, %v11235_v48  ;;  %v5854_v39 = vsel %vm815_vm1, %v11235_v48, %v11236_v14  ;;  %v5941_v27 = vmax.f32 %v15754_v60, %v5860_v9 }
 0x4b0   : > { %v5940_v38 = vmax.f32 %v18040_v41, %v5859_v32  ;;  %v5934_v17 = vmax.f32 %v15758_v7, %v5854_v39  ;;  %v5933_v16 = vmax.f32 %v15600_v4, %v5853_v26 }
 0x4b1   : > { %v5970_v58 = vpack.c.bf16 %v5942_v49, %v5935_v54 }
 0x4b2   : > { %v5969_v12 = vpack.c.bf16 %v5941_v27, %v5934_v17  ;;  %v5968_v23 = vpack.c.bf16 %v5940_v38, %v5933_v16 }
 0x4b3   : > { %10426 = vmatmul.mubr.msk.bf16.gmra.mxu1 %vm6624_vm3, %v5970_v58  ;;  %v11249_v59 = vpop.permute.xlu0 %11248 }
 0x4b4   : > { %v11244_v20 = vpop.permute.xlu1 %11243  ;;  %6885 = vmatprep.mubr.bf16.mxu1 %v18037_v53  ;;  %v11251_v31 = vunpack.i.h.bf16 %v11249_v59  ;;  %v11250_v51 = vunpack.i.l.bf16 %v11249_v59  ;;  %6812 = vmatprep.mubr.bf16.mxu0 %v5969_v12  ;;  %v11692_v12 = vld [vmem:[%s17232_s3 + $0x24] ss:$16 sps:$4 sm:$0xff]  }
 0x4b5   : > { %v11246_v30 = vunpack.i.h.bf16 %v11244_v20  ;;  %v11245_v35 = vunpack.i.l.bf16 %v11244_v20  ;;  %6813 = vmatmul.mubr.bf16.gmra.mxu0 %v5968_v23 }
 0x4b6   : > { %v5956_v60 = vmax.f32 %v15777_v50, %v11251_v31  ;;  %v5871_v4 = vsel %vm815_vm1, %v11221_v18, %v11250_v51  ;;  %v5872_v7 = vsel %vm815_vm1, %v11250_v51, %v11251_v31 }
 0x4b7   : > { %v5949_v36 = vmax.f32 %v15787_v3, %v11246_v30  ;;  %v5865_v24 = vsel %vm815_vm1, %v11216_v1, %v11245_v35  ;;  %v5866_v57 = vsel %vm815_vm1, %v11245_v35, %v11246_v30  ;;  %v5955_v28 = vmax.f32 %v15798_v0, %v5872_v7 }
 0x4b8   : > { %v5954_v62 = vmax.f32 %v15665_v25, %v5871_v4  ;;  %v5948_v50 = vmax.f32 %v15794_v45, %v5866_v57  ;;  %v5947_v21 = vmax.f32 %v15631_v47, %v5865_v24  ;;  %vm6944_vm1 = vcmask 326660  }
 0x4b9   : > { %v5977_v37 = vpack.c.bf16 %v5956_v60, %v5949_v36  ;;  %vm16036_vm5 = vmor %vm6944_vm1, %vm389_vm0 }
 0x4ba   : > { %v5976_v18 = vpack.c.bf16 %v5955_v28, %v5948_v50  ;;  %v5975_v11 = vpack.c.bf16 %v5954_v62, %v5947_v21 }
 0x4bb   : > { %10427 = vmatmul.mubr.msk.bf16.gmra.mxu1 %vm6624_vm3, %v5977_v37 }
 0x4bc   : > { %6822 = vmatprep.mubr.bf16.mxu0 %v5976_v18 }
 0x4bd   : > { %6823 = vmatmul.mubr.bf16.gmra.mxu0 %v5975_v11 }
 0x4e7   : > { %v6678_v3 = vpop.f32.mrf.mxu0 }
 0x4e9   : > { %v6680_v6 = vpop.f32.mrf.mxu0 }
 0x4eb   : > { %v6682_v1 = vpop.f32.mrf.mxu0 }
 0x4ed   : > { %v6684_v10 = vpop.f32.mrf.mxu0 }
 0x54b   : > { %v6688_v0 = vpop.f32.mrf.mxu0 }
 0x54d   : > { %v6741_v2 = vpop.f32.mrf.mxu1  ;;  %v6690_v25 = vpop.f32.mrf.mxu0 }
 0x54e   : > { %v6742_v15 = vadd.f32 %v6741_v2, %v6678_v3 }
 0x54f   : > { %v6743_v40 = vpop.f32.mrf.mxu1  ;;  %v6692_v45 = vpop.f32.mrf.mxu0 }
 0x550   : > { %v6744_v14 = vadd.f32 %v6743_v40, %v6680_v6 }
 0x551   : > { %v6745_v8 = vpop.f32.mrf.mxu1  ;;  %v6694_v56 = vpop.f32.mrf.mxu0 }
 0x552   : > { %v6746_v9 = vadd.f32 %v6745_v8, %v6682_v1 }
 0x553   : > { %v6747_v22 = vpop.f32.mrf.mxu1 }
 0x554   : > { %v6748_v27 = vadd.f32 %v6747_v22, %v6684_v10 }
 0x55a   : > { %v6751_v33 = vpop.f32.mrf.mxu1 }
 0x55b   : > { %v6752_v23 = vadd.f32 %v6751_v33, %v6688_v0 }
 0x55c   : > { %v6753_v55 = vpop.f32.mrf.mxu1 }
 0x55d   : > { %v6698_v19 = vpop.f32.mrf.mxu0  ;;  %v6754_v30 = vadd.f32 %v6753_v55, %v6690_v25 }
 0x55e   : > { %v6755_v47 = vpop.f32.mrf.mxu1 }
 0x55f   : > { %v6700_v43 = vpop.f32.mrf.mxu0  ;;  %v6756_v24 = vadd.f32 %v6755_v47, %v6692_v45 }
 0x560   : > { %v6757_v13 = vpop.f32.mrf.mxu1 }
 0x561   : > { %v16029_v44 = vpop.f32.mrf.mxu0  ;;  %v6758_v37 = vadd.f32 %v6757_v13, %v6694_v56 }
 0x562   : > { %v6761_v34 = vpop.f32.mrf.mxu1 }
 0x563   : > { %v16033_v29 = vpop.f32.mrf.mxu0  ;;  %v6762_v1 = vadd.f32 %v6761_v34, %v6698_v19 }
 0x564   : > { %v6763_v52 = vpop.f32.mrf.mxu1 }
 0x565   : > { %v6764_v40 = vadd.f32 %v6763_v52, %v6700_v43 }
 0x566   : > { %v16027_v42 = vpop.f32.mrf.mxu1 }
 0x567   : > { %v6766_v55 = vadd.f32 %v16027_v42, %v16029_v44 }
 0x568   : > { %v16031_v5 = vpop.f32.mrf.mxu1 }
 0x569   : > { %v6768_v13 = vadd.f32 %v16031_v5, %v16033_v29 }
 0x56b   : > { %v6867_v46 = vpop.f32.mrf.mxu1 }
 0x56d   : > { %v6869_v61 = vpop.f32.mrf.mxu1  ;;  %v6804_v63 = vpop.f32.mrf.mxu0 }
 0x56e   : > { %v6805_v48 = vadd.f32 %v6804_v63, %v6742_v15 }
 0x56f   : > { %v6871_v49 = vpop.f32.mrf.mxu1  ;;  %v6806_v32 = vpop.f32.mrf.mxu0 }
 0x570   : > { %v6807_v54 = vadd.f32 %v6806_v32, %v6744_v14  ;;  %v6868_v41 = vadd.f32 %v6867_v46, %v6805_v48  ;;  %v11685_v14 = vld [vmem:[%s17232_s3 + $0x4] ss:$16 sps:$4 sm:$0xff]   ;;  %v7421_v48 = vld [vmem:[%s17233_s4 + $0x8] sm:$0xff] }
 0x571   : > { %v6873_v26 = vpop.f32.mrf.mxu1  ;;  %v6808_v39 = vpop.f32.mrf.mxu0  ;;  %7927 = vmatprep.mubr.bf16.mxu1 %v11685_v14  ;;  %v7422_v32 = vld [vmem:[%s17233_s4 + $0x10] sm:$0xff] }
 0x572   : > { %v6870_v38 = vadd.f32 %v6869_v61, %v6807_v54  ;;  %v6809_v58 = vadd.f32 %v6808_v39, %v6746_v9  ;;  %v7420_v9 = vld [vmem:[%s17233_s4] sm:$0xff]  ;;  %v7423_v54 = vld [vmem:[%s17233_s4 + $0x18] sm:$0xff] }
 0x573   : > { %v6877_v17 = vpop.f32.mrf.mxu1  ;;  %v6810_v16 = vpop.f32.mrf.mxu0 }
 0x574   : > { %v16040_v59 = vpack.c.bf16 %v6870_v38, %v6868_v41  ;;  %v6811_v20 = vadd.f32 %v6810_v16, %v6748_v27  ;;  %v6872_v35 = vadd.f32 %v6871_v49, %v6809_v58  ;;  %v11691_v49 = vld [vmem:[%s17232_s3 + $0xc] ss:$16 sps:$4 sm:$0xff]  }
 0x575   : > { %v6879_v31 = vpop.f32.mrf.mxu1  ;;  %v6814_v51 = vpop.f32.mrf.mxu0  ;;  %10512 = vmatprep.mubr.msk.bf16.mxu0 %vm7876_vm15, %v11691_v49 }
 0x576   : > { %v6874_v60 = vadd.f32 %v6873_v26, %v6811_v20  ;;  %v6815_v4 = vadd.f32 %v6814_v51, %v6752_v23  ;;  %7012 = vrot.lane.b32.xlu1 %v16040_v59, %s17664_s14  ;;  %6946 = vst.msk [vmem:[#allocation5] sm:$0xff] %vm16036_vm5, %v16040_v59 }
 0x577   : > { %v6881_v7 = vpop.f32.mrf.mxu1  ;;  %v6816_v36 = vpop.f32.mrf.mxu0 }
 0x578   : > { %v16047_v57 = vpack.c.bf16 %v6874_v60, %v6872_v35  ;;  %v6817_v28 = vadd.f32 %v6816_v36, %v6754_v30  ;;  %v6878_v21 = vadd.f32 %v6877_v17, %v6815_v4 }
 0x579   : > { %v6883_v62 = vpop.f32.mrf.mxu1  ;;  %v6818_v50 = vpop.f32.mrf.mxu0 }
 0x57a   : > { %v6880_v18 = vadd.f32 %v6879_v31, %v6817_v28  ;;  %v6819_v11 = vadd.f32 %v6818_v50, %v6756_v24  ;;  %7014 = vrot.lane.b32.xlu0 %v16047_v57, %s17664_s14  ;;  %6964 = vrot.lane.b32.xlu1 %v16040_v59, %s17669_s29  ;;  %6947 = vst.msk [vmem:[#allocation5 + $0x8] sm:$0xff] %vm16036_vm5, %v16047_v57 }
 0x57b   : > { %v6887_v3 = vpop.f32.mrf.mxu1  ;;  %v6820_v6 = vpop.f32.mrf.mxu0 }
 0x57c   : > { %v16056_v2 = vpack.c.bf16 %v6880_v18, %v6878_v21  ;;  %v6821_v10 = vadd.f32 %v6820_v6, %v6758_v37  ;;  %v6882_v25 = vadd.f32 %v6881_v7, %v6819_v11 }
 0x57d   : > { %v6824_v0 = vpop.f32.mrf.mxu0  ;;  %v6889_v8 = vpop.f32.mrf.mxu1 }
 0x57e   : > { %v6884_v22 = vadd.f32 %v6883_v62, %v6821_v10  ;;  %v6825_v33 = vadd.f32 %v6824_v0, %v6762_v1  ;;  %6966 = vrot.lane.b32.xlu0 %v16047_v57, %s17669_s29  ;;  %7256 = vrot.lane.b32.xlu1 %v16040_v59, %s11970_s8  ;;  %6948 = vst.msk [vmem:[#allocation5 + $0x10] sm:$0xff] %vm16036_vm5, %v16056_v2 }
 0x57f   : > { %v6826_v45 = vpop.f32.mrf.mxu0  ;;  %v6891_v19 = vpop.f32.mrf.mxu1 }
 0x580   : > { %v10867_v47 = vpack.c.bf16 %v6884_v22, %v6882_v25  ;;  %v6827_v56 = vadd.f32 %v6826_v45, %v6764_v40  ;;  %v6888_v52 = vadd.f32 %v6887_v3, %v6825_v33 }
 0x581   : > { %v6828_v34 = vpop.f32.mrf.mxu0  ;;  %v6893_v61 = vpop.f32.mrf.mxu1 }
 0x582   : > { %v6890_v43 = vadd.f32 %v6889_v8, %v6827_v56  ;;  %v6829_v46 = vadd.f32 %v6828_v34, %v6766_v55  ;;  %7258 = vrot.lane.b32.xlu0 %v16047_v57, %s11970_s8  ;;  %7158 = vrot.lane.b32.xlu1 %v16040_v59, %s11971_s30  ;;  %6949 = vst.msk [vmem:[#allocation5 + $0x18] sm:$0xff] %vm16036_vm5, %v10867_v47 }
 0x583   : > { %v6830_v42 = vpop.f32.mrf.mxu0 }
 0x584   : > { %v10868_v44 = vpack.c.bf16 %v6890_v43, %v6888_v52  ;;  %v6831_v15 = vadd.f32 %v6830_v42, %v6768_v13  ;;  %v6892_v5 = vadd.f32 %v6891_v19, %v6829_v46 }
 0x586   : > { %v6894_v29 = vadd.f32 %v6893_v61, %v6831_v15  ;;  %7160 = vrot.lane.b32.xlu0 %v16047_v57, %s11971_s30  ;;  %7016 = vrot.lane.b32.xlu1 %v16056_v2, %s17664_s14  ;;  %6950 = vst.msk [vmem:[#allocation5 + $0x20] sm:$0xff] %vm16036_vm5, %v10868_v44 }
 0x588   : > { %v10869_v63 = vpack.c.bf16 %v6894_v29, %v6892_v5 }
 0x58a   : > { %7018 = vrot.lane.b32.xlu0 %v10867_v47, %s17664_s14  ;;  %6968 = vrot.lane.b32.xlu1 %v16056_v2, %s17669_s29  ;;  %6951 = vst.msk [vmem:[#allocation5 + $0x28] sm:$0xff] %vm16036_vm5, %v10869_v63 }
 0x58e   : > { %6970 = vrot.lane.b32.xlu0 %v10867_v47, %s17669_s29  ;;  %7260 = vrot.lane.b32.xlu1 %v16056_v2, %s11970_s8 }
 0x592   : > { %7262 = vrot.lane.b32.xlu0 %v10867_v47, %s11970_s8  ;;  %7211 = vrot.lane.b32.xlu1 %v16056_v2, %s11972_s26 }
 0x596   : > { %7213 = vrot.lane.b32.xlu0 %v10867_v47, %s11972_s26  ;;  %7113 = vrot.lane.b32.xlu1 %v16056_v2, %s11973_s12 }
 0x59a   : > { %7115 = vrot.lane.b32.xlu0 %v10867_v47, %s11973_s12  ;;  %6972 = vrot.lane.b32.xlu1 %v10868_v44, %s17669_s29 }
 0x59e   : > { %7207 = vrot.lane.b32.xlu1 %v16040_v59, %s11972_s26  ;;  %6974 = vrot.lane.b32.xlu0 %v10869_v63, %s17669_s29 }
 0x5a2   : > { %7264 = vrot.lane.b32.xlu1 %v10868_v44, %s11970_s8  ;;  %7209 = vrot.lane.b32.xlu0 %v16047_v57, %s11972_s26 }
 0x5a6   : > { %7215 = vrot.lane.b32.xlu1 %v10868_v44, %s11972_s26  ;;  %7111 = vrot.lane.b32.xlu0 %v16047_v57, %s11973_s12 }
 0x5aa   : > { %7117 = vrot.lane.b32.xlu1 %v10868_v44, %s11973_s12  ;;  %7164 = vrot.lane.b32.xlu0 %v10867_v47, %s11971_s30 }
 0x5ae   : > { %7109 = vrot.lane.b32.xlu1 %v16040_v59, %s11973_s12  ;;  %7266 = vrot.lane.b32.xlu0 %v10869_v63, %s11970_s8 }
 0x5b2   : > { %7166 = vrot.lane.b32.xlu1 %v10868_v44, %s11971_s30  ;;  %7066 = vrot.lane.b32.xlu0 %v10867_v47, %s11974_s17 }
 0x5b6   : > { %7068 = vrot.lane.b32.xlu1 %v10868_v44, %s11974_s17  ;;  %7217 = vrot.lane.b32.xlu0 %v10869_v63, %s11972_s26  ;;  %s296_s26 = sand.u32 1, %s11937_s28  }
 0x5b7   : > { %s9943_s11 = scalar_lea.sflag [#allocation8], %s296_s26 }
 0x5ba   : > { %7162 = vrot.lane.b32.xlu1 %v16056_v2, %s11971_s30  ;;  %7119 = vrot.lane.b32.xlu0 %v10869_v63, %s11973_s12  ;;  %s10019_s12 = sshll.u32 %s296_s26, 3 }
 0x5bb   : > { %s298_s13 = scalar_lea.vmem [#allocation7], %s10019_s12 }
 0x5be   : > { %7064 = vrot.lane.b32.xlu1 %v16056_v2, %s11974_s17  ;;  %7062 = vrot.lane.b32.xlu0 %v16047_v57, %s11974_s17 }
 0x5c2   : > { %7313 = vrot.lane.b32.xlu1 %v10868_v44, %s11975_s25  ;;  %7168 = vrot.lane.b32.xlu0 %v10869_v63, %s11971_s30 }
 0x5c6   : > { %7060 = vrot.lane.b32.xlu1 %v16040_v59, %s11974_s17  ;;  %7070 = vrot.lane.b32.xlu0 %v10869_v63, %s11974_s17 }
 0x5ca   : > { %7309 = vrot.lane.b32.xlu1 %v16056_v2, %s11975_s25  ;;  %7311 = vrot.lane.b32.xlu0 %v10867_v47, %s11975_s25 }
 0x5ce   : > { %7020 = vrot.lane.b32.xlu1 %v10868_v44, %s17664_s14  ;;  %7315 = vrot.lane.b32.xlu0 %v10869_v63, %s11975_s25 }
 0x5d2   : > { %7305 = vrot.lane.b32.xlu1 %v16040_v59, %s11975_s25  ;;  %7022 = vrot.lane.b32.xlu0 %v10869_v63, %s17664_s14 }
 0x5d6   : > { %7439 = vperm.xlu1 %11041, %v7421_v48   ;;  %7307 = vrot.lane.b32.xlu0 %v16047_v57, %s11975_s25 }
 0x5da   : > { %7444 = vperm.xlu1 %11041, %v7422_v32   ;;  %7434 = vperm.xlu0 %11040, %v7420_v9  }
 0x5de   : > { %7449 = vperm.xlu0 %11040, %v7423_v54  }
 0x5e8   : > { %v7013_v26 = vpop.permute.xlu1 %7012 }
 0x5e9   : > { %v7024_v39 = vrot.slane %v7013_v26, 4 }
 0x5eb   : > { %v7030_v27 = vsel %vm497_vm6, %v7013_v26, %v7024_v39 }
 0x5ec   : > { %7042 = vst.msk [vmem:[#allocation5 + $0x60] sm:$0xff] %vm16036_vm5, %v7030_v27  ;;  %v7015_v41 = vpop.permute.xlu0 %7014  ;;  %v6965_v38 = vpop.permute.xlu1 %6964 }
 0x5ed   : > { %v7025_v58 = vrot.slane %v7015_v41, 4  ;;  %v6976_v17 = vrot.slane %v6965_v38, 4 }
 0x5ef   : > { %v7031_v16 = vsel %vm497_vm6, %v7015_v41, %v7025_v58  ;;  %v6982_v23 = vsel %vm391_vm8, %v6965_v38, %v6976_v17 }
 0x5f0   : > { %7043 = vst.msk [vmem:[#allocation5 + $0x68] sm:$0xff] %vm16036_vm5, %v7031_v16  ;;  %6994 = vst.msk [vmem:[#allocation5 + $0x30] sm:$0xff] %vm16036_vm5, %v6982_v23  ;;  %v6967_v59 = vpop.permute.xlu0 %6966  ;;  %v7257_v20 = vpop.permute.xlu1 %7256 }
 0x5f1   : > { %v6977_v31 = vrot.slane %v6967_v59, 4  ;;  %v7268_v51 = vrot.slane %v7257_v20, 4 }
 0x5f3   : > { %v6983_v30 = vsel %vm391_vm8, %v6967_v59, %v6977_v31  ;;  %v7275_v35 = vsel %vm7274_vm13, %v7257_v20, %v7268_v51 }
 0x5f4   : > { %6995 = vst.msk [vmem:[#allocation5 + $0x38] sm:$0xff] %vm16036_vm5, %v6983_v30  ;;  %7287 = vst.msk [vmem:[#allocation5 + $0x150] sm:$0xff] %vm16036_vm5, %v7275_v35  ;;  %v7259_v60 = vpop.permute.xlu0 %7258  ;;  %v7159_v4 = vpop.permute.xlu1 %7158 }
 0x5f5   : > { %v7269_v7 = vrot.slane %v7259_v60, 4  ;;  %v7170_v36 = vrot.slane %v7159_v4, 4 }
 0x5f7   : > { %v7276_v24 = vsel %vm7274_vm13, %v7259_v60, %v7269_v7  ;;  %v7177_v57 = vsel %vm7176_vm7, %v7159_v4, %v7170_v36  ;;  %v11610_v15 = vld [vmem:[#allocation5 + $0x64] ss:$8 sps:$4 sm:$0xff]   ;;  %v11608_v63 = vld [vmem:[#allocation5 + $0x60] ss:$8 sps:$4 sm:$0xff]  }
 0x5f8   : > { %7288 = vst.msk [vmem:[#allocation5 + $0x158] sm:$0xff] %vm16036_vm5, %v7276_v24  ;;  %7189 = vst.msk [vmem:[#allocation5 + $0xf0] sm:$0xff] %vm16036_vm5, %v7177_v57  ;;  %v7161_v28 = vpop.permute.xlu0 %7160  ;;  %v7017_v62 = vpop.permute.xlu1 %7016 }
 0x5f9   : > { %v7171_v37 = vrot.slane %v7161_v28, 4  ;;  %v7026_v50 = vrot.slane %v7017_v62, 4 }
 0x5fb   : > { %v7178_v21 = vsel %vm7176_vm7, %v7161_v28, %v7171_v37  ;;  %v7032_v18 = vsel %vm497_vm6, %v7017_v62, %v7026_v50 }
 0x5fc   : > { %7190 = vst.msk [vmem:[#allocation5 + $0xf8] sm:$0xff] %vm16036_vm5, %v7178_v21  ;;  %7044 = vst.msk [vmem:[#allocation5 + $0x70] sm:$0xff] %vm16036_vm5, %v7032_v18  ;;  %v7019_v11 = vpop.permute.xlu0 %7018  ;;  %v6969_v3 = vpop.permute.xlu1 %6968 }
 0x5fd   : > { %v7027_v6 = vrot.slane %v7019_v11, 4  ;;  %v6978_v1 = vrot.slane %v6969_v3, 4 }
 0x5ff   : > { %v7033_v2 = vsel %vm497_vm6, %v7019_v11, %v7027_v6  ;;  %v6984_v10 = vsel %vm391_vm8, %v6969_v3, %v6978_v1 }
 0x600   : > { %7045 = vst.msk [vmem:[#allocation5 + $0x78] sm:$0xff] %vm16036_vm5, %v7033_v2  ;;  %6996 = vst.msk [vmem:[#allocation5 + $0x40] sm:$0xff] %vm16036_vm5, %v6984_v10  ;;  %v6971_v40 = vpop.permute.xlu0 %6970  ;;  %v7261_v0 = vpop.permute.xlu1 %7260  ;;  %v11619_v2 = vld [vmem:[#allocation5 + $0x34] ss:$8 sps:$4 sm:$0xff]  }
 0x601   : > { %v6979_v8 = vrot.slane %v6971_v40, 4  ;;  %v7270_v25 = vrot.slane %v7261_v0, 4 }
 0x603   : > { %v6985_v22 = vsel %vm391_vm8, %v6971_v40, %v6979_v8  ;;  %v7277_v33 = vsel %vm7274_vm13, %v7261_v0, %v7270_v25  ;;  %v11617_v8 = vld [vmem:[#allocation5 + $0x30] ss:$8 sps:$4 sm:$0xff]  }
 0x604   : > { %6997 = vst.msk [vmem:[#allocation5 + $0x48] sm:$0xff] %vm16036_vm5, %v6985_v22  ;;  %7289 = vst.msk [vmem:[#allocation5 + $0x160] sm:$0xff] %vm16036_vm5, %v7277_v33  ;;  %v7263_v45 = vpop.permute.xlu0 %7262  ;;  %v7212_v55 = vpop.permute.xlu1 %7211 }
 0x605   : > { %v7271_v47 = vrot.slane %v7263_v45, 4  ;;  %v7221_v56 = vrot.slane %v7212_v55, 4 }
 0x607   : > { %v7278_v13 = vsel %vm7274_vm13, %v7263_v45, %v7271_v47  ;;  %v7228_v19 = vsel %vm7225_vm9, %v7212_v55, %v7221_v56  ;;  %v11605_v34 = vld [vmem:[#allocation5 + $0x70] ss:$8 sps:$4 sm:$0xff]   ;;  %v11607_v52 = vld [vmem:[#allocation5 + $0x74] ss:$8 sps:$4 sm:$0xff]   ;;  %v11622_v45 = vld [vmem:[#allocation5 + $0x24] ss:$8 sps:$4 sm:$0xff]  }
 0x608   : > { %7290 = vst.msk [vmem:[#allocation5 + $0x168] sm:$0xff] %vm16036_vm5, %v7278_v13  ;;  %7240 = vst.msk [vmem:[#allocation5 + $0x130] sm:$0xff] %vm16036_vm5, %v7228_v19  ;;  %v7214_v43 = vpop.permute.xlu0 %7213  ;;  %v7114_v46 = vpop.permute.xlu1 %7113  ;;  %7895 = vmatprep.subr.bf16.mxu1 %v11607_v52  ;;  %v11620_v19 = vld [vmem:[#allocation5 + $0x20] ss:$8 sps:$4 sm:$0xff]  }
 0x609   : > { %v7222_v42 = vrot.slane %v7214_v43, 4  ;;  %v7123_v44 = vrot.slane %v7114_v46, 4  ;;  %7896 = vmatpush1.bf16.msra.mxu1 %v11605_v34 }
 0x60a   : > { %7897 = vmatprep.subr.bf16.mxu1 %v11610_v15 }
 0x60b   : > { %v7229_v61 = vsel %vm7225_vm9, %v7214_v43, %v7222_v42  ;;  %v7130_v5 = vsel %vm7127_vm10, %v7114_v46, %v7123_v44  ;;  %v11616_v37 = vld [vmem:[#allocation5 + $0x44] ss:$8 sps:$4 sm:$0xff]   ;;  %v11614_v11 = vld [vmem:[#allocation5 + $0x40] ss:$8 sps:$4 sm:$0xff]   ;;  %v11625_v43 = vld [vmem:[#allocation5 + $0x14] ss:$8 sps:$4 sm:$0xff]  }
 0x60c   : > { %7241 = vst.msk [vmem:[#allocation5 + $0x138] sm:$0xff] %vm16036_vm5, %v7229_v61  ;;  %7142 = vst.msk [vmem:[#allocation5 + $0xd0] sm:$0xff] %vm16036_vm5, %v7130_v5  ;;  %v7116_v29 = vpop.permute.xlu0 %7115  ;;  %v6973_v14 = vpop.permute.xlu1 %6972 }
 0x60d   : > { %v7124_v48 = vrot.slane %v7116_v29, 4  ;;  %v6980_v49 = vrot.slane %v6973_v14, 4  ;;  %7898 = vmatpush1.bf16.msra.mxu1 %v11608_v63 }
 0x60f   : > { %v7131_v32 = vsel %vm7127_vm10, %v7116_v29, %v7124_v48  ;;  %v6986_v9 = vsel %vm391_vm8, %v6973_v14, %v6980_v49  ;;  %v11623_v29 = vld [vmem:[#allocation5 + $0x10] ss:$8 sps:$4 sm:$0xff]   ;;  %v11631_v48 = vld [vmem:[#allocation5 + $0x164] ss:$8 sps:$4 sm:$0xff]  }
 0x610   : > { %7143 = vst.msk [vmem:[#allocation5 + $0xd8] sm:$0xff] %vm16036_vm5, %v7131_v32  ;;  %6998 = vst.msk [vmem:[#allocation5 + $0x50] sm:$0xff] %vm16036_vm5, %v6986_v9  ;;  %v7208_v54 = vpop.permute.xlu1 %7207  ;;  %v6975_v26 = vpop.permute.xlu0 %6974  ;;  %v11634_v49 = vld [vmem:[#allocation5 + $0x4] ss:$8 sps:$4 sm:$0xff]  }
 0x611   : > { %v7219_v39 = vrot.slane %v7208_v54, 4  ;;  %v6981_v27 = vrot.slane %v6975_v26, 4 }
 0x613   : > { %v7226_v41 = vsel %vm7225_vm9, %v7208_v54, %v7219_v39  ;;  %v6987_v38 = vsel %vm391_vm8, %v6975_v26, %v6981_v27  ;;  %v11629_v26 = vld [vmem:[#allocation5 + $0x160] ss:$8 sps:$4 sm:$0xff]  }
 0x614   : > { %7238 = vst.msk [vmem:[#allocation5 + $0x120] sm:$0xff] %vm16036_vm5, %v7226_v41  ;;  %6999 = vst.msk [vmem:[#allocation5 + $0x58] sm:$0xff] %vm16036_vm5, %v6987_v38  ;;  %v7265_v58 = vpop.permute.xlu1 %7264  ;;  %v7210_v17 = vpop.permute.xlu0 %7209  ;;  %v11632_v27 = vld [vmem:[#allocation5] ss:$8 sps:$4 sm:$0xff]  }
 0x615   : > { %v7272_v16 = vrot.slane %v7265_v58, 4  ;;  %v7220_v23 = vrot.slane %v7210_v17, 4 }
 0x617   : > { %v7279_v59 = vsel %vm7274_vm13, %v7265_v58, %v7272_v16  ;;  %v7227_v20 = vsel %vm7225_vm9, %v7210_v17, %v7220_v23  ;;  %v11637_v58 = vld [vmem:[#allocation5 + $0x154] ss:$8 sps:$4 sm:$0xff]  }
 0x618   : > { %7291 = vst.msk [vmem:[#allocation5 + $0x170] sm:$0xff] %vm16036_vm5, %v7279_v59  ;;  %7239 = vst.msk [vmem:[#allocation5 + $0x128] sm:$0xff] %vm16036_vm5, %v7227_v20  ;;  %v7216_v31 = vpop.permute.xlu1 %7215  ;;  %v7112_v51 = vpop.permute.xlu0 %7111  ;;  %v11640_v17 = vld [vmem:[#allocation5 + $0xf4] ss:$8 sps:$4 sm:$0xff]   ;;  %v11635_v20 = vld [vmem:[#allocation5 + $0x150] ss:$8 sps:$4 sm:$0xff]  }
 0x619   : > { %v7223_v30 = vrot.slane %v7216_v31, 4  ;;  %v7122_v35 = vrot.slane %v7112_v51, 4 }
 0x61b   : > { %v7230_v60 = vsel %vm7225_vm9, %v7216_v31, %v7223_v30  ;;  %v7129_v4 = vsel %vm7127_vm10, %v7112_v51, %v7122_v35  ;;  %v11611_v7 = vld [vmem:[#allocation5 + $0x50] ss:$8 sps:$4 sm:$0xff]   ;;  %v11613_v36 = vld [vmem:[#allocation5 + $0x54] ss:$8 sps:$4 sm:$0xff]  }
 0x61c   : > { %7242 = vst.msk [vmem:[#allocation5 + $0x140] sm:$0xff] %vm16036_vm5, %v7230_v60  ;;  %7141 = vst.msk [vmem:[#allocation5 + $0xc8] sm:$0xff] %vm16036_vm5, %v7129_v4  ;;  %v7118_v24 = vpop.permute.xlu1 %7117  ;;  %v7165_v57 = vpop.permute.xlu0 %7164  ;;  %7899 = vmatprep.subr.bf16.mxu1 %v11613_v36  ;;  %v11638_v51 = vld [vmem:[#allocation5 + $0xf0] ss:$8 sps:$4 sm:$0xff]  }
 0x61d   : > { %v7125_v28 = vrot.slane %v7118_v24, 4  ;;  %v7173_v62 = vrot.slane %v7165_v57, 4  ;;  %7900 = vmatpush1.bf16.msra.mxu1 %v11611_v7 }
 0x61e   : > { %7901 = vmatprep.subr.bf16.mxu1 %v11616_v37 }
 0x61f   : > { %v7132_v50 = vsel %vm7127_vm10, %v7118_v24, %v7125_v28  ;;  %v7180_v21 = vsel %vm7176_vm7, %v7165_v57, %v7173_v62 }
 0x620   : > { %7144 = vst.msk [vmem:[#allocation5 + $0xe0] sm:$0xff] %vm16036_vm5, %v7132_v50  ;;  %7192 = vst.msk [vmem:[#allocation5 + $0x108] sm:$0xff] %vm16036_vm5, %v7180_v21  ;;  %v7110_v18 = vpop.permute.xlu1 %7109  ;;  %v7267_v3 = vpop.permute.xlu0 %7266  ;;  %v11649_v21 = vld [vmem:[#allocation5 + $0x134] ss:$8 sps:$4 sm:$0xff]  }
 0x621   : > { %v7121_v6 = vrot.slane %v7110_v18, 4  ;;  %v7273_v1 = vrot.slane %v7267_v3, 4  ;;  %7902 = vmatpush1.bf16.msra.mxu1 %v11614_v11 }
 0x622   : > { %7903 = vmatprep.subr.bf16.mxu1 %v11619_v2 }
 0x623   : > { %v7128_v10 = vsel %vm7127_vm10, %v7110_v18, %v7121_v6  ;;  %v7280_v40 = vsel %vm7274_vm13, %v7267_v3, %v7273_v1  ;;  %v11652_v18 = vld [vmem:[#allocation5 + $0xd4] ss:$8 sps:$4 sm:$0xff]   ;;  %v11647_v1 = vld [vmem:[#allocation5 + $0x130] ss:$8 sps:$4 sm:$0xff]  }
 0x624   : > { %7140 = vst.msk [vmem:[#allocation5 + $0xc0] sm:$0xff] %vm16036_vm5, %v7128_v10  ;;  %7292 = vst.msk [vmem:[#allocation5 + $0x178] sm:$0xff] %vm16036_vm5, %v7280_v40  ;;  %v7167_v0 = vpop.permute.xlu1 %7166  ;;  %v7067_v25 = vpop.permute.xlu0 %7066  ;;  %v11650_v10 = vld [vmem:[#allocation5 + $0xd0] ss:$8 sps:$4 sm:$0xff]  }
 0x625   : > { %v7174_v22 = vrot.slane %v7167_v0, 4  ;;  %v7075_v33 = vrot.slane %v7067_v25, 4  ;;  %7904 = vmatpush1.bf16.msra.mxu1 %v11617_v8  ;;  %v11655_v8 = vld [vmem:[#allocation5 + $0x124] ss:$8 sps:$4 sm:$0xff]  }
 0x626   : > { %7905 = vmatprep.subr.bf16.mxu1 %v11622_v45 }
 0x627   : > { %v7181_v55 = vsel %vm7176_vm7, %v7167_v0, %v7174_v22  ;;  %v7082_v47 = vsel %vm7078_vm12, %v7067_v25, %v7075_v33 }
 0x628   : > { %7193 = vst.msk [vmem:[#allocation5 + $0x110] sm:$0xff] %vm16036_vm5, %v7181_v55  ;;  %7094 = vst.msk [vmem:[#allocation5 + $0xa8] sm:$0xff] %vm16036_vm5, %v7082_v47  ;;  %v7069_v56 = vpop.permute.xlu1 %7068  ;;  %v7218_v13 = vpop.permute.xlu0 %7217  ;;  %v11653_v55 = vld [vmem:[#allocation5 + $0x120] ss:$8 sps:$4 sm:$0xff]  }
 0x629   : > { %v7076_v34 = vrot.slane %v7069_v56, 4  ;;  %v7224_v52 = vrot.slane %v7218_v13, 4  ;;  %7906 = vmatpush1.bf16.msra.mxu1 %v11620_v19 }
 0x62a   : > { %7907 = vmatprep.subr.bf16.mxu1 %v11625_v43 }
 0x62b   : > { %v7083_v46 = vsel %vm7078_vm12, %v7069_v56, %v7076_v34  ;;  %v7231_v42 = vsel %vm7225_vm9, %v7218_v13, %v7224_v52  ;;  %v11626_v44 = vld [vmem:[#allocation5 + $0x170] ss:$8 sps:$4 sm:$0xff]   ;;  %v11628_v15 = vld [vmem:[#allocation5 + $0x174] ss:$8 sps:$4 sm:$0xff]   ;;  %v11658_v25 = vld [vmem:[#allocation5 + $0xc4] ss:$8 sps:$4 sm:$0xff]  }
 0x62c   : > { %7095 = vst.msk [vmem:[#allocation5 + $0xb0] sm:$0xff] %vm16036_vm5, %v7083_v46  ;;  %7243 = vst.msk [vmem:[#allocation5 + $0x148] sm:$0xff] %vm16036_vm5, %v7231_v42  ;;  %v7163_v61 = vpop.permute.xlu1 %7162  ;;  %v7120_v5 = vpop.permute.xlu0 %7119  ;;  %7988 = vmatprep.subr.bf16.mxu0 %v11628_v15  ;;  %v11656_v56 = vld [vmem:[#allocation5 + $0xc0] ss:$8 sps:$4 sm:$0xff]  }
 0x62d   : > { %v7172_v63 = vrot.slane %v7163_v61, 4  ;;  %v7126_v14 = vrot.slane %v7120_v5, 4  ;;  %7908 = vmatpush1.bf16.msra.mxu1 %v11623_v29  ;;  %7989 = vmatpush1.bf16.msra.mxu0 %v11626_v44 }
 0x62e   : > { %7990 = vmatprep.subr.bf16.mxu0 %v11631_v48  ;;  %7909 = vmatprep.subr.bf16.mxu1 %v11634_v49 }
 0x62f   : > { %v7179_v32 = vsel %vm7176_vm7, %v7163_v61, %v7172_v63  ;;  %v7133_v9 = vsel %vm7127_vm10, %v7120_v5, %v7126_v14 }
 0x630   : > { %7191 = vst.msk [vmem:[#allocation5 + $0x100] sm:$0xff] %vm16036_vm5, %v7179_v32  ;;  %7145 = vst.msk [vmem:[#allocation5 + $0xe8] sm:$0xff] %vm16036_vm5, %v7133_v9  ;;  %v7065_v54 = vpop.permute.xlu1 %7064  ;;  %v7063_v39 = vpop.permute.xlu0 %7062 }
 0x631   : > { %v7074_v41 = vrot.slane %v7065_v54, 4  ;;  %v7073_v38 = vrot.slane %v7063_v39, 4  ;;  %7910 = vmatpush1.bf16.msra.mxu1 %v11632_v27  ;;  %7991 = vmatpush1.bf16.msra.mxu0 %v11629_v26 }
 0x632   : > { %7992 = vmatprep.subr.bf16.mxu0 %v11637_v58  ;;  %7911 = vmatprep.subr.bf16.mxu1 %v11640_v17 }
 0x633   : > { %v7081_v16 = vsel %vm7078_vm12, %v7065_v54, %v7074_v41  ;;  %v7080_v23 = vsel %vm7078_vm12, %v7063_v39, %v7073_v38  ;;  %v11643_v60 = vld [vmem:[#allocation5 + $0x144] ss:$8 sps:$4 sm:$0xff]   ;;  %v11641_v28 = vld [vmem:[#allocation5 + $0x140] ss:$8 sps:$4 sm:$0xff]  }
 0x634   : > { %7093 = vst.msk [vmem:[#allocation5 + $0xa0] sm:$0xff] %vm16036_vm5, %v7081_v16  ;;  %7092 = vst.msk [vmem:[#allocation5 + $0x98] sm:$0xff] %vm16036_vm5, %v7080_v23  ;;  %v7314_v59 = vpop.permute.xlu1 %7313  ;;  %v7169_v31 = vpop.permute.xlu0 %7168 }
 0x635   : > { %v7321_v30 = vrot.slane %v7314_v59, 4  ;;  %v7175_v35 = vrot.slane %v7169_v31, 4  ;;  %7912 = vmatpush2.bf16.msra.mxu1 %v11638_v51  ;;  %7993 = vmatpush1.bf16.msra.mxu0 %v11635_v20  ;;  %v11683_v20 = vld [vmem:[%s17232_s3] ss:$16 sps:$4 sm:$0xff]  }
 0x636   : > { %7994 = vmatprep.subr.bf16.mxu0 %v11643_v60  ;;  %v11694_v60 = vld [vmem:[%s17232_s3 + $0x20] ss:$16 sps:$4 sm:$0xff]  }
 0x637   : > { %v7328_v4 = vsel %vm7323_vm11, %v7314_v59, %v7321_v30  ;;  %v7182_v7 = vsel %vm7176_vm7, %v7169_v31, %v7175_v35  ;;  %v11644_v36 = vld [vmem:[#allocation5 + $0xe0] ss:$8 sps:$4 sm:$0xff]   ;;  %v11646_v24 = vld [vmem:[#allocation5 + $0xe4] ss:$8 sps:$4 sm:$0xff]  }
 0x638   : > { %7340 = vst.msk [vmem:[#allocation5 + $0x1a0] sm:$0xff] %vm16036_vm5, %v7328_v4  ;;  %7194 = vst.msk [vmem:[#allocation5 + $0x118] sm:$0xff] %vm16036_vm5, %v7182_v7  ;;  %v7061_v57 = vpop.permute.xlu1 %7060  ;;  %v7071_v62 = vpop.permute.xlu0 %7070  ;;  %7913 = vmatprep.subr.bf16.mxu1 %v11646_v24  ;;  %v11667_v63 = vld [vmem:[#allocation5 + $0x104] ss:$8 sps:$4 sm:$0xff]   ;;  %v11665_v32 = vld [vmem:[#allocation5 + $0x100] ss:$8 sps:$4 sm:$0xff]  }
 0x639   : > { %v7072_v37 = vrot.slane %v7061_v57, 4  ;;  %v7077_v50 = vrot.slane %v7071_v62, 4  ;;  %7914 = vmatpush2.bf16.msra.mxu1 %v11644_v36  ;;  %7995 = vmatpush1.bf16.msra.mxu0 %v11641_v28  ;;  %v11689_v30 = vld [vmem:[%s17232_s3 + $0x8] ss:$16 sps:$4 sm:$0xff]   ;;  %v11695_v35 = vld [vmem:[%s17232_s3 + $0x2c] ss:$16 sps:$4 sm:$0xff]  }
 0x63a   : > { %7996 = vmatprep.subr.bf16.mxu0 %v11649_v21  ;;  %7915 = vmatprep.subr.bf16.mxu1 %v11652_v18  ;;  %v11698_v4 = vld [vmem:[%s17232_s3 + $0x44] ss:$16 sps:$4 sm:$0xff]   ;;  %v11697_v7 = vld [vmem:[%s17232_s3 + $0x28] ss:$16 sps:$4 sm:$0xff]   ;;  %v11701_v36 = vld [vmem:[%s17232_s3 + $0x4c] ss:$16 sps:$4 sm:$0xff]  }
 0x63b   : > { %v7079_v11 = vsel %vm7078_vm12, %v7061_v57, %v7072_v37  ;;  %v7084_v3 = vsel %vm7078_vm12, %v7071_v62, %v7077_v50  ;;  %v11670_v14 = vld [vmem:[#allocation5 + $0xa4] ss:$8 sps:$4 sm:$0xff]   ;;  %v11668_v54 = vld [vmem:[#allocation5 + $0xa0] ss:$8 sps:$4 sm:$0xff]  }
 0x63c   : > { %7091 = vst.msk [vmem:[#allocation5 + $0x90] sm:$0xff] %vm16036_vm5, %v7079_v11  ;;  %7096 = vst.msk [vmem:[#allocation5 + $0xb8] sm:$0xff] %vm16036_vm5, %v7084_v3  ;;  %v7310_v6 = vpop.permute.xlu1 %7309  ;;  %v7312_v2 = vpop.permute.xlu0 %7311  ;;  %v11700_v24 = vld [vmem:[%s17232_s3 + $0x40] ss:$16 sps:$4 sm:$0xff]   ;;  %v11704_v57 = vld [vmem:[%s17232_s3 + $0x64] ss:$16 sps:$4 sm:$0xff]  }
 0x63d   : > { %v7319_v40 = vrot.slane %v7310_v6, 4  ;;  %v7320_v0 = vrot.slane %v7312_v2, 4  ;;  %7916 = vmatpush2.bf16.msra.mxu1 %v11650_v10  ;;  %7997 = vmatpush1.bf16.msra.mxu0 %v11647_v1  ;;  %v11703_v28 = vld [vmem:[%s17232_s3 + $0x48] ss:$16 sps:$4 sm:$0xff]   ;;  %v11707_v62 = vld [vmem:[%s17232_s3 + $0x6c] ss:$16 sps:$4 sm:$0xff]  }
 0x63e   : > { %7998 = vmatprep.subr.bf16.mxu0 %v11655_v8  ;;  %7917 = vmatprep.subr.bf16.mxu1 %v11658_v25  ;;  %v11706_v37 = vld [vmem:[%s17232_s3 + $0x60] ss:$16 sps:$4 sm:$0xff]   ;;  %v11709_v50 = vld [vmem:[%s17232_s3 + $0x68] ss:$16 sps:$4 sm:$0xff]   ;;  %v11712_v18 = vld [vmem:[%s17232_s3 + $0x84] ss:$16 sps:$4 sm:$0xff]  }
 0x63f   : > { %v7326_v22 = vsel %vm7323_vm11, %v7310_v6, %v7319_v40  ;;  %v7327_v33 = vsel %vm7323_vm11, %v7312_v2, %v7320_v0  ;;  %v11661_v34 = vld [vmem:[#allocation5 + $0x114] ss:$8 sps:$4 sm:$0xff]   ;;  %v11659_v15 = vld [vmem:[#allocation5 + $0x110] ss:$8 sps:$4 sm:$0xff]  }
 0x640   : > { %7338 = vst.msk [vmem:[#allocation5 + $0x190] sm:$0xff] %vm16036_vm5, %v7326_v22  ;;  %7339 = vst.msk [vmem:[#allocation5 + $0x198] sm:$0xff] %vm16036_vm5, %v7327_v33  ;;  %v7021_v45 = vpop.permute.xlu1 %7020  ;;  %v7316_v47 = vpop.permute.xlu0 %7315  ;;  %v11710_v21 = vld [vmem:[%s17232_s3 + $0x80] ss:$16 sps:$4 sm:$0xff]   ;;  %v11713_v11 = vld [vmem:[%s17232_s3 + $0x8c] ss:$16 sps:$4 sm:$0xff]  }
 0x641   : > { %v7028_v13 = vrot.slane %v7021_v45, 4  ;;  %v7322_v19 = vrot.slane %v7316_v47, 4  ;;  %7918 = vmatpush2.bf16.msra.mxu1 %v11656_v56  ;;  %7999 = vmatpush1.bf16.msra.mxu0 %v11653_v55  ;;  %v11715_v3 = vld [vmem:[%s17232_s3 + $0x88] ss:$16 sps:$4 sm:$0xff]   ;;  %v11718_v6 = vld [vmem:[%s17232_s3 + $0xa4] ss:$16 sps:$4 sm:$0xff]  }
 0x642   : > { %8000 = vmatprep.subr.bf16.mxu0 %v11661_v34  ;;  %v11719_v1 = vld [vmem:[%s17232_s3 + $0xac] ss:$16 sps:$4 sm:$0xff]   ;;  %v11716_v2 = vld [vmem:[%s17232_s3 + $0xa0] ss:$16 sps:$4 sm:$0xff]   ;;  %v11721_v10 = vld [vmem:[%s17232_s3 + $0xa8] ss:$16 sps:$4 sm:$0xff]  }
 0x643   : > { %v7034_v52 = vsel %vm497_vm6, %v7021_v45, %v7028_v13  ;;  %v7329_v43 = vsel %vm7323_vm11, %v7316_v47, %v7322_v19  ;;  %v11662_v46 = vld [vmem:[#allocation5 + $0xb0] ss:$8 sps:$4 sm:$0xff]   ;;  %v11664_v42 = vld [vmem:[#allocation5 + $0xb4] ss:$8 sps:$4 sm:$0xff]  }
 0x644   : > { %7046 = vst.msk [vmem:[#allocation5 + $0x80] sm:$0xff] %vm16036_vm5, %v7034_v52  ;;  %7341 = vst.msk [vmem:[#allocation5 + $0x1a8] sm:$0xff] %vm16036_vm5, %v7329_v43  ;;  %v7306_v44 = vpop.permute.xlu1 %7305  ;;  %v7023_v61 = vpop.permute.xlu0 %7022  ;;  %7919 = vmatprep.subr.bf16.mxu1 %v11664_v42  ;;  %v11673_v39 = vld [vmem:[#allocation5 + $0x94] ss:$8 sps:$4 sm:$0xff]   ;;  %v11671_v58 = vld [vmem:[#allocation5 + $0x90] ss:$8 sps:$4 sm:$0xff]  }
 0x645   : > { %v7317_v5 = vrot.slane %v7306_v44, 4  ;;  %v7029_v29 = vrot.slane %v7023_v61, 4  ;;  %7920 = vmatpush2.bf16.msra.mxu1 %v11662_v46  ;;  %8001 = vmatpush1.bf16.msra.mxu0 %v11659_v15 }
 0x646   : > { %8002 = vmatprep.subr.bf16.mxu0 %v11667_v63  ;;  %7921 = vmatprep.subr.bf16.mxu1 %v11670_v14 }
 0x647   : > { %v7324_v48 = vsel %vm7323_vm11, %v7306_v44, %v7317_v5  ;;  %v7035_v49 = vsel %vm497_vm6, %v7023_v61, %v7029_v29  ;;  %v11679_v17 = vld [vmem:[#allocation5 + $0x194] ss:$8 sps:$4 sm:$0xff]   ;;  %v11677_v59 = vld [vmem:[#allocation5 + $0x190] ss:$8 sps:$4 sm:$0xff]   ;;  %vm8106_vm6 = vcmask 326656  }
 0x648   : > { %7336 = vst.msk [vmem:[#allocation5 + $0x180] sm:$0xff] %vm16036_vm5, %v7324_v48  ;;  %7047 = vst.msk [vmem:[#allocation5 + $0x88] sm:$0xff] %vm16036_vm5, %v7035_v49  ;;  %v7308_v9 = vpop.permute.xlu0 %7307 }
 0x649   : > { %v7318_v26 = vrot.slane %v7308_v9, 4  ;;  %7922 = vmatpush2.bf16.msra.mxu1 %v11668_v54  ;;  %8003 = vmatpush1.bf16.msra.mxu0 %v11665_v32 }
 0x64a   : > { %7923 = vmatprep.subr.bf16.mxu1 %v11673_v39 }
 0x64b   : > { %v7325_v27 = vsel %vm7323_vm11, %v7308_v9, %v7318_v26  ;;  %v11674_v41 = vld [vmem:[#allocation5 + $0x1a0] ss:$8 sps:$4 sm:$0xff]   ;;  %v11676_v38 = vld [vmem:[#allocation5 + $0x1a4] ss:$8 sps:$4 sm:$0xff]  }
 0x64c   : > { %7337 = vst.msk [vmem:[#allocation5 + $0x188] sm:$0xff] %vm16036_vm5, %v7325_v27  ;;  %8014 = vmatprep.subr.bf16.mxu0 %v11676_v38 }
 0x64d   : > { %7924 = vmatpush2.bf16.msra.mxu1 %v11671_v58  ;;  %8015 = vmatpush2.bf16.msra.mxu0 %v11674_v41 }
 0x64e   : > { %8016 = vmatprep.subr.bf16.mxu0 %v11679_v17 }
 0x64f   : > { %v11680_v16 = vld [vmem:[#allocation5 + $0x80] ss:$8 sps:$4 sm:$0xff]   ;;  %v11682_v23 = vld [vmem:[#allocation5 + $0x84] ss:$8 sps:$4 sm:$0xff]  }
 0x650   : > { %7925 = vmatprep.subr.bf16.mxu1 %v11682_v23 }
 0x651   : > { %7926 = vmatpush2.bf16.msra.mxu1 %v11680_v16  ;;  %8017 = vmatpush2.bf16.msra.mxu0 %v11677_v59  ;;  %v7440_v25 = vpop.permute.xlu1 %7439 }
 0x652   : > { %8529 = vmatprep.subr.bf16.mxu1 %v18037_v53 }
 0x653   : > { %v11686_v31 = vld [vmem:[#allocation5 + $0x180] ss:$8 sps:$4 sm:$0xff]   ;;  %v11688_v51 = vld [vmem:[#allocation5 + $0x184] ss:$8 sps:$4 sm:$0xff]  }
 0x654   : > { %7928 = vmatmul.mubr.bf16.vlgmr.msra.gmra.mxu1 %v11683_v20  ;;  %8018 = vmatprep.subr.bf16.mxu0 %v11688_v51 }
 0x655   : > { %8019 = vmatpush2.bf16.msra.mxu0 %v11686_v31  ;;  %7937 = vmatprep.mubr.bf16.mxu1 %v11692_v12  ;;  %v7435_v0 = vpop.permute.xlu0 %7434  ;;  %v7445_v42 = vpop.permute.xlu1 %7444 }
 0x656   : > { %8632 = vmatprep.subr.bf16.mxu0 %v18037_v53 }
 0x658   : > { %8021 = vmatmul.mubr.bf16.vlgmr.msra.gmra.mxu0 %v11689_v30 }
 0x659   : > { %10513 = vmatprep.mubr.msk.bf16.mxu0 %vm7876_vm15, %v11695_v35  ;;  %v7450_v9 = vpop.permute.xlu0 %7449 }
 0x65c   : > { %7938 = vmatmul.mubr.bf16.gmra.mxu1 %v11694_v60 }
 0x65d   : > { %7947 = vmatprep.mubr.bf16.mxu1 %v11698_v4 }
 0x660   : > { %8031 = vmatmul.mubr.bf16.gmra.mxu0 %v11697_v7  ;;  %v7425_v7 = vld [vmem:[%s17233_s4 + $0x28] sm:$0xff] }
 0x661   : > { %10514 = vmatprep.mubr.msk.bf16.mxu0 %vm7876_vm15, %v11701_v36 }
 0x664   : > { %7948 = vmatmul.mubr.bf16.gmra.mxu1 %v11700_v24  ;;  %v7424_v24 = vld [vmem:[%s17233_s4 + $0x20] sm:$0xff] }
 0x665   : > { %7957 = vmatprep.mubr.bf16.mxu1 %v11704_v57 }
 0x668   : > { %8041 = vmatmul.mubr.bf16.gmra.mxu0 %v11703_v28 }
 0x669   : > { %10515 = vmatprep.mubr.msk.bf16.mxu0 %vm7876_vm15, %v11707_v62 }
 0x66c   : > { %7958 = vmatmul.mubr.bf16.gmra.mxu1 %v11706_v37 }
 0x66d   : > { %7967 = vmatprep.mubr.bf16.mxu1 %v11712_v18  ;;  %v11722_v18 = vld [vmem:[%s17235_s6 + $0x38] sm:$0xff]  }
 0x66e   : > { %8633 = vmatpush1.bf16.msra.mxu0 %v11722_v18 }
 0x66f   : > { %8634 = vmatprep.subr.bf16.mxu0 %v18037_v53 }
 0x670   : > { %8051 = vmatmul.mubr.bf16.gmra.mxu0 %v11709_v50  ;;  %v7426_v50 = vld [vmem:[%s17233_s4 + $0x30] sm:$0xff] }
 0x671   : > { %10516 = vmatprep.mubr.msk.bf16.mxu0 %vm7876_vm15, %v11713_v11  ;;  %v11723_v11 = vld [vmem:[%s17235_s6 + $0x84] sm:$0xff]  }
 0x672   : > { %8530 = vmatpush1.bf16.msra.mxu1 %v11723_v11 }
 0x673   : > { %8531 = vmatprep.subr.bf16.mxu1 %v18037_v53 }
 0x674   : > { %7968 = vmatmul.mubr.bf16.gmra.mxu1 %v11710_v21  ;;  %v7427_v21 = vld [vmem:[%s17233_s4 + $0x38] sm:$0xff] }
 0x675   : > { %7977 = vmatprep.mubr.bf16.mxu1 %v11718_v6  ;;  %v11725_v6 = vld [vmem:[%s17235_s6 + $0x7c] sm:$0xff]  }
 0x676   : > { %8532 = vmatpush1.bf16.msra.mxu1 %v11725_v6 }
 0x677   : > { %8533 = vmatprep.subr.bf16.mxu1 %v18037_v53 }
 0x678   : > { %8061 = vmatmul.mubr.bf16.gmra.mxu0 %v11715_v3  ;;  %v11724_v3 = vld [vmem:[%s17235_s6 + $0x30] sm:$0xff]  }
 0x679   : > { %10517 = vmatprep.mubr.msk.bf16.mxu0 %vm7876_vm15, %v11719_v1  ;;  %8635 = vmatpush1.bf16.msra.mxu0 %v11724_v3  ;;  %v11726_v1 = vld [vmem:[%s17235_s6 + $0x28] sm:$0xff]  }
 0x67a   : > { %8636 = vmatprep.subr.bf16.mxu0 %v18037_v53 }
 0x67c   : > { %7978 = vmatmul.mubr.bf16.gmra.mxu1 %v11716_v2  ;;  %v11727_v2 = vld [vmem:[%s17235_s6 + $0x74] sm:$0xff]  }
 0x67d   : > { %8637 = vmatpush1.bf16.msra.mxu0 %v11726_v1  ;;  %8534 = vmatpush1.bf16.msra.mxu1 %v11727_v2 }
 0x67e   : > { %8638 = vmatprep.subr.bf16.mxu0 %v18037_v53  ;;  %8535 = vmatprep.subr.bf16.mxu1 %v18037_v53 }
 0x680   : > { %8071 = vmatmul.mubr.bf16.gmra.mxu0 %v11721_v10  ;;  %v11728_v10 = vld [vmem:[%s17235_s6 + $0x20] sm:$0xff]  }
 0x681   : > { %8639 = vmatpush1.bf16.msra.mxu0 %v11728_v10 }
 0x682   : > { %8640 = vmatprep.subr.bf16.mxu0 %v18037_v53 }
 0x714   : > { %v7929_v40 = vpop.f32.mrf.mxu1 }
 0x715   : > { %v7930_v22 = vadd.f32 %v7929_v40, %v7435_v0  ;;  %v11729_v40 = vld [vmem:[%s17235_s6 + $0x6c] sm:$0xff]  }
 0x716   : > { %v7931_v8 = vpop.f32.mrf.mxu1  ;;  %8536 = vmatpush1.bf16.msra.mxu1 %v11729_v40 }
 0x717   : > { %v7932_v55 = vadd.f32 %v7931_v8, %v7435_v0  ;;  %v11730_v0 = vld [vmem:[%s17235_s6 + $0x18] sm:$0xff]   ;;  %v11731_v8 = vld [vmem:[%s17235_s6 + $0x64] sm:$0xff]   ;;  %8537 = vmatprep.subr.bf16.mxu1 %v18037_v53 }
 0x718   : > { %v7933_v33 = vpop.f32.mrf.mxu1  ;;  %v8022_v45 = vpop.f32.mrf.mxu0  ;;  %8641 = vmatpush1.bf16.msra.mxu0 %v11730_v0 }
 0x719   : > { %v16355_v47 = vadd.f32 %v8022_v45, %v7930_v22  ;;  %v7934_v19 = vadd.f32 %v7933_v33, %v7440_v25  ;;  %v11733_v22 = vld [vmem:[%s17235_s6 + $0x5c] sm:$0xff]   ;;  %8642 = vmatprep.subr.bf16.mxu0 %v18037_v53  ;;  %v11734_v33 = vld [vmem:[%s17235_s6 + $0x8] sm:$0xff]   ;;  %v11735_v45 = vld [vmem:[%s17235_s6 + $0x54] sm:$0xff]  }
 0x71a   : > { %v7935_v56 = vpop.f32.mrf.mxu1  ;;  %v8024_v13 = vpop.f32.mrf.mxu0  ;;  %8538 = vmatpush1.bf16.msra.mxu1 %v11731_v8 }
 0x71b   : > { %v8081_v34 = vmax.f32 %v16355_v47, 0.0  ;;  %v8025_v52 = vadd.f32 %v8024_v13, %v7932_v55  ;;  %v7936_v44 = vadd.f32 %v7935_v56, %v7440_v25  ;;  %v11732_v25 = vld [vmem:[%s17235_s6 + $0x10] sm:$0xff]   ;;  %8539 = vmatprep.subr.bf16.mxu1 %v18037_v53  ;;  %v18043_v55 = vmov 65535   ;;  %v11736_v13 = vld [vmem:[%s17235_s6] sm:$0xff]  }
 0x71c   : > { %v7939_v43 = vpop.f32.mrf.mxu1  ;;  %v8026_v46 = vpop.f32.mrf.mxu0  ;;  %8643 = vmatpush1.bf16.msra.mxu0 %v11732_v25  ;;  %v8524_v56 = vsel %vm8523_vm2, 4294967295, %v18043_v55 }
 0x71d   : > { %v8082_v15 = vmax.f32 %v8025_v52, 0.0  ;;  %v16358_v61 = vadd.f32 %v8026_v46, %v7934_v19  ;;  %v7940_v63 = vadd.f32 %v7939_v43, %v7445_v42  ;;  %8644 = vmatprep.subr.bf16.mxu0 %v18037_v53  ;;  %v11737_v19 = vld [vmem:[%s17235_s6 + $0x4c] sm:$0xff]   ;;  %v11738_v52 = vld [vmem:[%s17235_s6 + $0x48] ss:$0 sps:$4 sm:$0xff]   ;;  %v16472_v43 = vsel %vm389_vm0, %v8524_v56, 0 }
 0x71e   : > { %v7941_v5 = vpop.f32.mrf.mxu1  ;;  %v8028_v29 = vpop.f32.mrf.mxu0  ;;  %8540 = vmatpush1.bf16.msra.mxu1 %v11733_v22  ;;  %v8630_v46 = vand.u32 %v11738_v52, %v16472_v43  ;;  %vm8519_vm0 = vcmask 187392  }
 0x71f   : > { %8107 = vst.msk [vmem:[#allocation6 + $0x8] sm:$0xff] %vm8106_vm6, %v8082_v15  ;;  %v8083_v14 = vmax.f32 %v16358_v61, 0.0  ;;  %v8029_v48 = vadd.f32 %v8028_v29, %v7936_v44  ;;  %v7942_v54 = vadd.f32 %v7941_v5, %v7445_v42  ;;  %8541 = vmatprep.subr.bf16.mxu1 %v18037_v53  ;;  %v11739_v42 = vld [vmem:[%s17235_s6 + $0x94] ss:$0 sps:$4 sm:$0xff]   ;;  %v11740_v15 = vld [vmem:[%s17235_s6 + $0x40] sm:$0xff]  }
 0x720   : > { %v7943_v49 = vpop.f32.mrf.mxu1  ;;  %v8032_v32 = vpop.f32.mrf.mxu0  ;;  %8645 = vmatpush1.bf16.msra.mxu0 %v11734_v33  ;;  %v8527_v44 = vand.u32 %v11739_v42, %v16472_v43 }
 0x721   : > { %v8084_v26 = vmax.f32 %v8029_v48, 0.0  ;;  %v16362_v39 = vadd.f32 %v8032_v32, %v7940_v63  ;;  %v7944_v38 = vadd.f32 %v7943_v49, %v7450_v9  ;;  %8646 = vmatprep.subr.bf16.mxu0 %v18037_v53  ;;  %v11741_v32 = vld [vmem:[%s17235_s6 + $0x8c] sm:$0xff]  }
 0x722   : > { %v7945_v27 = vpop.f32.mrf.mxu1  ;;  %v8034_v41 = vpop.f32.mrf.mxu0  ;;  %8542 = vmatpush1.bf16.msra.mxu1 %v11735_v45 }
 0x723   : > { %8109 = vst.msk [vmem:[#allocation6 + $0x18] sm:$0xff] %vm8106_vm6, %v8084_v26  ;;  %v8085_v58 = vmax.f32 %v16362_v39, 0.0  ;;  %v8035_v17 = vadd.f32 %v8034_v41, %v7942_v54  ;;  %v7946_v23 = vadd.f32 %v7945_v27, %v7450_v9  ;;  %8543 = vmatprep.subr.bf16.mxu1 %v18037_v53 }
 0x724   : > { %v8036_v16 = vpop.f32.mrf.mxu0  ;;  %8647 = vmatpush1.bf16.msra.mxu0 %v11736_v13  ;;  %v7949_v5 = vpop.f32.mrf.mxu1 }
 0x725   : > { %v8086_v59 = vmax.f32 %v8035_v17, 0.0  ;;  %v16366_v20 = vadd.f32 %v8036_v16, %v7944_v38  ;;  %8660 = vmatprep.subr.bf16.mxu0 %v18037_v53 }
 0x726   : > { %v8038_v12 = vpop.f32.mrf.mxu0  ;;  %v16368_v31 = vld [vmem:[#allocation6 + $0x8] sm:$0xff]  ;;  %8544 = vmatpush1.bf16.msra.mxu1 %v11737_v19  ;;  %v7951_v9 = vpop.f32.mrf.mxu1 }
 0x727   : > { %8111 = vst.msk [vmem:[#allocation6 + $0x28] sm:$0xff] %vm8106_vm6, %v8086_v59  ;;  %v8087_v51 = vmax.f32 %v16366_v20, 0.0  ;;  %v8039_v30 = vadd.f32 %v8038_v12, %v7946_v23  ;;  %v11252_v35 = vpack.i.bf16 %v16368_v31, %v8081_v34  ;;  %8557 = vmatprep.subr.bf16.mxu1 %v18037_v53 }
 0x728   : > { %8661 = vmatpush2.bf16.msra.mxu0 %v8630_v46  ;;  %v8042_v63 = vpop.f32.mrf.mxu0  ;;  %v7953_v59 = vpop.f32.mrf.mxu1 }
 0x729   : > { %v8088_v60 = vmax.f32 %v8039_v30, 0.0  ;;  %11253 = vrot.lane.b32.xlu0 %v11252_v35, %s17669_s29  ;;  %8662 = vmatprep.subr.bf16.mxu0 %v18037_v53 }
 0x72a   : > { %v16376_v4 = vld [vmem:[#allocation6 + $0x18] sm:$0xff]  ;;  %8558 = vmatpush2.bf16.msra.mxu1 %v8527_v44  ;;  %v8044_v38 = vpop.f32.mrf.mxu0  ;;  %v7955_v35 = vpop.f32.mrf.mxu1 }
 0x72b   : > { %8113 = vst.msk [vmem:[#allocation6 + $0x38] sm:$0xff] %vm8106_vm6, %v8088_v60  ;;  %v11257_v36 = vpack.i.bf16 %v16376_v4, %v8083_v14  ;;  %8559 = vmatprep.subr.bf16.mxu1 %v18037_v53 }
 0x72c   : > { %8663 = vmatpush2.bf16.msra.mxu0 %v11740_v15 }
 0x72d   : > { %11258 = vrot.lane.b32.xlu1 %v11257_v36, %s17669_s29  ;;  %7459 = vperm.xlu0 %11040, %v7425_v7   ;;  %v7959_v7 = vpop.f32.mrf.mxu1 }
 0x72e   : > { %v16389_v57 = vld [vmem:[#allocation6 + $0x28] sm:$0xff]  ;;  %8883 = vmatprep.subr.bf16.mxu0 %v18037_v53  ;;  %8560 = vmatpush2.bf16.msra.mxu1 %v11741_v32 }
 0x72f   : > { %v11262_v62 = vpack.i.bf16 %v16389_v57, %v8085_v58  ;;  %8757 = vmatprep.subr.bf16.mxu1 %v18037_v53 }
 0x731   : > { %7454 = vperm.xlu1 %11041, %v7424_v24  }
 0x732   : > { %v16391_v28 = vld [vmem:[#allocation6 + $0x38] sm:$0xff] }
 0x733   : > { %v11267_v37 = vpack.i.bf16 %v16391_v28, %v8087_v51 }
 0x735   : > { %11263 = vrot.lane.b32.xlu1 %v11262_v62, %s17669_s29  ;;  %11268 = vrot.lane.b32.xlu0 %v11267_v37, %s17669_s29 }
 0x739   : > { %7464 = vperm.xlu1 %11041, %v7426_v50   ;;  %7469 = vperm.xlu0 %11040, %v7427_v21  }
 0x79b   : > { %v11254_v29 = vpop.permute.xlu0 %11253 }
 0x79c   : > { %v11256_v48 = vunpack.i.h.bf16 %v11254_v29  ;;  %v11255_v49 = vunpack.i.l.bf16 %v11254_v29 }
 0x79e   : > { %v16493_v54 = vmax.f32 %v16368_v31, %v11256_v48  ;;  %v8226_v26 = vsel %vm391_vm8, %v11255_v49, %v11256_v48 }
 0x79f   : > { %v16498_v27 = vmax.f32 %v8081_v34, %v8226_v26  ;;  %v11259_v41 = vpop.permute.xlu1 %11258  ;;  %v8046_v34 = vpop.f32.mrf.mxu0 }
 0x7a0   : > { %v11261_v17 = vunpack.i.h.bf16 %v11259_v41  ;;  %v11260_v16 = vunpack.i.l.bf16 %v11259_v41 }
 0x7a1   : > { %v11277_v23 = vpack.i.bf16 %v16493_v54, %v16498_v27  ;;  %v8048_v60 = vpop.f32.mrf.mxu0 }
 0x7a2   : > { %v16504_v12 = vmax.f32 %v16376_v4, %v11261_v17  ;;  %v8227_v31 = vsel %vm391_vm8, %v11260_v16, %v11261_v17 }
 0x7a3   : > { %v16509_v47 = vmax.f32 %v8083_v14, %v8227_v31  ;;  %11278 = vrot.lane.b32.xlu0 %v11277_v23, %s11974_s17  ;;  %v8052_v62 = vpop.f32.mrf.mxu0  ;;  %v7961_v14 = vpop.f32.mrf.mxu1  ;;  %v7429_v31 = vld [vmem:[%s17233_s4 + $0x48] sm:$0xff] }
 0x7a5   : > { %v11272_v30 = vpack.i.bf16 %v16504_v12, %v16509_v47  ;;  %v8054_v6 = vpop.f32.mrf.mxu0  ;;  %v7963_v10 = vpop.f32.mrf.mxu1 }
 0x7a7   : > { %11273 = vrot.lane.b32.xlu1 %v11272_v30, %s11974_s17  ;;  %v8056_v22 = vpop.f32.mrf.mxu0  ;;  %v7965_v33 = vpop.f32.mrf.mxu1 }
 0x7a8   : > { %v7460_v36 = vpop.permute.xlu0 %7459 }
 0x7a9   : > { %v7954_v4 = vadd.f32 %v7953_v59, %v7460_v36  ;;  %v7956_v24 = vadd.f32 %v7955_v35, %v7460_v36  ;;  %v8058_v42 = vpop.f32.mrf.mxu0  ;;  %v7430_v36 = vld [vmem:[%s17233_s4 + $0x50] sm:$0xff] }
 0x7ab   : > { %v16515_v37 = vadd.f32 %v8046_v34, %v7954_v4  ;;  %v8049_v61 = vadd.f32 %v8048_v60, %v7956_v24  ;;  %v7428_v60 = vld [vmem:[%s17233_s4 + $0x40] sm:$0xff] }
 0x7ac   : > { %v7455_v50 = vpop.permute.xlu1 %7454  ;;  %v11269_v40 = vpop.permute.xlu0 %11268 }
 0x7ad   : > { %v8091_v21 = vmax.f32 %v16515_v37, 0.0  ;;  %v8092_v18 = vmax.f32 %v8049_v61, 0.0  ;;  %v7950_v11 = vadd.f32 %v7949_v5, %v7455_v50  ;;  %v7952_v3 = vadd.f32 %v7951_v9, %v7455_v50  ;;  %v11754_v37 = vld [vmem:[%s17235_s6 + $0xec] sm:$0xff]  }
 0x7ae   : > { %v11271_v45 = vunpack.i.h.bf16 %v11269_v40  ;;  %v11270_v13 = vunpack.i.l.bf16 %v11269_v40  ;;  %v11742_v40 = vld [vmem:[%s17235_s6 + $0x11c] sm:$0xff]  }
 0x7af   : > { %8117 = vst.msk [vmem:[#allocation6 + $0x58] sm:$0xff] %vm8106_vm6, %v8092_v18  ;;  %v16519_v1 = vadd.f32 %v8042_v63, %v7950_v11  ;;  %v8045_v2 = vadd.f32 %v8044_v38, %v7952_v3 }
 0x7b0   : > { %v11264_v0 = vpop.permute.xlu1 %11263  ;;  %v8229_v26 = vsel %vm391_vm8, %v11270_v13, %v11271_v45  ;;  %v16546_v34 = vmax.f32 %v16391_v28, %v11271_v45  ;;  %v11744_v45 = vld [vmem:[%s17235_s6 + $0x114] sm:$0xff]   ;;  %v11748_v13 = vld [vmem:[%s17235_s6 + $0x104] sm:$0xff]  }
 0x7b1   : > { %v8089_v8 = vmax.f32 %v16519_v1, 0.0  ;;  %v8090_v25 = vmax.f32 %v8045_v2, 0.0  ;;  %v11266_v48 = vunpack.i.h.bf16 %v11264_v0  ;;  %v11265_v49 = vunpack.i.l.bf16 %v11264_v0  ;;  %v11756_v1 = vld [vmem:[%s17235_s6 + $0xe4] sm:$0xff]  }
 0x7b2   : > { %v16550_v30 = vmax.f32 %v8087_v51, %v8229_v26 }
 0x7b3   : > { %8115 = vst.msk [vmem:[#allocation6 + $0x48] sm:$0xff] %vm8106_vm6, %v8090_v25  ;;  %v8228_v35 = vsel %vm391_vm8, %v11265_v49, %v11266_v48 }
 0x7b4   : > { %v7465_v55 = vpop.permute.xlu1 %7464  ;;  %v7470_v56 = vpop.permute.xlu0 %7469  ;;  %v16563_v28 = vmax.f32 %v8085_v58, %v8228_v35  ;;  %v11297_v20 = vpack.i.bf16 %v16546_v34, %v16550_v30  ;;  %v7431_v58 = vld [vmem:[%s17233_s4 + $0x58] sm:$0xff] }
 0x7b5   : > { %v7960_v19 = vadd.f32 %v7959_v7, %v7465_v55  ;;  %v7962_v52 = vadd.f32 %v7961_v14, %v7465_v55  ;;  %v7964_v46 = vadd.f32 %v7963_v10, %v7470_v56  ;;  %v7966_v44 = vadd.f32 %v7965_v33, %v7470_v56  ;;  %v11743_v33 = vld [vmem:[%s17235_s6 + $0xd0] sm:$0xff]   ;;  %v11747_v56 = vld [vmem:[%s17235_s6 + $0xc0] sm:$0xff]  }
 0x7b6   : > { %v16523_v15 = vld [vmem:[#allocation6 + $0x58] sm:$0xff]  ;;  %v16559_v7 = vmax.f32 %v16389_v57, %v11266_v48 }
 0x7b7   : > { %v16525_v5 = vadd.f32 %v8052_v62, %v7960_v19  ;;  %v8055_v29 = vadd.f32 %v8054_v6, %v7962_v52  ;;  %v16527_v63 = vadd.f32 %v8056_v22, %v7964_v46  ;;  %v8059_v32 = vadd.f32 %v8058_v42, %v7966_v44  ;;  %v16623_v19 = vpop.f32.mrf.mxu1  ;;  %v11749_v52 = vld [vmem:[%s17235_s6 + $0xb8] sm:$0xff]   ;;  %v16633_v42 = vpop.f32.mrf.mxu0 }
 0x7b8   : > { %v11287_v9 = vpack.i.bf16 %v16523_v15, %v8091_v21  ;;  %v11292_v51 = vpack.i.bf16 %v16559_v7, %v16563_v28  ;;  %v11750_v46 = vld [vmem:[%s17235_s6 + $0xfc] sm:$0xff]  }
 0x7b9   : > { %v8093_v41 = vmax.f32 %v16525_v5, 0.0  ;;  %v8094_v38 = vmax.f32 %v8055_v29, 0.0  ;;  %v8095_v17 = vmax.f32 %v16527_v63, 0.0  ;;  %v8096_v16 = vmax.f32 %v8059_v32, 0.0  ;;  %v7971_v49 = vpop.f32.mrf.mxu1  ;;  %v11751_v32 = vld [vmem:[%s17235_s6 + $0xb0] sm:$0xff]   ;;  %v11768_v63 = vld [vmem:[%s17235_s6 + $0x19c] sm:$0xff]  }
 0x7ba   : > { %11288 = vrot.lane.b32.xlu0 %v11287_v9, %s17669_s29  ;;  %v16536_v23 = vld [vmem:[#allocation6 + $0x48] sm:$0xff]  ;;  %v11752_v9 = vld [vmem:[%s17235_s6 + $0xf4] sm:$0xff]  }
 0x7bb   : > { %8119 = vst.msk [vmem:[#allocation6 + $0x68] sm:$0xff] %vm8106_vm6, %v8094_v38  ;;  %v11282_v59 = vpack.i.bf16 %v16536_v23, %v8089_v8  ;;  %8121 = vst.msk [vmem:[#allocation6 + $0x78] sm:$0xff] %vm8106_vm6, %v8096_v16 }
 0x7bd   : > { %11283 = vrot.lane.b32.xlu1 %v11282_v59, %s17669_s29  ;;  %v8064_v59 = vpop.f32.mrf.mxu0 }
 0x7be   : > { %7479 = vperm.xlu0 %11040, %v7429_v31  }
 0x7c1   : > { %7474 = vperm.xlu1 %11041, %v7428_v60  }
 0x7c2   : > { %11298 = vrot.lane.b32.xlu0 %v11297_v20, %s11974_s17  ;;  %v16573_v4 = vld [vmem:[#allocation6 + $0x68] sm:$0xff]  ;;  %v16582_v57 = vld [vmem:[#allocation6 + $0x78] sm:$0xff]  ;;  %v7973_v20 = vpop.f32.mrf.mxu1 }
 0x7c3   : > { %v11302_v39 = vpack.i.bf16 %v16573_v4, %v8093_v41  ;;  %v11307_v24 = vpack.i.bf16 %v16582_v57, %v8095_v17 }
 0x7c5   : > { %11293 = vrot.lane.b32.xlu1 %v11292_v51, %s11974_s17 }
 0x7c6   : > { %7484 = vperm.xlu0 %11040, %v7430_v36  }
 0x7c9   : > { %11303 = vrot.lane.b32.xlu1 %v11302_v39, %s17669_s29  ;;  %v11753_v39 = vld [vmem:[%s17235_s6 + $0xa8] sm:$0xff]  }
 0x7ca   : > { %7489 = vperm.xlu0 %11040, %v7431_v58  }
 0x7cd   : > { %11308 = vrot.lane.b32.xlu1 %v11307_v24, %s17669_s29  ;;  %v7975_v24 = vpop.f32.mrf.mxu1 }
 0x815   : > { %v11279_v62 = vpop.permute.xlu0 %11278 }
 0x816   : > { %v11281_v61 = vunpack.i.h.bf16 %v11279_v62  ;;  %v11280_v14 = vunpack.i.l.bf16 %v11279_v62  ;;  %v11755_v62 = vld [vmem:[%s17235_s6 + $0xa0] sm:$0xff]  }
 0x818   : > { %v8396_v50 = vmax.f32 %v16493_v54, %v11281_v61  ;;  %v8359_v18 = vsel %vm7078_vm12, %v11280_v14, %v11281_v61  ;;  %v7979_v14 = vpop.f32.mrf.mxu1 }
 0x819   : > { %v8395_v11 = vmax.f32 %v16498_v27, %v8359_v18  ;;  %v11274_v3 = vpop.permute.xlu1 %11273 }
 0x81a   : > { %v8420_v6 = vpack.c.bf16 %v8396_v50, %v8396_v50  ;;  %v11276_v2 = vunpack.i.h.bf16 %v11274_v3  ;;  %v11275_v10 = vunpack.i.l.bf16 %v11274_v3 }
 0x81b   : > { %v8419_v0 = vpack.c.bf16 %v8395_v11, %v8395_v11  ;;  %v11759_v11 = vld [vmem:[%s17235_s6 + $0xe0] ss:$0 sps:$4 sm:$0xff]  }
 0x81c   : > { %v8398_v25 = vmax.f32 %v16504_v12, %v11276_v2  ;;  %v8360_v22 = vsel %vm7078_vm12, %v11275_v10, %v11276_v2  ;;  %10558 = vmatprep.mubr.msk.bf16.mxu0 %vm8519_vm0, %v8420_v6  ;;  %v11745_v12 = vld [vmem:[%s17235_s6 + $0xc8] sm:$0xff]   ;;  %v11757_v2 = vld [vmem:[%s17235_s6 + $0x98] sm:$0xff]  }
 0x81d   : > { %v8397_v54 = vmax.f32 %v16509_v47, %v8360_v22  ;;  %8665 = vmatmul.mubr.bf16.vlgmr.msra.gmra.mxu0 %v8419_v0  ;;  %v11746_v47 = vld [vmem:[%s17235_s6 + $0x10c] sm:$0xff]  }
 0x81e   : > { %v8441_v27 = vpack.c.bf16 %v8398_v25, %v8398_v25  ;;  %8884 = vmatpush1.bf16.msra.mxu0 %v11742_v40  ;;  %v7981_v40 = vpop.f32.mrf.mxu1 }
 0x81f   : > { %v8440_v55 = vpack.c.bf16 %v8397_v54, %v8397_v54  ;;  %8885 = vmatprep.subr.bf16.mxu0 %v18037_v53 }
 0x820   : > { %10547 = vmatprep.mubr.msk.bf16.mxu1 %vm8519_vm0, %v8441_v27 }
 0x821   : > { %8562 = vmatmul.mubr.bf16.vlgmr.msra.gmra.mxu1 %v8440_v55 }
 0x822   : > { %8758 = vmatpush1.bf16.msra.mxu1 %v11743_v33  ;;  %8886 = vmatpush1.bf16.msra.mxu0 %v11744_v45  ;;  %v8755_v45 = vand.u32 %v11759_v11, %v16472_v43 }
 0x823   : > { %8759 = vmatprep.subr.bf16.mxu1 %v18037_v53  ;;  %8887 = vmatprep.subr.bf16.mxu0 %v18037_v53 }
 0x826   : > { %8760 = vmatpush1.bf16.msra.mxu1 %v11745_v12  ;;  %8888 = vmatpush1.bf16.msra.mxu0 %v11746_v47 }
 0x827   : > { %8761 = vmatprep.subr.bf16.mxu1 %v18037_v53  ;;  %8889 = vmatprep.subr.bf16.mxu0 %v18037_v53 }
 0x82a   : > { %8762 = vmatpush1.bf16.msra.mxu1 %v11747_v56  ;;  %8890 = vmatpush1.bf16.msra.mxu0 %v11748_v13 }
 0x82b   : > { %8763 = vmatprep.subr.bf16.mxu1 %v18037_v53  ;;  %8891 = vmatprep.subr.bf16.mxu0 %v18037_v53 }
 0x82c   : > { %v11289_v44 = vpop.permute.xlu0 %11288 }
 0x82d   : > { %v11291_v29 = vunpack.i.h.bf16 %v11289_v44  ;;  %v11290_v48 = vunpack.i.l.bf16 %v11289_v44  ;;  %v7983_v44 = vpop.f32.mrf.mxu1 }
 0x82e   : > { %8764 = vmatpush1.bf16.msra.mxu1 %v11749_v52  ;;  %8892 = vmatpush1.bf16.msra.mxu0 %v11750_v46  ;;  %v11760_v52 = vld [vmem:[%s17235_s6 + $0x124] sm:$0xff]  }
 0x82f   : > { %v16642_v26 = vmax.f32 %v16523_v15, %v11291_v29  ;;  %v8231_v38 = vsel %vm391_vm8, %v11290_v48, %v11291_v29  ;;  %v11284_v16 = vpop.permute.xlu1 %11283  ;;  %8765 = vmatprep.subr.bf16.mxu1 %v18037_v53  ;;  %8893 = vmatprep.subr.bf16.mxu0 %v18037_v53 }
 0x830   : > { %v16649_v31 = vmax.f32 %v8091_v21, %v8231_v38  ;;  %v11286_v35 = vunpack.i.h.bf16 %v11284_v16  ;;  %v11285_v60 = vunpack.i.l.bf16 %v11284_v16 }
 0x832   : > { %v11317_v51 = vpack.i.bf16 %v16642_v26, %v16649_v31  ;;  %v16654_v15 = vmax.f32 %v16536_v23, %v11286_v35  ;;  %v8230_v36 = vsel %vm391_vm8, %v11285_v60, %v11286_v35  ;;  %8766 = vmatpush1.bf16.msra.mxu1 %v11751_v32  ;;  %8894 = vmatpush1.bf16.msra.mxu0 %v11752_v9  ;;  %v8066_v23 = vpop.f32.mrf.mxu0 }
 0x833   : > { %v16665_v21 = vmax.f32 %v8089_v8, %v8230_v36  ;;  %8767 = vmatprep.subr.bf16.mxu1 %v18037_v53  ;;  %8895 = vmatprep.subr.bf16.mxu0 %v18037_v53  ;;  %v11758_v8 = vld [vmem:[%s17235_s6 + $0x12c] ss:$0 sps:$4 sm:$0xff]   ;;  %v11762_v36 = vld [vmem:[%s17235_s6 + $0x1b4] sm:$0xff]  }
 0x834   : > { %11318 = vrot.lane.b32.xlu0 %v11317_v51, %s11974_s17  ;;  %v8068_v61 = vpop.f32.mrf.mxu0  ;;  %v8881_v10 = vand.u32 %v11758_v8, %v16472_v43 }
 0x835   : > { %v11312_v58 = vpack.i.bf16 %v16654_v15, %v16665_v21 }
 0x836   : > { %8768 = vmatpush1.bf16.msra.mxu1 %v11753_v39  ;;  %8896 = vmatpush1.bf16.msra.mxu0 %v11754_v37  ;;  %v8072_v18 = vpop.f32.mrf.mxu0  ;;  %v7985_v37 = vpop.f32.mrf.mxu1 }
 0x837   : > { %11313 = vrot.lane.b32.xlu1 %v11312_v58, %s11974_s17  ;;  %8769 = vmatprep.subr.bf16.mxu1 %v18037_v53 }
 0x838   : > { %8897 = vmatprep.subr.bf16.mxu0 %v18037_v53  ;;  %v8074_v55 = vpop.f32.mrf.mxu0 }
 0x839   : > { %v7480_v50 = vpop.permute.xlu0 %7479 }
 0x83a   : > { %v7974_v3 = vadd.f32 %v7973_v20, %v7480_v50  ;;  %v7976_v6 = vadd.f32 %v7975_v24, %v7480_v50  ;;  %8770 = vmatpush1.bf16.msra.mxu1 %v11755_v62  ;;  %8898 = vmatpush1.bf16.msra.mxu0 %v11756_v1 }
 0x83b   : > { %8771 = vmatprep.subr.bf16.mxu1 %v18037_v53  ;;  %8911 = vmatprep.subr.bf16.mxu0 %v18037_v53 }
 0x83c   : > { %v16693_v0 = vadd.f32 %v8066_v23, %v7974_v3  ;;  %v8069_v25 = vadd.f32 %v8068_v61, %v7976_v6  ;;  %v7475_v22 = vpop.permute.xlu1 %7474 }
 0x83d   : > { %v7970_v54 = vadd.f32 %v16623_v19, %v7475_v22  ;;  %v7972_v27 = vadd.f32 %v7971_v49, %v7475_v22  ;;  %v11299_v33 = vpop.permute.xlu0 %11298 }
 0x83e   : > { %v8099_v12 = vmax.f32 %v16693_v0, 0.0  ;;  %v8100_v47 = vmax.f32 %v8069_v25, 0.0  ;;  %v11301_v56 = vunpack.i.h.bf16 %v11299_v33  ;;  %v11300_v13 = vunpack.i.l.bf16 %v11299_v33  ;;  %8772 = vmatpush1.bf16.msra.mxu1 %v11757_v2  ;;  %8912 = vmatpush2.bf16.msra.mxu0 %v8881_v10  ;;  %v11764_v25 = vld [vmem:[%s17235_s6 + $0x1ac] sm:$0xff]   ;;  %v11793_v0 = vld [vmem:[%s17235_s6 + $0x1d8] sm:$0xff]  }
 0x83f   : > { %v16702_v46 = vadd.f32 %v16633_v42, %v7970_v54  ;;  %v8065_v19 = vadd.f32 %v8064_v59, %v7972_v27  ;;  %8785 = vmatprep.subr.bf16.mxu1 %v18037_v53  ;;  %8913 = vmatprep.subr.bf16.mxu0 %v18037_v53  ;;  %v8076_v59 = vpop.f32.mrf.mxu0 }
 0x840   : > { %8125 = vst.msk [vmem:[#allocation6 + $0x98] sm:$0xff] %vm8106_vm6, %v8100_v47  ;;  %v8402_v29 = vmax.f32 %v16546_v34, %v11301_v56  ;;  %v8362_v48 = vsel %vm7078_vm12, %v11300_v13, %v11301_v56  ;;  %v11294_v49 = vpop.permute.xlu1 %11293  ;;  %v11761_v34 = vld [vmem:[%s17235_s6 + $0xd8] sm:$0xff]  }
 0x841   : > { %v8097_v32 = vmax.f32 %v16702_v46, 0.0  ;;  %v8098_v9 = vmax.f32 %v8065_v19, 0.0  ;;  %v8401_v38 = vmax.f32 %v16550_v30, %v8362_v48  ;;  %v11296_v42 = vunpack.i.h.bf16 %v11294_v49  ;;  %v7485_v16 = vpop.permute.xlu0 %7484 }
 0x842   : > { %v8799_v35 = vpack.c.bf16 %v8402_v29, %v8402_v29  ;;  %v11295_v60 = vunpack.i.l.bf16 %v11294_v49  ;;  %v7980_v20 = vadd.f32 %v7979_v14, %v7485_v16  ;;  %v7982_v51 = vadd.f32 %v7981_v40, %v7485_v16  ;;  %8786 = vmatpush2.bf16.msra.mxu1 %v8755_v45  ;;  %8914 = vmatpush2.bf16.msra.mxu0 %v11760_v52  ;;  %v11767_v49 = vld [vmem:[%s17235_s6 + $0x158] sm:$0xff]  }
 0x843   : > { %8123 = vst.msk [vmem:[#allocation6 + $0x88] sm:$0xff] %vm8106_vm6, %v8098_v9  ;;  %v8798_v30 = vpack.c.bf16 %v8401_v38, %v8401_v38  ;;  %v8400_v39 = vmax.f32 %v16559_v7, %v11296_v42  ;;  %8787 = vmatprep.subr.bf16.mxu1 %v18037_v53  ;;  %9135 = vmatprep.subr.bf16.mxu0 %v18037_v53  ;;  %v8078_v7 = vpop.f32.mrf.mxu0  ;;  %v11769_v38 = vld [vmem:[%s17235_s6 + $0x150] sm:$0xff]  }
 0x844   : > { %v8361_v23 = vsel %vm7078_vm12, %v11295_v60, %v11296_v42  ;;  %v16722_v58 = vadd.f32 %v8072_v18, %v7980_v20  ;;  %v8075_v24 = vadd.f32 %v8074_v55, %v7982_v51  ;;  %10618 = vmatprep.mubr.msk.bf16.mxu0 %vm8519_vm0, %v8799_v35  ;;  %v11304_v62 = vpop.permute.xlu1 %11303  ;;  %v11763_v18 = vld [vmem:[%s17235_s6 + $0x168] sm:$0xff]   ;;  %v11773_v51 = vld [vmem:[%s17235_s6 + $0x140] sm:$0xff]  }
 0x845   : > { %v8673_v1 = vpack.c.bf16 %v8400_v39, %v8400_v39  ;;  %v8399_v8 = vmax.f32 %v16563_v28, %v8361_v23  ;;  %v11306_v61 = vunpack.i.h.bf16 %v11304_v62  ;;  %v11305_v14 = vunpack.i.l.bf16 %v11304_v62  ;;  %v7490_v50 = vpop.permute.xlu0 %7489  ;;  %8916 = vmatmul.mubr.bf16.vlgmr.msra.gmra.mxu0 %v8798_v30  ;;  %v11771_v60 = vld [vmem:[%s17235_s6 + $0x148] sm:$0xff]   ;;  %v11776_v30 = vld [vmem:[%s17235_s6 + $0x17c] sm:$0xff]   ;;  %v11778_v39 = vld [vmem:[%s17235_s6 + $0x1c4] ss:$0 sps:$4 sm:$0xff]  }
 0x846   : > { %v8101_v11 = vmax.f32 %v16722_v58, 0.0  ;;  %v8102_v3 = vmax.f32 %v8075_v24, 0.0  ;;  %v7984_v6 = vadd.f32 %v7983_v44, %v7490_v50  ;;  %v7986_v2 = vadd.f32 %v7985_v37, %v7490_v50  ;;  %8788 = vmatpush2.bf16.msra.mxu1 %v11761_v34  ;;  %9136 = vmatpush1.bf16.msra.mxu0 %v11762_v36  ;;  %v11765_v44 = vld [vmem:[%s17235_s6 + $0x160] sm:$0xff]   ;;  %v11772_v20 = vld [vmem:[%s17235_s6 + $0x18c] sm:$0xff]   ;;  %v11775_v36 = vld [vmem:[%s17235_s6 + $0x138] sm:$0xff]  }
 0x847   : > { %v8672_v10 = vpack.c.bf16 %v8399_v8, %v8399_v8  ;;  %v8232_v40 = vsel %vm391_vm8, %v11305_v14, %v11306_v61  ;;  %10588 = vmatprep.mubr.msk.bf16.mxu1 %vm8519_vm0, %v8673_v1  ;;  %v16732_v28 = vld [vmem:[#allocation6 + $0x98] sm:$0xff]  ;;  %9009 = vmatprep.subr.bf16.mxu1 %v18037_v53  ;;  %v16746_v47 = vmax.f32 %v16573_v4, %v11306_v61  ;;  %v11774_v34 = vld [vmem:[%s17235_s6 + $0x184] sm:$0xff]   ;;  %v11777_v37 = vld [vmem:[%s17235_s6 + $0x130] sm:$0xff]  }
 0x848   : > { %8127 = vst.msk [vmem:[#allocation6 + $0xa8] sm:$0xff] %vm8106_vm6, %v8102_v3  ;;  %v16739_v22 = vadd.f32 %v8076_v59, %v7984_v6  ;;  %v8079_v54 = vadd.f32 %v8078_v7, %v7986_v2  ;;  %v11309_v27 = vpop.permute.xlu1 %11308  ;;  %v11327_v33 = vpack.i.bf16 %v16732_v28, %v8099_v12  ;;  %9137 = vmatprep.subr.bf16.mxu0 %v18037_v53  ;;  %v11770_v59 = vld [vmem:[%s17235_s6 + $0x194] sm:$0xff]   ;;  %v11780_v1 = vld [vmem:[%s17235_s6 + $0x1bc] sm:$0xff]  }
 0x849   : > { %8790 = vmatmul.mubr.bf16.vlgmr.msra.gmra.mxu1 %v8672_v10  ;;  %v11311_v45 = vunpack.i.h.bf16 %v11309_v27  ;;  %v11310_v55 = vunpack.i.l.bf16 %v11309_v27  ;;  %v16750_v56 = vmax.f32 %v8093_v41, %v8232_v40  ;;  %v11766_v41 = vld [vmem:[%s17235_s6 + $0x1a4] sm:$0xff]   ;;  %v11779_v23 = vld [vmem:[%s17235_s6 + $0x178] ss:$0 sps:$4 sm:$0xff]   ;;  %v9133_v24 = vand.u32 %v11778_v39, %v16472_v43  ;;  %v11781_v8 = vld [vmem:[%s17235_s6 + $0x170] sm:$0xff]  }
 0x84a   : > { %v8103_v13 = vmax.f32 %v16739_v22, 0.0  ;;  %v8104_v52 = vmax.f32 %v8079_v54, 0.0  ;;  %11328 = vrot.lane.b32.xlu0 %v11327_v33, %s17669_s29  ;;  %v16754_v19 = vld [vmem:[#allocation6 + $0x88] sm:$0xff]  ;;  %9010 = vmatpush1.bf16.msra.mxu1 %v11763_v18  ;;  %v9007_v62 = vand.u32 %v11779_v23, %v16472_v43  ;;  %v11800_v22 = vld [vmem:[%s17235_s6 + $0x254] sm:$0xff]  }
 0x84b   : > { %v16760_v29 = vmax.f32 %v16582_v57, %v11311_v45  ;;  %v8233_v4 = vsel %vm391_vm8, %v11310_v55, %v11311_v45  ;;  %v11322_v5 = vpack.i.bf16 %v16754_v19, %v8097_v32  ;;  %9138 = vmatpush1.bf16.msra.mxu0 %v11764_v25  ;;  %9011 = vmatprep.subr.bf16.mxu1 %v18037_v53  ;;  %v11782_v25 = vld [vmem:[%s17235_s6 + $0x24c] sm:$0xff]  }
 0x84c   : > { %8129 = vst.msk [vmem:[#allocation6 + $0xb8] sm:$0xff] %vm8106_vm6, %v8104_v52  ;;  %v16773_v48 = vmax.f32 %v8095_v17, %v8233_v4  ;;  %9139 = vmatprep.subr.bf16.mxu0 %v18037_v53  ;;  %v11332_v9 = vpack.i.bf16 %v16746_v47, %v16750_v56  ;;  %v11784_v52 = vld [vmem:[%s17235_s6 + $0x244] sm:$0xff]   ;;  %v11788_v4 = vld [vmem:[%s17235_s6 + $0x234] sm:$0xff]  }
 0x84d   : > { %11323 = vrot.lane.b32.xlu1 %v11322_v5, %s17669_s29  ;;  %v11789_v5 = vld [vmem:[%s17235_s6 + $0x1e8] sm:$0xff]  }
 0x84e   : > { %v11337_v57 = vpack.i.bf16 %v16760_v29, %v16773_v48  ;;  %9012 = vmatpush1.bf16.msra.mxu1 %v11765_v44  ;;  %v11787_v44 = vld [vmem:[%s17235_s6 + $0x1f0] sm:$0xff]  }
 0x84f   : > { %9140 = vmatpush1.bf16.msra.mxu0 %v11766_v41  ;;  %9013 = vmatprep.subr.bf16.mxu1 %v18037_v53  ;;  %v16789_v17 = vld [vmem:[#allocation6 + $0xa8] sm:$0xff] }
 0x850   : > { %11338 = vrot.lane.b32.xlu0 %v11337_v57, %s11974_s17  ;;  %9141 = vmatprep.subr.bf16.mxu0 %v18037_v53  ;;  %v11342_v42 = vpack.i.bf16 %v16789_v17, %v8101_v11  ;;  %v11790_v41 = vld [vmem:[%s17235_s6 + $0x22c] sm:$0xff]  }
 0x851   : > { %11333 = vrot.lane.b32.xlu1 %v11332_v9, %s11974_s17 }
 0x852   : > { %9014 = vmatpush1.bf16.msra.mxu1 %v11767_v49 }
 0x853   : > { %v16799_v16 = vld [vmem:[#allocation6 + $0xb8] sm:$0xff]  ;;  %9142 = vmatpush1.bf16.msra.mxu0 %v11768_v63  ;;  %9015 = vmatprep.subr.bf16.mxu1 %v18037_v53 }
 0x854   : > { %v11347_v35 = vpack.i.bf16 %v16799_v16, %v8103_v13  ;;  %9143 = vmatprep.subr.bf16.mxu0 %v18037_v53  ;;  %v11791_v63 = vld [vmem:[%s17235_s6 + $0x1e0] sm:$0xff]  }
 0x855   : > { %11343 = vrot.lane.b32.xlu1 %v11342_v42, %s17669_s29 }
 0x856   : > { %11348 = vrot.lane.b32.xlu0 %v11347_v35, %s17669_s29  ;;  %9016 = vmatpush1.bf16.msra.mxu1 %v11769_v38  ;;  %v11792_v35 = vld [vmem:[%s17235_s6 + $0x224] sm:$0xff]   ;;  %s18044_s29 = sld [smem:[#allocation52_spill]] }
 0x857   : > { %9144 = vmatpush1.bf16.msra.mxu0 %v11770_v59  ;;  %9017 = vmatprep.subr.bf16.mxu1 %v18037_v53 }
 0x858   : > { %9145 = vmatprep.subr.bf16.mxu0 %v18037_v53 }
 0x85a   : > { %9018 = vmatpush1.bf16.msra.mxu1 %v11771_v60 }
 0x85b   : > { %9146 = vmatpush1.bf16.msra.mxu0 %v11772_v20  ;;  %9019 = vmatprep.subr.bf16.mxu1 %v18037_v53 }
 0x85c   : > { %9147 = vmatprep.subr.bf16.mxu0 %v18037_v53  ;;  %s18045_s21 = smov %s18044_s29  ;;  %s17194_s16 = scalar_lea.hbm %s18044_s29, %s10861_s20 }
 0x85e   : > { %9020 = vmatpush1.bf16.msra.mxu1 %v11773_v51 }
 0x85f   : > { %9148 = vmatpush1.bf16.msra.mxu0 %v11774_v34  ;;  %9021 = vmatprep.subr.bf16.mxu1 %v18037_v53 }
 0x860   : > { %9149 = vmatprep.subr.bf16.mxu0 %v18037_v53 }
 0x862   : > { %9022 = vmatpush1.bf16.msra.mxu1 %v11775_v36 }
 0x863   : > { %9150 = vmatpush1.bf16.msra.mxu0 %v11776_v30  ;;  %9023 = vmatprep.subr.bf16.mxu1 %v18037_v53 }
 0x864   : > { %9163 = vmatprep.subr.bf16.mxu0 %v18037_v53 }
 0x866   : > { %9024 = vmatpush1.bf16.msra.mxu1 %v11777_v37 }
 0x867   : > { %9164 = vmatpush2.bf16.msra.mxu0 %v9133_v24  ;;  %9037 = vmatprep.subr.bf16.mxu1 %v18037_v53 }
 0x868   : > { %9165 = vmatprep.subr.bf16.mxu0 %v18037_v53 }
 0x86a   : > { %9038 = vmatpush2.bf16.msra.mxu1 %v9007_v62  ;;  %v11795_v62 = vld [vmem:[%s17235_s6 + $0x1d0] sm:$0xff]  }
 0x86b   : > { %9166 = vmatpush2.bf16.msra.mxu0 %v11780_v1  ;;  %9039 = vmatprep.subr.bf16.mxu1 %v18037_v53  ;;  %v11798_v1 = vld [vmem:[%s17235_s6 + $0x25c] ss:$0 sps:$4 sm:$0xff]  }
 0x86c   : > { %9387 = vmatprep.subr.bf16.mxu0 %v18037_v53 }
 0x86e   : > { %9040 = vmatpush2.bf16.msra.mxu1 %v11781_v8 }
 0x86f   : > { %9261 = vmatprep.subr.bf16.mxu1 %v18037_v53 }
 0x8a6   : > { %v11319_v61 = vpop.permute.xlu0 %11318 }
 0x8a7   : > { %v11321_v14 = vunpack.i.h.bf16 %v11319_v61  ;;  %v11320_v50 = vunpack.i.l.bf16 %v11319_v61 }
 0x8a9   : > { %v8406_v7 = vmax.f32 %v16642_v26, %v11321_v14  ;;  %v8364_v3 = vsel %vm7078_vm12, %v11320_v50, %v11321_v14  ;;  %v11314_v6 = vpop.permute.xlu1 %11313 }
 0x8aa   : > { %v8405_v2 = vmax.f32 %v16649_v31, %v8364_v3  ;;  %v11316_v18 = vunpack.i.h.bf16 %v11314_v6  ;;  %v11315_v10 = vunpack.i.l.bf16 %v11314_v6  ;;  %v11783_v31 = vld [vmem:[%s17235_s6 + $0x200] sm:$0xff]  }
 0x8ab   : > { %v9051_v40 = vpack.c.bf16 %v8406_v7, %v8406_v7 }
 0x8ac   : > { %v9050_v54 = vpack.c.bf16 %v8405_v2, %v8405_v2  ;;  %v8404_v27 = vmax.f32 %v16654_v15, %v11316_v18  ;;  %v8363_v33 = vsel %vm7078_vm12, %v11315_v10, %v11316_v18  ;;  %v11785_v15 = vld [vmem:[%s17235_s6 + $0x1f8] sm:$0xff]  }
 0x8ad   : > { %v8403_v45 = vmax.f32 %v16665_v21, %v8363_v33  ;;  %10678 = vmatprep.mubr.msk.bf16.mxu0 %vm8519_vm0, %v9051_v40  ;;  %v11786_v21 = vld [vmem:[%s17235_s6 + $0x23c] sm:$0xff]   ;;  %v11797_v40 = vld [vmem:[%s17235_s6 + $0x1c8] sm:$0xff]  }
 0x8ae   : > { %v8925_v26 = vpack.c.bf16 %v8404_v27, %v8404_v27  ;;  %9168 = vmatmul.mubr.bf16.vlgmr.msra.gmra.mxu0 %v9050_v54  ;;  %v11799_v54 = vld [vmem:[%s17235_s6 + $0x210] ss:$0 sps:$4 sm:$0xff]  }
 0x8af   : > { %v8924_v55 = vpack.c.bf16 %v8403_v45, %v8403_v45  ;;  %9388 = vmatpush1.bf16.msra.mxu0 %v11782_v25  ;;  %v9385_v25 = vand.u32 %v11798_v1, %v16472_v43  ;;  %v11819_v1 = vld [vmem:[%s17235_s6 + $0x2a8] ss:$0 sps:$4 sm:$0xff]  }
 0x8b0   : > { %10648 = vmatprep.mubr.msk.bf16.mxu1 %vm8519_vm0, %v8925_v26  ;;  %9389 = vmatprep.subr.bf16.mxu0 %v18037_v53 }
 0x8b1   : > { %9042 = vmatmul.mubr.bf16.vlgmr.msra.gmra.mxu1 %v8924_v55 }
 0x8b2   : > { %9262 = vmatpush1.bf16.msra.mxu1 %v11783_v31 }
 0x8b3   : > { %9390 = vmatpush1.bf16.msra.mxu0 %v11784_v52  ;;  %9263 = vmatprep.subr.bf16.mxu1 %v18037_v53  ;;  %v11801_v52 = vld [vmem:[%s17235_s6 + $0x208] sm:$0xff]  }
 0x8b4   : > { %9391 = vmatprep.subr.bf16.mxu0 %v18037_v53 }
 0x8b6   : > { %9264 = vmatpush1.bf16.msra.mxu1 %v11785_v15 }
 0x8b7   : > { %9392 = vmatpush1.bf16.msra.mxu0 %v11786_v21  ;;  %9265 = vmatprep.subr.bf16.mxu1 %v18037_v53 }
 0x8b8   : > { %9393 = vmatprep.subr.bf16.mxu0 %v18037_v53 }
 0x8ba   : > { %9266 = vmatpush1.bf16.msra.mxu1 %v11787_v44  ;;  %v11803_v44 = vld [vmem:[%s17235_s6 + $0x298] sm:$0xff]  }
 0x8bb   : > { %9394 = vmatpush1.bf16.msra.mxu0 %v11788_v4  ;;  %9267 = vmatprep.subr.bf16.mxu1 %v18037_v53 }
 0x8bc   : > { %v11329_v57 = vpop.permute.xlu0 %11328  ;;  %9395 = vmatprep.subr.bf16.mxu0 %v18037_v53 }
 0x8bd   : > { %v11331_v49 = vunpack.i.h.bf16 %v11329_v57  ;;  %v11330_v9 = vunpack.i.l.bf16 %v11329_v57 }
 0x8be   : > { %9268 = vmatpush1.bf16.msra.mxu1 %v11789_v5  ;;  %v11805_v5 = vld [vmem:[%s17235_s6 + $0x290] sm:$0xff]  }
 0x8bf   : > { %v16905_v38 = vmax.f32 %v16732_v28, %v11331_v49  ;;  %v8235_v42 = vsel %vm391_vm8, %v11330_v9, %v11331_v49  ;;  %9396 = vmatpush1.bf16.msra.mxu0 %v11790_v41  ;;  %v11324_v59 = vpop.permute.xlu1 %11323  ;;  %9269 = vmatprep.subr.bf16.mxu1 %v18037_v53  ;;  %v11806_v41 = vld [vmem:[%s17235_s6 + $0x2d4] sm:$0xff]   ;;  %v11807_v49 = vld [vmem:[%s17235_s6 + $0x288] sm:$0xff]  }
 0x8c0   : > { %v16914_v60 = vmax.f32 %v8099_v12, %v8235_v42  ;;  %v11326_v20 = vunpack.i.h.bf16 %v11324_v59  ;;  %v11325_v51 = vunpack.i.l.bf16 %v11324_v59  ;;  %9397 = vmatprep.subr.bf16.mxu0 %v18037_v53 }
 0x8c2   : > { %v11357_v28 = vpack.i.bf16 %v16905_v38, %v16914_v60  ;;  %v16920_v34 = vmax.f32 %v16754_v19, %v11326_v20  ;;  %v8234_v36 = vsel %vm391_vm8, %v11325_v51, %v11326_v20  ;;  %9270 = vmatpush1.bf16.msra.mxu1 %v11791_v63  ;;  %v11339_v30 = vpop.permute.xlu0 %11338  ;;  %v11794_v19 = vld [vmem:[%s17235_s6 + $0x21c] sm:$0xff]   ;;  %v11808_v63 = vld [vmem:[%s17235_s6 + $0x2cc] sm:$0xff]  }
 0x8c3   : > { %v16928_v12 = vmax.f32 %v8097_v32, %v8234_v36  ;;  %9398 = vmatpush1.bf16.msra.mxu0 %v11792_v35  ;;  %v11341_v39 = vunpack.i.h.bf16 %v11339_v30  ;;  %v11334_v37 = vpop.permute.xlu1 %11333  ;;  %9271 = vmatprep.subr.bf16.mxu1 %v18037_v53  ;;  %v11340_v3 = vunpack.i.l.bf16 %v11339_v30  ;;  %v11809_v20 = vld [vmem:[%s17235_s6 + $0x280] sm:$0xff]  }
 0x8c4   : > { %v11336_v23 = vunpack.i.h.bf16 %v11334_v37  ;;  %11358 = vrot.lane.b32.xlu0 %v11357_v28, %s11974_s17  ;;  %9399 = vmatprep.subr.bf16.mxu0 %v18037_v53  ;;  %v11335_v45 = vunpack.i.l.bf16 %v11334_v37  ;;  %v11810_v36 = vld [vmem:[%s17235_s6 + $0x2c4] sm:$0xff]   ;;  %v11812_v37 = vld [vmem:[%s17235_s6 + $0x2bc] sm:$0xff]  }
 0x8c5   : > { %v11352_v24 = vpack.i.bf16 %v16920_v34, %v16928_v12  ;;  %v8410_v46 = vmax.f32 %v16760_v29, %v11341_v39  ;;  %v11796_v29 = vld [vmem:[%s17235_s6 + $0x214] sm:$0xff]   ;;  %v8366_v31 = vsel %vm7078_vm12, %v11340_v3, %v11341_v39 }
 0x8c6   : > { %v8408_v32 = vmax.f32 %v16746_v47, %v11336_v23  ;;  %9272 = vmatpush1.bf16.msra.mxu1 %v11793_v0  ;;  %v8365_v55 = vsel %vm7078_vm12, %v11335_v45, %v11336_v23  ;;  %v11811_v0 = vld [vmem:[%s17235_s6 + $0x278] sm:$0xff]  }
 0x8c7   : > { %v9303_v8 = vpack.c.bf16 %v8410_v46, %v8410_v46  ;;  %9400 = vmatpush1.bf16.msra.mxu0 %v11794_v19  ;;  %11353 = vrot.lane.b32.xlu1 %v11352_v24, %s11974_s17  ;;  %v11344_v61 = vpop.permute.xlu1 %11343  ;;  %v8407_v15 = vmax.f32 %v16750_v56, %v8365_v55  ;;  %v11804_v56 = vld [vmem:[%s17235_s6 + $0x2dc] sm:$0xff]   ;;  %v11813_v19 = vld [vmem:[%s17235_s6 + $0x270] sm:$0xff]   ;;  %v11815_v24 = vld [vmem:[%s17235_s6 + $0x268] sm:$0xff]  }
 0x8c8   : > { %v9177_v14 = vpack.c.bf16 %v8408_v32, %v8408_v32  ;;  %v11346_v47 = vunpack.i.h.bf16 %v11344_v61  ;;  %v11345_v50 = vunpack.i.l.bf16 %v11344_v61  ;;  %v11349_v7 = vpop.permute.xlu0 %11348  ;;  %9273 = vmatprep.subr.bf16.mxu1 %v18037_v53  ;;  %9401 = vmatprep.subr.bf16.mxu0 %v18037_v53  ;;  %v11814_v23 = vld [vmem:[%s17235_s6 + $0x2b4] sm:$0xff]   ;;  %v11816_v46 = vld [vmem:[%s17235_s6 + $0x2ac] sm:$0xff]   ;;  %v9511_v61 = vand.u32 %v11819_v1, %v16472_v43 }
 0x8c9   : > { %v11351_v6 = vunpack.i.h.bf16 %v11349_v7  ;;  %v11350_v2 = vunpack.i.l.bf16 %v11349_v7  ;;  %10738 = vmatprep.mubr.msk.bf16.mxu0 %vm8519_vm0, %v9303_v8  ;;  %v9176_v4 = vpack.c.bf16 %v8407_v15, %v8407_v15  ;;  %v11818_v32 = vld [vmem:[%s17235_s6 + $0x2f4] ss:$0 sps:$4 sm:$0xff]   ;;  %v11822_v15 = vld [vmem:[%s17235_s6 + $0x37c] sm:$0xff]  }
 0x8ca   : > { %v16954_v18 = vmax.f32 %v16789_v17, %v11346_v47  ;;  %v8236_v10 = vsel %vm391_vm8, %v11345_v50, %v11346_v47  ;;  %9274 = vmatpush1.bf16.msra.mxu1 %v11795_v62  ;;  %10708 = vmatprep.mubr.msk.bf16.mxu1 %vm8519_vm0, %v9177_v14  ;;  %v11817_v62 = vld [vmem:[%s17235_s6 + $0x260] sm:$0xff]   ;;  %v9637_v8 = vand.u32 %v11818_v32, %v16472_v43 }
 0x8cb   : > { %v16967_v27 = vmax.f32 %v8101_v11, %v8236_v10  ;;  %v16970_v17 = vmax.f32 %v16799_v16, %v11351_v6  ;;  %v8237_v33 = vsel %vm391_vm8, %v11350_v2, %v11351_v6  ;;  %9402 = vmatpush1.bf16.msra.mxu0 %v11796_v29  ;;  %9275 = vmatprep.subr.bf16.mxu1 %v18037_v53  ;;  %v11820_v29 = vld [vmem:[%s17235_s6 + $0x2ec] sm:$0xff]   ;;  %v11821_v14 = vld [vmem:[%s17235_s6 + $0x2a0] sm:$0xff]   ;;  %vm9940_vm8 = vcmask 80896  }
 0x8cc   : > { %v16976_v26 = vmax.f32 %v8103_v13, %v8237_v33  ;;  %9415 = vmatprep.subr.bf16.mxu0 %v18037_v53  ;;  %v9259_v16 = vand.u32 %v11799_v54, %v16472_v43  ;;  %v8409_v13 = vmax.f32 %v16773_v48, %v8366_v31  ;;  %v11802_v48 = vld [vmem:[%s17235_s6 + $0x2e4] sm:$0xff]  }
 0x8cd   : > { %v11362_v58 = vpack.i.bf16 %v16954_v18, %v16967_v27 }
 0x8ce   : > { %v11367_v11 = vpack.i.bf16 %v16970_v17, %v16976_v26  ;;  %9276 = vmatpush1.bf16.msra.mxu1 %v11797_v40  ;;  %v9302_v21 = vpack.c.bf16 %v8409_v13, %v8409_v13 }
 0x8cf   : > { %9416 = vmatpush2.bf16.msra.mxu0 %v9385_v25  ;;  %11363 = vrot.lane.b32.xlu1 %v11362_v58, %s11974_s17 }
 0x8d0   : > { %11368 = vrot.lane.b32.xlu0 %v11367_v11, %s11974_s17  ;;  %9289 = vmatprep.subr.bf16.mxu1 %v18037_v53  ;;  %s9956_s17 = sshll.u32 %s298_s13, 4  ;;  %s9957_s17 = int_to_ptr.vmem [resolvable:$true] %s9956_s17 }
 0x8d1   : > { %9417 = vmatprep.subr.bf16.mxu0 %v18037_v53  ;;  %s11885_s14 = scalar_lea.vmem %s9957_s17, 128  ;;  %p11892_p0 = scmp.lt.s32.totalorder %s9957_s17, %s11890_s18 }
 0x8d2   : > { %9290 = vmatpush2.bf16.msra.mxu1 %v9259_v16  ;;  %p11886_p11 = scmp.ne.s32.totalorder %s9957_s17, %s11885_s14  ;;  %p11893_p1 = scmp.lt.s32.totalorder %s11891_s10, %s11885_s14 }
 0x8d3   : > { %9418 = vmatpush2.bf16.msra.mxu0 %v11800_v22  ;;  %9291 = vmatprep.subr.bf16.mxu1 %v18037_v53 }
 0x8d4   : > { %9639 = vmatprep.subr.bf16.mxu0 %v18037_v53  ;;  %p11887_p12 = pnand %p11886_p11, %p12060_p5  ;;  %p11894_p2 = por %p11893_p1, %p11892_p0 }
 0x8d6   : > { %9420 = vmatmul.mubr.bf16.vlgmr.msra.gmra.mxu0 %v9302_v21  ;;  %9292 = vmatpush2.bf16.msra.mxu1 %v11801_v52  ;;  %p11888_p13 = pneg %p11887_p12 }
 0x8d7   : > { %9640 = vmatpush1.bf16.msra.mxu0 %v11802_v48  ;;  %9513 = vmatprep.subr.bf16.mxu1 %v18037_v53 }
 0x8d8   : > { %9641 = vmatprep.subr.bf16.mxu0 %v18037_v53  ;;  %p11895_p3 = pnand %p11894_p2, %p11888_p13 }
 0x8d9   : > { %9294 = vmatmul.mubr.bf16.vlgmr.msra.gmra.mxu1 %v9176_v4 }
 0x8da   : > { %9514 = vmatpush1.bf16.msra.mxu1 %v11803_v44 }
 0x8db   : > { %9642 = vmatpush1.bf16.msra.mxu0 %v11804_v56  ;;  %9515 = vmatprep.subr.bf16.mxu1 %v18037_v53 }
 0x8dc   : > { %9643 = vmatprep.subr.bf16.mxu0 %v18037_v53 }
 0x8dd   : > { %v8666_v57 = vpop.f32.mrf.mxu0 }
 0x8de   : > { %9516 = vmatpush1.bf16.msra.mxu1 %v11805_v5  ;;  %v11824_v5 = vld [vmem:[%s17235_s6 + $0x374] sm:$0xff]  }
 0x8df   : > { %v8668_v9 = vpop.f32.mrf.mxu0  ;;  %9644 = vmatpush1.bf16.msra.mxu0 %v11806_v41  ;;  %9517 = vmatprep.subr.bf16.mxu1 %v18037_v53 }
 0x8e0   : > { %9645 = vmatprep.subr.bf16.mxu0 %v18037_v53  ;;  %v11826_v9 = vld [vmem:[%s17235_s6 + $0x36c] sm:$0xff]  }
 0x8e1   : > { %v8563_v42 = vpop.f32.mrf.mxu1  ;;  %v8669_v59 = vpop.f32.mrf.mxu0 }
 0x8e2   : > { %v8667_v35 = vadd.f32 %v8666_v57, %v8563_v42  ;;  %9518 = vmatpush1.bf16.msra.mxu1 %v11807_v49  ;;  %v11825_v57 = vld [vmem:[%s17235_s6 + $0x328] sm:$0xff]  }
 0x8e3   : > { %v8565_v51 = vpop.f32.mrf.mxu1  ;;  %v8670_v28 = vpop.f32.mrf.mxu0  ;;  %9646 = vmatpush1.bf16.msra.mxu0 %v11808_v63  ;;  %9519 = vmatprep.subr.bf16.mxu1 %v18037_v53 }
 0x8e4   : > { %9647 = vmatprep.subr.bf16.mxu0 %v18037_v53  ;;  %v11828_v51 = vld [vmem:[%s17235_s6 + $0x364] sm:$0xff]   ;;  %v11831_v28 = vld [vmem:[%s17235_s6 + $0x310] sm:$0xff]  }
 0x8e5   : > { %v8566_v30 = vpop.f32.mrf.mxu1 }
 0x8e6   : > { %9520 = vmatpush1.bf16.msra.mxu1 %v11809_v20  ;;  %v11833_v30 = vld [vmem:[%s17235_s6 + $0x308] sm:$0xff]  }
 0x8e7   : > { %v8567_v39 = vpop.f32.mrf.mxu1  ;;  %9648 = vmatpush1.bf16.msra.mxu0 %v11810_v36  ;;  %9521 = vmatprep.subr.bf16.mxu1 %v18037_v53  ;;  %v11832_v36 = vld [vmem:[%s17235_s6 + $0x354] sm:$0xff]  }
 0x8e8   : > { %9649 = vmatprep.subr.bf16.mxu0 %v18037_v53  ;;  %v11835_v39 = vld [vmem:[%s17235_s6 + $0x300] sm:$0xff]  }
 0x8ea   : > { %9522 = vmatpush1.bf16.msra.mxu1 %v11811_v0  ;;  %v11834_v0 = vld [vmem:[%s17235_s6 + $0x34c] sm:$0xff]  }
 0x8eb   : > { %9650 = vmatpush1.bf16.msra.mxu0 %v11812_v37  ;;  %9523 = vmatprep.subr.bf16.mxu1 %v18037_v53  ;;  %v11836_v37 = vld [vmem:[%s17235_s6 + $0x344] sm:$0xff]  }
 0x8ec   : > { %9651 = vmatprep.subr.bf16.mxu0 %v18037_v53 }
 0x8ee   : > { %9524 = vmatpush1.bf16.msra.mxu1 %v11813_v19  ;;  %v11838_v19 = vld [vmem:[%s17235_s6 + $0x38c] ss:$0 sps:$4 sm:$0xff]  }
 0x8ef   : > { %9652 = vmatpush1.bf16.msra.mxu0 %v11814_v23  ;;  %9525 = vmatprep.subr.bf16.mxu1 %v18037_v53  ;;  %v9889_v32 = vand.u32 %v11838_v19, %v16472_v43 }
 0x8f0   : > { %9653 = vmatprep.subr.bf16.mxu0 %v18037_v53 }
 0x8f2   : > { %9526 = vmatpush1.bf16.msra.mxu1 %v11815_v24  ;;  %v11837_v24 = vld [vmem:[%s17235_s6 + $0x2f8] sm:$0xff]  }
 0x8f3   : > { %9654 = vmatpush1.bf16.msra.mxu0 %v11816_v46  ;;  %9527 = vmatprep.subr.bf16.mxu1 %v18037_v53  ;;  %v11839_v46 = vld [vmem:[%s17235_s6 + $0x340] ss:$0 sps:$4 sm:$0xff]  }
 0x8f4   : > { %9667 = vmatprep.subr.bf16.mxu0 %v18037_v53 }
 0x8f6   : > { %9528 = vmatpush1.bf16.msra.mxu1 %v11817_v62 }
 0x8f7   : > { %9668 = vmatpush2.bf16.msra.mxu0 %v9637_v8  ;;  %9541 = vmatprep.subr.bf16.mxu1 %v18037_v53  ;;  %v9763_v8 = vand.u32 %v11839_v46, %v16472_v43 }
 0x8f8   : > { %9669 = vmatprep.subr.bf16.mxu0 %v18037_v53 }
 0x8fa   : > { %9542 = vmatpush2.bf16.msra.mxu1 %v9511_v61  ;;  %v11840_v61 = vld [vmem:[%s17235_s6 + $0x384] sm:$0xff]  }
 0x8fb   : > { %9670 = vmatpush2.bf16.msra.mxu0 %v11820_v29  ;;  %9543 = vmatprep.subr.bf16.mxu1 %v18037_v53 }
 0x8fc   : > { %9891 = vmatprep.subr.bf16.mxu0 %v18037_v53 }
 0x8fe   : > { %9544 = vmatpush2.bf16.msra.mxu1 %v11821_v14 }
 0x8ff   : > { %9765 = vmatprep.subr.bf16.mxu1 %v18037_v53 }
 0x905   : > { %v8917_v47 = vpop.f32.mrf.mxu0 }
 0x907   : > { %v8919_v50 = vpop.f32.mrf.mxu0 }
 0x909   : > { %v8791_v7 = vpop.f32.mrf.mxu1  ;;  %v8920_v3 = vpop.f32.mrf.mxu0 }
 0x90a   : > { %v8797_v6 = vadd.f32 %v8791_v7, %v8667_v35  ;;  %v11827_v35 = vld [vmem:[%s17235_s6 + $0x320] sm:$0xff]  }
 0x90b   : > { %v8793_v2 = vpop.f32.mrf.mxu1  ;;  %v8921_v10 = vpop.f32.mrf.mxu0 }
 0x90c   : > { %v17083_v40 = vadd.f32 %v8917_v47, %v8797_v6  ;;  %v11841_v47 = vld [vmem:[%s17235_s6 + $0x338] sm:$0xff]  }
 0x90d   : > { %v8794_v25 = vpop.f32.mrf.mxu1 }
 0x90f   : > { %v8795_v54 = vpop.f32.mrf.mxu1 }
 0x936   : > { %v11359_v33 = vpop.permute.xlu0 %11358 }
 0x937   : > { %v11361_v45 = vunpack.i.h.bf16 %v11359_v33  ;;  %v11360_v31 = vunpack.i.l.bf16 %v11359_v33 }
 0x939   : > { %v8414_v58 = vmax.f32 %v16905_v38, %v11361_v45  ;;  %v8368_v11 = vsel %vm7078_vm12, %v11360_v31, %v11361_v45  ;;  %v11354_v16 = vpop.permute.xlu1 %11353 }
 0x93a   : > { %v8413_v22 = vmax.f32 %v16914_v60, %v8368_v11  ;;  %v11356_v13 = vunpack.i.h.bf16 %v11354_v16  ;;  %v11355_v55 = vunpack.i.l.bf16 %v11354_v16  ;;  %v11823_v60 = vld [vmem:[%s17235_s6 + $0x330] sm:$0xff]  }
 0x93b   : > { %v9555_v52 = vpack.c.bf16 %v8414_v58, %v8414_v58 }
 0x93c   : > { %v9554_v48 = vpack.c.bf16 %v8413_v22, %v8413_v22  ;;  %v8412_v21 = vmax.f32 %v16920_v34, %v11356_v13  ;;  %v8367_v44 = vsel %vm7078_vm12, %v11355_v55, %v11356_v13 }
 0x93d   : > { %v8411_v4 = vmax.f32 %v16928_v12, %v8367_v44  ;;  %10798 = vmatprep.mubr.msk.bf16.mxu0 %vm8519_vm0, %v9555_v52 }
 0x93e   : > { %v9429_v38 = vpack.c.bf16 %v8412_v21, %v8412_v21  ;;  %9672 = vmatmul.mubr.bf16.vlgmr.msra.gmra.mxu0 %v9554_v48 }
 0x93f   : > { %v9428_v56 = vpack.c.bf16 %v8411_v4, %v8411_v4  ;;  %9892 = vmatpush1.bf16.msra.mxu0 %v11822_v15 }
 0x940   : > { %10768 = vmatprep.mubr.msk.bf16.mxu1 %vm8519_vm0, %v9429_v38  ;;  %9893 = vmatprep.subr.bf16.mxu0 %v18037_v53 }
 0x941   : > { %9546 = vmatmul.mubr.bf16.vlgmr.msra.gmra.mxu1 %v9428_v56  ;;  %v17103_v34 = vpop.permute.xlu1 %11363 }
 0x942   : > { %9766 = vmatpush1.bf16.msra.mxu1 %v11823_v60  ;;  %v11366_v12 = vunpack.i.h.bf16 %v17103_v34  ;;  %v11369_v41 = vpop.permute.xlu0 %11368  ;;  %v11365_v62 = vunpack.i.l.bf16 %v17103_v34 }
 0x943   : > { %v11371_v49 = vunpack.i.h.bf16 %v11369_v41  ;;  %9894 = vmatpush1.bf16.msra.mxu0 %v11824_v5  ;;  %9767 = vmatprep.subr.bf16.mxu1 %v18037_v53  ;;  %v11370_v23 = vunpack.i.l.bf16 %v11369_v41 }
 0x944   : > { %v8416_v63 = vmax.f32 %v16954_v18, %v11366_v12  ;;  %9895 = vmatprep.subr.bf16.mxu0 %v18037_v53  ;;  %v11829_v18 = vld [vmem:[%s17235_s6 + $0x318] sm:$0xff]   ;;  %v8369_v29 = vsel %vm7078_vm12, %v11365_v62, %v11366_v12 }
 0x945   : > { %v8418_v42 = vmax.f32 %v16970_v17, %v11371_v49  ;;  %v11830_v17 = vld [vmem:[%s17235_s6 + $0x35c] sm:$0xff]   ;;  %v8370_v1 = vsel %vm7078_vm12, %v11370_v23, %v11371_v49  ;;  %v8415_v43 = vmax.f32 %v16967_v27, %v8369_v29 }
 0x946   : > { %v9681_v59 = vpack.c.bf16 %v8416_v63, %v8416_v63  ;;  %9768 = vmatpush1.bf16.msra.mxu1 %v11825_v57  ;;  %v8417_v14 = vmax.f32 %v16976_v26, %v8370_v1  ;;  %v10859_v63 = vld [vmem:[%s17236_s7] ss:$0 sm:$0xff] }
 0x947   : > { %v9807_v20 = vpack.c.bf16 %v8418_v42, %v8418_v42  ;;  %9896 = vmatpush1.bf16.msra.mxu0 %v11826_v9  ;;  %9769 = vmatprep.subr.bf16.mxu1 %v18037_v53  ;;  %v9680_v7 = vpack.c.bf16 %v8415_v43, %v8415_v43 }
 0x948   : > { %10828 = vmatprep.mubr.msk.bf16.mxu1 %vm8519_vm0, %v9681_v59  ;;  %9897 = vmatprep.subr.bf16.mxu0 %v18037_v53  ;;  %v9806_v50 = vpack.c.bf16 %v8417_v14, %v8417_v14 }
 0x949   : > { %10858 = vmatprep.mubr.msk.bf16.mxu0 %vm8519_vm0, %v9807_v20 }
 0x94a   : > { %9770 = vmatpush1.bf16.msra.mxu1 %v11827_v35 }
 0x94b   : > { %9898 = vmatpush1.bf16.msra.mxu0 %v11828_v51  ;;  %9771 = vmatprep.subr.bf16.mxu1 %v18037_v53 }
 0x94c   : > { %9899 = vmatprep.subr.bf16.mxu0 %v18037_v53 }
 0x94e   : > { %9772 = vmatpush1.bf16.msra.mxu1 %v11829_v18 }
 0x94f   : > { %9900 = vmatpush1.bf16.msra.mxu0 %v11830_v17  ;;  %9773 = vmatprep.subr.bf16.mxu1 %v18037_v53 }
 0x950   : > { %9901 = vmatprep.subr.bf16.mxu0 %v18037_v53 }
 0x952   : > { %9774 = vmatpush1.bf16.msra.mxu1 %v11831_v28 }
 0x953   : > { %9902 = vmatpush1.bf16.msra.mxu0 %v11832_v36  ;;  %9775 = vmatprep.subr.bf16.mxu1 %v18037_v53 }
 0x954   : > { %9903 = vmatprep.subr.bf16.mxu0 %v18037_v53 }
 0x956   : > { %9776 = vmatpush1.bf16.msra.mxu1 %v11833_v30 }
 0x957   : > { %9904 = vmatpush1.bf16.msra.mxu0 %v11834_v0  ;;  %9777 = vmatprep.subr.bf16.mxu1 %v18037_v53 }
 0x958   : > { %9905 = vmatprep.subr.bf16.mxu0 %v18037_v53 }
 0x95a   : > { %9778 = vmatpush1.bf16.msra.mxu1 %v11835_v39 }
 0x95b   : > { %9906 = vmatpush1.bf16.msra.mxu0 %v11836_v37  ;;  %9779 = vmatprep.subr.bf16.mxu1 %v18037_v53 }
 0x95c   : > { %9919 = vmatprep.subr.bf16.mxu0 %v18037_v53 }
 0x95e   : > { %9780 = vmatpush1.bf16.msra.mxu1 %v11837_v24 }
 0x95f   : > { %9920 = vmatpush2.bf16.msra.mxu0 %v9889_v32  ;;  %9793 = vmatprep.subr.bf16.mxu1 %v18037_v53 }
 0x960   : > { %9921 = vmatprep.subr.bf16.mxu0 %v18037_v53 }
 0x962   : > { %9794 = vmatpush2.bf16.msra.mxu1 %v9763_v8 }
 0x963   : > { %9922 = vmatpush2.bf16.msra.mxu0 %v11840_v61  ;;  %9795 = vmatprep.subr.bf16.mxu1 %v18037_v53 }
 0x966   : > { %9924 = vmatmul.mubr.bf16.vlgmr.msra.gmra.mxu0 %v9806_v50  ;;  %9796 = vmatpush2.bf16.msra.mxu1 %v11841_v47 }
 0x969   : > { %9798 = vmatmul.mubr.bf16.vlgmr.msra.gmra.mxu1 %v9680_v7 }
 0x96e   : > { %v9169_v3 = vpop.f32.mrf.mxu0 }
 0x970   : > { %v9171_v6 = vpop.f32.mrf.mxu0 }
 0x971   : > { %v9043_v26 = vpop.f32.mrf.mxu1 }
 0x972   : > { %v9049_v2 = vadd.f32 %v9043_v26, %v17083_v40  ;;  %v9172_v10 = vpop.f32.mrf.mxu0 }
 0x973   : > { %v9045_v25 = vpop.f32.mrf.mxu1 }
 0x974   : > { %v9173_v54 = vpop.f32.mrf.mxu0  ;;  %v9175_v33 = vadd.f32 %v9169_v3, %v9049_v2 }
 0x975   : > { %v9046_v45 = vpop.f32.mrf.mxu1 }
 0x977   : > { %v9047_v31 = vpop.f32.mrf.mxu1 }
 0x996   : > { %v9421_v27 = vpop.f32.mrf.mxu0 }
 0x998   : > { %v9423_v58 = vpop.f32.mrf.mxu0 }
 0x999   : > { %v9295_v11 = vpop.f32.mrf.mxu1 }
 0x99a   : > { %v9301_v53 = vadd.f32 %v9295_v11, %v9175_v33  ;;  %v9424_v16 = vpop.f32.mrf.mxu0 }
 0x99b   : > { %v9297_v22 = vpop.f32.mrf.mxu1 }
 0x99c   : > { %v9425_v13 = vpop.f32.mrf.mxu0  ;;  %v9427_v55 = vadd.f32 %v9421_v27, %v9301_v53 }
 0x99d   : > { %v9298_v52 = vpop.f32.mrf.mxu1 }
 0x99f   : > { %v9299_v15 = vpop.f32.mrf.mxu1 }
 0x9fe   : > { %v9673_v48 = vpop.f32.mrf.mxu0 }
 0xa00   : > { %v9675_v21 = vpop.f32.mrf.mxu0 }
 0xa01   : > { %v9547_v40 = vpop.f32.mrf.mxu1 }
 0xa02   : > { %v9676_v44 = vpop.f32.mrf.mxu0  ;;  %v9553_v5 = vadd.f32 %v9547_v40, %v9427_v55 }
 0xa03   : > { %v9549_v4 = vpop.f32.mrf.mxu1 }
 0xa04   : > { %v9677_v38 = vpop.f32.mrf.mxu0  ;;  %v9679_v41 = vadd.f32 %v9673_v48, %v9553_v5 }
 0xa05   : > { %v9550_v60 = vpop.f32.mrf.mxu1 }
 0xa07   : > { %v9551_v56 = vpop.f32.mrf.mxu1 }
 0xa26   : > { %v9925_v34 = vpop.f32.mrf.mxu0 }
 0xa28   : > { %v9927_v12 = vpop.f32.mrf.mxu0 }
 0xa29   : > { %v9799_v57 = vpop.f32.mrf.mxu1 }
 0xa2a   : > { %v9805_v49 = vadd.f32 %v9799_v57, %v9679_v41  ;;  %v9928_v9 = vpop.f32.mrf.mxu0 }
 0xa2b   : > { %v9801_v42 = vpop.f32.mrf.mxu1 }
 0xa2c   : > { %v9931_v59 = vadd.f32 %v9925_v34, %v9805_v49  ;;  %v9929_v35 = vpop.f32.mrf.mxu0 }
 0xa2d   : > { %v9802_v20 = vpop.f32.mrf.mxu1 }
 0xa2e   : > { %v9939_v51 = vadd.f32 %v10859_v63, %v9931_v59 }
 0xa2f   : > { %v9803_v18 = vpop.f32.mrf.mxu1 }
 0xa30   : > { %9941 = vst.msk [vmem:[%s298_s13] sm:$0xff] %vm9940_vm8, %v9939_v51 }
 0xa31   : > { %11898 = shalt.err (!%p11895_p3)
}
 0xa32   : > { %s11899_s0 = scalar_lea.hbm %s17194_s16, 128  ;;  %s11903_s8 = scalar_lea.hbm %s18045_s21, 256 }
 0xa33   : > { %p11900_p4 = scmp.ne.s32.totalorder %s17194_s16, %s11899_s0  ;;  %p11904_p9 = scmp.lt.s32.totalorder %s17194_s16, %s18045_s21 }
 0xa34   : > { %p11905_p10 = scmp.lt.s32.totalorder %s11903_s8, %s11899_s0 }
 0xa35   : > { %p11901_p7 = pnand %p11900_p4, %p12060_p5 }
 0xa36   : > { %p11906_p11 = por %p11905_p10, %p11904_p9 }
 0xa37   : > { %p11902_p8 = pneg %p11901_p7 }
 0xa39   : > { %p11907_p12 = pnand %p11906_p11, %p11902_p8 }
 0xa3b   : > { %11910 = shalt.err (!%p11907_p12)
}
 0xa3c   : > { %10972 = dma.vmem_to_hbm [thread:$0]  (%p12060_p5), %s9957_s17, 128, %s17194_s16, %s9943_s11  }
 0xa3d PF: > { %s18046_s12 = sld [smem:[#allocation12_spill]] }
 0xa3e   : > { %s18047_s25 = sld [smem:[#allocation10_spill]] }
 0xa43   : > { %p10978_p13 = scmp.ge.s32.totalorder %s18046_s12, 2 }
 0xa44   : > { %s9968_s20 = sand.u32 1, %s18047_s25  }
 0xa45   : > { %p10975_p0 = pnand %p10978_p13, %p12064_p6  ;;  %s9969_s13 = scalar_lea.sflag [#allocation8], %s9968_s20 }
 0xa47   : > { %p10976_p1 = pneg %p10975_p0 }
 0xa49   : > { %11928 = dma.done.wait (%p10976_p1), %s9969_s13, 128  }
 0xa4a   : > { %11930 = vsyncadd (%p10976_p1), %s9969_s13, 4294967168  ;;  %s18049_s30 = sld [smem:[#allocation13_spill]]  ;;  %s18052_s27 = smov %s11937_s28 }
 0xa4b   : > { %s18050_s24 = sld [smem:[#allocation11_spill]] }
 0xa4c   : > { %s18051_s29 = sld [smem:[#allocation14_spill]] }
 0xa50   : > { %p18_p2 = scmp.ge.s32.totalorder %s18049_s30, 4  }
 0xa51   : > { %s18053_s28 = smov %s18050_s24 }
 0xa52   :  { %20 = sbr.rel (!%p18_p2) target bundleno = 6 (0x6), region = 98 }
 0xa57   :  { %9974 = vsyncpa [#allocation8], 1 }
 0xa58   :  { %9976 = vsyncpa [#allocation8 + $0x1], 1 }

</bundles_post_ra>
